<compile_context>
chip_gen: v7x
topology: tpu7x:2x2x1
jax: 0.10.0
libtpu: 0.0.40
codegen_flags: <defaults>
</compile_context>

<pallas_src>
import jax
import jax.numpy as jnp
from jax.experimental import pallas as pl
from jax.experimental.pallas import tpu as pltpu


def _mlp_kernel(x_ref, w1_ref, s1_ref, b1_ref,
                w2_hbm, s2_ref, b2_ref,
                w3_hbm, s3_ref, b3_ref,
                w4_ref, b4_ref,
                o_ref,
                w2_buf, w3_buf, dma_sem):
    """Entire 4-layer MLP in one kernel invocation (no grid).

    x: [B, F] f32 (cast to bf16 in-body)
    w1/w2/w3: int8, BN folded, per-output-channel scale s_i (f32 [1, N_i])
    w4: bf16, b_i: f32 [1, N_i].
    w2/w3 arrive as raw HBM refs and are DMA'd into VMEM scratch so the copy
    overlaps with earlier layers' compute (P4 pattern).
    """
    # Kick off background DMAs for the later layers' weights immediately.
    cp2 = pltpu.make_async_copy(w2_hbm, w2_buf, dma_sem.at[0])
    cp3 = pltpu.make_async_copy(w3_hbm, w3_buf, dma_sem.at[1])
    cp2.start()
    cp3.start()

    x = x_ref[...].astype(jnp.bfloat16)

    # Layer 1: int8 dequant -> MXU matmul -> scale (quant + folded BN) + bias -> ReLU
    h = jnp.dot(x, w1_ref[...].astype(jnp.bfloat16),
                preferred_element_type=jnp.float32)
    h = jnp.maximum(h * s1_ref[...] + b1_ref[...], 0.0).astype(jnp.bfloat16)

    # Layer 2 (dropout = identity in eval mode)
    cp2.wait()
    h = jnp.dot(h, w2_buf[...].astype(jnp.bfloat16),
                preferred_element_type=jnp.float32)
    h = jnp.maximum(h * s2_ref[...] + b2_ref[...], 0.0).astype(jnp.bfloat16)

    # Layer 3 (dropout = identity in eval mode)
    cp3.wait()
    h = jnp.dot(h, w3_buf[...].astype(jnp.bfloat16),
                preferred_element_type=jnp.float32)
    h = jnp.maximum(h * s3_ref[...] + b3_ref[...], 0.0).astype(jnp.bfloat16)

    # Output layer: plain bf16 Linear.
    out = jnp.dot(h, w4_ref[...], preferred_element_type=jnp.float32) + b4_ref[...]
    o_ref[...] = out.astype(o_ref.dtype)


def multiclass_classification_forward(prepped, x):
    """Forward pass of MulticlassClassification (eval mode), fully fused."""
    B = x.shape[0]
    num_class = prepped["w4"].shape[1]

    # Pad the batch to a full 8-row sublane tile (unmasked loads/stores).
    Bp = ((B + 7) // 8) * 8
    if Bp != B:
        x = jnp.pad(x, ((0, Bp - B), (0, 0)))

    vmem = pl.BlockSpec(memory_space=pltpu.MemorySpace.VMEM)
    hbm = pl.BlockSpec(memory_space=pl.ANY)

    out = pl.pallas_call(
        _mlp_kernel,
        out_shape=jax.ShapeDtypeStruct((Bp, num_class), jnp.float32),
        in_specs=[vmem,                 # x (f32)
                  vmem, vmem, vmem,     # w1 (int8), s1, b1
                  hbm, vmem, vmem,      # w2 (int8, HBM -> manual DMA), s2, b2
                  hbm, vmem, vmem,      # w3 (int8, HBM -> manual DMA), s3, b3
                  vmem, vmem],          # w4 (bf16), b4
        out_specs=vmem,
        scratch_shapes=[
            pltpu.VMEM(prepped["w2"].shape, jnp.int8),   # w2 landing buffer
            pltpu.VMEM(prepped["w3"].shape, jnp.int8),   # w3 landing buffer
            pltpu.SemaphoreType.DMA((2,)),
        ],
        compiler_params=pltpu.CompilerParams(
            # ~2.6 MiB int8 weights resident + up to ~4 MiB bf16 dequant
            # intermediate + small activations; 24 MiB gives comfortable
            # headroom on every generation (v7x physical VMEM = 64 MiB).
            vmem_limit_bytes=24 * 1024 * 1024,
        ),
    )(x,
      prepped["w1"], prepped["s1"], prepped["b1"],
      prepped["w2"], prepped["s2"], prepped["b2"],
      prepped["w3"], prepped["s3"], prepped["b3"],
      prepped["w4"], prepped["b4"])
    return out[:B]


def prepare_inference_params(params, eps=1e-5):
    """One-time prep: fold eval-mode BN into W/b, int8-quantize w1..w3 per channel."""
    prepped = {}
    for li, has_bn in ((1, True), (2, True), (3, True), (4, False)):
        w = params[f"w{li}"].astype(jnp.float32)
        b = params[f"b{li}"].astype(jnp.float32)
        if has_bn:
            bn_scale = params[f"bn{li}_gamma"] * jax.lax.rsqrt(
                params[f"bn{li}_var"] + eps)
            bn_shift = params[f"bn{li}_beta"] - params[f"bn{li}_mean"] * bn_scale
            w = w * bn_scale[None, :]
            b = b * bn_scale + bn_shift
        if li in (1, 2, 3):
            # Symmetric per-output-channel int8 quantization of the folded weight.
            amax = jnp.max(jnp.abs(w), axis=0)
            qscale = jnp.maximum(amax, 1e-12) / 127.0
            q = jnp.clip(jnp.round(w / qscale[None, :]), -127.0, 127.0)
            prepped[f"w{li}"] = q.astype(jnp.int8)
            prepped[f"s{li}"] = qscale.reshape(1, -1).astype(jnp.float32)
        else:
            prepped[f"w{li}"] = w.astype(jnp.bfloat16)
        prepped[f"b{li}"] = b.reshape(1, -1).astype(jnp.float32)
    return prepped


def init_params(key, num_feature, num_class):
    dims = [(num_feature, 2048), (2048, 1024), (1024, 512), (512, num_class)]
    params = {}
    keys = jax.random.split(key, 2 * len(dims) + 3 * 4)
    ki = 0
    for li, (fan_in, fan_out) in enumerate(dims, start=1):
        bound = 1.0 / jnp.sqrt(jnp.float32(fan_in))
        params[f"w{li}"] = jax.random.uniform(
            keys[ki], (fan_in, fan_out), jnp.float32, -bound, bound); ki += 1
        params[f"b{li}"] = jax.random.uniform(
            keys[ki], (fan_out,), jnp.float32, -bound, bound); ki += 1
    # BatchNorm params (deterministic, non-trivial running stats).
    for li, n in zip((1, 2, 3), (2048, 1024, 512)):
        params[f"bn{li}_gamma"] = 1.0 + 0.1 * jax.random.normal(keys[ki], (n,)); ki += 1
        params[f"bn{li}_beta"] = 0.1 * jax.random.normal(keys[ki], (n,)); ki += 1
        params[f"bn{li}_mean"] = 0.05 * jax.random.normal(keys[ki], (n,)); ki += 1
        params[f"bn{li}_var"] = jnp.ones((n,), jnp.float32)
    return params


def reference_forward_matched(prepped, x):
    """Pure-JAX reference with the SAME int8 weights / bf16 math / f32 accumulation."""
    h = x.astype(jnp.bfloat16)
    for li in (1, 2, 3):
        w = prepped[f"w{li}"].astype(jnp.bfloat16)   # int8 -> bf16 is exact
        z = jnp.dot(h, w, preferred_element_type=jnp.float32)
        z = z * prepped[f"s{li}"] + prepped[f"b{li}"]
        h = jnp.maximum(z, 0.0).astype(jnp.bfloat16)
    out = jnp.dot(h, prepped["w4"], preferred_element_type=jnp.float32)
    return out + prepped["b4"]


def reference_forward_fp32(params, x, eps=1e-5):
    """Full-precision reference matching the PyTorch module (eval mode)."""
    def bn(h, li):
        scale = params[f"bn{li}_gamma"] * jax.lax.rsqrt(params[f"bn{li}_var"] + eps)
        shift = params[f"bn{li}_beta"] - params[f"bn{li}_mean"] * scale
        return h * scale + shift

    h = jnp.maximum(bn(x @ params["w1"] + params["b1"], 1), 0.0)
    h = jnp.maximum(bn(h @ params["w2"] + params["b2"], 2), 0.0)
    h = jnp.maximum(bn(h @ params["w3"] + params["b3"], 3), 0.0)
    return h @ params["w4"] + params["b4"]


if __name__ == "__main__":
    num_feature = 256
    num_class = 16
    batch = 4

    key = jax.random.PRNGKey(0)
    k_params, k_x = jax.random.split(key)
    params = init_params(k_params, num_feature, num_class)
    x = jax.random.normal(k_x, (batch, num_feature), jnp.float32)

    prepped = prepare_inference_params(params)

    out = multiclass_classification_forward(prepped, x)
    out = jax.block_until_ready(out)
    assert out.shape == (batch, num_class), out.shape
    assert bool(jnp.all(jnp.isfinite(out)))

    # Tight check vs. a precision-matched JAX reference (same int8/bf16 weights).
    ref_m = reference_forward_matched(prepped, x)
    assert jnp.allclose(out, ref_m, atol=2e-3, rtol=2e-3), \
        float(jnp.max(jnp.abs(out - ref_m)))

    # Fidelity check vs. the full fp32 module semantics (int8/bf16-weight tolerance).
    ref_fp32 = reference_forward_fp32(params, x)
    assert jnp.allclose(out, ref_fp32, atol=5e-2, rtol=5e-2), \
        float(jnp.max(jnp.abs(out - ref_fp32)))

    print("KERNEL_OK")
</pallas_src>

<mosaic_0001>
module attributes {stable_mosaic.version = 11 : i64} {
  func.func @_mlp_kernel(%arg0: memref<8x256xf32, #tpu.memory_space<vmem>>, %arg1: memref<256x2048xi8, #tpu.memory_space<vmem>>, %arg2: memref<1x2048xf32, #tpu.memory_space<vmem>>, %arg3: memref<1x2048xf32, #tpu.memory_space<vmem>>, %arg4: memref<2048x1024xi8, #tpu.memory_space<any>>, %arg5: memref<1x1024xf32, #tpu.memory_space<vmem>>, %arg6: memref<1x1024xf32, #tpu.memory_space<vmem>>, %arg7: memref<1024x512xi8, #tpu.memory_space<any>>, %arg8: memref<1x512xf32, #tpu.memory_space<vmem>>, %arg9: memref<1x512xf32, #tpu.memory_space<vmem>>, %arg10: memref<512x16xbf16, #tpu.memory_space<vmem>>, %arg11: memref<1x16xf32, #tpu.memory_space<vmem>>, %arg12: memref<8x16xf32, #tpu.memory_space<vmem>>, %arg13: memref<2048x1024xi8, #tpu.memory_space<vmem>>, %arg14: memref<1024x512xi8, #tpu.memory_space<vmem>>, %arg15: memref<2x!tpu.dma_semaphore, #tpu.memory_space<semaphore_mem>>) attributes {dimension_semantics = [], scalar_prefetch = 0 : i64, scratch_operands = 3 : i64, tpu.core_type = #tpu.core_type<tc>} {
    %c0_i32 = arith.constant 0 : i32
    %0 = tpu.memref_slice %arg15[%c0_i32] : memref<2x!tpu.dma_semaphore, #tpu.memory_space<semaphore_mem>> -> memref<1x!tpu.dma_semaphore, #tpu.memory_space<semaphore_mem>>
    %1 = tpu.memref_squeeze %0 : memref<1x!tpu.dma_semaphore, #tpu.memory_space<semaphore_mem>> -> memref<!tpu.dma_semaphore, #tpu.memory_space<semaphore_mem>>
    tpu.enqueue_dma source(%arg4 : memref<2048x1024xi8, #tpu.memory_space<any>>) target(%arg13 : memref<2048x1024xi8, #tpu.memory_space<vmem>>) target_semaphore(%1 : memref<!tpu.dma_semaphore, #tpu.memory_space<semaphore_mem>>)
    %c1_i32 = arith.constant 1 : i32
    %2 = tpu.memref_slice %arg15[%c1_i32] : memref<2x!tpu.dma_semaphore, #tpu.memory_space<semaphore_mem>> -> memref<1x!tpu.dma_semaphore, #tpu.memory_space<semaphore_mem>>
    %3 = tpu.memref_squeeze %2 : memref<1x!tpu.dma_semaphore, #tpu.memory_space<semaphore_mem>> -> memref<!tpu.dma_semaphore, #tpu.memory_space<semaphore_mem>>
    tpu.enqueue_dma source(%arg7 : memref<1024x512xi8, #tpu.memory_space<any>>) target(%arg14 : memref<1024x512xi8, #tpu.memory_space<vmem>>) target_semaphore(%3 : memref<!tpu.dma_semaphore, #tpu.memory_space<semaphore_mem>>)
    %c0 = arith.constant 0 : index
    %c0_0 = arith.constant 0 : index
    %4 = vector.load %arg0[%c0, %c0_0] : memref<8x256xf32, #tpu.memory_space<vmem>>, vector<8x256xf32>
    %5 = arith.truncf %4 : vector<8x256xf32> to vector<8x256xbf16>
    %c0_1 = arith.constant 0 : index
    %c0_2 = arith.constant 0 : index
    %6 = vector.load %arg1[%c0_1, %c0_2] : memref<256x2048xi8, #tpu.memory_space<vmem>>, vector<256x2048xi8>
    %7 = arith.sitofp %6 : vector<256x2048xi8> to vector<256x2048xbf16>
    %cst = arith.constant dense<0.000000e+00> : vector<8x2048xf32>
    %8 = tpu.matmul %5, %7, %cst {dimension_numbers = #tpu.dot_dimension_numbers<[1], [0], [0], [1], [0, 0, 1, 1], [], []>} : vector<8x256xbf16>, vector<256x2048xbf16>, vector<8x2048xf32> -> vector<8x2048xf32>
    %c0_3 = arith.constant 0 : index
    %c0_4 = arith.constant 0 : index
    %9 = vector.load %arg2[%c0_3, %c0_4] : memref<1x2048xf32, #tpu.memory_space<vmem>>, vector<1x2048xf32>
    %10 = vector.broadcast %9 : vector<1x2048xf32> to vector<8x2048xf32>
    %11 = arith.mulf %8, %10 : vector<8x2048xf32>
    %c0_5 = arith.constant 0 : index
    %c0_6 = arith.constant 0 : index
    %12 = vector.load %arg3[%c0_5, %c0_6] : memref<1x2048xf32, #tpu.memory_space<vmem>>, vector<1x2048xf32>
    %13 = vector.broadcast %12 : vector<1x2048xf32> to vector<8x2048xf32>
    %14 = arith.addf %11, %13 : vector<8x2048xf32>
    %cst_7 = arith.constant 0.000000e+00 : f32
    %15 = vector.broadcast %cst_7 : f32 to vector<8x2048xf32>
    %16 = arith.maximumf %14, %15 : vector<8x2048xf32>
    %17 = arith.truncf %16 : vector<8x2048xf32> to vector<8x2048xbf16>
    %c0_i32_8 = arith.constant 0 : i32
    %18 = tpu.memref_slice %arg15[%c0_i32_8] : memref<2x!tpu.dma_semaphore, #tpu.memory_space<semaphore_mem>> -> memref<1x!tpu.dma_semaphore, #tpu.memory_space<semaphore_mem>>
    %19 = tpu.memref_squeeze %18 : memref<1x!tpu.dma_semaphore, #tpu.memory_space<semaphore_mem>> -> memref<!tpu.dma_semaphore, #tpu.memory_space<semaphore_mem>>
    tpu.wait_dma2 semaphore(%19 : memref<!tpu.dma_semaphore, #tpu.memory_space<semaphore_mem>>) src(%arg4 : memref<2048x1024xi8, #tpu.memory_space<any>>) dst(%arg13 : memref<2048x1024xi8, #tpu.memory_space<vmem>>)
    %c0_9 = arith.constant 0 : index
    %c0_10 = arith.constant 0 : index
    %20 = vector.load %arg13[%c0_9, %c0_10] : memref<2048x1024xi8, #tpu.memory_space<vmem>>, vector<2048x1024xi8>
    %21 = arith.sitofp %20 : vector<2048x1024xi8> to vector<2048x1024xbf16>
    %cst_11 = arith.constant dense<0.000000e+00> : vector<8x1024xf32>
    %22 = tpu.matmul %17, %21, %cst_11 {dimension_numbers = #tpu.dot_dimension_numbers<[1], [0], [0], [1], [0, 0, 1, 1], [], []>} : vector<8x2048xbf16>, vector<2048x1024xbf16>, vector<8x1024xf32> -> vector<8x1024xf32>
    %c0_12 = arith.constant 0 : index
    %c0_13 = arith.constant 0 : index
    %23 = vector.load %arg5[%c0_12, %c0_13] : memref<1x1024xf32, #tpu.memory_space<vmem>>, vector<1x1024xf32>
    %24 = vector.broadcast %23 : vector<1x1024xf32> to vector<8x1024xf32>
    %25 = arith.mulf %22, %24 : vector<8x1024xf32>
    %c0_14 = arith.constant 0 : index
    %c0_15 = arith.constant 0 : index
    %26 = vector.load %arg6[%c0_14, %c0_15] : memref<1x1024xf32, #tpu.memory_space<vmem>>, vector<1x1024xf32>
    %27 = vector.broadcast %26 : vector<1x1024xf32> to vector<8x1024xf32>
    %28 = arith.addf %25, %27 : vector<8x1024xf32>
    %cst_16 = arith.constant 0.000000e+00 : f32
    %29 = vector.broadcast %cst_16 : f32 to vector<8x1024xf32>
    %30 = arith.maximumf %28, %29 : vector<8x1024xf32>
    %31 = arith.truncf %30 : vector<8x1024xf32> to vector<8x1024xbf16>
    %c1_i32_17 = arith.constant 1 : i32
    %32 = tpu.memref_slice %arg15[%c1_i32_17] : memref<2x!tpu.dma_semaphore, #tpu.memory_space<semaphore_mem>> -> memref<1x!tpu.dma_semaphore, #tpu.memory_space<semaphore_mem>>
    %33 = tpu.memref_squeeze %32 : memref<1x!tpu.dma_semaphore, #tpu.memory_space<semaphore_mem>> -> memref<!tpu.dma_semaphore, #tpu.memory_space<semaphore_mem>>
    tpu.wait_dma2 semaphore(%33 : memref<!tpu.dma_semaphore, #tpu.memory_space<semaphore_mem>>) src(%arg7 : memref<1024x512xi8, #tpu.memory_space<any>>) dst(%arg14 : memref<1024x512xi8, #tpu.memory_space<vmem>>)
    %c0_18 = arith.constant 0 : index
    %c0_19 = arith.constant 0 : index
    %34 = vector.load %arg14[%c0_18, %c0_19] : memref<1024x512xi8, #tpu.memory_space<vmem>>, vector<1024x512xi8>
    %35 = arith.sitofp %34 : vector<1024x512xi8> to vector<1024x512xbf16>
    %cst_20 = arith.constant dense<0.000000e+00> : vector<8x512xf32>
    %36 = tpu.matmul %31, %35, %cst_20 {dimension_numbers = #tpu.dot_dimension_numbers<[1], [0], [0], [1], [0, 0, 1, 1], [], []>} : vector<8x1024xbf16>, vector<1024x512xbf16>, vector<8x512xf32> -> vector<8x512xf32>
    %c0_21 = arith.constant 0 : index
    %c0_22 = arith.constant 0 : index
    %37 = vector.load %arg8[%c0_21, %c0_22] : memref<1x512xf32, #tpu.memory_space<vmem>>, vector<1x512xf32>
    %38 = vector.broadcast %37 : vector<1x512xf32> to vector<8x512xf32>
    %39 = arith.mulf %36, %38 : vector<8x512xf32>
    %c0_23 = arith.constant 0 : index
    %c0_24 = arith.constant 0 : index
    %40 = vector.load %arg9[%c0_23, %c0_24] : memref<1x512xf32, #tpu.memory_space<vmem>>, vector<1x512xf32>
    %41 = vector.broadcast %40 : vector<1x512xf32> to vector<8x512xf32>
    %42 = arith.addf %39, %41 : vector<8x512xf32>
    %cst_25 = arith.constant 0.000000e+00 : f32
    %43 = vector.broadcast %cst_25 : f32 to vector<8x512xf32>
    %44 = arith.maximumf %42, %43 : vector<8x512xf32>
    %45 = arith.truncf %44 : vector<8x512xf32> to vector<8x512xbf16>
    %c0_26 = arith.constant 0 : index
    %c0_27 = arith.constant 0 : index
    %46 = vector.load %arg10[%c0_26, %c0_27] : memref<512x16xbf16, #tpu.memory_space<vmem>>, vector<512x16xbf16>
    %cst_28 = arith.constant dense<0.000000e+00> : vector<8x16xf32>
    %47 = tpu.matmul %45, %46, %cst_28 {dimension_numbers = #tpu.dot_dimension_numbers<[1], [0], [0], [1], [0, 0, 1, 1], [], []>} : vector<8x512xbf16>, vector<512x16xbf16>, vector<8x16xf32> -> vector<8x16xf32>
    %c0_29 = arith.constant 0 : index
    %c0_30 = arith.constant 0 : index
    %48 = vector.load %arg11[%c0_29, %c0_30] : memref<1x16xf32, #tpu.memory_space<vmem>>, vector<1x16xf32>
    %49 = vector.broadcast %48 : vector<1x16xf32> to vector<8x16xf32>
    %50 = arith.addf %47, %49 : vector<8x16xf32>
    %c0_31 = arith.constant 0 : index
    %c0_32 = arith.constant 0 : index
    %51 = vector.load %arg12[%c0_31, %c0_32] : memref<8x16xf32, #tpu.memory_space<vmem>>, vector<8x16xf32>
    tpu.vector_store %arg12[%c0_31, %c0_32], %50 {strides = array<i32>} : memref<8x16xf32, #tpu.memory_space<vmem>>, vector<8x16xf32>,
    return
  }
}

</mosaic_0001>

<bundles_post_ra>
// kernel: tpu_custom_call.1
= control target key start
LH: loop header
LB: loop body
LE: loop exit
PB: predicated region body
PF: predicated region fallthrough
CT: control target
= control target key end

     0   :  { %17 = vsyncpa [#allocation6], 0  ;;  %s6319_s0 = inlined_call_operand.hbm [shape: f32[8,256], index: 0, kind: input, shape index: {}]   ;;  %s6320_s1 = inlined_call_operand.hbm [shape: s8[256,2048], index: 1, kind: input, shape index: {}]   ;;  %s6321_s2 = inlined_call_operand.hbm [shape: f32[1,2048], index: 2, kind: input, shape index: {}]   ;;  %s6322_s3 = inlined_call_operand.hbm [shape: f32[1,2048], index: 3, kind: input, shape index: {}]   ;;  %s6323_s4 = inlined_call_operand.hbm [shape: s8[2048,1024], index: 4, kind: input, shape index: {}]   ;;  %s6324_s5 = inlined_call_operand.hbm [shape: f32[1,1024], index: 5, kind: input, shape index: {}]   ;;  %s6325_s6 = inlined_call_operand.hbm [shape: f32[1,1024], index: 6, kind: input, shape index: {}]   ;;  %s6326_s7 = inlined_call_operand.hbm [shape: s8[1024,512], index: 7, kind: input, shape index: {}]   ;;  %s6327_s8 = inlined_call_operand.hbm [shape: f32[1,512], index: 8, kind: input, shape index: {}]   ;;  %s6328_s9 = inlined_call_operand.hbm [shape: f32[1,512], index: 9, kind: input, shape index: {}]   ;;  %s6329_s10 = inlined_call_operand.vmem [shape: bf16[512,16], index: 10, kind: input, shape index: {}]   ;;  %s6330_s11 = inlined_call_operand.hbm [shape: f32[1,16], index: 11, kind: input, shape index: {}]   ;;  %s6331_s12 = inlined_call_operand.hbm [shape: f32[8,16], index: 12, kind: output, shape index: {}]  }
   0x1   :  { %18 = vsyncpa [#allocation9], 0 }
   0x2   :  { %19 = vsyncpa [#allocation12], 0 }
   0x3   :  { %20 = vsyncpa [#allocation15], 0 }
   0x4   :  { %21 = vsyncpa [#allocation18], 0 }
   0x5   :  { %22 = vsyncpa [#allocation7], 0  ;;  %s5780_s21 = smov [#allocation8]   ;;  %s5500_s25 = scalar_lea.hbm %s6320_s1, 16384 }
   0x6   :  { %s38_s22 = sshll.u32 %s5780_s21, 4  ;;  %p5501_p0 = scmp.ne.s32.totalorder %s6320_s1, %s5500_s25  ;;  %s39_s22 = int_to_ptr.vmem [resolvable:$true] %s38_s22 }
   0x7   :  { %p5504_p1 = scmp.lt.u32.totalorder %s5500_s25, %s6320_s1 }
   0x9   :  { %p5506_p2 = pnand %p5504_p1, %p5501_p0 }
   0xb   :  { %5509 = shalt.err (!%p5506_p2)
}
   0xc   :  { %s5510_s30 = scalar_lea.vmem %s39_s22, 16384  ;;  %p5515_p4 = scmp.lt.s32.totalorder %s39_s22, %s39_s22 }
   0xd   :  { %p5511_p3 = scmp.ne.s32.totalorder %s39_s22, %s5510_s30  ;;  %p5516_p5 = scmp.lt.s32.totalorder %s5510_s30, %s5510_s30 }
   0xf   :  { %p5517_p6 = por %p5516_p5, %p5515_p4 }
  0x11   :  { %p5518_p7 = pnand %p5517_p6, %p5511_p3 }
  0x13   :  { %5521 = shalt.err (!%p5518_p7)
}
  0x14   :  { %s5781_s13 = smov 2048   ;;  %s5782_s14 = smov 128  }
  0x15   :  { %44 = dma.hbm_to_vmem [thread:$0]  %s6320_s1, 16384, %s39_s22, [#allocation9], %s5781_s13, %s5781_s13, %s5782_s14  }
  0x16   :  { %s5783_s17 = smov [#allocation11]   ;;  %s5784_s19 = smov [#allocation14]  }
  0x17   :  { %s61_s18 = sshll.u32 %s5783_s17, 4  ;;  %s81_s20 = sshll.u32 %s5784_s19, 4  ;;  %s62_s18 = int_to_ptr.vmem [resolvable:$true] %s61_s18  ;;  %s82_s20 = int_to_ptr.vmem [resolvable:$true] %s81_s20 }
  0x18   :  { %s5522_s24 = scalar_lea.hbm %s6322_s3, 256 }
  0x19   :  { %p5523_p8 = scmp.ne.s32.totalorder %s6322_s3, %s5522_s24  ;;  %p5526_p9 = scmp.lt.u32.totalorder %s5522_s24, %s6322_s3 }
  0x1b   :  { %p5528_p10 = pnand %p5526_p9, %p5523_p8 }
  0x1d   :  { %5531 = shalt.err (!%p5528_p10)
}
  0x1e   :  { %s5532_s1 = scalar_lea.vmem %s62_s18, 256  ;;  %p5537_p12 = scmp.lt.s32.totalorder %s62_s18, %s62_s18 }
  0x1f   :  { %p5533_p11 = scmp.ne.s32.totalorder %s62_s18, %s5532_s1  ;;  %p5538_p13 = scmp.lt.s32.totalorder %s5532_s1, %s5532_s1 }
  0x21   :  { %p5539_p0 = por %p5538_p13, %p5537_p12 }
  0x23   :  { %p5540_p1 = pnand %p5539_p0, %p5533_p11 }
  0x25   :  { %5543 = shalt.err (!%p5540_p1)
}
  0x26   :  { %64 = dma.hbm_to_vmem [thread:$0]  %s6322_s3, 256, %s62_s18, [#allocation12]  }
  0x27   :  { %s5544_s14 = scalar_lea.hbm %s6325_s6, 128 }
  0x28   :  { %p5545_p2 = scmp.ne.s32.totalorder %s6325_s6, %s5544_s14  ;;  %p5548_p3 = scmp.lt.u32.totalorder %s5544_s14, %s6325_s6 }
  0x2a   :  { %p5550_p4 = pnand %p5548_p3, %p5545_p2 }
  0x2c   :  { %5553 = shalt.err (!%p5550_p4)
}
  0x2d   :  { %s5554_s21 = scalar_lea.vmem %s82_s20, 128  ;;  %p5559_p6 = scmp.lt.s32.totalorder %s82_s20, %s82_s20 }
  0x2e   :  { %p5555_p5 = scmp.ne.s32.totalorder %s82_s20, %s5554_s21  ;;  %p5560_p7 = scmp.lt.s32.totalorder %s5554_s21, %s5554_s21 }
  0x30   :  { %p5561_p8 = por %p5560_p7, %p5559_p6 }
  0x32   :  { %p5562_p9 = pnand %p5561_p8, %p5555_p5 }
  0x34   :  { %5565 = shalt.err (!%p5562_p9)
}
  0x35   :  { %84 = dma.hbm_to_vmem [thread:$0]  %s6325_s6, 128, %s82_s20, [#allocation15]  }
  0x36   :  { %s5785_s23 = smov [#allocation17]   ;;  %s5786_s25 = smov [#allocation5]  }
  0x37   :  { %s101_s24 = sshll.u32 %s5785_s23, 4  ;;  %s29_s26 = sshll.u32 %s5786_s25, 4  ;;  %s102_s24 = int_to_ptr.vmem [resolvable:$true] %s101_s24  ;;  %s30_s26 = int_to_ptr.vmem [resolvable:$true] %s29_s26 }
  0x38   :  { %s5566_s1 = scalar_lea.hbm %s6328_s9, 64 }
  0x39   :  { %p5567_p10 = scmp.ne.s32.totalorder %s6328_s9, %s5566_s1  ;;  %p5570_p11 = scmp.lt.u32.totalorder %s5566_s1, %s6328_s9 }
  0x3b   :  { %p5572_p12 = pnand %p5570_p11, %p5567_p10 }
  0x3d   :  { %5575 = shalt.err (!%p5572_p12)
}
  0x3e   :  { %s5576_s6 = scalar_lea.vmem %s102_s24, 64  ;;  %p5581_p0 = scmp.lt.s32.totalorder %s102_s24, %s102_s24 }
  0x3f   :  { %p5577_p13 = scmp.ne.s32.totalorder %s102_s24, %s5576_s6  ;;  %p5582_p1 = scmp.lt.s32.totalorder %s5576_s6, %s5576_s6 }
  0x41   :  { %p5583_p2 = por %p5582_p1, %p5581_p0 }
  0x43   :  { %p5584_p3 = pnand %p5583_p2, %p5577_p13 }
  0x45   :  { %5587 = shalt.err (!%p5584_p3)
}
  0x46   :  { %104 = dma.hbm_to_vmem [thread:$0]  %s6328_s9, 64, %s102_s24, [#allocation18]  }
  0x47   :  { %s5588_s17 = scalar_lea.hbm %s6319_s0, 256 }
  0x48   :  { %p5589_p4 = scmp.ne.s32.totalorder %s6319_s0, %s5588_s17  ;;  %p5592_p5 = scmp.lt.u32.totalorder %s5588_s17, %s6319_s0 }
  0x4a   :  { %p5594_p6 = pnand %p5592_p5, %p5589_p4 }
  0x4c   :  { %5597 = shalt.err (!%p5594_p6)
}
  0x4d   :  { %s5598_s23 = scalar_lea.vmem %s30_s26, 256  ;;  %p5603_p8 = scmp.lt.s32.totalorder %s30_s26, %s30_s26 }
  0x4e   :  { %p5599_p7 = scmp.ne.s32.totalorder %s30_s26, %s5598_s23  ;;  %p5604_p9 = scmp.lt.s32.totalorder %s5598_s23, %s5598_s23 }
  0x50   :  { %p5605_p10 = por %p5604_p9, %p5603_p8 }
  0x52   :  { %p5606_p11 = pnand %p5605_p10, %p5599_p7 }
  0x54   :  { %5609 = shalt.err (!%p5606_p11)
}
  0x55   :  { %32 = dma.hbm_to_vmem [thread:$0]  %s6319_s0, 256, %s30_s26, [#allocation6]  }
  0x56   :  { %s5787_s25 = smov [#allocation10]   ;;  %s5788_s28 = smov [#allocation13]  }
  0x57   :  { %s51_s27 = sshll.u32 %s5787_s25, 4  ;;  %s71_s1 = sshll.u32 %s5788_s28, 4  ;;  %s52_s27 = int_to_ptr.vmem [resolvable:$true] %s51_s27  ;;  %s72_s1 = int_to_ptr.vmem [resolvable:$true] %s71_s1 }
  0x58   :  { %s5610_s30 = scalar_lea.hbm %s6321_s2, 256 }
  0x59   :  { %p5611_p12 = scmp.ne.s32.totalorder %s6321_s2, %s5610_s30  ;;  %p5614_p13 = scmp.lt.u32.totalorder %s5610_s30, %s6321_s2 }
  0x5b   :  { %p5616_p0 = pnand %p5614_p13, %p5611_p12 }
  0x5d   :  { %5619 = shalt.err (!%p5616_p0)
}
  0x5e   :  { %s5620_s0 = scalar_lea.vmem %s52_s27, 256  ;;  %p5625_p2 = scmp.lt.s32.totalorder %s52_s27, %s52_s27 }
  0x5f   :  { %p5621_p1 = scmp.ne.s32.totalorder %s52_s27, %s5620_s0  ;;  %p5626_p3 = scmp.lt.s32.totalorder %s5620_s0, %s5620_s0 }
  0x61   :  { %p5627_p4 = por %p5626_p3, %p5625_p2 }
  0x63   :  { %p5628_p5 = pnand %p5627_p4, %p5621_p1 }
  0x65   :  { %5631 = shalt.err (!%p5628_p5)
}
  0x66   :  { %54 = dma.hbm_to_vmem [thread:$0]  %s6321_s2, 256, %s52_s27, [#allocation9]  }
  0x67   :  { %s5632_s19 = scalar_lea.hbm %s6324_s5, 128 }
  0x68   :  { %p5633_p6 = scmp.ne.s32.totalorder %s6324_s5, %s5632_s19  ;;  %p5636_p7 = scmp.lt.u32.totalorder %s5632_s19, %s6324_s5 }
  0x6a   :  { %p5638_p8 = pnand %p5636_p7, %p5633_p6 }
  0x6c   :  { %5641 = shalt.err (!%p5638_p8)
}
  0x6d   :  { %s5642_s9 = scalar_lea.vmem %s72_s1, 128  ;;  %p5647_p10 = scmp.lt.s32.totalorder %s72_s1, %s72_s1 }
  0x6e   :  { %p5643_p9 = scmp.ne.s32.totalorder %s72_s1, %s5642_s9  ;;  %p5648_p11 = scmp.lt.s32.totalorder %s5642_s9, %s5642_s9 }
  0x70   :  { %p5649_p12 = por %p5648_p11, %p5647_p10 }
  0x72   :  { %p5650_p13 = pnand %p5649_p12, %p5643_p9 }
  0x74   :  { %5653 = shalt.err (!%p5650_p13)
}
  0x75   :  { %74 = dma.hbm_to_vmem [thread:$0]  %s6324_s5, 128, %s72_s1, [#allocation12]  }
  0x76   :  { %s5789_s25 = smov [#allocation16]   ;;  %s5790_s28 = smov [#allocation19]  }
  0x77   :  { %s91_s27 = sshll.u32 %s5789_s25, 4  ;;  %s113_s22 = sshll.u32 %s5790_s28, 4  ;;  %s92_s27 = int_to_ptr.vmem [resolvable:$true] %s91_s27  ;;  %s114_s22 = int_to_ptr.vmem [resolvable:$true] %s113_s22 }
  0x78   :  { %s5654_s13 = scalar_lea.hbm %s6327_s8, 64 }
  0x79   :  { %p5655_p0 = scmp.ne.s32.totalorder %s6327_s8, %s5654_s13  ;;  %p5658_p1 = scmp.lt.u32.totalorder %s5654_s13, %s6327_s8 }
  0x7b   :  { %p5660_p2 = pnand %p5658_p1, %p5655_p0 }
  0x7d   :  { %5663 = shalt.err (!%p5660_p2)
}
  0x7e   :  { %s5664_s5 = scalar_lea.vmem %s92_s27, 64  ;;  %p5669_p4 = scmp.lt.s32.totalorder %s92_s27, %s92_s27 }
  0x7f   :  { %p5665_p3 = scmp.ne.s32.totalorder %s92_s27, %s5664_s5  ;;  %p5670_p5 = scmp.lt.s32.totalorder %s5664_s5, %s5664_s5 }
  0x81   :  { %p5671_p6 = por %p5670_p5, %p5669_p4 }
  0x83   :  { %p5672_p7 = pnand %p5671_p6, %p5665_p3 }
  0x85   :  { %5675 = shalt.err (!%p5672_p7)
}
  0x86   :  { %94 = dma.hbm_to_vmem [thread:$0]  %s6327_s8, 64, %s92_s27, [#allocation15]  }
  0x87   :  { %s5676_s17 = scalar_lea.hbm %s6330_s11, 16 }
  0x88   :  { %p5677_p8 = scmp.ne.s32.totalorder %s6330_s11, %s5676_s17  ;;  %p5680_p9 = scmp.lt.u32.totalorder %s5676_s17, %s6330_s11 }
  0x8a   :  { %p5682_p10 = pnand %p5680_p9, %p5677_p8 }
  0x8c   :  { %5685 = shalt.err (!%p5682_p10)
}
  0x8d   :  { %s5686_s23 = scalar_lea.vmem %s114_s22, 16  ;;  %s5690_s9 = scalar_lea.vmem %s114_s22, 32 }
  0x8e   :  { %p5687_p11 = scmp.ne.s32.totalorder %s114_s22, %s5686_s23  ;;  %p5691_p12 = scmp.lt.s32.totalorder %s114_s22, %s114_s22 }
  0x8f   :  { %p5692_p13 = scmp.lt.s32.totalorder %s5690_s9, %s5686_s23 }
  0x91   :  { %p5693_p0 = por %p5692_p13, %p5691_p12 }
  0x93   :  { %p5694_p1 = pnand %p5693_p0, %p5687_p11 }
  0x95   :  { %5697 = shalt.err (!%p5694_p1)
}
  0x96   :  { %116 = dma.hbm_to_vmem [thread:$0]  %s6330_s11, 16, %s114_s22, [#allocation18]  }
  0x97   :  { %5764 = dma.done.wait [#allocation6], 256  }
  0x98   :  { %5765 = vsyncadd [#allocation6], 4294967040 }
  0x99   :  { %5766 = dma.done.wait [#allocation9], 16640  }
  0x9a   :  { %5767 = vsyncadd [#allocation9], 4294950656 }
  0x9b   :  { %5768 = dma.done.wait [#allocation12], 384  }
  0x9c   :  { %5769 = vsyncadd [#allocation12], 4294966912 }
  0x9d   :  { %5770 = dma.done.wait [#allocation15], 192  }
  0x9e   :  { %5771 = vsyncadd [#allocation15], 4294967104 }
  0x9f   :  { %5772 = dma.done.wait [#allocation18], 80  }
  0xa0   :  { %5773 = vsyncadd [#allocation18], 4294967216  ;;  %v173_v0 = vld [vmem:[#allocation8 + $0x8] sm:$0xff]  ;;  %v175_v1 = vld [vmem:[#allocation8 + $0x18] sm:$0xff]  ;;  %s5791_s11 = smov [#allocation2]   ;;  %s5792_s25 = smov [#allocation3]  }
  0xa1   :  { %v172_v2 = vld [vmem:[#allocation8] sm:$0xff]  ;;  %v301_v3 = vunpack.c.l.s8.bf16 %v173_v0  ;;  %v317_v4 = vunpack.c.h.s8.bf16 %v173_v0  ;;  %v303_v5 = vunpack.c.l.s8.bf16 %v175_v1  ;;  %v319_v6 = vunpack.c.h.s8.bf16 %v175_v1  ;;  %v174_v7 = vld [vmem:[#allocation8 + $0x10] sm:$0xff]  ;;  %v189_v10 = vld [vmem:[#allocation8 + $0x88] sm:$0xff]  ;;  %s152_s24 = sshll.u32 %s5791_s11, 4  ;;  %s164_s27 = sshll.u32 %s5792_s25, 4  ;;  %s153_s24 = int_to_ptr.vmem [resolvable:$true] %s152_s24  ;;  %s165_s27 = int_to_ptr.vmem [resolvable:$true] %s164_s27 }
  0xa2   :  { %v300_v8 = vunpack.c.l.s8.bf16 %v172_v2  ;;  %v302_v9 = vunpack.c.l.s8.bf16 %v174_v7  ;;  %v191_v11 = vld [vmem:[#allocation8 + $0x98] sm:$0xff]  ;;  %v316_v12 = vunpack.c.h.s8.bf16 %v172_v2  ;;  %v318_v13 = vunpack.c.h.s8.bf16 %v174_v7  ;;  %v188_v16 = vld [vmem:[#allocation8 + $0x80] sm:$0xff]  ;;  %v190_v17 = vld [vmem:[#allocation8 + $0x90] sm:$0xff]  ;;  %s5698_s29 = scalar_lea.hbm %s6323_s4, 65536 }
  0xa3   :  { %556 = vmatprep.subr.bf16.mxu0 %v301_v3  ;;  %597 = vmatprep.subr.bf16.mxu1 %v303_v5  ;;  %v333_v14 = vunpack.c.l.s8.bf16 %v189_v10  ;;  %v335_v15 = vunpack.c.l.s8.bf16 %v191_v11  ;;  %v332_v18 = vunpack.c.l.s8.bf16 %v188_v16  ;;  %v334_v19 = vunpack.c.l.s8.bf16 %v190_v17  ;;  %v205_v22 = vld [vmem:[#allocation8 + $0x108] sm:$0xff]  ;;  %v207_v23 = vld [vmem:[#allocation8 + $0x118] sm:$0xff]  ;;  %v204_v28 = vld [vmem:[#allocation8 + $0x100] sm:$0xff]  ;;  %p5699_p2 = scmp.ne.s32.totalorder %s6323_s4, %s5698_s29  ;;  %p5702_p3 = scmp.lt.u32.totalorder %s5698_s29, %s6323_s4 }
  0xa4   :  { %557 = vmatpush1.bf16.msra.mxu0 %v300_v8  ;;  %598 = vmatpush1.bf16.msra.mxu1 %v302_v9  ;;  %v349_v20 = vunpack.c.h.s8.bf16 %v189_v10  ;;  %v351_v21 = vunpack.c.h.s8.bf16 %v191_v11  ;;  %v348_v24 = vunpack.c.h.s8.bf16 %v188_v16  ;;  %v350_v25 = vunpack.c.h.s8.bf16 %v190_v17  ;;  %v206_v29 = vld [vmem:[#allocation8 + $0x110] sm:$0xff]  ;;  %v169_v30 = vld [vmem:[#allocation5 + $0x8] sm:$0xff]  ;;  %v221_v36 = vld [vmem:[#allocation8 + $0x188] sm:$0xff] }
  0xa5   :  { %558 = vmatprep.subr.bf16.mxu0 %v317_v4  ;;  %599 = vmatprep.subr.bf16.mxu1 %v319_v6  ;;  %v365_v26 = vunpack.c.l.s8.bf16 %v205_v22  ;;  %v367_v27 = vunpack.c.l.s8.bf16 %v207_v23  ;;  %v364_v31 = vunpack.c.l.s8.bf16 %v204_v28  ;;  %v366_v32 = vunpack.c.l.s8.bf16 %v206_v29  ;;  %v223_v37 = vld [vmem:[#allocation8 + $0x198] sm:$0xff]  ;;  %v220_v42 = vld [vmem:[#allocation8 + $0x180] sm:$0xff]  ;;  %v222_v43 = vld [vmem:[#allocation8 + $0x190] sm:$0xff]  ;;  %p5704_p4 = pnand %p5702_p3, %p5699_p2 }
  0xa6   :  { %v381_v33 = vunpack.c.h.s8.bf16 %v205_v22  ;;  %v383_v34 = vunpack.c.h.s8.bf16 %v207_v23  ;;  %v5967_v35 = vpack.c.bf16 %v169_v30, %v169_v30  ;;  %v380_v38 = vunpack.c.h.s8.bf16 %v204_v28  ;;  %v237_v48 = vld [vmem:[#allocation8 + $0x208] sm:$0xff]  ;;  %v239_v49 = vld [vmem:[#allocation8 + $0x218] sm:$0xff]  ;;  %v236_v54 = vld [vmem:[#allocation8 + $0x200] sm:$0xff] }
  0xa7   :  { %v382_v39 = vunpack.c.h.s8.bf16 %v206_v29  ;;  %v397_v40 = vunpack.c.l.s8.bf16 %v221_v36  ;;  %v399_v41 = vunpack.c.l.s8.bf16 %v223_v37  ;;  %v396_v44 = vunpack.c.l.s8.bf16 %v220_v42  ;;  %v238_v55 = vld [vmem:[#allocation8 + $0x210] sm:$0xff]  ;;  %v253_v60 = vld [vmem:[#allocation8 + $0x288] sm:$0xff]  ;;  %v255_v61 = vld [vmem:[#allocation8 + $0x298] sm:$0xff] }
  0xa8   :  { %559 = vmatpush1.bf16.msra.mxu0 %v316_v12  ;;  %600 = vmatpush1.bf16.msra.mxu1 %v318_v13  ;;  %v398_v45 = vunpack.c.l.s8.bf16 %v222_v43  ;;  %v413_v46 = vunpack.c.h.s8.bf16 %v221_v36  ;;  %v415_v47 = vunpack.c.h.s8.bf16 %v223_v37  ;;  %v412_v50 = vunpack.c.h.s8.bf16 %v220_v42  ;;  %v252_v2 = vld [vmem:[#allocation8 + $0x280] sm:$0xff]  ;;  %v254_v3 = vld [vmem:[#allocation8 + $0x290] sm:$0xff]  ;;  %v269_v8 = vld [vmem:[#allocation8 + $0x308] sm:$0xff] }
  0xa9   :  { %560 = vmatprep.subr.bf16.mxu0 %v333_v14  ;;  %601 = vmatprep.subr.bf16.mxu1 %v335_v15  ;;  %v414_v51 = vunpack.c.h.s8.bf16 %v222_v43  ;;  %v429_v52 = vunpack.c.l.s8.bf16 %v237_v48  ;;  %v431_v53 = vunpack.c.l.s8.bf16 %v239_v49  ;;  %v428_v56 = vunpack.c.l.s8.bf16 %v236_v54  ;;  %v271_v9 = vld [vmem:[#allocation8 + $0x318] sm:$0xff]  ;;  %v268_v14 = vld [vmem:[#allocation8 + $0x300] sm:$0xff]  ;;  %v270_v15 = vld [vmem:[#allocation8 + $0x310] sm:$0xff] }
  0xaa   :  { %588 = vmatprep.mubr.bf16.mxu0 %v5967_v35  ;;  %629 = vmatprep.mubr.bf16.mxu1 %v5967_v35  ;;  %v430_v57 = vunpack.c.l.s8.bf16 %v238_v55  ;;  %v445_v58 = vunpack.c.h.s8.bf16 %v237_v48  ;;  %v447_v59 = vunpack.c.h.s8.bf16 %v239_v49  ;;  %v444_v62 = vunpack.c.h.s8.bf16 %v236_v54  ;;  %v168_v37 = vld [vmem:[#allocation5] sm:$0xff]  ;;  %v195_v48 = vld [vmem:[#allocation8 + $0xb8] sm:$0xff] }
  0xab   :  { %v446_v63 = vunpack.c.h.s8.bf16 %v238_v55  ;;  %v461_v0 = vunpack.c.l.s8.bf16 %v253_v60  ;;  %v463_v1 = vunpack.c.l.s8.bf16 %v255_v61  ;;  %v460_v4 = vunpack.c.l.s8.bf16 %v252_v2  ;;  %v194_v54 = vld [vmem:[#allocation8 + $0xb0] sm:$0xff] }
  0xac   :  { %561 = vmatpush1.bf16.msra.mxu0 %v332_v18  ;;  %602 = vmatpush1.bf16.msra.mxu1 %v334_v19  ;;  %v462_v5 = vunpack.c.l.s8.bf16 %v254_v3  ;;  %v477_v6 = vunpack.c.h.s8.bf16 %v253_v60  ;;  %v479_v7 = vunpack.c.h.s8.bf16 %v255_v61  ;;  %v476_v10 = vunpack.c.h.s8.bf16 %v252_v2  ;;  %v211_v60 = vld [vmem:[#allocation8 + $0x138] sm:$0xff]  ;;  %v210_v2 = vld [vmem:[#allocation8 + $0x130] sm:$0xff] }
  0xad   :  { %562 = vmatprep.subr.bf16.mxu0 %v349_v20  ;;  %603 = vmatprep.subr.bf16.mxu1 %v351_v21  ;;  %v478_v11 = vunpack.c.h.s8.bf16 %v254_v3  ;;  %v493_v12 = vunpack.c.l.s8.bf16 %v269_v8  ;;  %v495_v13 = vunpack.c.l.s8.bf16 %v271_v9  ;;  %v492_v16 = vunpack.c.l.s8.bf16 %v268_v14  ;;  %v285_v20 = vld [vmem:[#allocation8 + $0x388] sm:$0xff]  ;;  %v287_v21 = vld [vmem:[#allocation8 + $0x398] sm:$0xff] }
  0xae   :  { %v494_v17 = vunpack.c.l.s8.bf16 %v270_v15  ;;  %v509_v18 = vunpack.c.h.s8.bf16 %v269_v8  ;;  %v511_v19 = vunpack.c.h.s8.bf16 %v271_v9  ;;  %v508_v22 = vunpack.c.h.s8.bf16 %v268_v14  ;;  %v227_v8 = vld [vmem:[#allocation8 + $0x1b8] sm:$0xff]  ;;  %v226_v14 = vld [vmem:[#allocation8 + $0x1b0] sm:$0xff] }
  0xaf   :  { %v510_v23 = vunpack.c.h.s8.bf16 %v270_v15  ;;  %v541_v30 = vunpack.c.h.s8.bf16 %v285_v20  ;;  %v5971_v42 = vpack.c.bf16 %v168_v37, %v168_v37 }
  0xb0   :  { %563 = vmatpush1.bf16.msra.mxu0 %v348_v24  ;;  %604 = vmatpush1.bf16.msra.mxu1 %v350_v25  ;;  %v525_v24 = vunpack.c.l.s8.bf16 %v285_v20  ;;  %v527_v25 = vunpack.c.l.s8.bf16 %v287_v21  ;;  %v243_v20 = vld [vmem:[#allocation8 + $0x238] sm:$0xff] }
  0xb1   :  { %564 = vmatprep.subr.bf16.mxu0 %v365_v26  ;;  %605 = vmatprep.subr.bf16.mxu1 %v367_v27  ;;  %v284_v26 = vld [vmem:[#allocation8 + $0x380] sm:$0xff]  ;;  %v286_v27 = vld [vmem:[#allocation8 + $0x390] sm:$0xff] }
  0xb2   :  { %v524_v28 = vunpack.c.l.s8.bf16 %v284_v26  ;;  %v526_v29 = vunpack.c.l.s8.bf16 %v286_v27  ;;  %v542_v36 = vunpack.c.h.s8.bf16 %v286_v27 }
  0xb4   :  { %565 = vmatpush1.bf16.msra.mxu0 %v364_v31  ;;  %606 = vmatpush1.bf16.msra.mxu1 %v366_v32  ;;  %v543_v31 = vunpack.c.h.s8.bf16 %v287_v21  ;;  %v177_v32 = vld [vmem:[#allocation8 + $0x28] sm:$0xff] }
  0xb5   :  { %566 = vmatprep.subr.bf16.mxu0 %v381_v33  ;;  %607 = vmatprep.subr.bf16.mxu1 %v383_v34  ;;  %v179_v33 = vld [vmem:[#allocation8 + $0x38] sm:$0xff]  ;;  %v540_v34 = vunpack.c.h.s8.bf16 %v284_v26  ;;  %v242_v26 = vld [vmem:[#allocation8 + $0x230] sm:$0xff] }
  0xb8   :  { %567 = vmatpush1.bf16.msra.mxu0 %v380_v38  ;;  %608 = vmatpush1.bf16.msra.mxu1 %v382_v39  ;;  %v305_v38 = vunpack.c.l.s8.bf16 %v177_v32  ;;  %v307_v39 = vunpack.c.l.s8.bf16 %v179_v33 }
  0xb9   :  { %568 = vmatprep.subr.bf16.mxu0 %v397_v40  ;;  %609 = vmatprep.subr.bf16.mxu1 %v399_v41  ;;  %v176_v40 = vld [vmem:[#allocation8 + $0x20] sm:$0xff]  ;;  %v178_v41 = vld [vmem:[#allocation8 + $0x30] sm:$0xff] }
  0xba   :  { %v304_v43 = vunpack.c.l.s8.bf16 %v176_v40  ;;  %v320_v49 = vunpack.c.h.s8.bf16 %v176_v40 }
  0xbc   :  { %569 = vmatpush1.bf16.msra.mxu0 %v396_v44  ;;  %610 = vmatpush1.bf16.msra.mxu1 %v398_v45  ;;  %v306_v44 = vunpack.c.l.s8.bf16 %v178_v41  ;;  %v321_v45 = vunpack.c.h.s8.bf16 %v177_v32  ;;  %v259_v32 = vld [vmem:[#allocation8 + $0x2b8] sm:$0xff] }
  0xbd   :  { %570 = vmatprep.subr.bf16.mxu0 %v413_v46  ;;  %611 = vmatprep.subr.bf16.mxu1 %v415_v47  ;;  %v323_v46 = vunpack.c.h.s8.bf16 %v179_v33  ;;  %v193_v47 = vld [vmem:[#allocation8 + $0xa8] sm:$0xff]  ;;  %v467_v37 = vunpack.c.l.s8.bf16 %v259_v32 }
  0xc0   :  { %571 = vmatpush1.bf16.msra.mxu0 %v412_v50  ;;  %612 = vmatpush1.bf16.msra.mxu1 %v414_v51  ;;  %v322_v50 = vunpack.c.h.s8.bf16 %v178_v41  ;;  %v337_v51 = vunpack.c.l.s8.bf16 %v193_v47 }
  0xc1   :  { %572 = vmatprep.subr.bf16.mxu0 %v429_v52  ;;  %613 = vmatprep.subr.bf16.mxu1 %v431_v53  ;;  %v339_v52 = vunpack.c.l.s8.bf16 %v195_v48  ;;  %v192_v53 = vld [vmem:[#allocation8 + $0xa0] sm:$0xff] }
  0xc2   :  { %v336_v55 = vunpack.c.l.s8.bf16 %v192_v53  ;;  %v352_v61 = vunpack.c.h.s8.bf16 %v192_v53 }
  0xc4   :  { %573 = vmatpush1.bf16.msra.mxu0 %v428_v56  ;;  %614 = vmatpush1.bf16.msra.mxu1 %v430_v57  ;;  %v338_v56 = vunpack.c.l.s8.bf16 %v194_v54  ;;  %v353_v57 = vunpack.c.h.s8.bf16 %v193_v47 }
  0xc5   :  { %574 = vmatprep.subr.bf16.mxu0 %v445_v58  ;;  %615 = vmatprep.subr.bf16.mxu1 %v447_v59  ;;  %v355_v58 = vunpack.c.h.s8.bf16 %v195_v48  ;;  %v209_v59 = vld [vmem:[#allocation8 + $0x128] sm:$0xff] }
  0xc8   :  { %575 = vmatpush1.bf16.msra.mxu0 %v444_v62  ;;  %616 = vmatpush1.bf16.msra.mxu1 %v446_v63  ;;  %v354_v62 = vunpack.c.h.s8.bf16 %v194_v54  ;;  %v369_v63 = vunpack.c.l.s8.bf16 %v209_v59 }
  0xc9   :  { %576 = vmatprep.subr.bf16.mxu0 %v461_v0  ;;  %617 = vmatprep.subr.bf16.mxu1 %v463_v1  ;;  %v371_v0 = vunpack.c.l.s8.bf16 %v211_v60  ;;  %v208_v1 = vld [vmem:[#allocation8 + $0x120] sm:$0xff] }
  0xca   :  { %v368_v3 = vunpack.c.l.s8.bf16 %v208_v1  ;;  %v384_v9 = vunpack.c.h.s8.bf16 %v208_v1 }
  0xcc   :  { %577 = vmatpush1.bf16.msra.mxu0 %v460_v4  ;;  %618 = vmatpush1.bf16.msra.mxu1 %v462_v5  ;;  %v370_v4 = vunpack.c.l.s8.bf16 %v210_v2  ;;  %v385_v5 = vunpack.c.h.s8.bf16 %v209_v59 }
  0xcd   :  { %578 = vmatprep.subr.bf16.mxu0 %v477_v6  ;;  %619 = vmatprep.subr.bf16.mxu1 %v479_v7  ;;  %v387_v6 = vunpack.c.h.s8.bf16 %v211_v60  ;;  %v225_v7 = vld [vmem:[#allocation8 + $0x1a8] sm:$0xff] }
  0xd0   :  { %579 = vmatpush1.bf16.msra.mxu0 %v476_v10  ;;  %620 = vmatpush1.bf16.msra.mxu1 %v478_v11  ;;  %v386_v10 = vunpack.c.h.s8.bf16 %v210_v2  ;;  %v401_v11 = vunpack.c.l.s8.bf16 %v225_v7 }
  0xd1   :  { %580 = vmatprep.subr.bf16.mxu0 %v493_v12  ;;  %621 = vmatprep.subr.bf16.mxu1 %v495_v13  ;;  %v403_v12 = vunpack.c.l.s8.bf16 %v227_v8  ;;  %v224_v13 = vld [vmem:[#allocation8 + $0x1a0] sm:$0xff] }
  0xd2   :  { %v400_v15 = vunpack.c.l.s8.bf16 %v224_v13  ;;  %v416_v21 = vunpack.c.h.s8.bf16 %v224_v13 }
  0xd4   :  { %581 = vmatpush1.bf16.msra.mxu0 %v492_v16  ;;  %622 = vmatpush1.bf16.msra.mxu1 %v494_v17  ;;  %v402_v16 = vunpack.c.l.s8.bf16 %v226_v14  ;;  %v417_v17 = vunpack.c.h.s8.bf16 %v225_v7 }
  0xd5   :  { %582 = vmatprep.subr.bf16.mxu0 %v509_v18  ;;  %623 = vmatprep.subr.bf16.mxu1 %v511_v19  ;;  %v419_v18 = vunpack.c.h.s8.bf16 %v227_v8  ;;  %v241_v19 = vld [vmem:[#allocation8 + $0x228] sm:$0xff] }
  0xd8   :  { %583 = vmatpush1.bf16.msra.mxu0 %v508_v22  ;;  %624 = vmatpush1.bf16.msra.mxu1 %v510_v23  ;;  %v418_v22 = vunpack.c.h.s8.bf16 %v226_v14  ;;  %v433_v23 = vunpack.c.l.s8.bf16 %v241_v19 }
  0xd9   :  { %584 = vmatprep.subr.bf16.mxu0 %v525_v24  ;;  %625 = vmatprep.subr.bf16.mxu1 %v527_v25  ;;  %v435_v24 = vunpack.c.l.s8.bf16 %v243_v20  ;;  %v240_v25 = vld [vmem:[#allocation8 + $0x220] sm:$0xff] }
  0xda   :  { %v432_v27 = vunpack.c.l.s8.bf16 %v240_v25  ;;  %v448_v33 = vunpack.c.h.s8.bf16 %v240_v25 }
  0xdc   :  { %585 = vmatpush1.bf16.msra.mxu0 %v524_v28  ;;  %626 = vmatpush1.bf16.msra.mxu1 %v526_v29  ;;  %v434_v28 = vunpack.c.l.s8.bf16 %v242_v26  ;;  %v449_v29 = vunpack.c.h.s8.bf16 %v241_v19 }
  0xdd   :  { %586 = vmatprep.subr.bf16.mxu0 %v541_v30  ;;  %627 = vmatprep.subr.bf16.mxu1 %v543_v31  ;;  %v451_v30 = vunpack.c.h.s8.bf16 %v243_v20  ;;  %v257_v31 = vld [vmem:[#allocation8 + $0x2a8] sm:$0xff] }
  0xe0   :  { %587 = vmatpush1.bf16.msra.mxu0 %v540_v34  ;;  %628 = vmatpush1.bf16.msra.mxu1 %v542_v36  ;;  %v450_v34 = vunpack.c.h.s8.bf16 %v242_v26  ;;  %v465_v36 = vunpack.c.l.s8.bf16 %v257_v31 }
  0xe1   :  { %638 = vmatprep.subr.bf16.mxu0 %v305_v38  ;;  %679 = vmatprep.subr.bf16.mxu1 %v307_v39  ;;  %v256_v38 = vld [vmem:[#allocation8 + $0x2a0] sm:$0xff]  ;;  %v258_v39 = vld [vmem:[#allocation8 + $0x2b0] sm:$0xff] }
  0xe2   :  { %v464_v40 = vunpack.c.l.s8.bf16 %v256_v38  ;;  %v466_v41 = vunpack.c.l.s8.bf16 %v258_v39  ;;  %v480_v47 = vunpack.c.h.s8.bf16 %v256_v38  ;;  %v482_v48 = vunpack.c.h.s8.bf16 %v258_v39 }
  0xe3   :  { %589 = vmatmul.mubr.bf16.vlgmr.msra.gmra.mrb[0].mxu0 %v5971_v42  ;;  %630 = vmatmul.mubr.bf16.vlgmr.msra.gmra.mrb[0].mxu1 %v5971_v42 }
  0xe4   :  { %639 = vmatpush1.bf16.msra.mxu0 %v304_v43  ;;  %680 = vmatpush1.bf16.msra.mxu1 %v306_v44  ;;  %v481_v43 = vunpack.c.h.s8.bf16 %v257_v31  ;;  %v483_v44 = vunpack.c.h.s8.bf16 %v259_v32 }
  0xe5   :  { %640 = vmatprep.subr.bf16.mxu0 %v321_v45  ;;  %681 = vmatprep.subr.bf16.mxu1 %v323_v46  ;;  %v273_v45 = vld [vmem:[#allocation8 + $0x328] sm:$0xff]  ;;  %v275_v46 = vld [vmem:[#allocation8 + $0x338] sm:$0xff] }
  0xe6   :  { %670 = vmatprep.mubr.bf16.mxu0 %v5967_v35  ;;  %711 = vmatprep.mubr.bf16.mxu1 %v5967_v35 }
  0xe8   :  { %641 = vmatpush1.bf16.msra.mxu0 %v320_v49  ;;  %682 = vmatpush1.bf16.msra.mxu1 %v322_v50  ;;  %v497_v49 = vunpack.c.l.s8.bf16 %v273_v45  ;;  %v499_v50 = vunpack.c.l.s8.bf16 %v275_v46 }
  0xe9   :  { %642 = vmatprep.subr.bf16.mxu0 %v337_v51  ;;  %683 = vmatprep.subr.bf16.mxu1 %v339_v52  ;;  %v272_v51 = vld [vmem:[#allocation8 + $0x320] sm:$0xff]  ;;  %v274_v52 = vld [vmem:[#allocation8 + $0x330] sm:$0xff] }
  0xea   :  { %v496_v53 = vunpack.c.l.s8.bf16 %v272_v51  ;;  %v498_v54 = vunpack.c.l.s8.bf16 %v274_v52  ;;  %v512_v59 = vunpack.c.h.s8.bf16 %v272_v51  ;;  %v514_v60 = vunpack.c.h.s8.bf16 %v274_v52 }
  0xec   :  { %643 = vmatpush1.bf16.msra.mxu0 %v336_v55  ;;  %684 = vmatpush1.bf16.msra.mxu1 %v338_v56  ;;  %v513_v55 = vunpack.c.h.s8.bf16 %v273_v45  ;;  %v515_v56 = vunpack.c.h.s8.bf16 %v275_v46 }
  0xed   :  { %644 = vmatprep.subr.bf16.mxu0 %v353_v57  ;;  %685 = vmatprep.subr.bf16.mxu1 %v355_v58  ;;  %v289_v57 = vld [vmem:[#allocation8 + $0x3a8] sm:$0xff]  ;;  %v291_v58 = vld [vmem:[#allocation8 + $0x3b8] sm:$0xff] }
  0xf0   :  { %645 = vmatpush1.bf16.msra.mxu0 %v352_v61  ;;  %686 = vmatpush1.bf16.msra.mxu1 %v354_v62  ;;  %v529_v61 = vunpack.c.l.s8.bf16 %v289_v57  ;;  %v531_v62 = vunpack.c.l.s8.bf16 %v291_v58 }
  0xf1   :  { %646 = vmatprep.subr.bf16.mxu0 %v369_v63  ;;  %687 = vmatprep.subr.bf16.mxu1 %v371_v0  ;;  %v288_v63 = vld [vmem:[#allocation8 + $0x3a0] sm:$0xff]  ;;  %v290_v0 = vld [vmem:[#allocation8 + $0x3b0] sm:$0xff] }
  0xf2   :  { %v528_v1 = vunpack.c.l.s8.bf16 %v288_v63  ;;  %v530_v2 = vunpack.c.l.s8.bf16 %v290_v0  ;;  %v544_v7 = vunpack.c.h.s8.bf16 %v288_v63  ;;  %v546_v8 = vunpack.c.h.s8.bf16 %v290_v0 }
  0xf4   :  { %647 = vmatpush1.bf16.msra.mxu0 %v368_v3  ;;  %688 = vmatpush1.bf16.msra.mxu1 %v370_v4  ;;  %v545_v3 = vunpack.c.h.s8.bf16 %v289_v57  ;;  %v547_v4 = vunpack.c.h.s8.bf16 %v291_v58 }
  0xf5   :  { %648 = vmatprep.subr.bf16.mxu0 %v385_v5  ;;  %689 = vmatprep.subr.bf16.mxu1 %v387_v6  ;;  %v181_v5 = vld [vmem:[#allocation8 + $0x48] sm:$0xff]  ;;  %v183_v6 = vld [vmem:[#allocation8 + $0x58] sm:$0xff] }
  0xf8   :  { %649 = vmatpush1.bf16.msra.mxu0 %v384_v9  ;;  %690 = vmatpush1.bf16.msra.mxu1 %v386_v10  ;;  %v309_v9 = vunpack.c.l.s8.bf16 %v181_v5  ;;  %v311_v10 = vunpack.c.l.s8.bf16 %v183_v6 }
  0xf9   :  { %650 = vmatprep.subr.bf16.mxu0 %v401_v11  ;;  %691 = vmatprep.subr.bf16.mxu1 %v403_v12  ;;  %v180_v11 = vld [vmem:[#allocation8 + $0x40] sm:$0xff]  ;;  %v182_v12 = vld [vmem:[#allocation8 + $0x50] sm:$0xff] }
  0xfa   :  { %v308_v13 = vunpack.c.l.s8.bf16 %v180_v11  ;;  %v310_v14 = vunpack.c.l.s8.bf16 %v182_v12  ;;  %v324_v19 = vunpack.c.h.s8.bf16 %v180_v11  ;;  %v326_v20 = vunpack.c.h.s8.bf16 %v182_v12 }
  0xfc   :  { %651 = vmatpush1.bf16.msra.mxu0 %v400_v15  ;;  %692 = vmatpush1.bf16.msra.mxu1 %v402_v16  ;;  %v325_v15 = vunpack.c.h.s8.bf16 %v181_v5  ;;  %v327_v16 = vunpack.c.h.s8.bf16 %v183_v6 }
  0xfd   :  { %652 = vmatprep.subr.bf16.mxu0 %v417_v17  ;;  %693 = vmatprep.subr.bf16.mxu1 %v419_v18  ;;  %v197_v17 = vld [vmem:[#allocation8 + $0xc8] sm:$0xff]  ;;  %v199_v18 = vld [vmem:[#allocation8 + $0xd8] sm:$0xff] }
 0x100   :  { %653 = vmatpush1.bf16.msra.mxu0 %v416_v21  ;;  %694 = vmatpush1.bf16.msra.mxu1 %v418_v22  ;;  %v341_v21 = vunpack.c.l.s8.bf16 %v197_v17  ;;  %v343_v22 = vunpack.c.l.s8.bf16 %v199_v18 }
 0x101   :  { %654 = vmatprep.subr.bf16.mxu0 %v433_v23  ;;  %695 = vmatprep.subr.bf16.mxu1 %v435_v24  ;;  %v196_v23 = vld [vmem:[#allocation8 + $0xc0] sm:$0xff]  ;;  %v198_v24 = vld [vmem:[#allocation8 + $0xd0] sm:$0xff] }
 0x102   :  { %v340_v25 = vunpack.c.l.s8.bf16 %v196_v23  ;;  %v342_v26 = vunpack.c.l.s8.bf16 %v198_v24  ;;  %v356_v31 = vunpack.c.h.s8.bf16 %v196_v23  ;;  %v358_v32 = vunpack.c.h.s8.bf16 %v198_v24 }
 0x104   :  { %655 = vmatpush1.bf16.msra.mxu0 %v432_v27  ;;  %696 = vmatpush1.bf16.msra.mxu1 %v434_v28  ;;  %v357_v27 = vunpack.c.h.s8.bf16 %v197_v17  ;;  %v359_v28 = vunpack.c.h.s8.bf16 %v199_v18 }
 0x105   :  { %656 = vmatprep.subr.bf16.mxu0 %v449_v29  ;;  %697 = vmatprep.subr.bf16.mxu1 %v451_v30  ;;  %v213_v29 = vld [vmem:[#allocation8 + $0x148] sm:$0xff]  ;;  %v215_v30 = vld [vmem:[#allocation8 + $0x158] sm:$0xff] }
 0x108   :  { %657 = vmatpush1.bf16.msra.mxu0 %v448_v33  ;;  %698 = vmatpush1.bf16.msra.mxu1 %v450_v34  ;;  %v373_v33 = vunpack.c.l.s8.bf16 %v213_v29  ;;  %v375_v34 = vunpack.c.l.s8.bf16 %v215_v30 }
 0x109   :  { %658 = vmatprep.subr.bf16.mxu0 %v465_v36  ;;  %699 = vmatprep.subr.bf16.mxu1 %v467_v37  ;;  %v212_v36 = vld [vmem:[#allocation8 + $0x140] sm:$0xff]  ;;  %v214_v37 = vld [vmem:[#allocation8 + $0x150] sm:$0xff] }
 0x10a   :  { %v372_v38 = vunpack.c.l.s8.bf16 %v212_v36  ;;  %v374_v39 = vunpack.c.l.s8.bf16 %v214_v37  ;;  %v388_v45 = vunpack.c.h.s8.bf16 %v212_v36  ;;  %v390_v46 = vunpack.c.h.s8.bf16 %v214_v37 }
 0x10c   :  { %659 = vmatpush1.bf16.msra.mxu0 %v464_v40  ;;  %700 = vmatpush1.bf16.msra.mxu1 %v466_v41  ;;  %v389_v40 = vunpack.c.h.s8.bf16 %v213_v29  ;;  %v391_v41 = vunpack.c.h.s8.bf16 %v215_v30 }
 0x10d   :  { %660 = vmatprep.subr.bf16.mxu0 %v481_v43  ;;  %701 = vmatprep.subr.bf16.mxu1 %v483_v44  ;;  %v229_v43 = vld [vmem:[#allocation8 + $0x1c8] sm:$0xff]  ;;  %v231_v44 = vld [vmem:[#allocation8 + $0x1d8] sm:$0xff] }
 0x110   :  { %661 = vmatpush1.bf16.msra.mxu0 %v480_v47  ;;  %702 = vmatpush1.bf16.msra.mxu1 %v482_v48  ;;  %v405_v47 = vunpack.c.l.s8.bf16 %v229_v43  ;;  %v407_v48 = vunpack.c.l.s8.bf16 %v231_v44 }
 0x111   :  { %662 = vmatprep.subr.bf16.mxu0 %v497_v49  ;;  %703 = vmatprep.subr.bf16.mxu1 %v499_v50  ;;  %v228_v49 = vld [vmem:[#allocation8 + $0x1c0] sm:$0xff]  ;;  %v230_v50 = vld [vmem:[#allocation8 + $0x1d0] sm:$0xff] }
 0x112   :  { %v404_v51 = vunpack.c.l.s8.bf16 %v228_v49  ;;  %v406_v52 = vunpack.c.l.s8.bf16 %v230_v50  ;;  %v420_v57 = vunpack.c.h.s8.bf16 %v228_v49  ;;  %v422_v58 = vunpack.c.h.s8.bf16 %v230_v50 }
 0x114   :  { %663 = vmatpush1.bf16.msra.mxu0 %v496_v53  ;;  %704 = vmatpush1.bf16.msra.mxu1 %v498_v54  ;;  %v421_v53 = vunpack.c.h.s8.bf16 %v229_v43  ;;  %v423_v54 = vunpack.c.h.s8.bf16 %v231_v44 }
 0x115   :  { %664 = vmatprep.subr.bf16.mxu0 %v513_v55  ;;  %705 = vmatprep.subr.bf16.mxu1 %v515_v56  ;;  %v245_v55 = vld [vmem:[#allocation8 + $0x248] sm:$0xff]  ;;  %v247_v56 = vld [vmem:[#allocation8 + $0x258] sm:$0xff] }
 0x118   :  { %665 = vmatpush1.bf16.msra.mxu0 %v512_v59  ;;  %706 = vmatpush1.bf16.msra.mxu1 %v514_v60  ;;  %v437_v59 = vunpack.c.l.s8.bf16 %v245_v55  ;;  %v439_v60 = vunpack.c.l.s8.bf16 %v247_v56 }
 0x119   :  { %666 = vmatprep.subr.bf16.mxu0 %v529_v61  ;;  %707 = vmatprep.subr.bf16.mxu1 %v531_v62  ;;  %v244_v61 = vld [vmem:[#allocation8 + $0x240] sm:$0xff]  ;;  %v246_v62 = vld [vmem:[#allocation8 + $0x250] sm:$0xff] }
 0x11a   :  { %v436_v63 = vunpack.c.l.s8.bf16 %v244_v61  ;;  %v438_v0 = vunpack.c.l.s8.bf16 %v246_v62  ;;  %v452_v5 = vunpack.c.h.s8.bf16 %v244_v61  ;;  %v454_v6 = vunpack.c.h.s8.bf16 %v246_v62 }
 0x11c   :  { %667 = vmatpush1.bf16.msra.mxu0 %v528_v1  ;;  %708 = vmatpush1.bf16.msra.mxu1 %v530_v2  ;;  %v453_v1 = vunpack.c.h.s8.bf16 %v245_v55  ;;  %v455_v2 = vunpack.c.h.s8.bf16 %v247_v56 }
 0x11d   :  { %668 = vmatprep.subr.bf16.mxu0 %v545_v3  ;;  %709 = vmatprep.subr.bf16.mxu1 %v547_v4  ;;  %v261_v3 = vld [vmem:[#allocation8 + $0x2c8] sm:$0xff]  ;;  %v263_v4 = vld [vmem:[#allocation8 + $0x2d8] sm:$0xff] }
 0x120   :  { %669 = vmatpush1.bf16.msra.mxu0 %v544_v7  ;;  %710 = vmatpush1.bf16.msra.mxu1 %v546_v8  ;;  %v469_v7 = vunpack.c.l.s8.bf16 %v261_v3  ;;  %v471_v8 = vunpack.c.l.s8.bf16 %v263_v4 }
 0x121   :  { %720 = vmatprep.subr.bf16.mxu0 %v309_v9  ;;  %761 = vmatprep.subr.bf16.mxu1 %v311_v10  ;;  %v260_v9 = vld [vmem:[#allocation8 + $0x2c0] sm:$0xff]  ;;  %v262_v10 = vld [vmem:[#allocation8 + $0x2d0] sm:$0xff] }
 0x122   :  { %v468_v11 = vunpack.c.l.s8.bf16 %v260_v9  ;;  %v470_v12 = vunpack.c.l.s8.bf16 %v262_v10  ;;  %v484_v17 = vunpack.c.h.s8.bf16 %v260_v9  ;;  %v486_v18 = vunpack.c.h.s8.bf16 %v262_v10 }
 0x123   :  { %671 = vmatmul.mubr.bf16.vlgmr.msra.gmra.mrb[4].mxu0 %v5971_v42  ;;  %712 = vmatmul.mubr.bf16.vlgmr.msra.gmra.mrb[4].mxu1 %v5971_v42 }
 0x124   :  { %721 = vmatpush1.bf16.msra.mxu0 %v308_v13  ;;  %762 = vmatpush1.bf16.msra.mxu1 %v310_v14  ;;  %v485_v13 = vunpack.c.h.s8.bf16 %v261_v3  ;;  %v487_v14 = vunpack.c.h.s8.bf16 %v263_v4 }
 0x125   :  { %722 = vmatprep.subr.bf16.mxu0 %v325_v15  ;;  %763 = vmatprep.subr.bf16.mxu1 %v327_v16  ;;  %v277_v15 = vld [vmem:[#allocation8 + $0x348] sm:$0xff]  ;;  %v279_v16 = vld [vmem:[#allocation8 + $0x358] sm:$0xff] }
 0x126   :  { %752 = vmatprep.mubr.bf16.mxu0 %v5967_v35  ;;  %793 = vmatprep.mubr.bf16.mxu1 %v5967_v35 }
 0x128   :  { %723 = vmatpush1.bf16.msra.mxu0 %v324_v19  ;;  %764 = vmatpush1.bf16.msra.mxu1 %v326_v20  ;;  %v501_v19 = vunpack.c.l.s8.bf16 %v277_v15  ;;  %v503_v20 = vunpack.c.l.s8.bf16 %v279_v16 }
 0x129   :  { %724 = vmatprep.subr.bf16.mxu0 %v341_v21  ;;  %765 = vmatprep.subr.bf16.mxu1 %v343_v22  ;;  %v276_v21 = vld [vmem:[#allocation8 + $0x340] sm:$0xff]  ;;  %v278_v22 = vld [vmem:[#allocation8 + $0x350] sm:$0xff] }
 0x12a   :  { %v500_v23 = vunpack.c.l.s8.bf16 %v276_v21  ;;  %v502_v24 = vunpack.c.l.s8.bf16 %v278_v22  ;;  %v516_v29 = vunpack.c.h.s8.bf16 %v276_v21  ;;  %v518_v30 = vunpack.c.h.s8.bf16 %v278_v22 }
 0x12c   :  { %725 = vmatpush1.bf16.msra.mxu0 %v340_v25  ;;  %766 = vmatpush1.bf16.msra.mxu1 %v342_v26  ;;  %v517_v25 = vunpack.c.h.s8.bf16 %v277_v15  ;;  %v519_v26 = vunpack.c.h.s8.bf16 %v279_v16 }
 0x12d   :  { %726 = vmatprep.subr.bf16.mxu0 %v357_v27  ;;  %767 = vmatprep.subr.bf16.mxu1 %v359_v28  ;;  %v293_v27 = vld [vmem:[#allocation8 + $0x3c8] sm:$0xff]  ;;  %v295_v28 = vld [vmem:[#allocation8 + $0x3d8] sm:$0xff] }
 0x130   :  { %727 = vmatpush1.bf16.msra.mxu0 %v356_v31  ;;  %768 = vmatpush1.bf16.msra.mxu1 %v358_v32  ;;  %v533_v31 = vunpack.c.l.s8.bf16 %v293_v27  ;;  %v535_v32 = vunpack.c.l.s8.bf16 %v295_v28 }
 0x131   :  { %728 = vmatprep.subr.bf16.mxu0 %v373_v33  ;;  %769 = vmatprep.subr.bf16.mxu1 %v375_v34  ;;  %v292_v33 = vld [vmem:[#allocation8 + $0x3c0] sm:$0xff]  ;;  %v294_v34 = vld [vmem:[#allocation8 + $0x3d0] sm:$0xff] }
 0x132   :  { %v532_v36 = vunpack.c.l.s8.bf16 %v292_v33  ;;  %v534_v37 = vunpack.c.l.s8.bf16 %v294_v34  ;;  %v548_v43 = vunpack.c.h.s8.bf16 %v292_v33  ;;  %v550_v44 = vunpack.c.h.s8.bf16 %v294_v34 }
 0x134   :  { %729 = vmatpush1.bf16.msra.mxu0 %v372_v38  ;;  %770 = vmatpush1.bf16.msra.mxu1 %v374_v39  ;;  %v549_v38 = vunpack.c.h.s8.bf16 %v293_v27  ;;  %v551_v39 = vunpack.c.h.s8.bf16 %v295_v28 }
 0x135   :  { %730 = vmatprep.subr.bf16.mxu0 %v389_v40  ;;  %771 = vmatprep.subr.bf16.mxu1 %v391_v41  ;;  %v185_v40 = vld [vmem:[#allocation8 + $0x68] sm:$0xff]  ;;  %v187_v41 = vld [vmem:[#allocation8 + $0x78] sm:$0xff] }
 0x138   :  { %731 = vmatpush1.bf16.msra.mxu0 %v388_v45  ;;  %772 = vmatpush1.bf16.msra.mxu1 %v390_v46  ;;  %v313_v45 = vunpack.c.l.s8.bf16 %v185_v40  ;;  %v315_v46 = vunpack.c.l.s8.bf16 %v187_v41 }
 0x139   :  { %732 = vmatprep.subr.bf16.mxu0 %v405_v47  ;;  %773 = vmatprep.subr.bf16.mxu1 %v407_v48  ;;  %v184_v47 = vld [vmem:[#allocation8 + $0x60] sm:$0xff]  ;;  %v186_v48 = vld [vmem:[#allocation8 + $0x70] sm:$0xff] }
 0x13a   :  { %v312_v49 = vunpack.c.l.s8.bf16 %v184_v47  ;;  %v314_v50 = vunpack.c.l.s8.bf16 %v186_v48  ;;  %v328_v55 = vunpack.c.h.s8.bf16 %v184_v47  ;;  %v330_v56 = vunpack.c.h.s8.bf16 %v186_v48 }
 0x13c   :  { %733 = vmatpush1.bf16.msra.mxu0 %v404_v51  ;;  %774 = vmatpush1.bf16.msra.mxu1 %v406_v52  ;;  %v329_v51 = vunpack.c.h.s8.bf16 %v185_v40  ;;  %v331_v52 = vunpack.c.h.s8.bf16 %v187_v41 }
 0x13d   :  { %734 = vmatprep.subr.bf16.mxu0 %v421_v53  ;;  %775 = vmatprep.subr.bf16.mxu1 %v423_v54  ;;  %v201_v53 = vld [vmem:[#allocation8 + $0xe8] sm:$0xff]  ;;  %v203_v54 = vld [vmem:[#allocation8 + $0xf8] sm:$0xff] }
 0x140   :  { %735 = vmatpush1.bf16.msra.mxu0 %v420_v57  ;;  %776 = vmatpush1.bf16.msra.mxu1 %v422_v58  ;;  %v345_v57 = vunpack.c.l.s8.bf16 %v201_v53  ;;  %v347_v58 = vunpack.c.l.s8.bf16 %v203_v54 }
 0x141   :  { %736 = vmatprep.subr.bf16.mxu0 %v437_v59  ;;  %777 = vmatprep.subr.bf16.mxu1 %v439_v60  ;;  %v200_v59 = vld [vmem:[#allocation8 + $0xe0] sm:$0xff]  ;;  %v202_v60 = vld [vmem:[#allocation8 + $0xf0] sm:$0xff] }
 0x142   :  { %v344_v61 = vunpack.c.l.s8.bf16 %v200_v59  ;;  %v346_v62 = vunpack.c.l.s8.bf16 %v202_v60  ;;  %v360_v3 = vunpack.c.h.s8.bf16 %v200_v59  ;;  %v362_v4 = vunpack.c.h.s8.bf16 %v202_v60 }
 0x144   :  { %737 = vmatpush1.bf16.msra.mxu0 %v436_v63  ;;  %778 = vmatpush1.bf16.msra.mxu1 %v438_v0  ;;  %v361_v63 = vunpack.c.h.s8.bf16 %v201_v53  ;;  %v363_v0 = vunpack.c.h.s8.bf16 %v203_v54 }
 0x145   :  { %738 = vmatprep.subr.bf16.mxu0 %v453_v1  ;;  %779 = vmatprep.subr.bf16.mxu1 %v455_v2  ;;  %v217_v1 = vld [vmem:[#allocation8 + $0x168] sm:$0xff]  ;;  %v219_v2 = vld [vmem:[#allocation8 + $0x178] sm:$0xff] }
 0x146   :  { %v393_v10 = vunpack.c.h.s8.bf16 %v217_v1 }
 0x148   :  { %739 = vmatpush1.bf16.msra.mxu0 %v452_v5  ;;  %780 = vmatpush1.bf16.msra.mxu1 %v454_v6  ;;  %v377_v5 = vunpack.c.l.s8.bf16 %v217_v1  ;;  %v379_v6 = vunpack.c.l.s8.bf16 %v219_v2 }
 0x149   :  { %740 = vmatprep.subr.bf16.mxu0 %v469_v7  ;;  %781 = vmatprep.subr.bf16.mxu1 %v471_v8  ;;  %v216_v7 = vld [vmem:[#allocation8 + $0x160] sm:$0xff] }
 0x14a   :  { %v376_v8 = vunpack.c.l.s8.bf16 %v216_v7 }
 0x14c   :  { %741 = vmatpush1.bf16.msra.mxu0 %v468_v11  ;;  %782 = vmatpush1.bf16.msra.mxu1 %v470_v12  ;;  %v395_v11 = vunpack.c.h.s8.bf16 %v219_v2  ;;  %v233_v12 = vld [vmem:[#allocation8 + $0x1e8] sm:$0xff] }
 0x14d   :  { %742 = vmatprep.subr.bf16.mxu0 %v485_v13  ;;  %783 = vmatprep.subr.bf16.mxu1 %v487_v14  ;;  %v235_v13 = vld [vmem:[#allocation8 + $0x1f8] sm:$0xff]  ;;  %v392_v14 = vunpack.c.h.s8.bf16 %v216_v7  ;;  %v409_v16 = vunpack.c.l.s8.bf16 %v233_v12  ;;  %v425_v22 = vunpack.c.h.s8.bf16 %v233_v12 }
 0x150   :  { %743 = vmatpush1.bf16.msra.mxu0 %v484_v17  ;;  %784 = vmatpush1.bf16.msra.mxu1 %v486_v18  ;;  %v411_v17 = vunpack.c.l.s8.bf16 %v235_v13  ;;  %v232_v18 = vld [vmem:[#allocation8 + $0x1e0] sm:$0xff] }
 0x151   :  { %744 = vmatprep.subr.bf16.mxu0 %v501_v19  ;;  %785 = vmatprep.subr.bf16.mxu1 %v503_v20  ;;  %v234_v19 = vld [vmem:[#allocation8 + $0x1f0] sm:$0xff]  ;;  %v408_v20 = vunpack.c.l.s8.bf16 %v232_v18 }
 0x152   :  { %v410_v21 = vunpack.c.l.s8.bf16 %v234_v19  ;;  %v426_v27 = vunpack.c.h.s8.bf16 %v234_v19 }
 0x154   :  { %745 = vmatpush1.bf16.msra.mxu0 %v500_v23  ;;  %786 = vmatpush1.bf16.msra.mxu1 %v502_v24  ;;  %v427_v23 = vunpack.c.h.s8.bf16 %v235_v13  ;;  %v249_v24 = vld [vmem:[#allocation8 + $0x268] sm:$0xff] }
 0x155   :  { %746 = vmatprep.subr.bf16.mxu0 %v517_v25  ;;  %787 = vmatprep.subr.bf16.mxu1 %v519_v26  ;;  %v251_v25 = vld [vmem:[#allocation8 + $0x278] sm:$0xff]  ;;  %v424_v26 = vunpack.c.h.s8.bf16 %v232_v18  ;;  %v441_v28 = vunpack.c.l.s8.bf16 %v249_v24  ;;  %v457_v34 = vunpack.c.h.s8.bf16 %v249_v24  ;;  %v984_v18 = vld [vmem:[#allocation11] sm:$0xff] }
 0x158   :  { %747 = vmatpush1.bf16.msra.mxu0 %v516_v29  ;;  %788 = vmatpush1.bf16.msra.mxu1 %v518_v30  ;;  %v443_v29 = vunpack.c.l.s8.bf16 %v251_v25  ;;  %v248_v30 = vld [vmem:[#allocation8 + $0x260] sm:$0xff] }
 0x159   :  { %748 = vmatprep.subr.bf16.mxu0 %v533_v31  ;;  %789 = vmatprep.subr.bf16.mxu1 %v535_v32  ;;  %v250_v31 = vld [vmem:[#allocation8 + $0x270] sm:$0xff]  ;;  %v440_v32 = vunpack.c.l.s8.bf16 %v248_v30 }
 0x15a   :  { %v442_v33 = vunpack.c.l.s8.bf16 %v250_v31  ;;  %v458_v40 = vunpack.c.h.s8.bf16 %v250_v31 }
 0x15c   :  { %749 = vmatpush1.bf16.msra.mxu0 %v532_v36  ;;  %790 = vmatpush1.bf16.msra.mxu1 %v534_v37  ;;  %v459_v36 = vunpack.c.h.s8.bf16 %v251_v25  ;;  %v265_v37 = vld [vmem:[#allocation8 + $0x2e8] sm:$0xff] }
 0x15d   :  { %750 = vmatprep.subr.bf16.mxu0 %v549_v38  ;;  %791 = vmatprep.subr.bf16.mxu1 %v551_v39  ;;  %v267_v38 = vld [vmem:[#allocation8 + $0x2f8] sm:$0xff]  ;;  %v456_v39 = vunpack.c.h.s8.bf16 %v248_v30  ;;  %v473_v41 = vunpack.c.l.s8.bf16 %v265_v37  ;;  %v489_v48 = vunpack.c.h.s8.bf16 %v265_v37 }
 0x160   :  { %751 = vmatpush1.bf16.msra.mxu0 %v548_v43  ;;  %792 = vmatpush1.bf16.msra.mxu1 %v550_v44  ;;  %v475_v43 = vunpack.c.l.s8.bf16 %v267_v38  ;;  %v264_v44 = vld [vmem:[#allocation8 + $0x2e0] sm:$0xff] }
 0x161   :  { %802 = vmatprep.subr.bf16.mxu0 %v313_v45  ;;  %843 = vmatprep.subr.bf16.mxu1 %v315_v46  ;;  %v266_v45 = vld [vmem:[#allocation8 + $0x2f0] sm:$0xff]  ;;  %v472_v46 = vunpack.c.l.s8.bf16 %v264_v44 }
 0x162   :  { %v474_v47 = vunpack.c.l.s8.bf16 %v266_v45  ;;  %v490_v53 = vunpack.c.h.s8.bf16 %v266_v45 }
 0x163   :  { %753 = vmatmul.mubr.bf16.vlgmr.msra.gmra.mrb[8].mxu0 %v5971_v42  ;;  %794 = vmatmul.mubr.bf16.vlgmr.msra.gmra.mrb[8].mxu1 %v5971_v42 }
 0x164   :  { %803 = vmatpush1.bf16.msra.mxu0 %v312_v49  ;;  %844 = vmatpush1.bf16.msra.mxu1 %v314_v50  ;;  %v491_v49 = vunpack.c.h.s8.bf16 %v267_v38  ;;  %v281_v50 = vld [vmem:[#allocation8 + $0x368] sm:$0xff] }
 0x165   :  { %804 = vmatprep.subr.bf16.mxu0 %v329_v51  ;;  %845 = vmatprep.subr.bf16.mxu1 %v331_v52  ;;  %v283_v51 = vld [vmem:[#allocation8 + $0x378] sm:$0xff]  ;;  %v488_v52 = vunpack.c.h.s8.bf16 %v264_v44  ;;  %v505_v54 = vunpack.c.l.s8.bf16 %v281_v50  ;;  %v521_v60 = vunpack.c.h.s8.bf16 %v281_v50 }
 0x166   :  { %834 = vmatprep.mubr.bf16.mxu0 %v5967_v35  ;;  %875 = vmatprep.mubr.bf16.mxu1 %v5967_v35  ;;  %v218_v35 = vld [vmem:[#allocation8 + $0x170] sm:$0xff] }
 0x167   :  { %v378_v9 = vunpack.c.l.s8.bf16 %v218_v35  ;;  %v394_v15 = vunpack.c.h.s8.bf16 %v218_v35 }
 0x168   :  { %805 = vmatpush1.bf16.msra.mxu0 %v328_v55  ;;  %846 = vmatpush1.bf16.msra.mxu1 %v330_v56  ;;  %v507_v55 = vunpack.c.l.s8.bf16 %v283_v51  ;;  %v280_v56 = vld [vmem:[#allocation8 + $0x360] sm:$0xff] }
 0x169   :  { %806 = vmatprep.subr.bf16.mxu0 %v345_v57  ;;  %847 = vmatprep.subr.bf16.mxu1 %v347_v58  ;;  %v282_v57 = vld [vmem:[#allocation8 + $0x370] sm:$0xff]  ;;  %v504_v58 = vunpack.c.l.s8.bf16 %v280_v56 }
 0x16a   :  { %v506_v59 = vunpack.c.l.s8.bf16 %v282_v57  ;;  %v522_v1 = vunpack.c.h.s8.bf16 %v282_v57 }
 0x16c   :  { %807 = vmatpush1.bf16.msra.mxu0 %v344_v61  ;;  %848 = vmatpush1.bf16.msra.mxu1 %v346_v62  ;;  %v523_v61 = vunpack.c.h.s8.bf16 %v283_v51  ;;  %v297_v62 = vld [vmem:[#allocation8 + $0x3e8] sm:$0xff] }
 0x16d   :  { %808 = vmatprep.subr.bf16.mxu0 %v361_v63  ;;  %849 = vmatprep.subr.bf16.mxu1 %v363_v0  ;;  %v299_v63 = vld [vmem:[#allocation8 + $0x3f8] sm:$0xff]  ;;  %v520_v0 = vunpack.c.h.s8.bf16 %v280_v56  ;;  %v537_v2 = vunpack.c.l.s8.bf16 %v297_v62  ;;  %v553_v35 = vunpack.c.h.s8.bf16 %v297_v62 }
 0x170   :  { %809 = vmatpush1.bf16.msra.mxu0 %v360_v3  ;;  %850 = vmatpush1.bf16.msra.mxu1 %v362_v4  ;;  %v539_v3 = vunpack.c.l.s8.bf16 %v299_v63  ;;  %v296_v4 = vld [vmem:[#allocation8 + $0x3e0] sm:$0xff] }
 0x171   :  { %810 = vmatprep.subr.bf16.mxu0 %v377_v5  ;;  %851 = vmatprep.subr.bf16.mxu1 %v379_v6  ;;  %v298_v5 = vld [vmem:[#allocation8 + $0x3f0] sm:$0xff]  ;;  %v536_v6 = vunpack.c.l.s8.bf16 %v296_v4 }
 0x172   :  { %v538_v7 = vunpack.c.l.s8.bf16 %v298_v5 }
 0x174   :  { %811 = vmatpush1.bf16.msra.mxu0 %v376_v8  ;;  %852 = vmatpush1.bf16.msra.mxu1 %v378_v9  ;;  %v555_v8 = vunpack.c.h.s8.bf16 %v299_v63  ;;  %v552_v9 = vunpack.c.h.s8.bf16 %v296_v4 }
 0x175   :  { %812 = vmatprep.subr.bf16.mxu0 %v393_v10  ;;  %853 = vmatprep.subr.bf16.mxu1 %v395_v11  ;;  %v554_v10 = vunpack.c.h.s8.bf16 %v298_v5  ;;  %v888_v11 = vlaneseq }
 0x177   :  { %v889_v12 = vshrl.u32 %v888_v11, 7 }
 0x178   :  { %813 = vmatpush1.bf16.msra.mxu0 %v392_v14  ;;  %854 = vmatpush1.bf16.msra.mxu1 %v394_v15  ;;  %v884_v15 = vld [vmem:[#allocation10] sm:$0xff] }
 0x179   :  { %814 = vmatprep.subr.bf16.mxu0 %v409_v16  ;;  %855 = vmatprep.subr.bf16.mxu1 %v411_v17  ;;  %v5987_v13 = vsub.s32 0, %v889_v12  ;;  %v5989_v14 = vsub.s32 2, %v889_v12  ;;  %v5991_v16 = vsub.s32 1, %v889_v12  ;;  %v5993_v17 = vsub.s32 3, %v889_v12 }
 0x17b   :  { %v891_v19 = vrot.slane %v884_v15, %v5987_v13 }
 0x17c   :  { %815 = vmatpush1.bf16.msra.mxu0 %v408_v20  ;;  %856 = vmatpush1.bf16.msra.mxu1 %v410_v21  ;;  %v899_v20 = vrot.slane %v884_v15, %v5989_v14  ;;  %v895_v21 = vrot.slane %v884_v15, %v5991_v16 }
 0x17d   :  { %816 = vmatprep.subr.bf16.mxu0 %v425_v22  ;;  %857 = vmatprep.subr.bf16.mxu1 %v427_v23  ;;  %v991_v22 = vrot.slane %v984_v18, %v5987_v13  ;;  %v999_v23 = vrot.slane %v984_v18, %v5989_v14 }
 0x180   :  { %817 = vmatpush1.bf16.msra.mxu0 %v424_v26  ;;  %858 = vmatpush1.bf16.msra.mxu1 %v426_v27  ;;  %v995_v26 = vrot.slane %v984_v18, %v5991_v16  ;;  %v1003_v27 = vrot.slane %v984_v18, %v5993_v17 }
 0x181   :  { %818 = vmatprep.subr.bf16.mxu0 %v441_v28  ;;  %859 = vmatprep.subr.bf16.mxu1 %v443_v29 }
 0x184   :  { %819 = vmatpush1.bf16.msra.mxu0 %v440_v32  ;;  %860 = vmatpush1.bf16.msra.mxu1 %v442_v33 }
 0x185   :  { %820 = vmatprep.subr.bf16.mxu0 %v457_v34  ;;  %861 = vmatprep.subr.bf16.mxu1 %v459_v36 }
 0x188   :  { %821 = vmatpush1.bf16.msra.mxu0 %v456_v39  ;;  %862 = vmatpush1.bf16.msra.mxu1 %v458_v40 }
 0x189   :  { %822 = vmatprep.subr.bf16.mxu0 %v473_v41  ;;  %863 = vmatprep.subr.bf16.mxu1 %v475_v43 }
 0x18c   :  { %823 = vmatpush1.bf16.msra.mxu0 %v472_v46  ;;  %864 = vmatpush1.bf16.msra.mxu1 %v474_v47 }
 0x18d   :  { %824 = vmatprep.subr.bf16.mxu0 %v489_v48  ;;  %865 = vmatprep.subr.bf16.mxu1 %v491_v49 }
 0x190   :  { %825 = vmatpush1.bf16.msra.mxu0 %v488_v52  ;;  %866 = vmatpush1.bf16.msra.mxu1 %v490_v53  ;;  %v6011_v52 = vsub.s32 4, %v889_v12  ;;  %v6013_v53 = vsub.s32 6, %v889_v12 }
 0x191   :  { %826 = vmatprep.subr.bf16.mxu0 %v505_v54  ;;  %867 = vmatprep.subr.bf16.mxu1 %v507_v55  ;;  %v6015_v54 = vsub.s32 5, %v889_v12  ;;  %v6017_v55 = vsub.s32 7, %v889_v12 }
 0x192   :  { %v907_v56 = vrot.slane %v884_v15, %v6011_v52  ;;  %v915_v57 = vrot.slane %v884_v15, %v6013_v53 }
 0x194   :  { %827 = vmatpush1.bf16.msra.mxu0 %v504_v58  ;;  %868 = vmatpush1.bf16.msra.mxu1 %v506_v59  ;;  %v911_v58 = vrot.slane %v884_v15, %v6015_v54  ;;  %v919_v59 = vrot.slane %v884_v15, %v6017_v55 }
 0x195   :  { %828 = vmatprep.subr.bf16.mxu0 %v521_v60  ;;  %869 = vmatprep.subr.bf16.mxu1 %v523_v61  ;;  %v1007_v60 = vrot.slane %v984_v18, %v6011_v52  ;;  %v1015_v61 = vrot.slane %v984_v18, %v6013_v53 }
 0x198   :  { %829 = vmatpush1.bf16.msra.mxu0 %v520_v0  ;;  %870 = vmatpush1.bf16.msra.mxu1 %v522_v1  ;;  %v1011_v0 = vrot.slane %v984_v18, %v6015_v54  ;;  %v1019_v1 = vrot.slane %v984_v18, %v6017_v55 }
 0x199   :  { %830 = vmatprep.subr.bf16.mxu0 %v537_v2  ;;  %871 = vmatprep.subr.bf16.mxu1 %v539_v3 }
 0x19c   :  { %831 = vmatpush1.bf16.msra.mxu0 %v536_v6  ;;  %872 = vmatpush1.bf16.msra.mxu1 %v538_v7 }
 0x19d   :  { %832 = vmatprep.subr.bf16.mxu0 %v553_v35  ;;  %873 = vmatprep.subr.bf16.mxu1 %v555_v8 }
 0x1a0   :  { %833 = vmatpush1.bf16.msra.mxu0 %v552_v9  ;;  %874 = vmatpush1.bf16.msra.mxu1 %v554_v10 }
 0x1a3   :  { %835 = vmatmul.mubr.bf16.vlgmr.msra.gmra.mrb[12].mxu0 %v5971_v42  ;;  %876 = vmatmul.mubr.bf16.vlgmr.msra.gmra.mrb[12].mxu1 %v5971_v42  ;;  %v903_v42 = vrot.slane %v884_v15, %v5993_v17 }
 0x1b6   :  { %v590_v24 = vpop.f32.mrb[0].mxu0  ;;  %v631_v25 = vpop.f32.mrb[0].mxu1 }
 0x1b7   :  { %v968_v28 = vmul.f32 %v891_v19, %v590_v24  ;;  %v970_v29 = vmul.f32 %v899_v20, %v631_v25  ;;  %v592_v30 = vpop.f32.mrb[1].mxu0  ;;  %v633_v31 = vpop.f32.mrb[1].mxu1 }
 0x1b8   :  { %v969_v32 = vmul.f32 %v895_v21, %v592_v30  ;;  %v971_v33 = vmul.f32 %v903_v42, %v633_v31  ;;  %v594_v34 = vpop.f32.mrb[2].mxu0  ;;  %v635_v36 = vpop.f32.mrb[2].mxu1 }
 0x1b9   :  { %v1068_v37 = vadd.f32 %v991_v22, %v968_v28  ;;  %v1070_v38 = vadd.f32 %v999_v23, %v970_v29  ;;  %v595_v39 = vpop.f32.mrb[3].mxu0  ;;  %v636_v40 = vpop.f32.mrb[3].mxu1 }
 0x1ba   :  { %v1069_v41 = vadd.f32 %v995_v26, %v969_v32  ;;  %v1071_v43 = vadd.f32 %v1003_v27, %v971_v33 }
 0x1bb   :  { %v1084_v44 = vmax.f32 %v1068_v37, 0.0  ;;  %v1086_v45 = vmax.f32 %v1070_v38, 0.0 }
 0x1bc   :  { %v1085_v46 = vmax.f32 %v1069_v41, 0.0  ;;  %v1087_v47 = vmax.f32 %v1071_v43, 0.0 }
 0x1bd   :  { %v6003_v48 = vpack.c.bf16 %v1084_v44, %v1084_v44  ;;  %v6005_v49 = vpack.c.bf16 %v1086_v45, %v1086_v45 }
 0x1be   :  { %v6007_v50 = vpack.c.bf16 %v1085_v46, %v1085_v46  ;;  %v6009_v51 = vpack.c.bf16 %v1087_v47, %v1087_v47 }
 0x1f6   :  { %v672_v62 = vpop.f32.mrb[4].mxu0  ;;  %v713_v63 = vpop.f32.mrb[4].mxu1 }
 0x1f7   :  { %v972_v2 = vmul.f32 %v907_v56, %v672_v62  ;;  %v974_v3 = vmul.f32 %v915_v57, %v713_v63  ;;  %v674_v4 = vpop.f32.mrb[5].mxu0  ;;  %v715_v5 = vpop.f32.mrb[5].mxu1 }
 0x1f8   :  { %v973_v6 = vmul.f32 %v911_v58, %v674_v4  ;;  %v975_v7 = vmul.f32 %v919_v59, %v715_v5  ;;  %v676_v35 = vpop.f32.mrb[6].mxu0  ;;  %v717_v8 = vpop.f32.mrb[6].mxu1 }
 0x1f9   :  { %v1072_v9 = vadd.f32 %v1007_v60, %v972_v2  ;;  %v1074_v10 = vadd.f32 %v1015_v61, %v974_v3  ;;  %v677_v11 = vpop.f32.mrb[7].mxu0  ;;  %v718_v12 = vpop.f32.mrb[7].mxu1 }
 0x1fa   :  { %v1073_v15 = vadd.f32 %v1011_v0, %v973_v6  ;;  %v1075_v19 = vadd.f32 %v1019_v1, %v975_v7 }
 0x1fb   :  { %v1088_v20 = vmax.f32 %v1072_v9, 0.0  ;;  %v1090_v21 = vmax.f32 %v1074_v10, 0.0 }
 0x1fc   :  { %v1089_v42 = vmax.f32 %v1073_v15, 0.0  ;;  %v1091_v18 = vmax.f32 %v1075_v19, 0.0 }
 0x1fd   :  { %v6027_v22 = vpack.c.bf16 %v1088_v20, %v1088_v20  ;;  %v6029_v23 = vpack.c.bf16 %v1090_v21, %v1090_v21 }
 0x1fe   :  { %5707 = shalt.err (!%p5704_p4)  }
 0x1ff   :  { %s5708_s14 = scalar_lea.vmem %s153_s24, 65536  ;;  %p5713_p6 = scmp.lt.s32.totalorder %s153_s24, %s153_s24 }
 0x200   :  { %p5709_p5 = scmp.ne.s32.totalorder %s153_s24, %s5708_s14  ;;  %p5714_p7 = scmp.lt.s32.totalorder %s5708_s14, %s5708_s14 }
 0x202   :  { %p5715_p8 = por %p5714_p7, %p5713_p6 }
 0x204   :  { %p5716_p9 = pnand %p5715_p8, %p5709_p5 }
 0x206   :  { %5719 = shalt.err (!%p5716_p9)  }
 0x207   :  { %155 = dma.hbm_to_vmem [thread:$0]  %s6323_s4, 65536, %s153_s24, [#allocation4]  ;;  %v6043_v24 = vpack.c.bf16 %v1089_v42, %v1089_v42  ;;  %v6045_v25 = vpack.c.bf16 %v1091_v18, %v1091_v18 }
 0x208   :  { %s5720_s15 = scalar_lea.hbm %s6326_s7, 16384 }
 0x209   :  { %p5721_p10 = scmp.ne.s32.totalorder %s6326_s7, %s5720_s15  ;;  %p5724_p11 = scmp.lt.u32.totalorder %s5720_s15, %s6326_s7 }
 0x20b   :  { %p5726_p12 = pnand %p5724_p11, %p5721_p10 }
 0x20d   :  { %5729 = shalt.err (!%p5726_p12)  }
 0x20e   :  { %s5730_s4 = scalar_lea.vmem %s165_s27, 16384  ;;  %p5735_p0 = scmp.lt.s32.totalorder %s165_s27, %s165_s27 }
 0x20f   :  { %p5731_p13 = scmp.ne.s32.totalorder %s165_s27, %s5730_s4  ;;  %p5736_p1 = scmp.lt.s32.totalorder %s5730_s4, %s5730_s4 }
 0x211   :  { %p5737_p2 = por %p5736_p1, %p5735_p0 }
 0x213   :  { %p5738_p3 = pnand %p5737_p2, %p5731_p13 }
 0x215   :  { %5741 = shalt.err (!%p5738_p3)  }
 0x216   :  { %167 = dma.hbm_to_vmem [thread:$0]  %s6326_s7, 16384, %s165_s27, [#allocation4 + $0x1]  ;;  %v885_v26 = vld [vmem:[#allocation10 + $0x8] sm:$0xff]  ;;  %v985_v27 = vld [vmem:[#allocation11 + $0x8] sm:$0xff] }
 0x217   :  { %v923_v28 = vrot.slane %v885_v26, %v5987_v13  ;;  %v931_v29 = vrot.slane %v885_v26, %v5989_v14  ;;  %v927_v30 = vrot.slane %v885_v26, %v5991_v16  ;;  %v935_v31 = vrot.slane %v885_v26, %v5993_v17 }
 0x218   :  { %v1023_v32 = vrot.slane %v985_v27, %v5987_v13  ;;  %v1031_v33 = vrot.slane %v985_v27, %v5989_v14  ;;  %v1027_v37 = vrot.slane %v985_v27, %v5991_v16  ;;  %v1035_v38 = vrot.slane %v985_v27, %v5993_v17 }
 0x219   :  { %v939_v6 = vrot.slane %v885_v26, %v6011_v52  ;;  %v947_v7 = vrot.slane %v885_v26, %v6013_v53  ;;  %v943_v35 = vrot.slane %v885_v26, %v6015_v54  ;;  %v951_v8 = vrot.slane %v885_v26, %v6017_v55 }
 0x21a   :  { %v1039_v9 = vrot.slane %v985_v27, %v6011_v52  ;;  %v1047_v10 = vrot.slane %v985_v27, %v6013_v53  ;;  %v1043_v15 = vrot.slane %v985_v27, %v6015_v54  ;;  %v1051_v19 = vrot.slane %v985_v27, %v6017_v55 }
 0x236   :  { %v754_v34 = vpop.f32.mrb[8].mxu0  ;;  %v795_v36 = vpop.f32.mrb[8].mxu1 }
 0x237   :  { %v976_v39 = vmul.f32 %v923_v28, %v754_v34  ;;  %v978_v40 = vmul.f32 %v931_v29, %v795_v36  ;;  %v756_v41 = vpop.f32.mrb[9].mxu0  ;;  %v797_v43 = vpop.f32.mrb[9].mxu1 }
 0x238   :  { %v977_v44 = vmul.f32 %v927_v30, %v756_v41  ;;  %v979_v45 = vmul.f32 %v935_v31, %v797_v43  ;;  %v758_v46 = vpop.f32.mrb[10].mxu0  ;;  %v799_v47 = vpop.f32.mrb[10].mxu1 }
 0x239   :  { %v1076_v56 = vadd.f32 %v1023_v32, %v976_v39  ;;  %v1078_v57 = vadd.f32 %v1031_v33, %v978_v40  ;;  %v759_v58 = vpop.f32.mrb[11].mxu0  ;;  %v800_v59 = vpop.f32.mrb[11].mxu1 }
 0x23a   :  { %v1077_v60 = vadd.f32 %v1027_v37, %v977_v44  ;;  %v1079_v61 = vadd.f32 %v1035_v38, %v979_v45 }
 0x23b   :  { %v1092_v62 = vmax.f32 %v1076_v56, 0.0  ;;  %v1094_v63 = vmax.f32 %v1078_v57, 0.0 }
 0x23c   :  { %v1093_v0 = vmax.f32 %v1077_v60, 0.0  ;;  %v1095_v1 = vmax.f32 %v1079_v61, 0.0 }
 0x23d   :  { %v6067_v2 = vpack.c.bf16 %v1092_v62, %v1092_v62  ;;  %v6069_v3 = vpack.c.bf16 %v1094_v63, %v1094_v63 }
 0x23e   :  { %v6071_v4 = vpack.c.bf16 %v1093_v0, %v1093_v0  ;;  %v6073_v5 = vpack.c.bf16 %v1095_v1, %v1095_v1 }
 0x276   :  { %v836_v11 = vpop.f32.mrb[12].mxu0  ;;  %v877_v12 = vpop.f32.mrb[12].mxu1 }
 0x277   :  { %v980_v20 = vmul.f32 %v939_v6, %v836_v11  ;;  %v982_v21 = vmul.f32 %v947_v7, %v877_v12  ;;  %v838_v42 = vpop.f32.mrb[13].mxu0  ;;  %v879_v18 = vpop.f32.mrb[13].mxu1 }
 0x278   :  { %v981_v28 = vmul.f32 %v943_v35, %v838_v42  ;;  %v983_v29 = vmul.f32 %v951_v8, %v879_v18  ;;  %v840_v30 = vpop.f32.mrb[14].mxu0  ;;  %v881_v31 = vpop.f32.mrb[14].mxu1 }
 0x279   :  { %v1080_v32 = vadd.f32 %v1039_v9, %v980_v20  ;;  %v1082_v26 = vadd.f32 %v1047_v10, %v982_v21  ;;  %v841_v33 = vpop.f32.mrb[15].mxu0  ;;  %v882_v34 = vpop.f32.mrb[15].mxu1 }
 0x27a   :  { %v1081_v36 = vadd.f32 %v1043_v15, %v981_v28  ;;  %v1083_v37 = vadd.f32 %v1051_v19, %v983_v29 }
 0x27b   :  { %v1096_v38 = vmax.f32 %v1080_v32, 0.0  ;;  %v1098_v39 = vmax.f32 %v1082_v26, 0.0 }
 0x27c   :  { %v1097_v40 = vmax.f32 %v1081_v36, 0.0  ;;  %v1099_v41 = vmax.f32 %v1083_v37, 0.0 }
 0x27d   :  { %v6083_v43 = vpack.c.bf16 %v1096_v38, %v1096_v38  ;;  %v6085_v27 = vpack.c.bf16 %v1098_v39, %v1098_v39 }
 0x27e   :  { %v6087_v44 = vpack.c.bf16 %v1097_v40, %v1097_v40  ;;  %v6089_v45 = vpack.c.bf16 %v1099_v41, %v1099_v41 }
 0x27f   :  { %5774 = dma.done.wait [#allocation4], 65536 }
 0x280   :  { %5775 = vsyncadd [#allocation4], 4294901760  ;;  %2688 = vmatprep.mubr.bf16.mxu0 %v6007_v50  ;;  %3016 = vmatprep.mubr.bf16.mxu1 %v6007_v50  ;;  %v1121_v46 = vld [vmem:[#allocation2 + $0x8] sm:$0xff]  ;;  %v1123_v47 = vld [vmem:[#allocation2 + $0x18] sm:$0xff] }
 0x281   :  { %v1120_v56 = vld [vmem:[#allocation2] sm:$0xff]  ;;  %v1633_v57 = vunpack.c.l.s8.bf16 %v1121_v46  ;;  %v1641_v58 = vunpack.c.h.s8.bf16 %v1121_v46  ;;  %v1635_v59 = vunpack.c.l.s8.bf16 %v1123_v47  ;;  %v1643_v60 = vunpack.c.h.s8.bf16 %v1123_v47  ;;  %v1122_v61 = vld [vmem:[#allocation2 + $0x10] sm:$0xff]  ;;  %v1129_v0 = vld [vmem:[#allocation2 + $0x48] sm:$0xff] }
 0x282   :  { %v1632_v62 = vunpack.c.l.s8.bf16 %v1120_v56  ;;  %v1634_v63 = vunpack.c.l.s8.bf16 %v1122_v61  ;;  %v1131_v1 = vld [vmem:[#allocation2 + $0x58] sm:$0xff]  ;;  %v1640_v6 = vunpack.c.h.s8.bf16 %v1120_v56  ;;  %v1642_v7 = vunpack.c.h.s8.bf16 %v1122_v61  ;;  %v1128_v9 = vld [vmem:[#allocation2 + $0x40] sm:$0xff]  ;;  %v1130_v10 = vld [vmem:[#allocation2 + $0x50] sm:$0xff] }
 0x283   :  { %2656 = vmatprep.subr.bf16.mxu0 %v1633_v57  ;;  %2984 = vmatprep.subr.bf16.mxu1 %v1635_v59  ;;  %v1649_v35 = vunpack.c.l.s8.bf16 %v1129_v0  ;;  %v1651_v8 = vunpack.c.l.s8.bf16 %v1131_v1  ;;  %v1648_v11 = vunpack.c.l.s8.bf16 %v1128_v9  ;;  %v1650_v12 = vunpack.c.l.s8.bf16 %v1130_v10  ;;  %v1137_v20 = vld [vmem:[#allocation2 + $0x88] sm:$0xff]  ;;  %v1139_v21 = vld [vmem:[#allocation2 + $0x98] sm:$0xff]  ;;  %v1136_v30 = vld [vmem:[#allocation2 + $0x80] sm:$0xff] }
 0x284   :  { %2657 = vmatpush1.bf16.msra.mxu0 %v1632_v62  ;;  %2985 = vmatpush1.bf16.msra.mxu1 %v1634_v63  ;;  %v1657_v15 = vunpack.c.h.s8.bf16 %v1129_v0  ;;  %v1659_v19 = vunpack.c.h.s8.bf16 %v1131_v1  ;;  %v1656_v42 = vunpack.c.h.s8.bf16 %v1128_v9  ;;  %v1658_v18 = vunpack.c.h.s8.bf16 %v1130_v10  ;;  %v1138_v31 = vld [vmem:[#allocation2 + $0x90] sm:$0xff]  ;;  %v1145_v36 = vld [vmem:[#allocation2 + $0xc8] sm:$0xff]  ;;  %v1147_v37 = vld [vmem:[#allocation2 + $0xd8] sm:$0xff] }
 0x285   :  { %2658 = vmatprep.subr.bf16.mxu0 %v1641_v58  ;;  %2986 = vmatprep.subr.bf16.mxu1 %v1643_v60  ;;  %v1665_v28 = vunpack.c.l.s8.bf16 %v1137_v20  ;;  %v1667_v29 = vunpack.c.l.s8.bf16 %v1139_v21  ;;  %v1664_v32 = vunpack.c.l.s8.bf16 %v1136_v30  ;;  %v1666_v26 = vunpack.c.l.s8.bf16 %v1138_v31  ;;  %v1144_v46 = vld [vmem:[#allocation2 + $0xc0] sm:$0xff]  ;;  %v1146_v47 = vld [vmem:[#allocation2 + $0xd0] sm:$0xff]  ;;  %v1153_v60 = vld [vmem:[#allocation2 + $0x108] sm:$0xff] }
 0x286   :  { %v1673_v33 = vunpack.c.h.s8.bf16 %v1137_v20  ;;  %v1675_v34 = vunpack.c.h.s8.bf16 %v1139_v21  ;;  %v1672_v38 = vunpack.c.h.s8.bf16 %v1136_v30  ;;  %v1674_v39 = vunpack.c.h.s8.bf16 %v1138_v31  ;;  %v1155_v61 = vld [vmem:[#allocation2 + $0x118] sm:$0xff] }
 0x287   :  { %v1681_v40 = vunpack.c.l.s8.bf16 %v1145_v36  ;;  %v1683_v41 = vunpack.c.l.s8.bf16 %v1147_v37  ;;  %v1680_v56 = vunpack.c.l.s8.bf16 %v1144_v46  ;;  %v1682_v57 = vunpack.c.l.s8.bf16 %v1146_v47 }
 0x288   :  { %2659 = vmatpush1.bf16.msra.mxu0 %v1640_v6  ;;  %2987 = vmatpush1.bf16.msra.mxu1 %v1642_v7  ;;  %v1689_v58 = vunpack.c.h.s8.bf16 %v1145_v36  ;;  %v1691_v59 = vunpack.c.h.s8.bf16 %v1147_v37  ;;  %v1688_v62 = vunpack.c.h.s8.bf16 %v1144_v46  ;;  %v1690_v63 = vunpack.c.h.s8.bf16 %v1146_v47  ;;  %v1152_v6 = vld [vmem:[#allocation2 + $0x100] sm:$0xff]  ;;  %v1154_v7 = vld [vmem:[#allocation2 + $0x110] sm:$0xff] }
 0x289   :  { %2660 = vmatprep.subr.bf16.mxu0 %v1649_v35  ;;  %2988 = vmatprep.subr.bf16.mxu1 %v1651_v8  ;;  %v1697_v0 = vunpack.c.l.s8.bf16 %v1153_v60  ;;  %v1699_v1 = vunpack.c.l.s8.bf16 %v1155_v61  ;;  %v1696_v35 = vunpack.c.l.s8.bf16 %v1152_v6  ;;  %v1698_v8 = vunpack.c.l.s8.bf16 %v1154_v7 }
 0x28a   :  { %v1705_v9 = vunpack.c.h.s8.bf16 %v1153_v60  ;;  %v1707_v10 = vunpack.c.h.s8.bf16 %v1155_v61 }
 0x28c   :  { %2661 = vmatpush1.bf16.msra.mxu0 %v1648_v11  ;;  %2989 = vmatpush1.bf16.msra.mxu1 %v1650_v12  ;;  %v1161_v11 = vld [vmem:[#allocation2 + $0x148] sm:$0xff]  ;;  %v1163_v12 = vld [vmem:[#allocation2 + $0x158] sm:$0xff] }
 0x28d   :  { %2662 = vmatprep.subr.bf16.mxu0 %v1657_v15  ;;  %2990 = vmatprep.subr.bf16.mxu1 %v1659_v19  ;;  %v1704_v15 = vunpack.c.h.s8.bf16 %v1152_v6  ;;  %v1706_v19 = vunpack.c.h.s8.bf16 %v1154_v7  ;;  %v1713_v20 = vunpack.c.l.s8.bf16 %v1161_v11  ;;  %v1715_v21 = vunpack.c.l.s8.bf16 %v1163_v12 }
 0x28e   :  { %v1721_v30 = vunpack.c.h.s8.bf16 %v1161_v11  ;;  %v1723_v31 = vunpack.c.h.s8.bf16 %v1163_v12 }
 0x290   :  { %2663 = vmatpush1.bf16.msra.mxu0 %v1656_v42  ;;  %2991 = vmatpush1.bf16.msra.mxu1 %v1658_v18  ;;  %v1160_v42 = vld [vmem:[#allocation2 + $0x140] sm:$0xff]  ;;  %v1162_v18 = vld [vmem:[#allocation2 + $0x150] sm:$0xff] }
 0x291   :  { %2664 = vmatprep.subr.bf16.mxu0 %v1665_v28  ;;  %2992 = vmatprep.subr.bf16.mxu1 %v1667_v29  ;;  %v1712_v28 = vunpack.c.l.s8.bf16 %v1160_v42  ;;  %v1714_v29 = vunpack.c.l.s8.bf16 %v1162_v18 }
 0x294   :  { %2665 = vmatpush1.bf16.msra.mxu0 %v1664_v32  ;;  %2993 = vmatpush1.bf16.msra.mxu1 %v1666_v26  ;;  %v1169_v32 = vld [vmem:[#allocation2 + $0x188] sm:$0xff]  ;;  %v1171_v26 = vld [vmem:[#allocation2 + $0x198] sm:$0xff] }
 0x295   :  { %2666 = vmatprep.subr.bf16.mxu0 %v1673_v33  ;;  %2994 = vmatprep.subr.bf16.mxu1 %v1675_v34  ;;  %v1720_v33 = vunpack.c.h.s8.bf16 %v1160_v42  ;;  %v1722_v34 = vunpack.c.h.s8.bf16 %v1162_v18  ;;  %v1729_v36 = vunpack.c.l.s8.bf16 %v1169_v32  ;;  %v1731_v37 = vunpack.c.l.s8.bf16 %v1171_v26 }
 0x296   :  { %v1737_v46 = vunpack.c.h.s8.bf16 %v1169_v32  ;;  %v1739_v47 = vunpack.c.h.s8.bf16 %v1171_v26 }
 0x298   :  { %2667 = vmatpush1.bf16.msra.mxu0 %v1672_v38  ;;  %2995 = vmatpush1.bf16.msra.mxu1 %v1674_v39  ;;  %v1168_v38 = vld [vmem:[#allocation2 + $0x180] sm:$0xff]  ;;  %v1170_v39 = vld [vmem:[#allocation2 + $0x190] sm:$0xff] }
 0x299   :  { %2668 = vmatprep.subr.bf16.mxu0 %v1681_v40  ;;  %2996 = vmatprep.subr.bf16.mxu1 %v1683_v41  ;;  %v1728_v40 = vunpack.c.l.s8.bf16 %v1168_v38  ;;  %v1730_v41 = vunpack.c.l.s8.bf16 %v1170_v39 }
 0x29c   :  { %2669 = vmatpush1.bf16.msra.mxu0 %v1680_v56  ;;  %2997 = vmatpush1.bf16.msra.mxu1 %v1682_v57  ;;  %v1177_v56 = vld [vmem:[#allocation2 + $0x1c8] sm:$0xff]  ;;  %v1179_v57 = vld [vmem:[#allocation2 + $0x1d8] sm:$0xff] }
 0x29d   :  { %2670 = vmatprep.subr.bf16.mxu0 %v1689_v58  ;;  %2998 = vmatprep.subr.bf16.mxu1 %v1691_v59  ;;  %v1736_v58 = vunpack.c.h.s8.bf16 %v1168_v38  ;;  %v1738_v59 = vunpack.c.h.s8.bf16 %v1170_v39  ;;  %v1745_v60 = vunpack.c.l.s8.bf16 %v1177_v56  ;;  %v1747_v61 = vunpack.c.l.s8.bf16 %v1179_v57 }
 0x29e   :  { %v1753_v6 = vunpack.c.h.s8.bf16 %v1177_v56  ;;  %v1755_v7 = vunpack.c.h.s8.bf16 %v1179_v57 }
 0x2a0   :  { %2671 = vmatpush1.bf16.msra.mxu0 %v1688_v62  ;;  %2999 = vmatpush1.bf16.msra.mxu1 %v1690_v63  ;;  %v1176_v62 = vld [vmem:[#allocation2 + $0x1c0] sm:$0xff]  ;;  %v1178_v63 = vld [vmem:[#allocation2 + $0x1d0] sm:$0xff] }
 0x2a1   :  { %2672 = vmatprep.subr.bf16.mxu0 %v1697_v0  ;;  %3000 = vmatprep.subr.bf16.mxu1 %v1699_v1  ;;  %v1744_v0 = vunpack.c.l.s8.bf16 %v1176_v62  ;;  %v1746_v1 = vunpack.c.l.s8.bf16 %v1178_v63 }
 0x2a4   :  { %2673 = vmatpush1.bf16.msra.mxu0 %v1696_v35  ;;  %3001 = vmatpush1.bf16.msra.mxu1 %v1698_v8  ;;  %v1185_v35 = vld [vmem:[#allocation2 + $0x208] sm:$0xff]  ;;  %v1187_v8 = vld [vmem:[#allocation2 + $0x218] sm:$0xff] }
 0x2a5   :  { %2674 = vmatprep.subr.bf16.mxu0 %v1705_v9  ;;  %3002 = vmatprep.subr.bf16.mxu1 %v1707_v10  ;;  %v1752_v9 = vunpack.c.h.s8.bf16 %v1176_v62  ;;  %v1754_v10 = vunpack.c.h.s8.bf16 %v1178_v63  ;;  %v1761_v11 = vunpack.c.l.s8.bf16 %v1185_v35  ;;  %v1763_v12 = vunpack.c.l.s8.bf16 %v1187_v8 }
 0x2a6   :  { %v1769_v42 = vunpack.c.h.s8.bf16 %v1185_v35  ;;  %v1771_v18 = vunpack.c.h.s8.bf16 %v1187_v8 }
 0x2a8   :  { %2675 = vmatpush1.bf16.msra.mxu0 %v1704_v15  ;;  %3003 = vmatpush1.bf16.msra.mxu1 %v1706_v19  ;;  %v1184_v15 = vld [vmem:[#allocation2 + $0x200] sm:$0xff]  ;;  %v1186_v19 = vld [vmem:[#allocation2 + $0x210] sm:$0xff] }
 0x2a9   :  { %2676 = vmatprep.subr.bf16.mxu0 %v1713_v20  ;;  %3004 = vmatprep.subr.bf16.mxu1 %v1715_v21  ;;  %v1760_v20 = vunpack.c.l.s8.bf16 %v1184_v15  ;;  %v1762_v21 = vunpack.c.l.s8.bf16 %v1186_v19 }
 0x2ac   :  { %2677 = vmatpush1.bf16.msra.mxu0 %v1712_v28  ;;  %3005 = vmatpush1.bf16.msra.mxu1 %v1714_v29  ;;  %v1193_v28 = vld [vmem:[#allocation2 + $0x248] sm:$0xff]  ;;  %v1195_v29 = vld [vmem:[#allocation2 + $0x258] sm:$0xff] }
 0x2ad   :  { %2678 = vmatprep.subr.bf16.mxu0 %v1721_v30  ;;  %3006 = vmatprep.subr.bf16.mxu1 %v1723_v31  ;;  %v1768_v30 = vunpack.c.h.s8.bf16 %v1184_v15  ;;  %v1770_v31 = vunpack.c.h.s8.bf16 %v1186_v19  ;;  %v1777_v32 = vunpack.c.l.s8.bf16 %v1193_v28  ;;  %v1779_v26 = vunpack.c.l.s8.bf16 %v1195_v29 }
 0x2ae   :  { %v1785_v38 = vunpack.c.h.s8.bf16 %v1193_v28  ;;  %v1787_v39 = vunpack.c.h.s8.bf16 %v1195_v29 }
 0x2b0   :  { %2679 = vmatpush1.bf16.msra.mxu0 %v1720_v33  ;;  %3007 = vmatpush1.bf16.msra.mxu1 %v1722_v34  ;;  %v1192_v33 = vld [vmem:[#allocation2 + $0x240] sm:$0xff]  ;;  %v1194_v34 = vld [vmem:[#allocation2 + $0x250] sm:$0xff] }
 0x2b1   :  { %2680 = vmatprep.subr.bf16.mxu0 %v1729_v36  ;;  %3008 = vmatprep.subr.bf16.mxu1 %v1731_v37  ;;  %v1776_v36 = vunpack.c.l.s8.bf16 %v1192_v33  ;;  %v1778_v37 = vunpack.c.l.s8.bf16 %v1194_v34 }
 0x2b4   :  { %2681 = vmatpush1.bf16.msra.mxu0 %v1728_v40  ;;  %3009 = vmatpush1.bf16.msra.mxu1 %v1730_v41  ;;  %v1201_v40 = vld [vmem:[#allocation2 + $0x288] sm:$0xff]  ;;  %v1203_v41 = vld [vmem:[#allocation2 + $0x298] sm:$0xff] }
 0x2b5   :  { %2682 = vmatprep.subr.bf16.mxu0 %v1737_v46  ;;  %3010 = vmatprep.subr.bf16.mxu1 %v1739_v47  ;;  %v1784_v46 = vunpack.c.h.s8.bf16 %v1192_v33  ;;  %v1786_v47 = vunpack.c.h.s8.bf16 %v1194_v34  ;;  %v1793_v56 = vunpack.c.l.s8.bf16 %v1201_v40  ;;  %v1795_v57 = vunpack.c.l.s8.bf16 %v1203_v41 }
 0x2b6   :  { %v1801_v62 = vunpack.c.h.s8.bf16 %v1201_v40  ;;  %v1803_v63 = vunpack.c.h.s8.bf16 %v1203_v41 }
 0x2b8   :  { %2683 = vmatpush1.bf16.msra.mxu0 %v1736_v58  ;;  %3011 = vmatpush1.bf16.msra.mxu1 %v1738_v59  ;;  %v1200_v58 = vld [vmem:[#allocation2 + $0x280] sm:$0xff]  ;;  %v1202_v59 = vld [vmem:[#allocation2 + $0x290] sm:$0xff] }
 0x2b9   :  { %2684 = vmatprep.subr.bf16.mxu0 %v1745_v60  ;;  %3012 = vmatprep.subr.bf16.mxu1 %v1747_v61  ;;  %v1792_v60 = vunpack.c.l.s8.bf16 %v1200_v58  ;;  %v1794_v61 = vunpack.c.l.s8.bf16 %v1202_v59 }
 0x2bc   :  { %2685 = vmatpush1.bf16.msra.mxu0 %v1744_v0  ;;  %3013 = vmatpush1.bf16.msra.mxu1 %v1746_v1  ;;  %v1209_v0 = vld [vmem:[#allocation2 + $0x2c8] sm:$0xff]  ;;  %v1211_v1 = vld [vmem:[#allocation2 + $0x2d8] sm:$0xff] }
 0x2bd   :  { %2686 = vmatprep.subr.bf16.mxu0 %v1753_v6  ;;  %3014 = vmatprep.subr.bf16.mxu1 %v1755_v7  ;;  %v1800_v6 = vunpack.c.h.s8.bf16 %v1200_v58  ;;  %v1802_v7 = vunpack.c.h.s8.bf16 %v1202_v59  ;;  %v1809_v35 = vunpack.c.l.s8.bf16 %v1209_v0  ;;  %v1811_v8 = vunpack.c.l.s8.bf16 %v1211_v1 }
 0x2be   :  { %v1817_v15 = vunpack.c.h.s8.bf16 %v1209_v0  ;;  %v1819_v19 = vunpack.c.h.s8.bf16 %v1211_v1 }
 0x2c0   :  { %2687 = vmatpush1.bf16.msra.mxu0 %v1752_v9  ;;  %3015 = vmatpush1.bf16.msra.mxu1 %v1754_v10  ;;  %v1208_v9 = vld [vmem:[#allocation2 + $0x2c0] sm:$0xff]  ;;  %v1210_v10 = vld [vmem:[#allocation2 + $0x2d0] sm:$0xff] }
 0x2c1   :  { %2697 = vmatprep.subr.bf16.mxu0 %v1761_v11  ;;  %3025 = vmatprep.subr.bf16.mxu1 %v1763_v12  ;;  %v1808_v11 = vunpack.c.l.s8.bf16 %v1208_v9  ;;  %v1810_v12 = vunpack.c.l.s8.bf16 %v1210_v10 }
 0x2c3   :  { %2689 = vmatmul.mubr.bf16.vlgmr.msra.gmra.mrb[16].mxu0 %v6003_v48  ;;  %3017 = vmatmul.mubr.bf16.vlgmr.msra.gmra.mrb[16].mxu1 %v6003_v48 }
 0x2c4   :  { %2698 = vmatpush1.bf16.msra.mxu0 %v1760_v20  ;;  %3026 = vmatpush1.bf16.msra.mxu1 %v1762_v21  ;;  %v1217_v20 = vld [vmem:[#allocation2 + $0x308] sm:$0xff]  ;;  %v1219_v21 = vld [vmem:[#allocation2 + $0x318] sm:$0xff] }
 0x2c5   :  { %2699 = vmatprep.subr.bf16.mxu0 %v1769_v42  ;;  %3027 = vmatprep.subr.bf16.mxu1 %v1771_v18  ;;  %v1816_v42 = vunpack.c.h.s8.bf16 %v1208_v9  ;;  %v1818_v18 = vunpack.c.h.s8.bf16 %v1210_v10  ;;  %v1825_v28 = vunpack.c.l.s8.bf16 %v1217_v20  ;;  %v1827_v29 = vunpack.c.l.s8.bf16 %v1219_v21 }
 0x2c6   :  { %2729 = vmatprep.mubr.bf16.mxu0 %v6009_v51  ;;  %3057 = vmatprep.mubr.bf16.mxu1 %v6009_v51  ;;  %v1833_v33 = vunpack.c.h.s8.bf16 %v1217_v20  ;;  %v1835_v34 = vunpack.c.h.s8.bf16 %v1219_v21 }
 0x2c8   :  { %2700 = vmatpush1.bf16.msra.mxu0 %v1768_v30  ;;  %3028 = vmatpush1.bf16.msra.mxu1 %v1770_v31  ;;  %v1216_v30 = vld [vmem:[#allocation2 + $0x300] sm:$0xff]  ;;  %v1218_v31 = vld [vmem:[#allocation2 + $0x310] sm:$0xff] }
 0x2c9   :  { %2701 = vmatprep.subr.bf16.mxu0 %v1777_v32  ;;  %3029 = vmatprep.subr.bf16.mxu1 %v1779_v26  ;;  %v1824_v32 = vunpack.c.l.s8.bf16 %v1216_v30  ;;  %v1826_v26 = vunpack.c.l.s8.bf16 %v1218_v31 }
 0x2cc   :  { %2702 = vmatpush1.bf16.msra.mxu0 %v1776_v36  ;;  %3030 = vmatpush1.bf16.msra.mxu1 %v1778_v37  ;;  %v1225_v36 = vld [vmem:[#allocation2 + $0x348] sm:$0xff]  ;;  %v1227_v37 = vld [vmem:[#allocation2 + $0x358] sm:$0xff] }
 0x2cd   :  { %2703 = vmatprep.subr.bf16.mxu0 %v1785_v38  ;;  %3031 = vmatprep.subr.bf16.mxu1 %v1787_v39  ;;  %v1832_v38 = vunpack.c.h.s8.bf16 %v1216_v30  ;;  %v1834_v39 = vunpack.c.h.s8.bf16 %v1218_v31  ;;  %v1841_v40 = vunpack.c.l.s8.bf16 %v1225_v36  ;;  %v1843_v41 = vunpack.c.l.s8.bf16 %v1227_v37 }
 0x2ce   :  { %v1849_v58 = vunpack.c.h.s8.bf16 %v1225_v36  ;;  %v1851_v59 = vunpack.c.h.s8.bf16 %v1227_v37 }
 0x2d0   :  { %2704 = vmatpush1.bf16.msra.mxu0 %v1784_v46  ;;  %3032 = vmatpush1.bf16.msra.mxu1 %v1786_v47  ;;  %v1224_v46 = vld [vmem:[#allocation2 + $0x340] sm:$0xff]  ;;  %v1226_v47 = vld [vmem:[#allocation2 + $0x350] sm:$0xff] }
 0x2d1   :  { %2705 = vmatprep.subr.bf16.mxu0 %v1793_v56  ;;  %3033 = vmatprep.subr.bf16.mxu1 %v1795_v57  ;;  %v1840_v56 = vunpack.c.l.s8.bf16 %v1224_v46  ;;  %v1842_v57 = vunpack.c.l.s8.bf16 %v1226_v47 }
 0x2d4   :  { %2706 = vmatpush1.bf16.msra.mxu0 %v1792_v60  ;;  %3034 = vmatpush1.bf16.msra.mxu1 %v1794_v61  ;;  %v1233_v60 = vld [vmem:[#allocation2 + $0x388] sm:$0xff]  ;;  %v1235_v61 = vld [vmem:[#allocation2 + $0x398] sm:$0xff] }
 0x2d5   :  { %2707 = vmatprep.subr.bf16.mxu0 %v1801_v62  ;;  %3035 = vmatprep.subr.bf16.mxu1 %v1803_v63  ;;  %v1848_v62 = vunpack.c.h.s8.bf16 %v1224_v46  ;;  %v1850_v63 = vunpack.c.h.s8.bf16 %v1226_v47  ;;  %v1857_v0 = vunpack.c.l.s8.bf16 %v1233_v60  ;;  %v1859_v1 = vunpack.c.l.s8.bf16 %v1235_v61 }
 0x2d6   :  { %v1865_v9 = vunpack.c.h.s8.bf16 %v1233_v60  ;;  %v1867_v10 = vunpack.c.h.s8.bf16 %v1235_v61 }
 0x2d8   :  { %2708 = vmatpush1.bf16.msra.mxu0 %v1800_v6  ;;  %3036 = vmatpush1.bf16.msra.mxu1 %v1802_v7  ;;  %v1232_v6 = vld [vmem:[#allocation2 + $0x380] sm:$0xff]  ;;  %v1234_v7 = vld [vmem:[#allocation2 + $0x390] sm:$0xff] }
 0x2d9   :  { %2709 = vmatprep.subr.bf16.mxu0 %v1809_v35  ;;  %3037 = vmatprep.subr.bf16.mxu1 %v1811_v8  ;;  %v1856_v35 = vunpack.c.l.s8.bf16 %v1232_v6  ;;  %v1858_v8 = vunpack.c.l.s8.bf16 %v1234_v7 }
 0x2dc   :  { %2710 = vmatpush1.bf16.msra.mxu0 %v1808_v11  ;;  %3038 = vmatpush1.bf16.msra.mxu1 %v1810_v12  ;;  %v1241_v11 = vld [vmem:[#allocation2 + $0x3c8] sm:$0xff]  ;;  %v1243_v12 = vld [vmem:[#allocation2 + $0x3d8] sm:$0xff] }
 0x2dd   :  { %2711 = vmatprep.subr.bf16.mxu0 %v1817_v15  ;;  %3039 = vmatprep.subr.bf16.mxu1 %v1819_v19  ;;  %v1864_v15 = vunpack.c.h.s8.bf16 %v1232_v6  ;;  %v1866_v19 = vunpack.c.h.s8.bf16 %v1234_v7  ;;  %v1873_v20 = vunpack.c.l.s8.bf16 %v1241_v11  ;;  %v1875_v21 = vunpack.c.l.s8.bf16 %v1243_v12 }
 0x2de   :  { %v1881_v30 = vunpack.c.h.s8.bf16 %v1241_v11  ;;  %v1883_v31 = vunpack.c.h.s8.bf16 %v1243_v12 }
 0x2e0   :  { %2712 = vmatpush1.bf16.msra.mxu0 %v1816_v42  ;;  %3040 = vmatpush1.bf16.msra.mxu1 %v1818_v18  ;;  %v1240_v42 = vld [vmem:[#allocation2 + $0x3c0] sm:$0xff]  ;;  %v1242_v18 = vld [vmem:[#allocation2 + $0x3d0] sm:$0xff] }
 0x2e1   :  { %2713 = vmatprep.subr.bf16.mxu0 %v1825_v28  ;;  %3041 = vmatprep.subr.bf16.mxu1 %v1827_v29  ;;  %v1872_v28 = vunpack.c.l.s8.bf16 %v1240_v42  ;;  %v1874_v29 = vunpack.c.l.s8.bf16 %v1242_v18 }
 0x2e4   :  { %2714 = vmatpush1.bf16.msra.mxu0 %v1824_v32  ;;  %3042 = vmatpush1.bf16.msra.mxu1 %v1826_v26  ;;  %v1249_v32 = vld [vmem:[#allocation2 + $0x408] sm:$0xff]  ;;  %v1251_v26 = vld [vmem:[#allocation2 + $0x418] sm:$0xff] }
 0x2e5   :  { %2715 = vmatprep.subr.bf16.mxu0 %v1833_v33  ;;  %3043 = vmatprep.subr.bf16.mxu1 %v1835_v34  ;;  %v1880_v33 = vunpack.c.h.s8.bf16 %v1240_v42  ;;  %v1882_v34 = vunpack.c.h.s8.bf16 %v1242_v18  ;;  %v1889_v36 = vunpack.c.l.s8.bf16 %v1249_v32  ;;  %v1891_v37 = vunpack.c.l.s8.bf16 %v1251_v26 }
 0x2e6   :  { %v1897_v46 = vunpack.c.h.s8.bf16 %v1249_v32  ;;  %v1899_v47 = vunpack.c.h.s8.bf16 %v1251_v26 }
 0x2e8   :  { %2716 = vmatpush1.bf16.msra.mxu0 %v1832_v38  ;;  %3044 = vmatpush1.bf16.msra.mxu1 %v1834_v39  ;;  %v1248_v38 = vld [vmem:[#allocation2 + $0x400] sm:$0xff]  ;;  %v1250_v39 = vld [vmem:[#allocation2 + $0x410] sm:$0xff] }
 0x2e9   :  { %2717 = vmatprep.subr.bf16.mxu0 %v1841_v40  ;;  %3045 = vmatprep.subr.bf16.mxu1 %v1843_v41  ;;  %v1888_v40 = vunpack.c.l.s8.bf16 %v1248_v38  ;;  %v1890_v41 = vunpack.c.l.s8.bf16 %v1250_v39 }
 0x2ec   :  { %2718 = vmatpush1.bf16.msra.mxu0 %v1840_v56  ;;  %3046 = vmatpush1.bf16.msra.mxu1 %v1842_v57  ;;  %v1257_v56 = vld [vmem:[#allocation2 + $0x448] sm:$0xff]  ;;  %v1259_v57 = vld [vmem:[#allocation2 + $0x458] sm:$0xff] }
 0x2ed   :  { %2719 = vmatprep.subr.bf16.mxu0 %v1849_v58  ;;  %3047 = vmatprep.subr.bf16.mxu1 %v1851_v59  ;;  %v1896_v58 = vunpack.c.h.s8.bf16 %v1248_v38  ;;  %v1898_v59 = vunpack.c.h.s8.bf16 %v1250_v39  ;;  %v1905_v60 = vunpack.c.l.s8.bf16 %v1257_v56  ;;  %v1907_v61 = vunpack.c.l.s8.bf16 %v1259_v57 }
 0x2ee   :  { %v1913_v6 = vunpack.c.h.s8.bf16 %v1257_v56  ;;  %v1915_v7 = vunpack.c.h.s8.bf16 %v1259_v57 }
 0x2f0   :  { %2720 = vmatpush1.bf16.msra.mxu0 %v1848_v62  ;;  %3048 = vmatpush1.bf16.msra.mxu1 %v1850_v63  ;;  %v1256_v62 = vld [vmem:[#allocation2 + $0x440] sm:$0xff]  ;;  %v1258_v63 = vld [vmem:[#allocation2 + $0x450] sm:$0xff] }
 0x2f1   :  { %2721 = vmatprep.subr.bf16.mxu0 %v1857_v0  ;;  %3049 = vmatprep.subr.bf16.mxu1 %v1859_v1  ;;  %v1904_v0 = vunpack.c.l.s8.bf16 %v1256_v62  ;;  %v1906_v1 = vunpack.c.l.s8.bf16 %v1258_v63 }
 0x2f4   :  { %2722 = vmatpush1.bf16.msra.mxu0 %v1856_v35  ;;  %3050 = vmatpush1.bf16.msra.mxu1 %v1858_v8  ;;  %v1265_v35 = vld [vmem:[#allocation2 + $0x488] sm:$0xff]  ;;  %v1267_v8 = vld [vmem:[#allocation2 + $0x498] sm:$0xff] }
 0x2f5   :  { %2723 = vmatprep.subr.bf16.mxu0 %v1865_v9  ;;  %3051 = vmatprep.subr.bf16.mxu1 %v1867_v10  ;;  %v1912_v9 = vunpack.c.h.s8.bf16 %v1256_v62  ;;  %v1914_v10 = vunpack.c.h.s8.bf16 %v1258_v63  ;;  %v1921_v11 = vunpack.c.l.s8.bf16 %v1265_v35  ;;  %v1923_v12 = vunpack.c.l.s8.bf16 %v1267_v8 }
 0x2f6   :  { %v1929_v42 = vunpack.c.h.s8.bf16 %v1265_v35  ;;  %v1931_v18 = vunpack.c.h.s8.bf16 %v1267_v8 }
 0x2f8   :  { %2724 = vmatpush1.bf16.msra.mxu0 %v1864_v15  ;;  %3052 = vmatpush1.bf16.msra.mxu1 %v1866_v19  ;;  %v1264_v15 = vld [vmem:[#allocation2 + $0x480] sm:$0xff]  ;;  %v1266_v19 = vld [vmem:[#allocation2 + $0x490] sm:$0xff] }
 0x2f9   :  { %2725 = vmatprep.subr.bf16.mxu0 %v1873_v20  ;;  %3053 = vmatprep.subr.bf16.mxu1 %v1875_v21  ;;  %v1920_v20 = vunpack.c.l.s8.bf16 %v1264_v15  ;;  %v1922_v21 = vunpack.c.l.s8.bf16 %v1266_v19 }
 0x2fc   :  { %2726 = vmatpush1.bf16.msra.mxu0 %v1872_v28  ;;  %3054 = vmatpush1.bf16.msra.mxu1 %v1874_v29  ;;  %v1273_v28 = vld [vmem:[#allocation2 + $0x4c8] sm:$0xff]  ;;  %v1275_v29 = vld [vmem:[#allocation2 + $0x4d8] sm:$0xff] }
 0x2fd   :  { %2727 = vmatprep.subr.bf16.mxu0 %v1881_v30  ;;  %3055 = vmatprep.subr.bf16.mxu1 %v1883_v31  ;;  %v1928_v30 = vunpack.c.h.s8.bf16 %v1264_v15  ;;  %v1930_v31 = vunpack.c.h.s8.bf16 %v1266_v19  ;;  %v1937_v32 = vunpack.c.l.s8.bf16 %v1273_v28  ;;  %v1939_v26 = vunpack.c.l.s8.bf16 %v1275_v29 }
 0x2fe   :  { %v1945_v38 = vunpack.c.h.s8.bf16 %v1273_v28  ;;  %v1947_v39 = vunpack.c.h.s8.bf16 %v1275_v29 }
 0x300   :  { %2728 = vmatpush1.bf16.msra.mxu0 %v1880_v33  ;;  %3056 = vmatpush1.bf16.msra.mxu1 %v1882_v34  ;;  %v1272_v33 = vld [vmem:[#allocation2 + $0x4c0] sm:$0xff]  ;;  %v1274_v34 = vld [vmem:[#allocation2 + $0x4d0] sm:$0xff] }
 0x301   :  { %2738 = vmatprep.subr.bf16.mxu0 %v1889_v36  ;;  %3066 = vmatprep.subr.bf16.mxu1 %v1891_v37  ;;  %v1936_v36 = vunpack.c.l.s8.bf16 %v1272_v33  ;;  %v1938_v37 = vunpack.c.l.s8.bf16 %v1274_v34 }
 0x303   :  { %2730 = vmatmul.mubr.bf16.vlgmr.msra.gmra.mrb[16].mxu0 %v6005_v49  ;;  %3058 = vmatmul.mubr.bf16.vlgmr.msra.gmra.mrb[16].mxu1 %v6005_v49 }
 0x304   :  { %2739 = vmatpush1.bf16.msra.mxu0 %v1888_v40  ;;  %3067 = vmatpush1.bf16.msra.mxu1 %v1890_v41  ;;  %v1281_v40 = vld [vmem:[#allocation2 + $0x508] sm:$0xff]  ;;  %v1283_v41 = vld [vmem:[#allocation2 + $0x518] sm:$0xff] }
 0x305   :  { %2740 = vmatprep.subr.bf16.mxu0 %v1897_v46  ;;  %3068 = vmatprep.subr.bf16.mxu1 %v1899_v47  ;;  %v1944_v46 = vunpack.c.h.s8.bf16 %v1272_v33  ;;  %v1946_v47 = vunpack.c.h.s8.bf16 %v1274_v34  ;;  %v1953_v56 = vunpack.c.l.s8.bf16 %v1281_v40  ;;  %v1955_v57 = vunpack.c.l.s8.bf16 %v1283_v41 }
 0x306   :  { %2770 = vmatprep.mubr.bf16.mxu0 %v6043_v24  ;;  %3098 = vmatprep.mubr.bf16.mxu1 %v6043_v24  ;;  %v1961_v62 = vunpack.c.h.s8.bf16 %v1281_v40  ;;  %v1963_v63 = vunpack.c.h.s8.bf16 %v1283_v41 }
 0x308   :  { %2741 = vmatpush1.bf16.msra.mxu0 %v1896_v58  ;;  %3069 = vmatpush1.bf16.msra.mxu1 %v1898_v59  ;;  %v1280_v58 = vld [vmem:[#allocation2 + $0x500] sm:$0xff]  ;;  %v1282_v59 = vld [vmem:[#allocation2 + $0x510] sm:$0xff] }
 0x309   :  { %2742 = vmatprep.subr.bf16.mxu0 %v1905_v60  ;;  %3070 = vmatprep.subr.bf16.mxu1 %v1907_v61  ;;  %v1952_v60 = vunpack.c.l.s8.bf16 %v1280_v58  ;;  %v1954_v61 = vunpack.c.l.s8.bf16 %v1282_v59 }
 0x30c   :  { %2743 = vmatpush1.bf16.msra.mxu0 %v1904_v0  ;;  %3071 = vmatpush1.bf16.msra.mxu1 %v1906_v1  ;;  %v1289_v0 = vld [vmem:[#allocation2 + $0x548] sm:$0xff]  ;;  %v1291_v1 = vld [vmem:[#allocation2 + $0x558] sm:$0xff] }
 0x30d   :  { %2744 = vmatprep.subr.bf16.mxu0 %v1913_v6  ;;  %3072 = vmatprep.subr.bf16.mxu1 %v1915_v7  ;;  %v1960_v6 = vunpack.c.h.s8.bf16 %v1280_v58  ;;  %v1962_v7 = vunpack.c.h.s8.bf16 %v1282_v59  ;;  %v1969_v35 = vunpack.c.l.s8.bf16 %v1289_v0  ;;  %v1971_v8 = vunpack.c.l.s8.bf16 %v1291_v1 }
 0x30e   :  { %v1977_v15 = vunpack.c.h.s8.bf16 %v1289_v0  ;;  %v1979_v19 = vunpack.c.h.s8.bf16 %v1291_v1 }
 0x310   :  { %2745 = vmatpush1.bf16.msra.mxu0 %v1912_v9  ;;  %3073 = vmatpush1.bf16.msra.mxu1 %v1914_v10  ;;  %v1288_v9 = vld [vmem:[#allocation2 + $0x540] sm:$0xff]  ;;  %v1290_v10 = vld [vmem:[#allocation2 + $0x550] sm:$0xff] }
 0x311   :  { %2746 = vmatprep.subr.bf16.mxu0 %v1921_v11  ;;  %3074 = vmatprep.subr.bf16.mxu1 %v1923_v12  ;;  %v1968_v11 = vunpack.c.l.s8.bf16 %v1288_v9  ;;  %v1970_v12 = vunpack.c.l.s8.bf16 %v1290_v10 }
 0x314   :  { %2747 = vmatpush1.bf16.msra.mxu0 %v1920_v20  ;;  %3075 = vmatpush1.bf16.msra.mxu1 %v1922_v21  ;;  %v1297_v20 = vld [vmem:[#allocation2 + $0x588] sm:$0xff]  ;;  %v1299_v21 = vld [vmem:[#allocation2 + $0x598] sm:$0xff] }
 0x315   :  { %2748 = vmatprep.subr.bf16.mxu0 %v1929_v42  ;;  %3076 = vmatprep.subr.bf16.mxu1 %v1931_v18  ;;  %v1976_v42 = vunpack.c.h.s8.bf16 %v1288_v9  ;;  %v1978_v18 = vunpack.c.h.s8.bf16 %v1290_v10  ;;  %v1985_v28 = vunpack.c.l.s8.bf16 %v1297_v20  ;;  %v1987_v29 = vunpack.c.l.s8.bf16 %v1299_v21 }
 0x316   :  { %v1993_v33 = vunpack.c.h.s8.bf16 %v1297_v20  ;;  %v1995_v34 = vunpack.c.h.s8.bf16 %v1299_v21 }
 0x318   :  { %2749 = vmatpush1.bf16.msra.mxu0 %v1928_v30  ;;  %3077 = vmatpush1.bf16.msra.mxu1 %v1930_v31  ;;  %v1296_v30 = vld [vmem:[#allocation2 + $0x580] sm:$0xff]  ;;  %v1298_v31 = vld [vmem:[#allocation2 + $0x590] sm:$0xff] }
 0x319   :  { %2750 = vmatprep.subr.bf16.mxu0 %v1937_v32  ;;  %3078 = vmatprep.subr.bf16.mxu1 %v1939_v26  ;;  %v1984_v32 = vunpack.c.l.s8.bf16 %v1296_v30  ;;  %v1986_v26 = vunpack.c.l.s8.bf16 %v1298_v31 }
 0x31c   :  { %2751 = vmatpush1.bf16.msra.mxu0 %v1936_v36  ;;  %3079 = vmatpush1.bf16.msra.mxu1 %v1938_v37  ;;  %v1305_v36 = vld [vmem:[#allocation2 + $0x5c8] sm:$0xff]  ;;  %v1307_v37 = vld [vmem:[#allocation2 + $0x5d8] sm:$0xff] }
 0x31d   :  { %2752 = vmatprep.subr.bf16.mxu0 %v1945_v38  ;;  %3080 = vmatprep.subr.bf16.mxu1 %v1947_v39  ;;  %v1992_v38 = vunpack.c.h.s8.bf16 %v1296_v30  ;;  %v1994_v39 = vunpack.c.h.s8.bf16 %v1298_v31  ;;  %v2001_v40 = vunpack.c.l.s8.bf16 %v1305_v36  ;;  %v2003_v41 = vunpack.c.l.s8.bf16 %v1307_v37 }
 0x31e   :  { %v2009_v58 = vunpack.c.h.s8.bf16 %v1305_v36  ;;  %v2011_v59 = vunpack.c.h.s8.bf16 %v1307_v37 }
 0x320   :  { %2753 = vmatpush1.bf16.msra.mxu0 %v1944_v46  ;;  %3081 = vmatpush1.bf16.msra.mxu1 %v1946_v47  ;;  %v1304_v46 = vld [vmem:[#allocation2 + $0x5c0] sm:$0xff]  ;;  %v1306_v47 = vld [vmem:[#allocation2 + $0x5d0] sm:$0xff] }
 0x321   :  { %2754 = vmatprep.subr.bf16.mxu0 %v1953_v56  ;;  %3082 = vmatprep.subr.bf16.mxu1 %v1955_v57  ;;  %v2000_v56 = vunpack.c.l.s8.bf16 %v1304_v46  ;;  %v2002_v57 = vunpack.c.l.s8.bf16 %v1306_v47 }
 0x324   :  { %2755 = vmatpush1.bf16.msra.mxu0 %v1952_v60  ;;  %3083 = vmatpush1.bf16.msra.mxu1 %v1954_v61  ;;  %v1313_v60 = vld [vmem:[#allocation2 + $0x608] sm:$0xff]  ;;  %v1315_v61 = vld [vmem:[#allocation2 + $0x618] sm:$0xff] }
 0x325   :  { %2756 = vmatprep.subr.bf16.mxu0 %v1961_v62  ;;  %3084 = vmatprep.subr.bf16.mxu1 %v1963_v63  ;;  %v2008_v62 = vunpack.c.h.s8.bf16 %v1304_v46  ;;  %v2010_v63 = vunpack.c.h.s8.bf16 %v1306_v47  ;;  %v2017_v0 = vunpack.c.l.s8.bf16 %v1313_v60  ;;  %v2019_v1 = vunpack.c.l.s8.bf16 %v1315_v61 }
 0x326   :  { %v2025_v9 = vunpack.c.h.s8.bf16 %v1313_v60  ;;  %v2027_v10 = vunpack.c.h.s8.bf16 %v1315_v61 }
 0x328   :  { %2757 = vmatpush1.bf16.msra.mxu0 %v1960_v6  ;;  %3085 = vmatpush1.bf16.msra.mxu1 %v1962_v7  ;;  %v1312_v6 = vld [vmem:[#allocation2 + $0x600] sm:$0xff]  ;;  %v1314_v7 = vld [vmem:[#allocation2 + $0x610] sm:$0xff] }
 0x329   :  { %2758 = vmatprep.subr.bf16.mxu0 %v1969_v35  ;;  %3086 = vmatprep.subr.bf16.mxu1 %v1971_v8  ;;  %v2016_v35 = vunpack.c.l.s8.bf16 %v1312_v6  ;;  %v2018_v8 = vunpack.c.l.s8.bf16 %v1314_v7 }
 0x32c   :  { %2759 = vmatpush1.bf16.msra.mxu0 %v1968_v11  ;;  %3087 = vmatpush1.bf16.msra.mxu1 %v1970_v12  ;;  %v1321_v11 = vld [vmem:[#allocation2 + $0x648] sm:$0xff]  ;;  %v1323_v12 = vld [vmem:[#allocation2 + $0x658] sm:$0xff] }
 0x32d   :  { %2760 = vmatprep.subr.bf16.mxu0 %v1977_v15  ;;  %3088 = vmatprep.subr.bf16.mxu1 %v1979_v19  ;;  %v2024_v15 = vunpack.c.h.s8.bf16 %v1312_v6  ;;  %v2026_v19 = vunpack.c.h.s8.bf16 %v1314_v7  ;;  %v2033_v20 = vunpack.c.l.s8.bf16 %v1321_v11  ;;  %v2035_v21 = vunpack.c.l.s8.bf16 %v1323_v12 }
 0x32e   :  { %v2041_v30 = vunpack.c.h.s8.bf16 %v1321_v11  ;;  %v2043_v31 = vunpack.c.h.s8.bf16 %v1323_v12 }
 0x330   :  { %2761 = vmatpush1.bf16.msra.mxu0 %v1976_v42  ;;  %3089 = vmatpush1.bf16.msra.mxu1 %v1978_v18  ;;  %v1320_v42 = vld [vmem:[#allocation2 + $0x640] sm:$0xff]  ;;  %v1322_v18 = vld [vmem:[#allocation2 + $0x650] sm:$0xff] }
 0x331   :  { %2762 = vmatprep.subr.bf16.mxu0 %v1985_v28  ;;  %3090 = vmatprep.subr.bf16.mxu1 %v1987_v29  ;;  %v2032_v28 = vunpack.c.l.s8.bf16 %v1320_v42  ;;  %v2034_v29 = vunpack.c.l.s8.bf16 %v1322_v18 }
 0x334   :  { %2763 = vmatpush1.bf16.msra.mxu0 %v1984_v32  ;;  %3091 = vmatpush1.bf16.msra.mxu1 %v1986_v26  ;;  %v1329_v32 = vld [vmem:[#allocation2 + $0x688] sm:$0xff]  ;;  %v1331_v26 = vld [vmem:[#allocation2 + $0x698] sm:$0xff] }
 0x335   :  { %2764 = vmatprep.subr.bf16.mxu0 %v1993_v33  ;;  %3092 = vmatprep.subr.bf16.mxu1 %v1995_v34  ;;  %v2040_v33 = vunpack.c.h.s8.bf16 %v1320_v42  ;;  %v2042_v34 = vunpack.c.h.s8.bf16 %v1322_v18  ;;  %v2049_v36 = vunpack.c.l.s8.bf16 %v1329_v32  ;;  %v2051_v37 = vunpack.c.l.s8.bf16 %v1331_v26 }
 0x336   :  { %v2057_v46 = vunpack.c.h.s8.bf16 %v1329_v32  ;;  %v2059_v47 = vunpack.c.h.s8.bf16 %v1331_v26 }
 0x338   :  { %2765 = vmatpush1.bf16.msra.mxu0 %v1992_v38  ;;  %3093 = vmatpush1.bf16.msra.mxu1 %v1994_v39  ;;  %v1328_v38 = vld [vmem:[#allocation2 + $0x680] sm:$0xff]  ;;  %v1330_v39 = vld [vmem:[#allocation2 + $0x690] sm:$0xff] }
 0x339   :  { %2766 = vmatprep.subr.bf16.mxu0 %v2001_v40  ;;  %3094 = vmatprep.subr.bf16.mxu1 %v2003_v41  ;;  %v2048_v40 = vunpack.c.l.s8.bf16 %v1328_v38  ;;  %v2050_v41 = vunpack.c.l.s8.bf16 %v1330_v39 }
 0x33c   :  { %2767 = vmatpush1.bf16.msra.mxu0 %v2000_v56  ;;  %3095 = vmatpush1.bf16.msra.mxu1 %v2002_v57  ;;  %v1337_v56 = vld [vmem:[#allocation2 + $0x6c8] sm:$0xff]  ;;  %v1339_v57 = vld [vmem:[#allocation2 + $0x6d8] sm:$0xff] }
 0x33d   :  { %2768 = vmatprep.subr.bf16.mxu0 %v2009_v58  ;;  %3096 = vmatprep.subr.bf16.mxu1 %v2011_v59  ;;  %v2056_v58 = vunpack.c.h.s8.bf16 %v1328_v38  ;;  %v2058_v59 = vunpack.c.h.s8.bf16 %v1330_v39  ;;  %v2065_v60 = vunpack.c.l.s8.bf16 %v1337_v56  ;;  %v2067_v61 = vunpack.c.l.s8.bf16 %v1339_v57 }
 0x33e   :  { %v2073_v6 = vunpack.c.h.s8.bf16 %v1337_v56  ;;  %v2075_v7 = vunpack.c.h.s8.bf16 %v1339_v57 }
 0x340   :  { %2769 = vmatpush1.bf16.msra.mxu0 %v2008_v62  ;;  %3097 = vmatpush1.bf16.msra.mxu1 %v2010_v63  ;;  %v1336_v62 = vld [vmem:[#allocation2 + $0x6c0] sm:$0xff]  ;;  %v1338_v63 = vld [vmem:[#allocation2 + $0x6d0] sm:$0xff] }
 0x341   :  { %2779 = vmatprep.subr.bf16.mxu0 %v2017_v0  ;;  %3107 = vmatprep.subr.bf16.mxu1 %v2019_v1  ;;  %v2064_v0 = vunpack.c.l.s8.bf16 %v1336_v62  ;;  %v2066_v1 = vunpack.c.l.s8.bf16 %v1338_v63 }
 0x343   :  { %2771 = vmatmul.mubr.bf16.vlgmr.msra.gmra.mrb[16].mxu0 %v6027_v22  ;;  %3099 = vmatmul.mubr.bf16.vlgmr.msra.gmra.mrb[16].mxu1 %v6027_v22 }
 0x344   :  { %2780 = vmatpush1.bf16.msra.mxu0 %v2016_v35  ;;  %3108 = vmatpush1.bf16.msra.mxu1 %v2018_v8  ;;  %v1345_v35 = vld [vmem:[#allocation2 + $0x708] sm:$0xff]  ;;  %v1347_v8 = vld [vmem:[#allocation2 + $0x718] sm:$0xff] }
 0x345   :  { %2781 = vmatprep.subr.bf16.mxu0 %v2025_v9  ;;  %3109 = vmatprep.subr.bf16.mxu1 %v2027_v10  ;;  %v2072_v9 = vunpack.c.h.s8.bf16 %v1336_v62  ;;  %v2074_v10 = vunpack.c.h.s8.bf16 %v1338_v63  ;;  %v2081_v11 = vunpack.c.l.s8.bf16 %v1345_v35  ;;  %v2083_v12 = vunpack.c.l.s8.bf16 %v1347_v8 }
 0x346   :  { %2811 = vmatprep.mubr.bf16.mxu0 %v6045_v25  ;;  %3139 = vmatprep.mubr.bf16.mxu1 %v6045_v25  ;;  %v2089_v42 = vunpack.c.h.s8.bf16 %v1345_v35  ;;  %v2091_v18 = vunpack.c.h.s8.bf16 %v1347_v8 }
 0x348   :  { %2782 = vmatpush1.bf16.msra.mxu0 %v2024_v15  ;;  %3110 = vmatpush1.bf16.msra.mxu1 %v2026_v19  ;;  %v1344_v15 = vld [vmem:[#allocation2 + $0x700] sm:$0xff]  ;;  %v1346_v19 = vld [vmem:[#allocation2 + $0x710] sm:$0xff] }
 0x349   :  { %2783 = vmatprep.subr.bf16.mxu0 %v2033_v20  ;;  %3111 = vmatprep.subr.bf16.mxu1 %v2035_v21  ;;  %v2080_v20 = vunpack.c.l.s8.bf16 %v1344_v15  ;;  %v2082_v21 = vunpack.c.l.s8.bf16 %v1346_v19 }
 0x34c   :  { %2784 = vmatpush1.bf16.msra.mxu0 %v2032_v28  ;;  %3112 = vmatpush1.bf16.msra.mxu1 %v2034_v29  ;;  %v1353_v28 = vld [vmem:[#allocation2 + $0x748] sm:$0xff]  ;;  %v1355_v29 = vld [vmem:[#allocation2 + $0x758] sm:$0xff] }
 0x34d   :  { %2785 = vmatprep.subr.bf16.mxu0 %v2041_v30  ;;  %3113 = vmatprep.subr.bf16.mxu1 %v2043_v31  ;;  %v2088_v30 = vunpack.c.h.s8.bf16 %v1344_v15  ;;  %v2090_v31 = vunpack.c.h.s8.bf16 %v1346_v19  ;;  %v2097_v32 = vunpack.c.l.s8.bf16 %v1353_v28  ;;  %v2099_v26 = vunpack.c.l.s8.bf16 %v1355_v29 }
 0x34e   :  { %v2105_v38 = vunpack.c.h.s8.bf16 %v1353_v28  ;;  %v2107_v39 = vunpack.c.h.s8.bf16 %v1355_v29 }
 0x350   :  { %2786 = vmatpush1.bf16.msra.mxu0 %v2040_v33  ;;  %3114 = vmatpush1.bf16.msra.mxu1 %v2042_v34  ;;  %v1352_v33 = vld [vmem:[#allocation2 + $0x740] sm:$0xff]  ;;  %v1354_v34 = vld [vmem:[#allocation2 + $0x750] sm:$0xff] }
 0x351   :  { %2787 = vmatprep.subr.bf16.mxu0 %v2049_v36  ;;  %3115 = vmatprep.subr.bf16.mxu1 %v2051_v37  ;;  %v2096_v36 = vunpack.c.l.s8.bf16 %v1352_v33  ;;  %v2098_v37 = vunpack.c.l.s8.bf16 %v1354_v34 }
 0x354   :  { %2788 = vmatpush1.bf16.msra.mxu0 %v2048_v40  ;;  %3116 = vmatpush1.bf16.msra.mxu1 %v2050_v41  ;;  %v1361_v40 = vld [vmem:[#allocation2 + $0x788] sm:$0xff]  ;;  %v1363_v41 = vld [vmem:[#allocation2 + $0x798] sm:$0xff] }
 0x355   :  { %2789 = vmatprep.subr.bf16.mxu0 %v2057_v46  ;;  %3117 = vmatprep.subr.bf16.mxu1 %v2059_v47  ;;  %v2104_v46 = vunpack.c.h.s8.bf16 %v1352_v33  ;;  %v2106_v47 = vunpack.c.h.s8.bf16 %v1354_v34  ;;  %v2113_v56 = vunpack.c.l.s8.bf16 %v1361_v40  ;;  %v2115_v57 = vunpack.c.l.s8.bf16 %v1363_v41 }
 0x356   :  { %v2121_v62 = vunpack.c.h.s8.bf16 %v1361_v40  ;;  %v2123_v63 = vunpack.c.h.s8.bf16 %v1363_v41 }
 0x358   :  { %2790 = vmatpush1.bf16.msra.mxu0 %v2056_v58  ;;  %3118 = vmatpush1.bf16.msra.mxu1 %v2058_v59  ;;  %v1360_v58 = vld [vmem:[#allocation2 + $0x780] sm:$0xff]  ;;  %v1362_v59 = vld [vmem:[#allocation2 + $0x790] sm:$0xff] }
 0x359   :  { %2791 = vmatprep.subr.bf16.mxu0 %v2065_v60  ;;  %3119 = vmatprep.subr.bf16.mxu1 %v2067_v61  ;;  %v2112_v60 = vunpack.c.l.s8.bf16 %v1360_v58  ;;  %v2114_v61 = vunpack.c.l.s8.bf16 %v1362_v59 }
 0x35c   :  { %2792 = vmatpush1.bf16.msra.mxu0 %v2064_v0  ;;  %3120 = vmatpush1.bf16.msra.mxu1 %v2066_v1  ;;  %v1369_v0 = vld [vmem:[#allocation2 + $0x7c8] sm:$0xff]  ;;  %v1371_v1 = vld [vmem:[#allocation2 + $0x7d8] sm:$0xff] }
 0x35d   :  { %2793 = vmatprep.subr.bf16.mxu0 %v2073_v6  ;;  %3121 = vmatprep.subr.bf16.mxu1 %v2075_v7  ;;  %v2120_v6 = vunpack.c.h.s8.bf16 %v1360_v58  ;;  %v2122_v7 = vunpack.c.h.s8.bf16 %v1362_v59  ;;  %v2129_v35 = vunpack.c.l.s8.bf16 %v1369_v0  ;;  %v2131_v8 = vunpack.c.l.s8.bf16 %v1371_v1 }
 0x35e   :  { %v2137_v15 = vunpack.c.h.s8.bf16 %v1369_v0  ;;  %v2139_v19 = vunpack.c.h.s8.bf16 %v1371_v1 }
 0x360   :  { %2794 = vmatpush1.bf16.msra.mxu0 %v2072_v9  ;;  %3122 = vmatpush1.bf16.msra.mxu1 %v2074_v10  ;;  %v1368_v9 = vld [vmem:[#allocation2 + $0x7c0] sm:$0xff]  ;;  %v1370_v10 = vld [vmem:[#allocation2 + $0x7d0] sm:$0xff] }
 0x361   :  { %2795 = vmatprep.subr.bf16.mxu0 %v2081_v11  ;;  %3123 = vmatprep.subr.bf16.mxu1 %v2083_v12  ;;  %v2128_v11 = vunpack.c.l.s8.bf16 %v1368_v9  ;;  %v2130_v12 = vunpack.c.l.s8.bf16 %v1370_v10 }
 0x364   :  { %2796 = vmatpush1.bf16.msra.mxu0 %v2080_v20  ;;  %3124 = vmatpush1.bf16.msra.mxu1 %v2082_v21  ;;  %v1377_v20 = vld [vmem:[#allocation2 + $0x808] sm:$0xff]  ;;  %v1379_v21 = vld [vmem:[#allocation2 + $0x818] sm:$0xff] }
 0x365   :  { %2797 = vmatprep.subr.bf16.mxu0 %v2089_v42  ;;  %3125 = vmatprep.subr.bf16.mxu1 %v2091_v18  ;;  %v2136_v42 = vunpack.c.h.s8.bf16 %v1368_v9  ;;  %v2138_v18 = vunpack.c.h.s8.bf16 %v1370_v10  ;;  %v2145_v28 = vunpack.c.l.s8.bf16 %v1377_v20  ;;  %v2147_v29 = vunpack.c.l.s8.bf16 %v1379_v21 }
 0x366   :  { %v2153_v33 = vunpack.c.h.s8.bf16 %v1377_v20  ;;  %v2155_v34 = vunpack.c.h.s8.bf16 %v1379_v21 }
 0x368   :  { %2798 = vmatpush1.bf16.msra.mxu0 %v2088_v30  ;;  %3126 = vmatpush1.bf16.msra.mxu1 %v2090_v31  ;;  %v1376_v30 = vld [vmem:[#allocation2 + $0x800] sm:$0xff]  ;;  %v1378_v31 = vld [vmem:[#allocation2 + $0x810] sm:$0xff] }
 0x369   :  { %2799 = vmatprep.subr.bf16.mxu0 %v2097_v32  ;;  %3127 = vmatprep.subr.bf16.mxu1 %v2099_v26  ;;  %v2144_v32 = vunpack.c.l.s8.bf16 %v1376_v30  ;;  %v2146_v26 = vunpack.c.l.s8.bf16 %v1378_v31 }
 0x36c   :  { %2800 = vmatpush1.bf16.msra.mxu0 %v2096_v36  ;;  %3128 = vmatpush1.bf16.msra.mxu1 %v2098_v37  ;;  %v1385_v36 = vld [vmem:[#allocation2 + $0x848] sm:$0xff]  ;;  %v1387_v37 = vld [vmem:[#allocation2 + $0x858] sm:$0xff] }
 0x36d   :  { %2801 = vmatprep.subr.bf16.mxu0 %v2105_v38  ;;  %3129 = vmatprep.subr.bf16.mxu1 %v2107_v39  ;;  %v2152_v38 = vunpack.c.h.s8.bf16 %v1376_v30  ;;  %v2154_v39 = vunpack.c.h.s8.bf16 %v1378_v31  ;;  %v2161_v40 = vunpack.c.l.s8.bf16 %v1385_v36  ;;  %v2163_v41 = vunpack.c.l.s8.bf16 %v1387_v37 }
 0x36e   :  { %v2169_v58 = vunpack.c.h.s8.bf16 %v1385_v36  ;;  %v2171_v59 = vunpack.c.h.s8.bf16 %v1387_v37 }
 0x370   :  { %2802 = vmatpush1.bf16.msra.mxu0 %v2104_v46  ;;  %3130 = vmatpush1.bf16.msra.mxu1 %v2106_v47  ;;  %v1384_v46 = vld [vmem:[#allocation2 + $0x840] sm:$0xff]  ;;  %v1386_v47 = vld [vmem:[#allocation2 + $0x850] sm:$0xff] }
 0x371   :  { %2803 = vmatprep.subr.bf16.mxu0 %v2113_v56  ;;  %3131 = vmatprep.subr.bf16.mxu1 %v2115_v57  ;;  %v2160_v56 = vunpack.c.l.s8.bf16 %v1384_v46  ;;  %v2162_v57 = vunpack.c.l.s8.bf16 %v1386_v47 }
 0x374   :  { %2804 = vmatpush1.bf16.msra.mxu0 %v2112_v60  ;;  %3132 = vmatpush1.bf16.msra.mxu1 %v2114_v61  ;;  %v1393_v60 = vld [vmem:[#allocation2 + $0x888] sm:$0xff]  ;;  %v1395_v61 = vld [vmem:[#allocation2 + $0x898] sm:$0xff] }
 0x375   :  { %2805 = vmatprep.subr.bf16.mxu0 %v2121_v62  ;;  %3133 = vmatprep.subr.bf16.mxu1 %v2123_v63  ;;  %v2168_v62 = vunpack.c.h.s8.bf16 %v1384_v46  ;;  %v2170_v63 = vunpack.c.h.s8.bf16 %v1386_v47  ;;  %v2177_v0 = vunpack.c.l.s8.bf16 %v1393_v60  ;;  %v2179_v1 = vunpack.c.l.s8.bf16 %v1395_v61 }
 0x376   :  { %v2185_v9 = vunpack.c.h.s8.bf16 %v1393_v60  ;;  %v2187_v10 = vunpack.c.h.s8.bf16 %v1395_v61 }
 0x378   :  { %2806 = vmatpush1.bf16.msra.mxu0 %v2120_v6  ;;  %3134 = vmatpush1.bf16.msra.mxu1 %v2122_v7  ;;  %v1392_v6 = vld [vmem:[#allocation2 + $0x880] sm:$0xff]  ;;  %v1394_v7 = vld [vmem:[#allocation2 + $0x890] sm:$0xff] }
 0x379   :  { %2807 = vmatprep.subr.bf16.mxu0 %v2129_v35  ;;  %3135 = vmatprep.subr.bf16.mxu1 %v2131_v8  ;;  %v2176_v35 = vunpack.c.l.s8.bf16 %v1392_v6  ;;  %v2178_v8 = vunpack.c.l.s8.bf16 %v1394_v7 }
 0x37c   :  { %2808 = vmatpush1.bf16.msra.mxu0 %v2128_v11  ;;  %3136 = vmatpush1.bf16.msra.mxu1 %v2130_v12  ;;  %v1401_v11 = vld [vmem:[#allocation2 + $0x8c8] sm:$0xff]  ;;  %v1403_v12 = vld [vmem:[#allocation2 + $0x8d8] sm:$0xff] }
 0x37d   :  { %2809 = vmatprep.subr.bf16.mxu0 %v2137_v15  ;;  %3137 = vmatprep.subr.bf16.mxu1 %v2139_v19  ;;  %v2184_v15 = vunpack.c.h.s8.bf16 %v1392_v6  ;;  %v2186_v19 = vunpack.c.h.s8.bf16 %v1394_v7  ;;  %v2193_v20 = vunpack.c.l.s8.bf16 %v1401_v11  ;;  %v2195_v21 = vunpack.c.l.s8.bf16 %v1403_v12 }
 0x37e   :  { %v2201_v30 = vunpack.c.h.s8.bf16 %v1401_v11  ;;  %v2203_v31 = vunpack.c.h.s8.bf16 %v1403_v12 }
 0x380   :  { %2810 = vmatpush1.bf16.msra.mxu0 %v2136_v42  ;;  %3138 = vmatpush1.bf16.msra.mxu1 %v2138_v18  ;;  %v1400_v42 = vld [vmem:[#allocation2 + $0x8c0] sm:$0xff]  ;;  %v1402_v18 = vld [vmem:[#allocation2 + $0x8d0] sm:$0xff] }
 0x381   :  { %2820 = vmatprep.subr.bf16.mxu0 %v2145_v28  ;;  %3148 = vmatprep.subr.bf16.mxu1 %v2147_v29  ;;  %v2192_v28 = vunpack.c.l.s8.bf16 %v1400_v42  ;;  %v2194_v29 = vunpack.c.l.s8.bf16 %v1402_v18 }
 0x383   :  { %2812 = vmatmul.mubr.bf16.vlgmr.msra.gmra.mrb[16].mxu0 %v6029_v23  ;;  %3140 = vmatmul.mubr.bf16.vlgmr.msra.gmra.mrb[16].mxu1 %v6029_v23 }
 0x384   :  { %2821 = vmatpush1.bf16.msra.mxu0 %v2144_v32  ;;  %3149 = vmatpush1.bf16.msra.mxu1 %v2146_v26  ;;  %v1409_v32 = vld [vmem:[#allocation2 + $0x908] sm:$0xff]  ;;  %v1411_v26 = vld [vmem:[#allocation2 + $0x918] sm:$0xff] }
 0x385   :  { %2822 = vmatprep.subr.bf16.mxu0 %v2153_v33  ;;  %3150 = vmatprep.subr.bf16.mxu1 %v2155_v34  ;;  %v2200_v33 = vunpack.c.h.s8.bf16 %v1400_v42  ;;  %v2202_v34 = vunpack.c.h.s8.bf16 %v1402_v18  ;;  %v2209_v36 = vunpack.c.l.s8.bf16 %v1409_v32  ;;  %v2211_v37 = vunpack.c.l.s8.bf16 %v1411_v26 }
 0x386   :  { %2852 = vmatprep.mubr.bf16.mxu0 %v6071_v4  ;;  %3180 = vmatprep.mubr.bf16.mxu1 %v6071_v4  ;;  %v2217_v46 = vunpack.c.h.s8.bf16 %v1409_v32  ;;  %v2219_v47 = vunpack.c.h.s8.bf16 %v1411_v26 }
 0x388   :  { %2823 = vmatpush1.bf16.msra.mxu0 %v2152_v38  ;;  %3151 = vmatpush1.bf16.msra.mxu1 %v2154_v39  ;;  %v1408_v38 = vld [vmem:[#allocation2 + $0x900] sm:$0xff]  ;;  %v1410_v39 = vld [vmem:[#allocation2 + $0x910] sm:$0xff] }
 0x389   :  { %2824 = vmatprep.subr.bf16.mxu0 %v2161_v40  ;;  %3152 = vmatprep.subr.bf16.mxu1 %v2163_v41  ;;  %v2208_v40 = vunpack.c.l.s8.bf16 %v1408_v38  ;;  %v2210_v41 = vunpack.c.l.s8.bf16 %v1410_v39 }
 0x38c   :  { %2825 = vmatpush1.bf16.msra.mxu0 %v2160_v56  ;;  %3153 = vmatpush1.bf16.msra.mxu1 %v2162_v57  ;;  %v1417_v56 = vld [vmem:[#allocation2 + $0x948] sm:$0xff]  ;;  %v1419_v57 = vld [vmem:[#allocation2 + $0x958] sm:$0xff] }
 0x38d   :  { %2826 = vmatprep.subr.bf16.mxu0 %v2169_v58  ;;  %3154 = vmatprep.subr.bf16.mxu1 %v2171_v59  ;;  %v2216_v58 = vunpack.c.h.s8.bf16 %v1408_v38  ;;  %v2218_v59 = vunpack.c.h.s8.bf16 %v1410_v39  ;;  %v2225_v60 = vunpack.c.l.s8.bf16 %v1417_v56  ;;  %v2227_v61 = vunpack.c.l.s8.bf16 %v1419_v57 }
 0x38e   :  { %v2233_v6 = vunpack.c.h.s8.bf16 %v1417_v56  ;;  %v2235_v7 = vunpack.c.h.s8.bf16 %v1419_v57 }
 0x390   :  { %2827 = vmatpush1.bf16.msra.mxu0 %v2168_v62  ;;  %3155 = vmatpush1.bf16.msra.mxu1 %v2170_v63  ;;  %v1416_v62 = vld [vmem:[#allocation2 + $0x940] sm:$0xff]  ;;  %v1418_v63 = vld [vmem:[#allocation2 + $0x950] sm:$0xff] }
 0x391   :  { %2828 = vmatprep.subr.bf16.mxu0 %v2177_v0  ;;  %3156 = vmatprep.subr.bf16.mxu1 %v2179_v1  ;;  %v2224_v0 = vunpack.c.l.s8.bf16 %v1416_v62  ;;  %v2226_v1 = vunpack.c.l.s8.bf16 %v1418_v63 }
 0x394   :  { %2829 = vmatpush1.bf16.msra.mxu0 %v2176_v35  ;;  %3157 = vmatpush1.bf16.msra.mxu1 %v2178_v8  ;;  %v1425_v35 = vld [vmem:[#allocation2 + $0x988] sm:$0xff]  ;;  %v1427_v8 = vld [vmem:[#allocation2 + $0x998] sm:$0xff] }
 0x395   :  { %2830 = vmatprep.subr.bf16.mxu0 %v2185_v9  ;;  %3158 = vmatprep.subr.bf16.mxu1 %v2187_v10  ;;  %v2232_v9 = vunpack.c.h.s8.bf16 %v1416_v62  ;;  %v2234_v10 = vunpack.c.h.s8.bf16 %v1418_v63  ;;  %v2241_v11 = vunpack.c.l.s8.bf16 %v1425_v35  ;;  %v2243_v12 = vunpack.c.l.s8.bf16 %v1427_v8 }
 0x396   :  { %v2249_v42 = vunpack.c.h.s8.bf16 %v1425_v35  ;;  %v2251_v18 = vunpack.c.h.s8.bf16 %v1427_v8 }
 0x398   :  { %2831 = vmatpush1.bf16.msra.mxu0 %v2184_v15  ;;  %3159 = vmatpush1.bf16.msra.mxu1 %v2186_v19  ;;  %v1424_v15 = vld [vmem:[#allocation2 + $0x980] sm:$0xff]  ;;  %v1426_v19 = vld [vmem:[#allocation2 + $0x990] sm:$0xff] }
 0x399   :  { %2832 = vmatprep.subr.bf16.mxu0 %v2193_v20  ;;  %3160 = vmatprep.subr.bf16.mxu1 %v2195_v21  ;;  %v2240_v20 = vunpack.c.l.s8.bf16 %v1424_v15  ;;  %v2242_v21 = vunpack.c.l.s8.bf16 %v1426_v19 }
 0x39c   :  { %2833 = vmatpush1.bf16.msra.mxu0 %v2192_v28  ;;  %3161 = vmatpush1.bf16.msra.mxu1 %v2194_v29  ;;  %v1433_v28 = vld [vmem:[#allocation2 + $0x9c8] sm:$0xff]  ;;  %v1435_v29 = vld [vmem:[#allocation2 + $0x9d8] sm:$0xff] }
 0x39d   :  { %2834 = vmatprep.subr.bf16.mxu0 %v2201_v30  ;;  %3162 = vmatprep.subr.bf16.mxu1 %v2203_v31  ;;  %v2248_v30 = vunpack.c.h.s8.bf16 %v1424_v15  ;;  %v2250_v31 = vunpack.c.h.s8.bf16 %v1426_v19  ;;  %v2257_v32 = vunpack.c.l.s8.bf16 %v1433_v28  ;;  %v2259_v26 = vunpack.c.l.s8.bf16 %v1435_v29 }
 0x39e   :  { %v2265_v38 = vunpack.c.h.s8.bf16 %v1433_v28  ;;  %v2267_v39 = vunpack.c.h.s8.bf16 %v1435_v29 }
 0x3a0   :  { %2835 = vmatpush1.bf16.msra.mxu0 %v2200_v33  ;;  %3163 = vmatpush1.bf16.msra.mxu1 %v2202_v34  ;;  %v1432_v33 = vld [vmem:[#allocation2 + $0x9c0] sm:$0xff]  ;;  %v1434_v34 = vld [vmem:[#allocation2 + $0x9d0] sm:$0xff] }
 0x3a1   :  { %2836 = vmatprep.subr.bf16.mxu0 %v2209_v36  ;;  %3164 = vmatprep.subr.bf16.mxu1 %v2211_v37  ;;  %v2256_v36 = vunpack.c.l.s8.bf16 %v1432_v33  ;;  %v2258_v37 = vunpack.c.l.s8.bf16 %v1434_v34 }
 0x3a4   :  { %2837 = vmatpush1.bf16.msra.mxu0 %v2208_v40  ;;  %3165 = vmatpush1.bf16.msra.mxu1 %v2210_v41  ;;  %v1441_v40 = vld [vmem:[#allocation2 + $0xa08] sm:$0xff]  ;;  %v1443_v41 = vld [vmem:[#allocation2 + $0xa18] sm:$0xff] }
 0x3a5   :  { %2838 = vmatprep.subr.bf16.mxu0 %v2217_v46  ;;  %3166 = vmatprep.subr.bf16.mxu1 %v2219_v47  ;;  %v2264_v46 = vunpack.c.h.s8.bf16 %v1432_v33  ;;  %v2266_v47 = vunpack.c.h.s8.bf16 %v1434_v34  ;;  %v2273_v56 = vunpack.c.l.s8.bf16 %v1441_v40  ;;  %v2275_v57 = vunpack.c.l.s8.bf16 %v1443_v41 }
 0x3a6   :  { %v2281_v62 = vunpack.c.h.s8.bf16 %v1441_v40  ;;  %v2283_v63 = vunpack.c.h.s8.bf16 %v1443_v41 }
 0x3a8   :  { %2839 = vmatpush1.bf16.msra.mxu0 %v2216_v58  ;;  %3167 = vmatpush1.bf16.msra.mxu1 %v2218_v59  ;;  %v1440_v58 = vld [vmem:[#allocation2 + $0xa00] sm:$0xff]  ;;  %v1442_v59 = vld [vmem:[#allocation2 + $0xa10] sm:$0xff] }
 0x3a9   :  { %2840 = vmatprep.subr.bf16.mxu0 %v2225_v60  ;;  %3168 = vmatprep.subr.bf16.mxu1 %v2227_v61  ;;  %v2272_v60 = vunpack.c.l.s8.bf16 %v1440_v58  ;;  %v2274_v61 = vunpack.c.l.s8.bf16 %v1442_v59 }
 0x3ac   :  { %2841 = vmatpush1.bf16.msra.mxu0 %v2224_v0  ;;  %3169 = vmatpush1.bf16.msra.mxu1 %v2226_v1  ;;  %v1449_v0 = vld [vmem:[#allocation2 + $0xa48] sm:$0xff]  ;;  %v1451_v1 = vld [vmem:[#allocation2 + $0xa58] sm:$0xff] }
 0x3ad   :  { %2842 = vmatprep.subr.bf16.mxu0 %v2233_v6  ;;  %3170 = vmatprep.subr.bf16.mxu1 %v2235_v7  ;;  %v2280_v6 = vunpack.c.h.s8.bf16 %v1440_v58  ;;  %v2282_v7 = vunpack.c.h.s8.bf16 %v1442_v59  ;;  %v2289_v35 = vunpack.c.l.s8.bf16 %v1449_v0  ;;  %v2291_v8 = vunpack.c.l.s8.bf16 %v1451_v1 }
 0x3ae   :  { %v2297_v15 = vunpack.c.h.s8.bf16 %v1449_v0  ;;  %v2299_v19 = vunpack.c.h.s8.bf16 %v1451_v1 }
 0x3b0   :  { %2843 = vmatpush1.bf16.msra.mxu0 %v2232_v9  ;;  %3171 = vmatpush1.bf16.msra.mxu1 %v2234_v10  ;;  %v1448_v9 = vld [vmem:[#allocation2 + $0xa40] sm:$0xff]  ;;  %v1450_v10 = vld [vmem:[#allocation2 + $0xa50] sm:$0xff] }
 0x3b1   :  { %2844 = vmatprep.subr.bf16.mxu0 %v2241_v11  ;;  %3172 = vmatprep.subr.bf16.mxu1 %v2243_v12  ;;  %v2288_v11 = vunpack.c.l.s8.bf16 %v1448_v9  ;;  %v2290_v12 = vunpack.c.l.s8.bf16 %v1450_v10 }
 0x3b4   :  { %2845 = vmatpush1.bf16.msra.mxu0 %v2240_v20  ;;  %3173 = vmatpush1.bf16.msra.mxu1 %v2242_v21  ;;  %v1457_v20 = vld [vmem:[#allocation2 + $0xa88] sm:$0xff]  ;;  %v1459_v21 = vld [vmem:[#allocation2 + $0xa98] sm:$0xff] }
 0x3b5   :  { %2846 = vmatprep.subr.bf16.mxu0 %v2249_v42  ;;  %3174 = vmatprep.subr.bf16.mxu1 %v2251_v18  ;;  %v2296_v42 = vunpack.c.h.s8.bf16 %v1448_v9  ;;  %v2298_v18 = vunpack.c.h.s8.bf16 %v1450_v10  ;;  %v2305_v28 = vunpack.c.l.s8.bf16 %v1457_v20  ;;  %v2307_v29 = vunpack.c.l.s8.bf16 %v1459_v21 }
 0x3b6   :  { %v2313_v33 = vunpack.c.h.s8.bf16 %v1457_v20  ;;  %v2315_v34 = vunpack.c.h.s8.bf16 %v1459_v21 }
 0x3b8   :  { %2847 = vmatpush1.bf16.msra.mxu0 %v2248_v30  ;;  %3175 = vmatpush1.bf16.msra.mxu1 %v2250_v31  ;;  %v1456_v30 = vld [vmem:[#allocation2 + $0xa80] sm:$0xff]  ;;  %v1458_v31 = vld [vmem:[#allocation2 + $0xa90] sm:$0xff] }
 0x3b9   :  { %2848 = vmatprep.subr.bf16.mxu0 %v2257_v32  ;;  %3176 = vmatprep.subr.bf16.mxu1 %v2259_v26  ;;  %v2304_v32 = vunpack.c.l.s8.bf16 %v1456_v30  ;;  %v2306_v26 = vunpack.c.l.s8.bf16 %v1458_v31 }
 0x3bc   :  { %2849 = vmatpush1.bf16.msra.mxu0 %v2256_v36  ;;  %3177 = vmatpush1.bf16.msra.mxu1 %v2258_v37  ;;  %v1465_v36 = vld [vmem:[#allocation2 + $0xac8] sm:$0xff]  ;;  %v1467_v37 = vld [vmem:[#allocation2 + $0xad8] sm:$0xff] }
 0x3bd   :  { %2850 = vmatprep.subr.bf16.mxu0 %v2265_v38  ;;  %3178 = vmatprep.subr.bf16.mxu1 %v2267_v39  ;;  %v2312_v38 = vunpack.c.h.s8.bf16 %v1456_v30  ;;  %v2314_v39 = vunpack.c.h.s8.bf16 %v1458_v31  ;;  %v2321_v40 = vunpack.c.l.s8.bf16 %v1465_v36  ;;  %v2323_v41 = vunpack.c.l.s8.bf16 %v1467_v37 }
 0x3be   :  { %v2329_v58 = vunpack.c.h.s8.bf16 %v1465_v36  ;;  %v2331_v59 = vunpack.c.h.s8.bf16 %v1467_v37 }
 0x3c0   :  { %2851 = vmatpush1.bf16.msra.mxu0 %v2264_v46  ;;  %3179 = vmatpush1.bf16.msra.mxu1 %v2266_v47  ;;  %v1464_v46 = vld [vmem:[#allocation2 + $0xac0] sm:$0xff]  ;;  %v1466_v47 = vld [vmem:[#allocation2 + $0xad0] sm:$0xff] }
 0x3c1   :  { %2861 = vmatprep.subr.bf16.mxu0 %v2273_v56  ;;  %3189 = vmatprep.subr.bf16.mxu1 %v2275_v57  ;;  %v2320_v56 = vunpack.c.l.s8.bf16 %v1464_v46  ;;  %v2322_v57 = vunpack.c.l.s8.bf16 %v1466_v47 }
 0x3c3   :  { %2853 = vmatmul.mubr.bf16.vlgmr.msra.gmra.mrb[16].mxu0 %v6067_v2  ;;  %3181 = vmatmul.mubr.bf16.vlgmr.msra.gmra.mrb[16].mxu1 %v6067_v2 }
 0x3c4   :  { %2862 = vmatpush1.bf16.msra.mxu0 %v2272_v60  ;;  %3190 = vmatpush1.bf16.msra.mxu1 %v2274_v61  ;;  %v1473_v60 = vld [vmem:[#allocation2 + $0xb08] sm:$0xff]  ;;  %v1475_v61 = vld [vmem:[#allocation2 + $0xb18] sm:$0xff] }
 0x3c5   :  { %2863 = vmatprep.subr.bf16.mxu0 %v2281_v62  ;;  %3191 = vmatprep.subr.bf16.mxu1 %v2283_v63  ;;  %v2328_v62 = vunpack.c.h.s8.bf16 %v1464_v46  ;;  %v2330_v63 = vunpack.c.h.s8.bf16 %v1466_v47  ;;  %v2337_v0 = vunpack.c.l.s8.bf16 %v1473_v60  ;;  %v2339_v1 = vunpack.c.l.s8.bf16 %v1475_v61 }
 0x3c6   :  { %2893 = vmatprep.mubr.bf16.mxu0 %v6073_v5  ;;  %3221 = vmatprep.mubr.bf16.mxu1 %v6073_v5  ;;  %v2345_v9 = vunpack.c.h.s8.bf16 %v1473_v60  ;;  %v2347_v10 = vunpack.c.h.s8.bf16 %v1475_v61 }
 0x3c8   :  { %2864 = vmatpush1.bf16.msra.mxu0 %v2280_v6  ;;  %3192 = vmatpush1.bf16.msra.mxu1 %v2282_v7  ;;  %v1472_v6 = vld [vmem:[#allocation2 + $0xb00] sm:$0xff]  ;;  %v1474_v7 = vld [vmem:[#allocation2 + $0xb10] sm:$0xff] }
 0x3c9   :  { %2865 = vmatprep.subr.bf16.mxu0 %v2289_v35  ;;  %3193 = vmatprep.subr.bf16.mxu1 %v2291_v8  ;;  %v2336_v35 = vunpack.c.l.s8.bf16 %v1472_v6  ;;  %v2338_v8 = vunpack.c.l.s8.bf16 %v1474_v7 }
 0x3cc   :  { %2866 = vmatpush1.bf16.msra.mxu0 %v2288_v11  ;;  %3194 = vmatpush1.bf16.msra.mxu1 %v2290_v12  ;;  %v1481_v11 = vld [vmem:[#allocation2 + $0xb48] sm:$0xff]  ;;  %v1483_v12 = vld [vmem:[#allocation2 + $0xb58] sm:$0xff] }
 0x3cd   :  { %2867 = vmatprep.subr.bf16.mxu0 %v2297_v15  ;;  %3195 = vmatprep.subr.bf16.mxu1 %v2299_v19  ;;  %v2344_v15 = vunpack.c.h.s8.bf16 %v1472_v6  ;;  %v2346_v19 = vunpack.c.h.s8.bf16 %v1474_v7  ;;  %v2353_v20 = vunpack.c.l.s8.bf16 %v1481_v11  ;;  %v2355_v21 = vunpack.c.l.s8.bf16 %v1483_v12 }
 0x3ce   :  { %v2361_v30 = vunpack.c.h.s8.bf16 %v1481_v11  ;;  %v2363_v31 = vunpack.c.h.s8.bf16 %v1483_v12 }
 0x3d0   :  { %2868 = vmatpush1.bf16.msra.mxu0 %v2296_v42  ;;  %3196 = vmatpush1.bf16.msra.mxu1 %v2298_v18  ;;  %v1480_v42 = vld [vmem:[#allocation2 + $0xb40] sm:$0xff]  ;;  %v1482_v18 = vld [vmem:[#allocation2 + $0xb50] sm:$0xff] }
 0x3d1   :  { %2869 = vmatprep.subr.bf16.mxu0 %v2305_v28  ;;  %3197 = vmatprep.subr.bf16.mxu1 %v2307_v29  ;;  %v2352_v28 = vunpack.c.l.s8.bf16 %v1480_v42  ;;  %v2354_v29 = vunpack.c.l.s8.bf16 %v1482_v18 }
 0x3d4   :  { %2870 = vmatpush1.bf16.msra.mxu0 %v2304_v32  ;;  %3198 = vmatpush1.bf16.msra.mxu1 %v2306_v26  ;;  %v1489_v32 = vld [vmem:[#allocation2 + $0xb88] sm:$0xff]  ;;  %v1491_v26 = vld [vmem:[#allocation2 + $0xb98] sm:$0xff] }
 0x3d5   :  { %2871 = vmatprep.subr.bf16.mxu0 %v2313_v33  ;;  %3199 = vmatprep.subr.bf16.mxu1 %v2315_v34  ;;  %v2360_v33 = vunpack.c.h.s8.bf16 %v1480_v42  ;;  %v2362_v34 = vunpack.c.h.s8.bf16 %v1482_v18  ;;  %v2369_v36 = vunpack.c.l.s8.bf16 %v1489_v32  ;;  %v2371_v37 = vunpack.c.l.s8.bf16 %v1491_v26 }
 0x3d6   :  { %v2377_v46 = vunpack.c.h.s8.bf16 %v1489_v32  ;;  %v2379_v47 = vunpack.c.h.s8.bf16 %v1491_v26 }
 0x3d8   :  { %2872 = vmatpush1.bf16.msra.mxu0 %v2312_v38  ;;  %3200 = vmatpush1.bf16.msra.mxu1 %v2314_v39  ;;  %v1488_v38 = vld [vmem:[#allocation2 + $0xb80] sm:$0xff]  ;;  %v1490_v39 = vld [vmem:[#allocation2 + $0xb90] sm:$0xff] }
 0x3d9   :  { %2873 = vmatprep.subr.bf16.mxu0 %v2321_v40  ;;  %3201 = vmatprep.subr.bf16.mxu1 %v2323_v41  ;;  %v2368_v40 = vunpack.c.l.s8.bf16 %v1488_v38  ;;  %v2370_v41 = vunpack.c.l.s8.bf16 %v1490_v39 }
 0x3dc   :  { %2874 = vmatpush1.bf16.msra.mxu0 %v2320_v56  ;;  %3202 = vmatpush1.bf16.msra.mxu1 %v2322_v57  ;;  %v1497_v56 = vld [vmem:[#allocation2 + $0xbc8] sm:$0xff]  ;;  %v1499_v57 = vld [vmem:[#allocation2 + $0xbd8] sm:$0xff] }
 0x3dd   :  { %2875 = vmatprep.subr.bf16.mxu0 %v2329_v58  ;;  %3203 = vmatprep.subr.bf16.mxu1 %v2331_v59  ;;  %v2376_v58 = vunpack.c.h.s8.bf16 %v1488_v38  ;;  %v2378_v59 = vunpack.c.h.s8.bf16 %v1490_v39  ;;  %v2385_v60 = vunpack.c.l.s8.bf16 %v1497_v56  ;;  %v2387_v61 = vunpack.c.l.s8.bf16 %v1499_v57 }
 0x3de   :  { %v2393_v6 = vunpack.c.h.s8.bf16 %v1497_v56  ;;  %v2395_v7 = vunpack.c.h.s8.bf16 %v1499_v57 }
 0x3e0   :  { %2876 = vmatpush1.bf16.msra.mxu0 %v2328_v62  ;;  %3204 = vmatpush1.bf16.msra.mxu1 %v2330_v63  ;;  %v1496_v62 = vld [vmem:[#allocation2 + $0xbc0] sm:$0xff]  ;;  %v1498_v63 = vld [vmem:[#allocation2 + $0xbd0] sm:$0xff] }
 0x3e1   :  { %2877 = vmatprep.subr.bf16.mxu0 %v2337_v0  ;;  %3205 = vmatprep.subr.bf16.mxu1 %v2339_v1  ;;  %v2384_v0 = vunpack.c.l.s8.bf16 %v1496_v62  ;;  %v2386_v1 = vunpack.c.l.s8.bf16 %v1498_v63 }
 0x3e4   :  { %2878 = vmatpush1.bf16.msra.mxu0 %v2336_v35  ;;  %3206 = vmatpush1.bf16.msra.mxu1 %v2338_v8  ;;  %v1505_v35 = vld [vmem:[#allocation2 + $0xc08] sm:$0xff]  ;;  %v1507_v8 = vld [vmem:[#allocation2 + $0xc18] sm:$0xff] }
 0x3e5   :  { %2879 = vmatprep.subr.bf16.mxu0 %v2345_v9  ;;  %3207 = vmatprep.subr.bf16.mxu1 %v2347_v10  ;;  %v2392_v9 = vunpack.c.h.s8.bf16 %v1496_v62  ;;  %v2394_v10 = vunpack.c.h.s8.bf16 %v1498_v63  ;;  %v2401_v11 = vunpack.c.l.s8.bf16 %v1505_v35  ;;  %v2403_v12 = vunpack.c.l.s8.bf16 %v1507_v8 }
 0x3e6   :  { %v2409_v42 = vunpack.c.h.s8.bf16 %v1505_v35  ;;  %v2411_v18 = vunpack.c.h.s8.bf16 %v1507_v8 }
 0x3e8   :  { %2880 = vmatpush1.bf16.msra.mxu0 %v2344_v15  ;;  %3208 = vmatpush1.bf16.msra.mxu1 %v2346_v19  ;;  %v1504_v15 = vld [vmem:[#allocation2 + $0xc00] sm:$0xff]  ;;  %v1506_v19 = vld [vmem:[#allocation2 + $0xc10] sm:$0xff] }
 0x3e9   :  { %2881 = vmatprep.subr.bf16.mxu0 %v2353_v20  ;;  %3209 = vmatprep.subr.bf16.mxu1 %v2355_v21  ;;  %v2400_v20 = vunpack.c.l.s8.bf16 %v1504_v15  ;;  %v2402_v21 = vunpack.c.l.s8.bf16 %v1506_v19 }
 0x3ec   :  { %2882 = vmatpush1.bf16.msra.mxu0 %v2352_v28  ;;  %3210 = vmatpush1.bf16.msra.mxu1 %v2354_v29  ;;  %v1513_v28 = vld [vmem:[#allocation2 + $0xc48] sm:$0xff]  ;;  %v1515_v29 = vld [vmem:[#allocation2 + $0xc58] sm:$0xff] }
 0x3ed   :  { %2883 = vmatprep.subr.bf16.mxu0 %v2361_v30  ;;  %3211 = vmatprep.subr.bf16.mxu1 %v2363_v31  ;;  %v2408_v30 = vunpack.c.h.s8.bf16 %v1504_v15  ;;  %v2410_v31 = vunpack.c.h.s8.bf16 %v1506_v19  ;;  %v2417_v32 = vunpack.c.l.s8.bf16 %v1513_v28  ;;  %v2419_v26 = vunpack.c.l.s8.bf16 %v1515_v29 }
 0x3ee   :  { %v2425_v38 = vunpack.c.h.s8.bf16 %v1513_v28  ;;  %v2427_v39 = vunpack.c.h.s8.bf16 %v1515_v29 }
 0x3f0   :  { %2884 = vmatpush1.bf16.msra.mxu0 %v2360_v33  ;;  %3212 = vmatpush1.bf16.msra.mxu1 %v2362_v34  ;;  %v1512_v33 = vld [vmem:[#allocation2 + $0xc40] sm:$0xff]  ;;  %v1514_v34 = vld [vmem:[#allocation2 + $0xc50] sm:$0xff] }
 0x3f1   :  { %2885 = vmatprep.subr.bf16.mxu0 %v2369_v36  ;;  %3213 = vmatprep.subr.bf16.mxu1 %v2371_v37  ;;  %v2416_v36 = vunpack.c.l.s8.bf16 %v1512_v33  ;;  %v2418_v37 = vunpack.c.l.s8.bf16 %v1514_v34 }
 0x3f4   :  { %2886 = vmatpush1.bf16.msra.mxu0 %v2368_v40  ;;  %3214 = vmatpush1.bf16.msra.mxu1 %v2370_v41  ;;  %v1521_v40 = vld [vmem:[#allocation2 + $0xc88] sm:$0xff]  ;;  %v1523_v41 = vld [vmem:[#allocation2 + $0xc98] sm:$0xff] }
 0x3f5   :  { %2887 = vmatprep.subr.bf16.mxu0 %v2377_v46  ;;  %3215 = vmatprep.subr.bf16.mxu1 %v2379_v47  ;;  %v2424_v46 = vunpack.c.h.s8.bf16 %v1512_v33  ;;  %v2426_v47 = vunpack.c.h.s8.bf16 %v1514_v34  ;;  %v2433_v56 = vunpack.c.l.s8.bf16 %v1521_v40  ;;  %v2435_v57 = vunpack.c.l.s8.bf16 %v1523_v41 }
 0x3f6   :  { %v2441_v62 = vunpack.c.h.s8.bf16 %v1521_v40  ;;  %v2443_v63 = vunpack.c.h.s8.bf16 %v1523_v41 }
 0x3f8   :  { %2888 = vmatpush1.bf16.msra.mxu0 %v2376_v58  ;;  %3216 = vmatpush1.bf16.msra.mxu1 %v2378_v59  ;;  %v1520_v58 = vld [vmem:[#allocation2 + $0xc80] sm:$0xff]  ;;  %v1522_v59 = vld [vmem:[#allocation2 + $0xc90] sm:$0xff] }
 0x3f9   :  { %2889 = vmatprep.subr.bf16.mxu0 %v2385_v60  ;;  %3217 = vmatprep.subr.bf16.mxu1 %v2387_v61  ;;  %v2432_v60 = vunpack.c.l.s8.bf16 %v1520_v58  ;;  %v2434_v61 = vunpack.c.l.s8.bf16 %v1522_v59 }
 0x3fc   :  { %2890 = vmatpush1.bf16.msra.mxu0 %v2384_v0  ;;  %3218 = vmatpush1.bf16.msra.mxu1 %v2386_v1  ;;  %v1529_v0 = vld [vmem:[#allocation2 + $0xcc8] sm:$0xff]  ;;  %v1531_v1 = vld [vmem:[#allocation2 + $0xcd8] sm:$0xff] }
 0x3fd   :  { %2891 = vmatprep.subr.bf16.mxu0 %v2393_v6  ;;  %3219 = vmatprep.subr.bf16.mxu1 %v2395_v7  ;;  %v2440_v6 = vunpack.c.h.s8.bf16 %v1520_v58  ;;  %v2442_v7 = vunpack.c.h.s8.bf16 %v1522_v59  ;;  %v2449_v35 = vunpack.c.l.s8.bf16 %v1529_v0  ;;  %v2451_v8 = vunpack.c.l.s8.bf16 %v1531_v1 }
 0x3fe   :  { %v2457_v15 = vunpack.c.h.s8.bf16 %v1529_v0  ;;  %v2459_v19 = vunpack.c.h.s8.bf16 %v1531_v1 }
 0x400   :  { %2892 = vmatpush1.bf16.msra.mxu0 %v2392_v9  ;;  %3220 = vmatpush1.bf16.msra.mxu1 %v2394_v10  ;;  %v1528_v9 = vld [vmem:[#allocation2 + $0xcc0] sm:$0xff]  ;;  %v1530_v10 = vld [vmem:[#allocation2 + $0xcd0] sm:$0xff] }
 0x401   :  { %2902 = vmatprep.subr.bf16.mxu0 %v2401_v11  ;;  %3230 = vmatprep.subr.bf16.mxu1 %v2403_v12  ;;  %v2448_v11 = vunpack.c.l.s8.bf16 %v1528_v9  ;;  %v2450_v12 = vunpack.c.l.s8.bf16 %v1530_v10 }
 0x403   :  { %2894 = vmatmul.mubr.bf16.vlgmr.msra.gmra.mrb[16].mxu0 %v6069_v3  ;;  %3222 = vmatmul.mubr.bf16.vlgmr.msra.gmra.mrb[16].mxu1 %v6069_v3 }
 0x404   :  { %2903 = vmatpush1.bf16.msra.mxu0 %v2400_v20  ;;  %3231 = vmatpush1.bf16.msra.mxu1 %v2402_v21  ;;  %v1537_v20 = vld [vmem:[#allocation2 + $0xd08] sm:$0xff]  ;;  %v1539_v21 = vld [vmem:[#allocation2 + $0xd18] sm:$0xff] }
 0x405   :  { %2904 = vmatprep.subr.bf16.mxu0 %v2409_v42  ;;  %3232 = vmatprep.subr.bf16.mxu1 %v2411_v18  ;;  %v2456_v42 = vunpack.c.h.s8.bf16 %v1528_v9  ;;  %v2458_v18 = vunpack.c.h.s8.bf16 %v1530_v10  ;;  %v2465_v28 = vunpack.c.l.s8.bf16 %v1537_v20  ;;  %v2467_v29 = vunpack.c.l.s8.bf16 %v1539_v21 }
 0x406   :  { %2934 = vmatprep.mubr.bf16.mxu0 %v6087_v44  ;;  %3262 = vmatprep.mubr.bf16.mxu1 %v6087_v44  ;;  %v2473_v33 = vunpack.c.h.s8.bf16 %v1537_v20  ;;  %v2475_v34 = vunpack.c.h.s8.bf16 %v1539_v21 }
 0x408   :  { %2905 = vmatpush1.bf16.msra.mxu0 %v2408_v30  ;;  %3233 = vmatpush1.bf16.msra.mxu1 %v2410_v31  ;;  %v1536_v30 = vld [vmem:[#allocation2 + $0xd00] sm:$0xff]  ;;  %v1538_v31 = vld [vmem:[#allocation2 + $0xd10] sm:$0xff] }
 0x409   :  { %2906 = vmatprep.subr.bf16.mxu0 %v2417_v32  ;;  %3234 = vmatprep.subr.bf16.mxu1 %v2419_v26  ;;  %v2464_v32 = vunpack.c.l.s8.bf16 %v1536_v30  ;;  %v2466_v26 = vunpack.c.l.s8.bf16 %v1538_v31 }
 0x40c   :  { %2907 = vmatpush1.bf16.msra.mxu0 %v2416_v36  ;;  %3235 = vmatpush1.bf16.msra.mxu1 %v2418_v37  ;;  %v1545_v36 = vld [vmem:[#allocation2 + $0xd48] sm:$0xff]  ;;  %v1547_v37 = vld [vmem:[#allocation2 + $0xd58] sm:$0xff] }
 0x40d   :  { %2908 = vmatprep.subr.bf16.mxu0 %v2425_v38  ;;  %3236 = vmatprep.subr.bf16.mxu1 %v2427_v39  ;;  %v2472_v38 = vunpack.c.h.s8.bf16 %v1536_v30  ;;  %v2474_v39 = vunpack.c.h.s8.bf16 %v1538_v31  ;;  %v2481_v40 = vunpack.c.l.s8.bf16 %v1545_v36  ;;  %v2483_v41 = vunpack.c.l.s8.bf16 %v1547_v37 }
 0x40e   :  { %v2489_v58 = vunpack.c.h.s8.bf16 %v1545_v36  ;;  %v2491_v59 = vunpack.c.h.s8.bf16 %v1547_v37 }
 0x410   :  { %2909 = vmatpush1.bf16.msra.mxu0 %v2424_v46  ;;  %3237 = vmatpush1.bf16.msra.mxu1 %v2426_v47  ;;  %v1544_v46 = vld [vmem:[#allocation2 + $0xd40] sm:$0xff]  ;;  %v1546_v47 = vld [vmem:[#allocation2 + $0xd50] sm:$0xff] }
 0x411   :  { %2910 = vmatprep.subr.bf16.mxu0 %v2433_v56  ;;  %3238 = vmatprep.subr.bf16.mxu1 %v2435_v57  ;;  %v2480_v56 = vunpack.c.l.s8.bf16 %v1544_v46  ;;  %v2482_v57 = vunpack.c.l.s8.bf16 %v1546_v47 }
 0x414   :  { %2911 = vmatpush1.bf16.msra.mxu0 %v2432_v60  ;;  %3239 = vmatpush1.bf16.msra.mxu1 %v2434_v61  ;;  %v1553_v60 = vld [vmem:[#allocation2 + $0xd88] sm:$0xff]  ;;  %v1555_v61 = vld [vmem:[#allocation2 + $0xd98] sm:$0xff] }
 0x415   :  { %2912 = vmatprep.subr.bf16.mxu0 %v2441_v62  ;;  %3240 = vmatprep.subr.bf16.mxu1 %v2443_v63  ;;  %v2488_v62 = vunpack.c.h.s8.bf16 %v1544_v46  ;;  %v2490_v63 = vunpack.c.h.s8.bf16 %v1546_v47  ;;  %v2497_v0 = vunpack.c.l.s8.bf16 %v1553_v60  ;;  %v2499_v1 = vunpack.c.l.s8.bf16 %v1555_v61 }
 0x416   :  { %v2505_v9 = vunpack.c.h.s8.bf16 %v1553_v60  ;;  %v2507_v10 = vunpack.c.h.s8.bf16 %v1555_v61 }
 0x418   :  { %2913 = vmatpush1.bf16.msra.mxu0 %v2440_v6  ;;  %3241 = vmatpush1.bf16.msra.mxu1 %v2442_v7  ;;  %v1552_v6 = vld [vmem:[#allocation2 + $0xd80] sm:$0xff]  ;;  %v1554_v7 = vld [vmem:[#allocation2 + $0xd90] sm:$0xff] }
 0x419   :  { %2914 = vmatprep.subr.bf16.mxu0 %v2449_v35  ;;  %3242 = vmatprep.subr.bf16.mxu1 %v2451_v8  ;;  %v2496_v35 = vunpack.c.l.s8.bf16 %v1552_v6  ;;  %v2498_v8 = vunpack.c.l.s8.bf16 %v1554_v7 }
 0x41c   :  { %2915 = vmatpush1.bf16.msra.mxu0 %v2448_v11  ;;  %3243 = vmatpush1.bf16.msra.mxu1 %v2450_v12  ;;  %v1561_v11 = vld [vmem:[#allocation2 + $0xdc8] sm:$0xff]  ;;  %v1563_v12 = vld [vmem:[#allocation2 + $0xdd8] sm:$0xff] }
 0x41d   :  { %2916 = vmatprep.subr.bf16.mxu0 %v2457_v15  ;;  %3244 = vmatprep.subr.bf16.mxu1 %v2459_v19  ;;  %v2504_v15 = vunpack.c.h.s8.bf16 %v1552_v6  ;;  %v2506_v19 = vunpack.c.h.s8.bf16 %v1554_v7  ;;  %v2513_v20 = vunpack.c.l.s8.bf16 %v1561_v11  ;;  %v2515_v21 = vunpack.c.l.s8.bf16 %v1563_v12 }
 0x41e   :  { %v2521_v30 = vunpack.c.h.s8.bf16 %v1561_v11  ;;  %v2523_v31 = vunpack.c.h.s8.bf16 %v1563_v12 }
 0x420   :  { %2917 = vmatpush1.bf16.msra.mxu0 %v2456_v42  ;;  %3245 = vmatpush1.bf16.msra.mxu1 %v2458_v18  ;;  %v1560_v42 = vld [vmem:[#allocation2 + $0xdc0] sm:$0xff]  ;;  %v1562_v18 = vld [vmem:[#allocation2 + $0xdd0] sm:$0xff] }
 0x421   :  { %2918 = vmatprep.subr.bf16.mxu0 %v2465_v28  ;;  %3246 = vmatprep.subr.bf16.mxu1 %v2467_v29  ;;  %v2512_v28 = vunpack.c.l.s8.bf16 %v1560_v42  ;;  %v2514_v29 = vunpack.c.l.s8.bf16 %v1562_v18 }
 0x424   :  { %2919 = vmatpush1.bf16.msra.mxu0 %v2464_v32  ;;  %3247 = vmatpush1.bf16.msra.mxu1 %v2466_v26  ;;  %v1569_v32 = vld [vmem:[#allocation2 + $0xe08] sm:$0xff]  ;;  %v1571_v26 = vld [vmem:[#allocation2 + $0xe18] sm:$0xff] }
 0x425   :  { %2920 = vmatprep.subr.bf16.mxu0 %v2473_v33  ;;  %3248 = vmatprep.subr.bf16.mxu1 %v2475_v34  ;;  %v2520_v33 = vunpack.c.h.s8.bf16 %v1560_v42  ;;  %v2522_v34 = vunpack.c.h.s8.bf16 %v1562_v18  ;;  %v2529_v36 = vunpack.c.l.s8.bf16 %v1569_v32  ;;  %v2531_v37 = vunpack.c.l.s8.bf16 %v1571_v26 }
 0x426   :  { %v2537_v46 = vunpack.c.h.s8.bf16 %v1569_v32  ;;  %v2539_v47 = vunpack.c.h.s8.bf16 %v1571_v26 }
 0x428   :  { %2921 = vmatpush1.bf16.msra.mxu0 %v2472_v38  ;;  %3249 = vmatpush1.bf16.msra.mxu1 %v2474_v39  ;;  %v1568_v38 = vld [vmem:[#allocation2 + $0xe00] sm:$0xff]  ;;  %v1570_v39 = vld [vmem:[#allocation2 + $0xe10] sm:$0xff] }
 0x429   :  { %2922 = vmatprep.subr.bf16.mxu0 %v2481_v40  ;;  %3250 = vmatprep.subr.bf16.mxu1 %v2483_v41  ;;  %v2528_v40 = vunpack.c.l.s8.bf16 %v1568_v38  ;;  %v2530_v41 = vunpack.c.l.s8.bf16 %v1570_v39 }
 0x42c   :  { %2923 = vmatpush1.bf16.msra.mxu0 %v2480_v56  ;;  %3251 = vmatpush1.bf16.msra.mxu1 %v2482_v57  ;;  %v1577_v56 = vld [vmem:[#allocation2 + $0xe48] sm:$0xff]  ;;  %v1579_v57 = vld [vmem:[#allocation2 + $0xe58] sm:$0xff] }
 0x42d   :  { %2924 = vmatprep.subr.bf16.mxu0 %v2489_v58  ;;  %3252 = vmatprep.subr.bf16.mxu1 %v2491_v59  ;;  %v2536_v58 = vunpack.c.h.s8.bf16 %v1568_v38  ;;  %v2538_v59 = vunpack.c.h.s8.bf16 %v1570_v39  ;;  %v2545_v60 = vunpack.c.l.s8.bf16 %v1577_v56  ;;  %v2547_v61 = vunpack.c.l.s8.bf16 %v1579_v57 }
 0x42e   :  { %v2553_v6 = vunpack.c.h.s8.bf16 %v1577_v56  ;;  %v2555_v7 = vunpack.c.h.s8.bf16 %v1579_v57 }
 0x430   :  { %2925 = vmatpush1.bf16.msra.mxu0 %v2488_v62  ;;  %3253 = vmatpush1.bf16.msra.mxu1 %v2490_v63  ;;  %v1576_v62 = vld [vmem:[#allocation2 + $0xe40] sm:$0xff]  ;;  %v1578_v63 = vld [vmem:[#allocation2 + $0xe50] sm:$0xff] }
 0x431   :  { %2926 = vmatprep.subr.bf16.mxu0 %v2497_v0  ;;  %3254 = vmatprep.subr.bf16.mxu1 %v2499_v1  ;;  %v2544_v0 = vunpack.c.l.s8.bf16 %v1576_v62  ;;  %v2546_v1 = vunpack.c.l.s8.bf16 %v1578_v63 }
 0x434   :  { %2927 = vmatpush1.bf16.msra.mxu0 %v2496_v35  ;;  %3255 = vmatpush1.bf16.msra.mxu1 %v2498_v8  ;;  %v1585_v35 = vld [vmem:[#allocation2 + $0xe88] sm:$0xff]  ;;  %v1587_v8 = vld [vmem:[#allocation2 + $0xe98] sm:$0xff] }
 0x435   :  { %2928 = vmatprep.subr.bf16.mxu0 %v2505_v9  ;;  %3256 = vmatprep.subr.bf16.mxu1 %v2507_v10  ;;  %v2552_v9 = vunpack.c.h.s8.bf16 %v1576_v62  ;;  %v2554_v10 = vunpack.c.h.s8.bf16 %v1578_v63  ;;  %v2561_v11 = vunpack.c.l.s8.bf16 %v1585_v35  ;;  %v2563_v12 = vunpack.c.l.s8.bf16 %v1587_v8 }
 0x436   :  { %v2569_v42 = vunpack.c.h.s8.bf16 %v1585_v35  ;;  %v2571_v18 = vunpack.c.h.s8.bf16 %v1587_v8 }
 0x438   :  { %2929 = vmatpush1.bf16.msra.mxu0 %v2504_v15  ;;  %3257 = vmatpush1.bf16.msra.mxu1 %v2506_v19  ;;  %v1584_v15 = vld [vmem:[#allocation2 + $0xe80] sm:$0xff]  ;;  %v1586_v19 = vld [vmem:[#allocation2 + $0xe90] sm:$0xff] }
 0x439   :  { %2930 = vmatprep.subr.bf16.mxu0 %v2513_v20  ;;  %3258 = vmatprep.subr.bf16.mxu1 %v2515_v21  ;;  %v2560_v20 = vunpack.c.l.s8.bf16 %v1584_v15  ;;  %v2562_v21 = vunpack.c.l.s8.bf16 %v1586_v19 }
 0x43c   :  { %2931 = vmatpush1.bf16.msra.mxu0 %v2512_v28  ;;  %3259 = vmatpush1.bf16.msra.mxu1 %v2514_v29  ;;  %v1593_v28 = vld [vmem:[#allocation2 + $0xec8] sm:$0xff]  ;;  %v1595_v29 = vld [vmem:[#allocation2 + $0xed8] sm:$0xff] }
 0x43d   :  { %2932 = vmatprep.subr.bf16.mxu0 %v2521_v30  ;;  %3260 = vmatprep.subr.bf16.mxu1 %v2523_v31  ;;  %v2568_v30 = vunpack.c.h.s8.bf16 %v1584_v15  ;;  %v2570_v31 = vunpack.c.h.s8.bf16 %v1586_v19  ;;  %v2577_v32 = vunpack.c.l.s8.bf16 %v1593_v28  ;;  %v2579_v26 = vunpack.c.l.s8.bf16 %v1595_v29 }
 0x43e   :  { %v2585_v38 = vunpack.c.h.s8.bf16 %v1593_v28  ;;  %v2587_v39 = vunpack.c.h.s8.bf16 %v1595_v29 }
 0x440   :  { %2933 = vmatpush1.bf16.msra.mxu0 %v2520_v33  ;;  %3261 = vmatpush1.bf16.msra.mxu1 %v2522_v34  ;;  %v1592_v33 = vld [vmem:[#allocation2 + $0xec0] sm:$0xff]  ;;  %v1594_v34 = vld [vmem:[#allocation2 + $0xed0] sm:$0xff] }
 0x441   :  { %2943 = vmatprep.subr.bf16.mxu0 %v2529_v36  ;;  %3271 = vmatprep.subr.bf16.mxu1 %v2531_v37  ;;  %v2576_v36 = vunpack.c.l.s8.bf16 %v1592_v33  ;;  %v2578_v37 = vunpack.c.l.s8.bf16 %v1594_v34 }
 0x443   :  { %2935 = vmatmul.mubr.bf16.vlgmr.msra.gmra.mrb[16].mxu0 %v6083_v43  ;;  %3263 = vmatmul.mubr.bf16.vlgmr.msra.gmra.mrb[16].mxu1 %v6083_v43 }
 0x444   :  { %2944 = vmatpush1.bf16.msra.mxu0 %v2528_v40  ;;  %3272 = vmatpush1.bf16.msra.mxu1 %v2530_v41  ;;  %v1601_v40 = vld [vmem:[#allocation2 + $0xf08] sm:$0xff]  ;;  %v1603_v41 = vld [vmem:[#allocation2 + $0xf18] sm:$0xff] }
 0x445   :  { %2945 = vmatprep.subr.bf16.mxu0 %v2537_v46  ;;  %3273 = vmatprep.subr.bf16.mxu1 %v2539_v47  ;;  %v2584_v46 = vunpack.c.h.s8.bf16 %v1592_v33  ;;  %v2586_v47 = vunpack.c.h.s8.bf16 %v1594_v34  ;;  %v2593_v56 = vunpack.c.l.s8.bf16 %v1601_v40  ;;  %v2595_v57 = vunpack.c.l.s8.bf16 %v1603_v41 }
 0x446   :  { %2975 = vmatprep.mubr.bf16.mxu0 %v6089_v45  ;;  %3303 = vmatprep.mubr.bf16.mxu1 %v6089_v45  ;;  %v2601_v62 = vunpack.c.h.s8.bf16 %v1601_v40  ;;  %v2603_v63 = vunpack.c.h.s8.bf16 %v1603_v41 }
 0x448   :  { %2946 = vmatpush1.bf16.msra.mxu0 %v2536_v58  ;;  %3274 = vmatpush1.bf16.msra.mxu1 %v2538_v59  ;;  %v1600_v58 = vld [vmem:[#allocation2 + $0xf00] sm:$0xff]  ;;  %v1602_v59 = vld [vmem:[#allocation2 + $0xf10] sm:$0xff] }
 0x449   :  { %2947 = vmatprep.subr.bf16.mxu0 %v2545_v60  ;;  %3275 = vmatprep.subr.bf16.mxu1 %v2547_v61  ;;  %v2592_v60 = vunpack.c.l.s8.bf16 %v1600_v58  ;;  %v2594_v61 = vunpack.c.l.s8.bf16 %v1602_v59 }
 0x44c   :  { %2948 = vmatpush1.bf16.msra.mxu0 %v2544_v0  ;;  %3276 = vmatpush1.bf16.msra.mxu1 %v2546_v1  ;;  %v1609_v0 = vld [vmem:[#allocation2 + $0xf48] sm:$0xff]  ;;  %v1611_v1 = vld [vmem:[#allocation2 + $0xf58] sm:$0xff] }
 0x44d   :  { %2949 = vmatprep.subr.bf16.mxu0 %v2553_v6  ;;  %3277 = vmatprep.subr.bf16.mxu1 %v2555_v7  ;;  %v2600_v6 = vunpack.c.h.s8.bf16 %v1600_v58  ;;  %v2602_v7 = vunpack.c.h.s8.bf16 %v1602_v59  ;;  %v2609_v35 = vunpack.c.l.s8.bf16 %v1609_v0  ;;  %v2611_v8 = vunpack.c.l.s8.bf16 %v1611_v1 }
 0x44e   :  { %v2617_v15 = vunpack.c.h.s8.bf16 %v1609_v0  ;;  %v2619_v19 = vunpack.c.h.s8.bf16 %v1611_v1 }
 0x450   :  { %2950 = vmatpush1.bf16.msra.mxu0 %v2552_v9  ;;  %3278 = vmatpush1.bf16.msra.mxu1 %v2554_v10  ;;  %v1608_v9 = vld [vmem:[#allocation2 + $0xf40] sm:$0xff]  ;;  %v1610_v10 = vld [vmem:[#allocation2 + $0xf50] sm:$0xff] }
 0x451   :  { %2951 = vmatprep.subr.bf16.mxu0 %v2561_v11  ;;  %3279 = vmatprep.subr.bf16.mxu1 %v2563_v12  ;;  %v2608_v11 = vunpack.c.l.s8.bf16 %v1608_v9  ;;  %v2610_v12 = vunpack.c.l.s8.bf16 %v1610_v10 }
 0x454   :  { %2952 = vmatpush1.bf16.msra.mxu0 %v2560_v20  ;;  %3280 = vmatpush1.bf16.msra.mxu1 %v2562_v21  ;;  %v1617_v20 = vld [vmem:[#allocation2 + $0xf88] sm:$0xff]  ;;  %v1619_v21 = vld [vmem:[#allocation2 + $0xf98] sm:$0xff] }
 0x455   :  { %2953 = vmatprep.subr.bf16.mxu0 %v2569_v42  ;;  %3281 = vmatprep.subr.bf16.mxu1 %v2571_v18  ;;  %v2616_v42 = vunpack.c.h.s8.bf16 %v1608_v9  ;;  %v2618_v18 = vunpack.c.h.s8.bf16 %v1610_v10  ;;  %v2625_v28 = vunpack.c.l.s8.bf16 %v1617_v20  ;;  %v2627_v29 = vunpack.c.l.s8.bf16 %v1619_v21 }
 0x456   :  { %v2633_v33 = vunpack.c.h.s8.bf16 %v1617_v20  ;;  %v2635_v34 = vunpack.c.h.s8.bf16 %v1619_v21 }
 0x458   :  { %2954 = vmatpush1.bf16.msra.mxu0 %v2568_v30  ;;  %3282 = vmatpush1.bf16.msra.mxu1 %v2570_v31  ;;  %v1616_v30 = vld [vmem:[#allocation2 + $0xf80] sm:$0xff]  ;;  %v1618_v31 = vld [vmem:[#allocation2 + $0xf90] sm:$0xff] }
 0x459   :  { %2955 = vmatprep.subr.bf16.mxu0 %v2577_v32  ;;  %3283 = vmatprep.subr.bf16.mxu1 %v2579_v26  ;;  %v2624_v32 = vunpack.c.l.s8.bf16 %v1616_v30  ;;  %v2626_v26 = vunpack.c.l.s8.bf16 %v1618_v31 }
 0x45c   :  { %2956 = vmatpush1.bf16.msra.mxu0 %v2576_v36  ;;  %3284 = vmatpush1.bf16.msra.mxu1 %v2578_v37  ;;  %v1625_v36 = vld [vmem:[#allocation2 + $0xfc8] sm:$0xff]  ;;  %v1627_v37 = vld [vmem:[#allocation2 + $0xfd8] sm:$0xff] }
 0x45d   :  { %2957 = vmatprep.subr.bf16.mxu0 %v2585_v38  ;;  %3285 = vmatprep.subr.bf16.mxu1 %v2587_v39  ;;  %v2632_v38 = vunpack.c.h.s8.bf16 %v1616_v30  ;;  %v2634_v39 = vunpack.c.h.s8.bf16 %v1618_v31  ;;  %v2641_v40 = vunpack.c.l.s8.bf16 %v1625_v36  ;;  %v2643_v41 = vunpack.c.l.s8.bf16 %v1627_v37 }
 0x45e   :  { %v2649_v58 = vunpack.c.h.s8.bf16 %v1625_v36  ;;  %v2651_v59 = vunpack.c.h.s8.bf16 %v1627_v37 }
 0x460   :  { %2958 = vmatpush1.bf16.msra.mxu0 %v2584_v46  ;;  %3286 = vmatpush1.bf16.msra.mxu1 %v2586_v47  ;;  %v1624_v46 = vld [vmem:[#allocation2 + $0xfc0] sm:$0xff]  ;;  %v1626_v47 = vld [vmem:[#allocation2 + $0xfd0] sm:$0xff] }
 0x461   :  { %2959 = vmatprep.subr.bf16.mxu0 %v2593_v56  ;;  %3287 = vmatprep.subr.bf16.mxu1 %v2595_v57  ;;  %v2640_v56 = vunpack.c.l.s8.bf16 %v1624_v46  ;;  %v2642_v57 = vunpack.c.l.s8.bf16 %v1626_v47 }
 0x464   :  { %2960 = vmatpush1.bf16.msra.mxu0 %v2592_v60  ;;  %3288 = vmatpush1.bf16.msra.mxu1 %v2594_v61  ;;  %v1125_v60 = vld [vmem:[#allocation2 + $0x28] sm:$0xff]  ;;  %v1127_v61 = vld [vmem:[#allocation2 + $0x38] sm:$0xff] }
 0x465   :  { %2961 = vmatprep.subr.bf16.mxu0 %v2601_v62  ;;  %3289 = vmatprep.subr.bf16.mxu1 %v2603_v63  ;;  %v2648_v62 = vunpack.c.h.s8.bf16 %v1624_v46  ;;  %v2650_v63 = vunpack.c.h.s8.bf16 %v1626_v47  ;;  %v1637_v0 = vunpack.c.l.s8.bf16 %v1125_v60  ;;  %v1639_v1 = vunpack.c.l.s8.bf16 %v1127_v61  ;;  %v1149_v47 = vld [vmem:[#allocation2 + $0xe8] sm:$0xff] }
 0x466   :  { %v1645_v9 = vunpack.c.h.s8.bf16 %v1125_v60  ;;  %v1647_v10 = vunpack.c.h.s8.bf16 %v1127_v61  ;;  %v1148_v61 = vld [vmem:[#allocation2 + $0xe0] sm:$0xff] }
 0x468   :  { %2962 = vmatpush1.bf16.msra.mxu0 %v2600_v6  ;;  %3290 = vmatpush1.bf16.msra.mxu1 %v2602_v7  ;;  %v1124_v6 = vld [vmem:[#allocation2 + $0x20] sm:$0xff]  ;;  %v1126_v7 = vld [vmem:[#allocation2 + $0x30] sm:$0xff] }
 0x469   :  { %2963 = vmatprep.subr.bf16.mxu0 %v2609_v35  ;;  %3291 = vmatprep.subr.bf16.mxu1 %v2611_v8  ;;  %v1636_v35 = vunpack.c.l.s8.bf16 %v1124_v6  ;;  %v1638_v8 = vunpack.c.l.s8.bf16 %v1126_v7 }
 0x46c   :  { %2964 = vmatpush1.bf16.msra.mxu0 %v2608_v11  ;;  %3292 = vmatpush1.bf16.msra.mxu1 %v2610_v12  ;;  %v1133_v11 = vld [vmem:[#allocation2 + $0x68] sm:$0xff]  ;;  %v1135_v12 = vld [vmem:[#allocation2 + $0x78] sm:$0xff] }
 0x46d   :  { %2965 = vmatprep.subr.bf16.mxu0 %v2617_v15  ;;  %3293 = vmatprep.subr.bf16.mxu1 %v2619_v19  ;;  %v1644_v15 = vunpack.c.h.s8.bf16 %v1124_v6  ;;  %v1646_v19 = vunpack.c.h.s8.bf16 %v1126_v7  ;;  %v1653_v20 = vunpack.c.l.s8.bf16 %v1133_v11  ;;  %v1655_v21 = vunpack.c.l.s8.bf16 %v1135_v12  ;;  %v1157_v7 = vld [vmem:[#allocation2 + $0x128] sm:$0xff] }
 0x46e   :  { %v1661_v30 = vunpack.c.h.s8.bf16 %v1133_v11  ;;  %v1663_v31 = vunpack.c.h.s8.bf16 %v1135_v12  ;;  %v1156_v12 = vld [vmem:[#allocation2 + $0x120] sm:$0xff] }
 0x470   :  { %2966 = vmatpush1.bf16.msra.mxu0 %v2616_v42  ;;  %3294 = vmatpush1.bf16.msra.mxu1 %v2618_v18  ;;  %v1132_v42 = vld [vmem:[#allocation2 + $0x60] sm:$0xff]  ;;  %v1134_v18 = vld [vmem:[#allocation2 + $0x70] sm:$0xff] }
 0x471   :  { %2967 = vmatprep.subr.bf16.mxu0 %v2625_v28  ;;  %3295 = vmatprep.subr.bf16.mxu1 %v2627_v29  ;;  %v1652_v28 = vunpack.c.l.s8.bf16 %v1132_v42  ;;  %v1654_v29 = vunpack.c.l.s8.bf16 %v1134_v18 }
 0x474   :  { %2968 = vmatpush1.bf16.msra.mxu0 %v2624_v32  ;;  %3296 = vmatpush1.bf16.msra.mxu1 %v2626_v26  ;;  %v1141_v32 = vld [vmem:[#allocation2 + $0xa8] sm:$0xff]  ;;  %v1143_v26 = vld [vmem:[#allocation2 + $0xb8] sm:$0xff] }
 0x475   :  { %2969 = vmatprep.subr.bf16.mxu0 %v2633_v33  ;;  %3297 = vmatprep.subr.bf16.mxu1 %v2635_v34  ;;  %v1660_v33 = vunpack.c.h.s8.bf16 %v1132_v42  ;;  %v1662_v34 = vunpack.c.h.s8.bf16 %v1134_v18  ;;  %v1669_v36 = vunpack.c.l.s8.bf16 %v1141_v32  ;;  %v1671_v37 = vunpack.c.l.s8.bf16 %v1143_v26  ;;  %v1165_v18 = vld [vmem:[#allocation2 + $0x168] sm:$0xff] }
 0x476   :  { %v1679_v46 = vunpack.c.h.s8.bf16 %v1143_v26  ;;  %v1164_v26 = vld [vmem:[#allocation2 + $0x160] sm:$0xff] }
 0x478   :  { %2970 = vmatpush1.bf16.msra.mxu0 %v2632_v38  ;;  %3298 = vmatpush1.bf16.msra.mxu1 %v2634_v39  ;;  %v1140_v38 = vld [vmem:[#allocation2 + $0xa0] sm:$0xff] }
 0x479   :  { %2971 = vmatprep.subr.bf16.mxu0 %v2641_v40  ;;  %3299 = vmatprep.subr.bf16.mxu1 %v2643_v41  ;;  %v1668_v39 = vunpack.c.l.s8.bf16 %v1140_v38  ;;  %v1677_v41 = vunpack.c.h.s8.bf16 %v1141_v32 }
 0x47c   :  { %2972 = vmatpush1.bf16.msra.mxu0 %v2640_v56  ;;  %3300 = vmatpush1.bf16.msra.mxu1 %v2642_v57  ;;  %v1151_v56 = vld [vmem:[#allocation2 + $0xf8] sm:$0xff]  ;;  %v1676_v57 = vunpack.c.h.s8.bf16 %v1140_v38 }
 0x47d   :  { %2973 = vmatprep.subr.bf16.mxu0 %v2649_v58  ;;  %3301 = vmatprep.subr.bf16.mxu1 %v2651_v59  ;;  %v1685_v59 = vunpack.c.l.s8.bf16 %v1149_v47  ;;  %v1687_v60 = vunpack.c.l.s8.bf16 %v1151_v56  ;;  %v1695_v6 = vunpack.c.h.s8.bf16 %v1151_v56  ;;  %v1172_v56 = vld [vmem:[#allocation2 + $0x1a0] sm:$0xff] }
 0x480   :  { %2974 = vmatpush1.bf16.msra.mxu0 %v2648_v62  ;;  %3302 = vmatpush1.bf16.msra.mxu1 %v2650_v63  ;;  %v1150_v62 = vld [vmem:[#allocation2 + $0xf0] sm:$0xff]  ;;  %v1684_v63 = vunpack.c.l.s8.bf16 %v1148_v61 }
 0x481   :  { %3312 = vmatprep.subr.bf16.mxu0 %v1637_v0  ;;  %3640 = vmatprep.subr.bf16.mxu1 %v1639_v1  ;;  %v1686_v0 = vunpack.c.l.s8.bf16 %v1150_v62  ;;  %v1693_v1 = vunpack.c.h.s8.bf16 %v1149_v47 }
 0x483   :  { %2976 = vmatmul.mubr.bf16.vlgmr.msra.gmra.mrb[16].mxu0 %v6085_v27  ;;  %3304 = vmatmul.mubr.bf16.vlgmr.msra.gmra.mrb[16].mxu1 %v6085_v27 }
 0x484   :  { %3313 = vmatpush1.bf16.msra.mxu0 %v1636_v35  ;;  %3641 = vmatpush1.bf16.msra.mxu1 %v1638_v8  ;;  %v1159_v35 = vld [vmem:[#allocation2 + $0x138] sm:$0xff]  ;;  %v1692_v8 = vunpack.c.h.s8.bf16 %v1148_v61 }
 0x485   :  { %3314 = vmatprep.subr.bf16.mxu0 %v1645_v9  ;;  %3642 = vmatprep.subr.bf16.mxu1 %v1647_v10  ;;  %v1694_v9 = vunpack.c.h.s8.bf16 %v1150_v62  ;;  %v1701_v10 = vunpack.c.l.s8.bf16 %v1157_v7  ;;  %v1703_v11 = vunpack.c.l.s8.bf16 %v1159_v35  ;;  %v1711_v42 = vunpack.c.h.s8.bf16 %v1159_v35  ;;  %v1181_v62 = vld [vmem:[#allocation2 + $0x1e8] sm:$0xff]  ;;  %v1180_v35 = vld [vmem:[#allocation2 + $0x1e0] sm:$0xff] }
 0x486   :  { %3344 = vmatprep.mubr.bf16.mxu0 %v6007_v50  ;;  %3672 = vmatprep.mubr.bf16.mxu1 %v6007_v50  ;;  %v1142_v50 = vld [vmem:[#allocation2 + $0xb0] sm:$0xff] }
 0x487   :  { %v1670_v40 = vunpack.c.l.s8.bf16 %v1142_v50  ;;  %v1678_v58 = vunpack.c.h.s8.bf16 %v1142_v50  ;;  %v1173_v50 = vld [vmem:[#allocation2 + $0x1a8] sm:$0xff] }
 0x488   :  { %3315 = vmatpush1.bf16.msra.mxu0 %v1644_v15  ;;  %3643 = vmatpush1.bf16.msra.mxu1 %v1646_v19  ;;  %v1158_v15 = vld [vmem:[#allocation2 + $0x130] sm:$0xff]  ;;  %v1700_v19 = vunpack.c.l.s8.bf16 %v1156_v12 }
 0x489   :  { %3316 = vmatprep.subr.bf16.mxu0 %v1653_v20  ;;  %3644 = vmatprep.subr.bf16.mxu1 %v1655_v21  ;;  %v1702_v20 = vunpack.c.l.s8.bf16 %v1158_v15  ;;  %v1709_v21 = vunpack.c.h.s8.bf16 %v1157_v7 }
 0x48c   :  { %3317 = vmatpush1.bf16.msra.mxu0 %v1652_v28  ;;  %3645 = vmatpush1.bf16.msra.mxu1 %v1654_v29  ;;  %v1167_v28 = vld [vmem:[#allocation2 + $0x178] sm:$0xff]  ;;  %v1708_v29 = vunpack.c.h.s8.bf16 %v1156_v12 }
 0x48d   :  { %3318 = vmatprep.subr.bf16.mxu0 %v1661_v30  ;;  %3646 = vmatprep.subr.bf16.mxu1 %v1663_v31  ;;  %v1710_v30 = vunpack.c.h.s8.bf16 %v1158_v15  ;;  %v1717_v31 = vunpack.c.l.s8.bf16 %v1165_v18  ;;  %v1719_v32 = vunpack.c.l.s8.bf16 %v1167_v28  ;;  %v1727_v38 = vunpack.c.h.s8.bf16 %v1167_v28  ;;  %v1189_v15 = vld [vmem:[#allocation2 + $0x228] sm:$0xff]  ;;  %v1188_v28 = vld [vmem:[#allocation2 + $0x220] sm:$0xff] }
 0x490   :  { %3319 = vmatpush1.bf16.msra.mxu0 %v1660_v33  ;;  %3647 = vmatpush1.bf16.msra.mxu1 %v1662_v34  ;;  %v1166_v33 = vld [vmem:[#allocation2 + $0x170] sm:$0xff]  ;;  %v1716_v34 = vunpack.c.l.s8.bf16 %v1164_v26 }
 0x491   :  { %3320 = vmatprep.subr.bf16.mxu0 %v1669_v36  ;;  %3648 = vmatprep.subr.bf16.mxu1 %v1671_v37  ;;  %v1718_v36 = vunpack.c.l.s8.bf16 %v1166_v33  ;;  %v1725_v37 = vunpack.c.h.s8.bf16 %v1165_v18 }
 0x494   :  { %3321 = vmatpush1.bf16.msra.mxu0 %v1668_v39  ;;  %3649 = vmatpush1.bf16.msra.mxu1 %v1670_v40  ;;  %v1175_v39 = vld [vmem:[#allocation2 + $0x1b8] sm:$0xff]  ;;  %v1724_v40 = vunpack.c.h.s8.bf16 %v1164_v26 }
 0x495   :  { %3322 = vmatprep.subr.bf16.mxu0 %v1677_v41  ;;  %3650 = vmatprep.subr.bf16.mxu1 %v1679_v46  ;;  %v1726_v41 = vunpack.c.h.s8.bf16 %v1166_v33  ;;  %v1733_v46 = vunpack.c.l.s8.bf16 %v1173_v50  ;;  %v1735_v47 = vunpack.c.l.s8.bf16 %v1175_v39  ;;  %v1743_v61 = vunpack.c.h.s8.bf16 %v1175_v39  ;;  %v1197_v33 = vld [vmem:[#allocation2 + $0x268] sm:$0xff]  ;;  %v1196_v39 = vld [vmem:[#allocation2 + $0x260] sm:$0xff] }
 0x498   :  { %3323 = vmatpush1.bf16.msra.mxu0 %v1676_v57  ;;  %3651 = vmatpush1.bf16.msra.mxu1 %v1678_v58  ;;  %v1174_v57 = vld [vmem:[#allocation2 + $0x1b0] sm:$0xff]  ;;  %v1732_v58 = vunpack.c.l.s8.bf16 %v1172_v56 }
 0x499   :  { %3324 = vmatprep.subr.bf16.mxu0 %v1685_v59  ;;  %3652 = vmatprep.subr.bf16.mxu1 %v1687_v60  ;;  %v1734_v59 = vunpack.c.l.s8.bf16 %v1174_v57  ;;  %v1741_v60 = vunpack.c.h.s8.bf16 %v1173_v50 }
 0x49c   :  { %3325 = vmatpush1.bf16.msra.mxu0 %v1684_v63  ;;  %3653 = vmatpush1.bf16.msra.mxu1 %v1686_v0  ;;  %v1183_v63 = vld [vmem:[#allocation2 + $0x1f8] sm:$0xff]  ;;  %v1740_v0 = vunpack.c.h.s8.bf16 %v1172_v56  ;;  %v1205_v56 = vld [vmem:[#allocation2 + $0x2a8] sm:$0xff] }
 0x49d   :  { %3326 = vmatprep.subr.bf16.mxu0 %v1693_v1  ;;  %3654 = vmatprep.subr.bf16.mxu1 %v1695_v6  ;;  %v1742_v1 = vunpack.c.h.s8.bf16 %v1174_v57  ;;  %v1749_v6 = vunpack.c.l.s8.bf16 %v1181_v62  ;;  %v1751_v7 = vunpack.c.l.s8.bf16 %v1183_v63  ;;  %v1759_v12 = vunpack.c.h.s8.bf16 %v1183_v63  ;;  %v1207_v57 = vld [vmem:[#allocation2 + $0x2b8] sm:$0xff] }
 0x4a0   :  { %3327 = vmatpush1.bf16.msra.mxu0 %v1692_v8  ;;  %3655 = vmatpush1.bf16.msra.mxu1 %v1694_v9  ;;  %v1182_v8 = vld [vmem:[#allocation2 + $0x1f0] sm:$0xff]  ;;  %v1748_v9 = vunpack.c.l.s8.bf16 %v1180_v35 }
 0x4a1   :  { %3328 = vmatprep.subr.bf16.mxu0 %v1701_v10  ;;  %3656 = vmatprep.subr.bf16.mxu1 %v1703_v11  ;;  %v1750_v10 = vunpack.c.l.s8.bf16 %v1182_v8  ;;  %v1757_v11 = vunpack.c.h.s8.bf16 %v1181_v62  ;;  %v1204_v62 = vld [vmem:[#allocation2 + $0x2a0] sm:$0xff] }
 0x4a2   :  { %v1796_v63 = vunpack.c.l.s8.bf16 %v1204_v62 }
 0x4a4   :  { %3329 = vmatpush1.bf16.msra.mxu0 %v1700_v19  ;;  %3657 = vmatpush1.bf16.msra.mxu1 %v1702_v20  ;;  %v1191_v19 = vld [vmem:[#allocation2 + $0x238] sm:$0xff]  ;;  %v1756_v20 = vunpack.c.h.s8.bf16 %v1180_v35 }
 0x4a5   :  { %3330 = vmatprep.subr.bf16.mxu0 %v1709_v21  ;;  %3658 = vmatprep.subr.bf16.mxu1 %v1711_v42  ;;  %v1758_v21 = vunpack.c.h.s8.bf16 %v1182_v8  ;;  %v1765_v42 = vunpack.c.l.s8.bf16 %v1189_v15  ;;  %v1767_v18 = vunpack.c.l.s8.bf16 %v1191_v19  ;;  %v1775_v26 = vunpack.c.h.s8.bf16 %v1191_v19  ;;  %v1215_v35 = vld [vmem:[#allocation2 + $0x2f8] sm:$0xff] }
 0x4a6   :  { %v1804_v8 = vunpack.c.h.s8.bf16 %v1204_v62  ;;  %v1239_v62 = vld [vmem:[#allocation2 + $0x3b8] sm:$0xff] }
 0x4a8   :  { %3331 = vmatpush1.bf16.msra.mxu0 %v1708_v29  ;;  %3659 = vmatpush1.bf16.msra.mxu1 %v1710_v30  ;;  %v1190_v29 = vld [vmem:[#allocation2 + $0x230] sm:$0xff]  ;;  %v1764_v30 = vunpack.c.l.s8.bf16 %v1188_v28 }
 0x4a9   :  { %3332 = vmatprep.subr.bf16.mxu0 %v1717_v31  ;;  %3660 = vmatprep.subr.bf16.mxu1 %v1719_v32  ;;  %v1766_v31 = vunpack.c.l.s8.bf16 %v1190_v29  ;;  %v1773_v32 = vunpack.c.h.s8.bf16 %v1189_v15  ;;  %v1214_v15 = vld [vmem:[#allocation2 + $0x2f0] sm:$0xff] }
 0x4ac   :  { %3333 = vmatpush1.bf16.msra.mxu0 %v1716_v34  ;;  %3661 = vmatpush1.bf16.msra.mxu1 %v1718_v36  ;;  %v1199_v34 = vld [vmem:[#allocation2 + $0x278] sm:$0xff]  ;;  %v1772_v36 = vunpack.c.h.s8.bf16 %v1188_v28 }
 0x4ad   :  { %3334 = vmatprep.subr.bf16.mxu0 %v1725_v37  ;;  %3662 = vmatprep.subr.bf16.mxu1 %v1727_v38  ;;  %v1774_v37 = vunpack.c.h.s8.bf16 %v1190_v29  ;;  %v1781_v38 = vunpack.c.l.s8.bf16 %v1197_v33  ;;  %v1783_v50 = vunpack.c.l.s8.bf16 %v1199_v34  ;;  %v1223_v28 = vld [vmem:[#allocation2 + $0x338] sm:$0xff] }
 0x4b0   :  { %3335 = vmatpush1.bf16.msra.mxu0 %v1724_v40  ;;  %3663 = vmatpush1.bf16.msra.mxu1 %v1726_v41  ;;  %v1198_v40 = vld [vmem:[#allocation2 + $0x270] sm:$0xff]  ;;  %v1780_v41 = vunpack.c.l.s8.bf16 %v1196_v39 }
 0x4b1   :  { %3336 = vmatprep.subr.bf16.mxu0 %v1733_v46  ;;  %3664 = vmatprep.subr.bf16.mxu1 %v1735_v47  ;;  %v1782_v46 = vunpack.c.l.s8.bf16 %v1198_v40  ;;  %v1791_v47 = vunpack.c.h.s8.bf16 %v1199_v34 }
 0x4b4   :  { %3337 = vmatpush1.bf16.msra.mxu0 %v1732_v58  ;;  %3665 = vmatpush1.bf16.msra.mxu1 %v1734_v59  ;;  %v1788_v58 = vunpack.c.h.s8.bf16 %v1196_v39  ;;  %v1790_v59 = vunpack.c.h.s8.bf16 %v1198_v40  ;;  %v1231_v39 = vld [vmem:[#allocation2 + $0x378] sm:$0xff] }
 0x4b5   :  { %3338 = vmatprep.subr.bf16.mxu0 %v1741_v60  ;;  %3666 = vmatprep.subr.bf16.mxu1 %v1743_v61  ;;  %v1797_v60 = vunpack.c.l.s8.bf16 %v1205_v56  ;;  %v1799_v61 = vunpack.c.l.s8.bf16 %v1207_v57 }
 0x4b8   :  { %3339 = vmatpush1.bf16.msra.mxu0 %v1740_v0  ;;  %3667 = vmatpush1.bf16.msra.mxu1 %v1742_v1  ;;  %v1805_v1 = vunpack.c.h.s8.bf16 %v1205_v56  ;;  %v1230_v56 = vld [vmem:[#allocation2 + $0x370] sm:$0xff] }
 0x4b9   :  { %3340 = vmatprep.subr.bf16.mxu0 %v1749_v6  ;;  %3668 = vmatprep.subr.bf16.mxu1 %v1751_v7  ;;  %v1807_v6 = vunpack.c.h.s8.bf16 %v1207_v57  ;;  %v1213_v7 = vld [vmem:[#allocation2 + $0x2e8] sm:$0xff] }
 0x4bc   :  { %3341 = vmatpush1.bf16.msra.mxu0 %v1748_v9  ;;  %3669 = vmatpush1.bf16.msra.mxu1 %v1750_v10  ;;  %v1813_v10 = vunpack.c.l.s8.bf16 %v1213_v7 }
 0x4bd   :  { %3342 = vmatprep.subr.bf16.mxu0 %v1757_v11  ;;  %3670 = vmatprep.subr.bf16.mxu1 %v1759_v12  ;;  %v1815_v11 = vunpack.c.l.s8.bf16 %v1215_v35  ;;  %v1212_v12 = vld [vmem:[#allocation2 + $0x2e0] sm:$0xff] }
 0x4be   :  { %v1812_v19 = vunpack.c.l.s8.bf16 %v1212_v12  ;;  %v1820_v29 = vunpack.c.h.s8.bf16 %v1212_v12  ;;  %v1247_v12 = vld [vmem:[#allocation2 + $0x3f8] sm:$0xff] }
 0x4c0   :  { %3343 = vmatpush1.bf16.msra.mxu0 %v1756_v20  ;;  %3671 = vmatpush1.bf16.msra.mxu1 %v1758_v21  ;;  %v1814_v20 = vunpack.c.l.s8.bf16 %v1214_v15  ;;  %v1821_v21 = vunpack.c.h.s8.bf16 %v1213_v7  ;;  %v1238_v7 = vld [vmem:[#allocation2 + $0x3b0] sm:$0xff] }
 0x4c1   :  { %3353 = vmatprep.subr.bf16.mxu0 %v1765_v42  ;;  %3681 = vmatprep.subr.bf16.mxu1 %v1767_v18  ;;  %v1823_v42 = vunpack.c.h.s8.bf16 %v1215_v35  ;;  %v1221_v18 = vld [vmem:[#allocation2 + $0x328] sm:$0xff] }
 0x4c3   :  { %3345 = vmatmul.mubr.bf16.vlgmr.msra.gmra.mrb[20].mxu0 %v6003_v48  ;;  %3673 = vmatmul.mubr.bf16.vlgmr.msra.gmra.mrb[20].mxu1 %v6003_v48  ;;  %v1789_v48 = vunpack.c.h.s8.bf16 %v1197_v33  ;;  %v1222_v33 = vld [vmem:[#allocation2 + $0x330] sm:$0xff] }
 0x4c4   :  { %3354 = vmatpush1.bf16.msra.mxu0 %v1764_v30  ;;  %3682 = vmatpush1.bf16.msra.mxu1 %v1766_v31  ;;  %v1822_v30 = vunpack.c.h.s8.bf16 %v1214_v15  ;;  %v1829_v31 = vunpack.c.l.s8.bf16 %v1221_v18 }
 0x4c5   :  { %3355 = vmatprep.subr.bf16.mxu0 %v1773_v32  ;;  %3683 = vmatprep.subr.bf16.mxu1 %v1775_v26  ;;  %v1831_v32 = vunpack.c.l.s8.bf16 %v1223_v28  ;;  %v1220_v26 = vld [vmem:[#allocation2 + $0x320] sm:$0xff] }
 0x4c6   :  { %3385 = vmatprep.mubr.bf16.mxu0 %v6009_v51  ;;  %3713 = vmatprep.mubr.bf16.mxu1 %v6009_v51  ;;  %v1206_v51 = vld [vmem:[#allocation2 + $0x2b0] sm:$0xff]  ;;  %v1828_v34 = vunpack.c.l.s8.bf16 %v1220_v26  ;;  %v1836_v40 = vunpack.c.h.s8.bf16 %v1220_v26  ;;  %v1255_v26 = vld [vmem:[#allocation2 + $0x438] sm:$0xff] }
 0x4c7   :  { %v1798_v0 = vunpack.c.l.s8.bf16 %v1206_v51  ;;  %v1806_v9 = vunpack.c.h.s8.bf16 %v1206_v51 }
 0x4c8   :  { %3356 = vmatpush1.bf16.msra.mxu0 %v1772_v36  ;;  %3684 = vmatpush1.bf16.msra.mxu1 %v1774_v37  ;;  %v1830_v36 = vunpack.c.l.s8.bf16 %v1222_v33  ;;  %v1837_v37 = vunpack.c.h.s8.bf16 %v1221_v18  ;;  %v1246_v18 = vld [vmem:[#allocation2 + $0x3f0] sm:$0xff] }
 0x4c9   :  { %3357 = vmatprep.subr.bf16.mxu0 %v1781_v38  ;;  %3685 = vmatprep.subr.bf16.mxu1 %v1783_v50  ;;  %v1839_v38 = vunpack.c.h.s8.bf16 %v1223_v28  ;;  %v1229_v50 = vld [vmem:[#allocation2 + $0x368] sm:$0xff] }
 0x4cc   :  { %3358 = vmatpush1.bf16.msra.mxu0 %v1780_v41  ;;  %3686 = vmatpush1.bf16.msra.mxu1 %v1782_v46  ;;  %v1838_v41 = vunpack.c.h.s8.bf16 %v1222_v33  ;;  %v1845_v46 = vunpack.c.l.s8.bf16 %v1229_v50 }
 0x4cd   :  { %3359 = vmatprep.subr.bf16.mxu0 %v1789_v48  ;;  %3687 = vmatprep.subr.bf16.mxu1 %v1791_v47  ;;  %v1847_v48 = vunpack.c.l.s8.bf16 %v1231_v39  ;;  %v1228_v47 = vld [vmem:[#allocation2 + $0x360] sm:$0xff] }
 0x4ce   :  { %v1844_v57 = vunpack.c.l.s8.bf16 %v1228_v47  ;;  %v1852_v51 = vunpack.c.h.s8.bf16 %v1228_v47  ;;  %v1263_v47 = vld [vmem:[#allocation2 + $0x478] sm:$0xff] }
 0x4d0   :  { %3360 = vmatpush1.bf16.msra.mxu0 %v1788_v58  ;;  %3688 = vmatpush1.bf16.msra.mxu1 %v1790_v59  ;;  %v1846_v58 = vunpack.c.l.s8.bf16 %v1230_v56  ;;  %v1853_v59 = vunpack.c.h.s8.bf16 %v1229_v50  ;;  %v1254_v50 = vld [vmem:[#allocation2 + $0x430] sm:$0xff] }
 0x4d1   :  { %3361 = vmatprep.subr.bf16.mxu0 %v1797_v60  ;;  %3689 = vmatprep.subr.bf16.mxu1 %v1799_v61  ;;  %v1855_v60 = vunpack.c.h.s8.bf16 %v1231_v39  ;;  %v1237_v61 = vld [vmem:[#allocation2 + $0x3a8] sm:$0xff] }
 0x4d4   :  { %3362 = vmatpush1.bf16.msra.mxu0 %v1796_v63  ;;  %3690 = vmatpush1.bf16.msra.mxu1 %v1798_v0  ;;  %v1854_v63 = vunpack.c.h.s8.bf16 %v1230_v56  ;;  %v1861_v0 = vunpack.c.l.s8.bf16 %v1237_v61 }
 0x4d5   :  { %3363 = vmatprep.subr.bf16.mxu0 %v1805_v1  ;;  %3691 = vmatprep.subr.bf16.mxu1 %v1807_v6  ;;  %v1863_v1 = vunpack.c.l.s8.bf16 %v1239_v62  ;;  %v1236_v6 = vld [vmem:[#allocation2 + $0x3a0] sm:$0xff] }
 0x4d6   :  { %v1860_v35 = vunpack.c.l.s8.bf16 %v1236_v6  ;;  %v1868_v15 = vunpack.c.h.s8.bf16 %v1236_v6 }
 0x4d8   :  { %3364 = vmatpush1.bf16.msra.mxu0 %v1804_v8  ;;  %3692 = vmatpush1.bf16.msra.mxu1 %v1806_v9  ;;  %v1862_v8 = vunpack.c.l.s8.bf16 %v1238_v7  ;;  %v1869_v9 = vunpack.c.h.s8.bf16 %v1237_v61  ;;  %v1262_v61 = vld [vmem:[#allocation2 + $0x470] sm:$0xff] }
 0x4d9   :  { %3365 = vmatprep.subr.bf16.mxu0 %v1813_v10  ;;  %3693 = vmatprep.subr.bf16.mxu1 %v1815_v11  ;;  %v1871_v10 = vunpack.c.h.s8.bf16 %v1239_v62  ;;  %v1245_v11 = vld [vmem:[#allocation2 + $0x3e8] sm:$0xff] }
 0x4dc   :  { %3366 = vmatpush1.bf16.msra.mxu0 %v1812_v19  ;;  %3694 = vmatpush1.bf16.msra.mxu1 %v1814_v20  ;;  %v1870_v19 = vunpack.c.h.s8.bf16 %v1238_v7  ;;  %v1877_v20 = vunpack.c.l.s8.bf16 %v1245_v11  ;;  %v1918_v7 = vunpack.c.h.s8.bf16 %v1262_v61 }
 0x4dd   :  { %3367 = vmatprep.subr.bf16.mxu0 %v1821_v21  ;;  %3695 = vmatprep.subr.bf16.mxu1 %v1823_v42  ;;  %v1879_v21 = vunpack.c.l.s8.bf16 %v1247_v12  ;;  %v1244_v42 = vld [vmem:[#allocation2 + $0x3e0] sm:$0xff] }
 0x4de   :  { %v1876_v28 = vunpack.c.l.s8.bf16 %v1244_v42  ;;  %v1884_v33 = vunpack.c.h.s8.bf16 %v1244_v42 }
 0x4e0   :  { %3368 = vmatpush1.bf16.msra.mxu0 %v1820_v29  ;;  %3696 = vmatpush1.bf16.msra.mxu1 %v1822_v30  ;;  %v1878_v29 = vunpack.c.l.s8.bf16 %v1246_v18  ;;  %v1885_v30 = vunpack.c.h.s8.bf16 %v1245_v11 }
 0x4e1   :  { %3369 = vmatprep.subr.bf16.mxu0 %v1829_v31  ;;  %3697 = vmatprep.subr.bf16.mxu1 %v1831_v32  ;;  %v1887_v31 = vunpack.c.h.s8.bf16 %v1247_v12  ;;  %v1253_v32 = vld [vmem:[#allocation2 + $0x428] sm:$0xff] }
 0x4e4   :  { %3370 = vmatpush1.bf16.msra.mxu0 %v1828_v34  ;;  %3698 = vmatpush1.bf16.msra.mxu1 %v1830_v36  ;;  %v1886_v34 = vunpack.c.h.s8.bf16 %v1246_v18  ;;  %v1893_v36 = vunpack.c.l.s8.bf16 %v1253_v32 }
 0x4e5   :  { %3371 = vmatprep.subr.bf16.mxu0 %v1837_v37  ;;  %3699 = vmatprep.subr.bf16.mxu1 %v1839_v38  ;;  %v1895_v37 = vunpack.c.l.s8.bf16 %v1255_v26  ;;  %v1252_v38 = vld [vmem:[#allocation2 + $0x420] sm:$0xff] }
 0x4e6   :  { %v1892_v39 = vunpack.c.l.s8.bf16 %v1252_v38  ;;  %v1900_v56 = vunpack.c.h.s8.bf16 %v1252_v38 }
 0x4e8   :  { %3372 = vmatpush1.bf16.msra.mxu0 %v1836_v40  ;;  %3700 = vmatpush1.bf16.msra.mxu1 %v1838_v41  ;;  %v1894_v40 = vunpack.c.l.s8.bf16 %v1254_v50  ;;  %v1901_v41 = vunpack.c.h.s8.bf16 %v1253_v32 }
 0x4e9   :  { %3373 = vmatprep.subr.bf16.mxu0 %v1845_v46  ;;  %3701 = vmatprep.subr.bf16.mxu1 %v1847_v48  ;;  %v1903_v46 = vunpack.c.h.s8.bf16 %v1255_v26  ;;  %v1261_v48 = vld [vmem:[#allocation2 + $0x468] sm:$0xff] }
 0x4ec   :  { %3374 = vmatpush1.bf16.msra.mxu0 %v1844_v57  ;;  %3702 = vmatpush1.bf16.msra.mxu1 %v1846_v58  ;;  %v1902_v57 = vunpack.c.h.s8.bf16 %v1254_v50  ;;  %v1909_v58 = vunpack.c.l.s8.bf16 %v1261_v48 }
 0x4ed   :  { %3375 = vmatprep.subr.bf16.mxu0 %v1853_v59  ;;  %3703 = vmatprep.subr.bf16.mxu1 %v1855_v60  ;;  %v1911_v59 = vunpack.c.l.s8.bf16 %v1263_v47  ;;  %v1260_v60 = vld [vmem:[#allocation2 + $0x460] sm:$0xff] }
 0x4ee   :  { %v1908_v62 = vunpack.c.l.s8.bf16 %v1260_v60  ;;  %v1916_v6 = vunpack.c.h.s8.bf16 %v1260_v60 }
 0x4f0   :  { %3376 = vmatpush1.bf16.msra.mxu0 %v1852_v51  ;;  %3704 = vmatpush1.bf16.msra.mxu1 %v1854_v63  ;;  %v1910_v51 = vunpack.c.l.s8.bf16 %v1262_v61  ;;  %v1919_v63 = vunpack.c.h.s8.bf16 %v1263_v47 }
 0x4f1   :  { %3377 = vmatprep.subr.bf16.mxu0 %v1861_v0  ;;  %3705 = vmatprep.subr.bf16.mxu1 %v1863_v1  ;;  %v1269_v0 = vld [vmem:[#allocation2 + $0x4a8] sm:$0xff]  ;;  %v1271_v1 = vld [vmem:[#allocation2 + $0x4b8] sm:$0xff] }
 0x4f2   :  { %v1933_v12 = vunpack.c.h.s8.bf16 %v1269_v0 }
 0x4f4   :  { %3378 = vmatpush1.bf16.msra.mxu0 %v1860_v35  ;;  %3706 = vmatpush1.bf16.msra.mxu1 %v1862_v8  ;;  %v1925_v35 = vunpack.c.l.s8.bf16 %v1269_v0  ;;  %v1927_v8 = vunpack.c.l.s8.bf16 %v1271_v1 }
 0x4f5   :  { %3379 = vmatprep.subr.bf16.mxu0 %v1869_v9  ;;  %3707 = vmatprep.subr.bf16.mxu1 %v1871_v10  ;;  %v1268_v9 = vld [vmem:[#allocation2 + $0x4a0] sm:$0xff] }
 0x4f6   :  { %v1924_v10 = vunpack.c.l.s8.bf16 %v1268_v9 }
 0x4f8   :  { %3380 = vmatpush1.bf16.msra.mxu0 %v1868_v15  ;;  %3708 = vmatpush1.bf16.msra.mxu1 %v1870_v19  ;;  %v1935_v15 = vunpack.c.h.s8.bf16 %v1271_v1  ;;  %v1277_v19 = vld [vmem:[#allocation2 + $0x4e8] sm:$0xff] }
 0x4f9   :  { %3381 = vmatprep.subr.bf16.mxu0 %v1877_v20  ;;  %3709 = vmatprep.subr.bf16.mxu1 %v1879_v21  ;;  %v1279_v20 = vld [vmem:[#allocation2 + $0x4f8] sm:$0xff]  ;;  %v1932_v21 = vunpack.c.h.s8.bf16 %v1268_v9  ;;  %v1941_v18 = vunpack.c.l.s8.bf16 %v1277_v19  ;;  %v1949_v26 = vunpack.c.h.s8.bf16 %v1277_v19 }
 0x4fc   :  { %3382 = vmatpush1.bf16.msra.mxu0 %v1876_v28  ;;  %3710 = vmatpush1.bf16.msra.mxu1 %v1878_v29  ;;  %v1943_v28 = vunpack.c.l.s8.bf16 %v1279_v20  ;;  %v1276_v29 = vld [vmem:[#allocation2 + $0x4e0] sm:$0xff] }
 0x4fd   :  { %3383 = vmatprep.subr.bf16.mxu0 %v1885_v30  ;;  %3711 = vmatprep.subr.bf16.mxu1 %v1887_v31  ;;  %v1278_v30 = vld [vmem:[#allocation2 + $0x4f0] sm:$0xff]  ;;  %v1940_v31 = vunpack.c.l.s8.bf16 %v1276_v29 }
 0x4fe   :  { %v1942_v32 = vunpack.c.l.s8.bf16 %v1278_v30  ;;  %v1950_v38 = vunpack.c.h.s8.bf16 %v1278_v30 }
 0x500   :  { %3384 = vmatpush1.bf16.msra.mxu0 %v1884_v33  ;;  %3712 = vmatpush1.bf16.msra.mxu1 %v1886_v34  ;;  %v1951_v33 = vunpack.c.h.s8.bf16 %v1279_v20  ;;  %v1285_v34 = vld [vmem:[#allocation2 + $0x528] sm:$0xff] }
 0x501   :  { %3394 = vmatprep.subr.bf16.mxu0 %v1893_v36  ;;  %3722 = vmatprep.subr.bf16.mxu1 %v1895_v37  ;;  %v1287_v36 = vld [vmem:[#allocation2 + $0x538] sm:$0xff]  ;;  %v1948_v37 = vunpack.c.h.s8.bf16 %v1276_v29  ;;  %v1957_v50 = vunpack.c.l.s8.bf16 %v1285_v34  ;;  %v1965_v47 = vunpack.c.h.s8.bf16 %v1285_v34 }
 0x503   :  { %3386 = vmatmul.mubr.bf16.vlgmr.msra.gmra.mrb[20].mxu0 %v6005_v49  ;;  %3714 = vmatmul.mubr.bf16.vlgmr.msra.gmra.mrb[20].mxu1 %v6005_v49  ;;  %v1917_v49 = vunpack.c.h.s8.bf16 %v1261_v48 }
 0x504   :  { %3395 = vmatpush1.bf16.msra.mxu0 %v1892_v39  ;;  %3723 = vmatpush1.bf16.msra.mxu1 %v1894_v40  ;;  %v1959_v39 = vunpack.c.l.s8.bf16 %v1287_v36  ;;  %v1284_v40 = vld [vmem:[#allocation2 + $0x520] sm:$0xff] }
 0x505   :  { %3396 = vmatprep.subr.bf16.mxu0 %v1901_v41  ;;  %3724 = vmatprep.subr.bf16.mxu1 %v1903_v46  ;;  %v1286_v41 = vld [vmem:[#allocation2 + $0x530] sm:$0xff]  ;;  %v1956_v46 = vunpack.c.l.s8.bf16 %v1284_v40 }
 0x506   :  { %3426 = vmatprep.mubr.bf16.mxu0 %v6043_v24  ;;  %3754 = vmatprep.mubr.bf16.mxu1 %v6043_v24  ;;  %v1270_v24 = vld [vmem:[#allocation2 + $0x4b0] sm:$0xff]  ;;  %v1958_v48 = vunpack.c.l.s8.bf16 %v1286_v41  ;;  %v1966_v60 = vunpack.c.h.s8.bf16 %v1286_v41 }
 0x507   :  { %v1926_v11 = vunpack.c.l.s8.bf16 %v1270_v24  ;;  %v1934_v42 = vunpack.c.h.s8.bf16 %v1270_v24 }
 0x508   :  { %3397 = vmatpush1.bf16.msra.mxu0 %v1900_v56  ;;  %3725 = vmatpush1.bf16.msra.mxu1 %v1902_v57  ;;  %v1967_v56 = vunpack.c.h.s8.bf16 %v1287_v36  ;;  %v1293_v57 = vld [vmem:[#allocation2 + $0x568] sm:$0xff] }
 0x509   :  { %3398 = vmatprep.subr.bf16.mxu0 %v1909_v58  ;;  %3726 = vmatprep.subr.bf16.mxu1 %v1911_v59  ;;  %v1295_v58 = vld [vmem:[#allocation2 + $0x578] sm:$0xff]  ;;  %v1964_v59 = vunpack.c.h.s8.bf16 %v1284_v40  ;;  %v1973_v61 = vunpack.c.l.s8.bf16 %v1293_v57  ;;  %v1981_v1 = vunpack.c.h.s8.bf16 %v1293_v57 }
 0x50c   :  { %3399 = vmatpush1.bf16.msra.mxu0 %v1908_v62  ;;  %3727 = vmatpush1.bf16.msra.mxu1 %v1910_v51  ;;  %v1975_v62 = vunpack.c.l.s8.bf16 %v1295_v58  ;;  %v1292_v51 = vld [vmem:[#allocation2 + $0x560] sm:$0xff] }
 0x50d   :  { %3400 = vmatprep.subr.bf16.mxu0 %v1917_v49  ;;  %3728 = vmatprep.subr.bf16.mxu1 %v1919_v63  ;;  %v1294_v49 = vld [vmem:[#allocation2 + $0x570] sm:$0xff]  ;;  %v1972_v63 = vunpack.c.l.s8.bf16 %v1292_v51 }
 0x50e   :  { %v1974_v0 = vunpack.c.l.s8.bf16 %v1294_v49  ;;  %v1982_v9 = vunpack.c.h.s8.bf16 %v1294_v49 }
 0x510   :  { %3401 = vmatpush1.bf16.msra.mxu0 %v1916_v6  ;;  %3729 = vmatpush1.bf16.msra.mxu1 %v1918_v7  ;;  %v1983_v6 = vunpack.c.h.s8.bf16 %v1295_v58  ;;  %v1301_v7 = vld [vmem:[#allocation2 + $0x5a8] sm:$0xff] }
 0x511   :  { %3402 = vmatprep.subr.bf16.mxu0 %v1925_v35  ;;  %3730 = vmatprep.subr.bf16.mxu1 %v1927_v8  ;;  %v1303_v35 = vld [vmem:[#allocation2 + $0x5b8] sm:$0xff]  ;;  %v1980_v8 = vunpack.c.h.s8.bf16 %v1292_v51  ;;  %v1989_v24 = vunpack.c.l.s8.bf16 %v1301_v7  ;;  %v1997_v20 = vunpack.c.h.s8.bf16 %v1301_v7 }
 0x514   :  { %3403 = vmatpush1.bf16.msra.mxu0 %v1924_v10  ;;  %3731 = vmatpush1.bf16.msra.mxu1 %v1926_v11  ;;  %v1991_v10 = vunpack.c.l.s8.bf16 %v1303_v35  ;;  %v1300_v11 = vld [vmem:[#allocation2 + $0x5a0] sm:$0xff] }
 0x515   :  { %3404 = vmatprep.subr.bf16.mxu0 %v1933_v12  ;;  %3732 = vmatprep.subr.bf16.mxu1 %v1935_v15  ;;  %v1302_v12 = vld [vmem:[#allocation2 + $0x5b0] sm:$0xff]  ;;  %v1988_v15 = vunpack.c.l.s8.bf16 %v1300_v11 }
 0x516   :  { %v1990_v19 = vunpack.c.l.s8.bf16 %v1302_v12  ;;  %v1998_v29 = vunpack.c.h.s8.bf16 %v1302_v12 }
 0x518   :  { %3405 = vmatpush1.bf16.msra.mxu0 %v1932_v21  ;;  %3733 = vmatpush1.bf16.msra.mxu1 %v1934_v42  ;;  %v1999_v21 = vunpack.c.h.s8.bf16 %v1303_v35  ;;  %v1309_v42 = vld [vmem:[#allocation2 + $0x5e8] sm:$0xff] }
 0x519   :  { %3406 = vmatprep.subr.bf16.mxu0 %v1941_v18  ;;  %3734 = vmatprep.subr.bf16.mxu1 %v1943_v28  ;;  %v1311_v18 = vld [vmem:[#allocation2 + $0x5f8] sm:$0xff]  ;;  %v1996_v28 = vunpack.c.h.s8.bf16 %v1300_v11  ;;  %v2005_v30 = vunpack.c.l.s8.bf16 %v1309_v42  ;;  %v2013_v36 = vunpack.c.h.s8.bf16 %v1309_v42 }
 0x51c   :  { %3407 = vmatpush1.bf16.msra.mxu0 %v1940_v31  ;;  %3735 = vmatpush1.bf16.msra.mxu1 %v1942_v32  ;;  %v2007_v31 = vunpack.c.l.s8.bf16 %v1311_v18  ;;  %v1308_v32 = vld [vmem:[#allocation2 + $0x5e0] sm:$0xff] }
 0x51d   :  { %3408 = vmatprep.subr.bf16.mxu0 %v1949_v26  ;;  %3736 = vmatprep.subr.bf16.mxu1 %v1951_v33  ;;  %v1310_v26 = vld [vmem:[#allocation2 + $0x5f0] sm:$0xff]  ;;  %v2004_v33 = vunpack.c.l.s8.bf16 %v1308_v32 }
 0x51e   :  { %v2006_v34 = vunpack.c.l.s8.bf16 %v1310_v26  ;;  %v2014_v40 = vunpack.c.h.s8.bf16 %v1310_v26 }
 0x520   :  { %3409 = vmatpush1.bf16.msra.mxu0 %v1948_v37  ;;  %3737 = vmatpush1.bf16.msra.mxu1 %v1950_v38  ;;  %v2015_v37 = vunpack.c.h.s8.bf16 %v1311_v18  ;;  %v1317_v38 = vld [vmem:[#allocation2 + $0x628] sm:$0xff] }
 0x521   :  { %3410 = vmatprep.subr.bf16.mxu0 %v1957_v50  ;;  %3738 = vmatprep.subr.bf16.mxu1 %v1959_v39  ;;  %v1319_v50 = vld [vmem:[#allocation2 + $0x638] sm:$0xff]  ;;  %v2012_v39 = vunpack.c.h.s8.bf16 %v1308_v32  ;;  %v2021_v41 = vunpack.c.l.s8.bf16 %v1317_v38  ;;  %v2029_v58 = vunpack.c.h.s8.bf16 %v1317_v38 }
 0x524   :  { %3411 = vmatpush1.bf16.msra.mxu0 %v1956_v46  ;;  %3739 = vmatpush1.bf16.msra.mxu1 %v1958_v48  ;;  %v2023_v46 = vunpack.c.l.s8.bf16 %v1319_v50  ;;  %v1316_v48 = vld [vmem:[#allocation2 + $0x620] sm:$0xff] }
 0x525   :  { %3412 = vmatprep.subr.bf16.mxu0 %v1965_v47  ;;  %3740 = vmatprep.subr.bf16.mxu1 %v1967_v56  ;;  %v1318_v47 = vld [vmem:[#allocation2 + $0x630] sm:$0xff]  ;;  %v2020_v56 = vunpack.c.l.s8.bf16 %v1316_v48 }
 0x526   :  { %v2022_v57 = vunpack.c.l.s8.bf16 %v1318_v47  ;;  %v2030_v51 = vunpack.c.h.s8.bf16 %v1318_v47 }
 0x528   :  { %3413 = vmatpush1.bf16.msra.mxu0 %v1964_v59  ;;  %3741 = vmatpush1.bf16.msra.mxu1 %v1966_v60  ;;  %v2031_v59 = vunpack.c.h.s8.bf16 %v1319_v50  ;;  %v1325_v60 = vld [vmem:[#allocation2 + $0x668] sm:$0xff] }
 0x529   :  { %3414 = vmatprep.subr.bf16.mxu0 %v1973_v61  ;;  %3742 = vmatprep.subr.bf16.mxu1 %v1975_v62  ;;  %v1327_v61 = vld [vmem:[#allocation2 + $0x678] sm:$0xff]  ;;  %v2028_v62 = vunpack.c.h.s8.bf16 %v1316_v48  ;;  %v2037_v49 = vunpack.c.l.s8.bf16 %v1325_v60 }
 0x52a   :  { %v2047_v35 = vunpack.c.h.s8.bf16 %v1327_v61 }
 0x52c   :  { %3415 = vmatpush1.bf16.msra.mxu0 %v1972_v63  ;;  %3743 = vmatpush1.bf16.msra.mxu1 %v1974_v0  ;;  %v2039_v63 = vunpack.c.l.s8.bf16 %v1327_v61  ;;  %v1324_v0 = vld [vmem:[#allocation2 + $0x660] sm:$0xff] }
 0x52d   :  { %3416 = vmatprep.subr.bf16.mxu0 %v1981_v1  ;;  %3744 = vmatprep.subr.bf16.mxu1 %v1983_v6  ;;  %v1326_v1 = vld [vmem:[#allocation2 + $0x670] sm:$0xff]  ;;  %v2036_v6 = vunpack.c.l.s8.bf16 %v1324_v0 }
 0x52e   :  { %v2038_v7 = vunpack.c.l.s8.bf16 %v1326_v1 }
 0x530   :  { %3417 = vmatpush1.bf16.msra.mxu0 %v1980_v8  ;;  %3745 = vmatpush1.bf16.msra.mxu1 %v1982_v9  ;;  %v1333_v8 = vld [vmem:[#allocation2 + $0x6a8] sm:$0xff]  ;;  %v1335_v9 = vld [vmem:[#allocation2 + $0x6b8] sm:$0xff] }
 0x531   :  { %3418 = vmatprep.subr.bf16.mxu0 %v1989_v24  ;;  %3746 = vmatprep.subr.bf16.mxu1 %v1991_v10  ;;  %v2044_v24 = vunpack.c.h.s8.bf16 %v1324_v0  ;;  %v2046_v10 = vunpack.c.h.s8.bf16 %v1326_v1  ;;  %v2053_v11 = vunpack.c.l.s8.bf16 %v1333_v8  ;;  %v2055_v12 = vunpack.c.l.s8.bf16 %v1335_v9 }
 0x532   :  { %v2061_v42 = vunpack.c.h.s8.bf16 %v1333_v8  ;;  %v2063_v18 = vunpack.c.h.s8.bf16 %v1335_v9 }
 0x534   :  { %3419 = vmatpush1.bf16.msra.mxu0 %v1988_v15  ;;  %3747 = vmatpush1.bf16.msra.mxu1 %v1990_v19  ;;  %v1332_v15 = vld [vmem:[#allocation2 + $0x6a0] sm:$0xff] }
 0x535   :  { %3420 = vmatprep.subr.bf16.mxu0 %v1997_v20  ;;  %3748 = vmatprep.subr.bf16.mxu1 %v1999_v21  ;;  %v2052_v19 = vunpack.c.l.s8.bf16 %v1332_v15  ;;  %v3968_v21 = vld [vmem:[#allocation13] sm:$0xff] }
 0x536   :  { %v3981_v32 = vrot.slane %v3968_v21, %v5989_v14  ;;  %v3977_v26 = vrot.slane %v3968_v21, %v5991_v16 }
 0x538   :  { %3421 = vmatpush1.bf16.msra.mxu0 %v1996_v28  ;;  %3749 = vmatpush1.bf16.msra.mxu1 %v1998_v29  ;;  %v4018_v28 = vld [vmem:[#allocation14] sm:$0xff]  ;;  %v1341_v29 = vld [vmem:[#allocation2 + $0x6e8] sm:$0xff] }
 0x539   :  { %3422 = vmatprep.subr.bf16.mxu0 %v2005_v30  ;;  %3750 = vmatprep.subr.bf16.mxu1 %v2007_v31  ;;  %v1343_v30 = vld [vmem:[#allocation2 + $0x6f8] sm:$0xff]  ;;  %v3973_v31 = vrot.slane %v3968_v21, %v5987_v13  ;;  %v4031_v38 = vrot.slane %v4018_v28, %v5989_v14  ;;  %v2069_v50 = vunpack.c.l.s8.bf16 %v1341_v29  ;;  %v4027_v47 = vrot.slane %v4018_v28, %v5991_v16 }
 0x53a   :  { %v2079_v8 = vunpack.c.h.s8.bf16 %v1343_v30 }
 0x53c   :  { %3423 = vmatpush1.bf16.msra.mxu0 %v2004_v33  ;;  %3751 = vmatpush1.bf16.msra.mxu1 %v2006_v34  ;;  %v3985_v33 = vrot.slane %v3968_v21, %v5993_v17  ;;  %v2060_v34 = vunpack.c.h.s8.bf16 %v1332_v15 }
 0x53d   :  { %3424 = vmatprep.subr.bf16.mxu0 %v2013_v36  ;;  %3752 = vmatprep.subr.bf16.mxu1 %v2015_v37  ;;  %v4023_v37 = vrot.slane %v4018_v28, %v5987_v13 }
 0x540   :  { %3425 = vmatpush1.bf16.msra.mxu0 %v2012_v39  ;;  %3753 = vmatpush1.bf16.msra.mxu1 %v2014_v40  ;;  %v2071_v39 = vunpack.c.l.s8.bf16 %v1343_v30  ;;  %v1340_v40 = vld [vmem:[#allocation2 + $0x6e0] sm:$0xff] }
 0x541   :  { %3435 = vmatprep.subr.bf16.mxu0 %v2021_v41  ;;  %3763 = vmatprep.subr.bf16.mxu1 %v2023_v46  ;;  %v1342_v41 = vld [vmem:[#allocation2 + $0x6f0] sm:$0xff]  ;;  %v1348_v30 = vld [vmem:[#allocation2 + $0x720] sm:$0xff] }
 0x542   :  { %v2070_v0 = vunpack.c.l.s8.bf16 %v1342_v41  ;;  %v2078_v21 = vunpack.c.h.s8.bf16 %v1342_v41 }
 0x543   :  { %3427 = vmatmul.mubr.bf16.vlgmr.msra.gmra.mrb[20].mxu0 %v6027_v22  ;;  %3755 = vmatmul.mubr.bf16.vlgmr.msra.gmra.mrb[20].mxu1 %v6027_v22  ;;  %v2045_v22 = vunpack.c.h.s8.bf16 %v1325_v60 }
 0x544   :  { %3436 = vmatpush1.bf16.msra.mxu0 %v2020_v56  ;;  %3764 = vmatpush1.bf16.msra.mxu1 %v2022_v57  ;;  %v4035_v56 = vrot.slane %v4018_v28, %v5993_v17 }
 0x545   :  { %3437 = vmatprep.subr.bf16.mxu0 %v2029_v58  ;;  %3765 = vmatprep.subr.bf16.mxu1 %v2031_v59 }
 0x546   :  { %3467 = vmatprep.mubr.bf16.mxu0 %v6045_v25  ;;  %3795 = vmatprep.mubr.bf16.mxu1 %v6045_v25  ;;  %v1334_v25 = vld [vmem:[#allocation2 + $0x6b0] sm:$0xff] }
 0x547   :  { %v2054_v20 = vunpack.c.l.s8.bf16 %v1334_v25  ;;  %v2062_v36 = vunpack.c.h.s8.bf16 %v1334_v25 }
 0x548   :  { %3438 = vmatpush1.bf16.msra.mxu0 %v2028_v62  ;;  %3766 = vmatpush1.bf16.msra.mxu1 %v2030_v51 }
 0x549   :  { %3439 = vmatprep.subr.bf16.mxu0 %v2037_v49  ;;  %3767 = vmatprep.subr.bf16.mxu1 %v2039_v63  ;;  %v2068_v63 = vunpack.c.l.s8.bf16 %v1340_v40 }
 0x54c   :  { %3440 = vmatpush1.bf16.msra.mxu0 %v2036_v6  ;;  %3768 = vmatpush1.bf16.msra.mxu1 %v2038_v7 }
 0x54d   :  { %3441 = vmatprep.subr.bf16.mxu0 %v2045_v22  ;;  %3769 = vmatprep.subr.bf16.mxu1 %v2047_v35  ;;  %v2077_v35 = vunpack.c.h.s8.bf16 %v1341_v29 }
 0x550   :  { %3442 = vmatpush1.bf16.msra.mxu0 %v2044_v24  ;;  %3770 = vmatpush1.bf16.msra.mxu1 %v2046_v10  ;;  %v1349_v10 = vld [vmem:[#allocation2 + $0x728] sm:$0xff] }
 0x551   :  { %3443 = vmatprep.subr.bf16.mxu0 %v2053_v11  ;;  %3771 = vmatprep.subr.bf16.mxu1 %v2055_v12  ;;  %v1351_v11 = vld [vmem:[#allocation2 + $0x738] sm:$0xff]  ;;  %v2085_v28 = vunpack.c.l.s8.bf16 %v1349_v10 }
 0x552   :  { %v2087_v29 = vunpack.c.l.s8.bf16 %v1351_v11 }
 0x554   :  { %3444 = vmatpush1.bf16.msra.mxu0 %v2052_v19  ;;  %3772 = vmatpush1.bf16.msra.mxu1 %v2054_v20  ;;  %v2076_v20 = vunpack.c.h.s8.bf16 %v1340_v40 }
 0x555   :  { %3445 = vmatprep.subr.bf16.mxu0 %v2061_v42  ;;  %3773 = vmatprep.subr.bf16.mxu1 %v2063_v18 }
 0x556   :  { %v2977_v46 = vpop.f32.mrb[16].mxu0  ;;  %v3305_v48 = vpop.f32.mrb[16].mxu1 }
 0x557   :  { %v4010_v57 = vmul.f32 %v3973_v31, %v2977_v46  ;;  %v4012_v58 = vmul.f32 %v3981_v32, %v3305_v48  ;;  %v2979_v59 = vpop.f32.mrb[17].mxu0  ;;  %v3307_v60 = vpop.f32.mrb[17].mxu1  ;;  %v1350_v31 = vld [vmem:[#allocation2 + $0x730] sm:$0xff]  ;;  %v1356_v48 = vld [vmem:[#allocation2 + $0x760] sm:$0xff] }
 0x558   :  { %v4011_v61 = vmul.f32 %v3977_v26, %v2979_v59  ;;  %v4013_v62 = vmul.f32 %v3985_v33, %v3307_v60  ;;  %v2981_v51 = vpop.f32.mrb[18].mxu0  ;;  %v3309_v49 = vpop.f32.mrb[18].mxu1  ;;  %3446 = vmatpush1.bf16.msra.mxu0 %v2060_v34  ;;  %3774 = vmatpush1.bf16.msra.mxu1 %v2062_v36  ;;  %v2084_v33 = vunpack.c.l.s8.bf16 %v1348_v30  ;;  %v2086_v34 = vunpack.c.l.s8.bf16 %v1350_v31  ;;  %v1365_v60 = vld [vmem:[#allocation2 + $0x7a8] sm:$0xff] }
 0x559   :  { %v4060_v1 = vadd.f32 %v4023_v37, %v4010_v57  ;;  %v4062_v6 = vadd.f32 %v4031_v38, %v4012_v58  ;;  %v2982_v7 = vpop.f32.mrb[19].mxu0  ;;  %v3310_v22 = vpop.f32.mrb[19].mxu1  ;;  %3447 = vmatprep.subr.bf16.mxu0 %v2069_v50  ;;  %3775 = vmatprep.subr.bf16.mxu1 %v2071_v39  ;;  %v2093_v36 = vunpack.c.h.s8.bf16 %v1349_v10  ;;  %v2095_v37 = vunpack.c.h.s8.bf16 %v1351_v11  ;;  %v1357_v38 = vld [vmem:[#allocation2 + $0x768] sm:$0xff]  ;;  %v1359_v50 = vld [vmem:[#allocation2 + $0x778] sm:$0xff] }
 0x55a   :  { %v4061_v9 = vadd.f32 %v4027_v47, %v4011_v61  ;;  %v4063_v24 = vadd.f32 %v4035_v56, %v4013_v62  ;;  %v2092_v39 = vunpack.c.h.s8.bf16 %v1348_v30  ;;  %v2094_v40 = vunpack.c.h.s8.bf16 %v1350_v31  ;;  %v1358_v47 = vld [vmem:[#allocation2 + $0x770] sm:$0xff]  ;;  %v1367_v61 = vld [vmem:[#allocation2 + $0x7b8] sm:$0xff] }
 0x55b   :  { %v4068_v12 = vmax.f32 %v4060_v1, 0.0  ;;  %v4070_v15 = vmax.f32 %v4062_v6, 0.0  ;;  %v2101_v41 = vunpack.c.l.s8.bf16 %v1357_v38  ;;  %v2103_v46 = vunpack.c.l.s8.bf16 %v1359_v50  ;;  %v1366_v1 = vld [vmem:[#allocation2 + $0x7b0] sm:$0xff]  ;;  %v1383_v30 = vld [vmem:[#allocation2 + $0x838] sm:$0xff] }
 0x55c   :  { %v4069_v25 = vmax.f32 %v4061_v9, 0.0  ;;  %v4071_v19 = vmax.f32 %v4063_v24, 0.0  ;;  %3448 = vmatpush1.bf16.msra.mxu0 %v2068_v63  ;;  %3776 = vmatpush1.bf16.msra.mxu1 %v2070_v0  ;;  %v2100_v56 = vunpack.c.l.s8.bf16 %v1356_v48  ;;  %v2102_v57 = vunpack.c.l.s8.bf16 %v1358_v47  ;;  %v1364_v0 = vld [vmem:[#allocation2 + $0x7a0] sm:$0xff]  ;;  %v1375_v9 = vld [vmem:[#allocation2 + $0x7f8] sm:$0xff] }
 0x55d   :  { %v6145_v42 = vpack.c.bf16 %v4068_v12, %v4068_v12  ;;  %v6147_v18 = vpack.c.bf16 %v4070_v15, %v4070_v15  ;;  %3449 = vmatprep.subr.bf16.mxu0 %v2077_v35  ;;  %3777 = vmatprep.subr.bf16.mxu1 %v2079_v8  ;;  %v2109_v58 = vunpack.c.h.s8.bf16 %v1357_v38  ;;  %v2111_v59 = vunpack.c.h.s8.bf16 %v1359_v50  ;;  %v1373_v8 = vld [vmem:[#allocation2 + $0x7e8] sm:$0xff]  ;;  %v1372_v15 = vld [vmem:[#allocation2 + $0x7e0] sm:$0xff]  ;;  %v1382_v38 = vld [vmem:[#allocation2 + $0x830] sm:$0xff] }
 0x55e   :  { %v6149_v32 = vpack.c.bf16 %v4069_v25, %v4069_v25  ;;  %v6151_v26 = vpack.c.bf16 %v4071_v19, %v4071_v19  ;;  %v2108_v62 = vunpack.c.h.s8.bf16 %v1356_v48  ;;  %v2110_v51 = vunpack.c.h.s8.bf16 %v1358_v47  ;;  %v1374_v25 = vld [vmem:[#allocation2 + $0x7f0] sm:$0xff]  ;;  %v1391_v48 = vld [vmem:[#allocation2 + $0x878] sm:$0xff] }
 0x55f   :  { %v2117_v49 = vunpack.c.l.s8.bf16 %v1365_v60  ;;  %v2119_v63 = vunpack.c.l.s8.bf16 %v1367_v61  ;;  %v2116_v6 = vunpack.c.l.s8.bf16 %v1364_v0  ;;  %v2118_v7 = vunpack.c.l.s8.bf16 %v1366_v1 }
 0x560   :  { %3450 = vmatpush1.bf16.msra.mxu0 %v2076_v20  ;;  %3778 = vmatpush1.bf16.msra.mxu1 %v2078_v21  ;;  %v2125_v22 = vunpack.c.h.s8.bf16 %v1365_v60  ;;  %v2127_v35 = vunpack.c.h.s8.bf16 %v1367_v61  ;;  %v2124_v24 = vunpack.c.h.s8.bf16 %v1364_v0  ;;  %v2126_v10 = vunpack.c.h.s8.bf16 %v1366_v1  ;;  %v1390_v60 = vld [vmem:[#allocation2 + $0x870] sm:$0xff] }
 0x561   :  { %3451 = vmatprep.subr.bf16.mxu0 %v2085_v28  ;;  %3779 = vmatprep.subr.bf16.mxu1 %v2087_v29  ;;  %v2133_v11 = vunpack.c.l.s8.bf16 %v1373_v8  ;;  %v2135_v12 = vunpack.c.l.s8.bf16 %v1375_v9  ;;  %v2132_v19 = vunpack.c.l.s8.bf16 %v1372_v15  ;;  %v2134_v20 = vunpack.c.l.s8.bf16 %v1374_v25  ;;  %v1381_v29 = vld [vmem:[#allocation2 + $0x828] sm:$0xff] }
 0x562   :  { %v2141_v21 = vunpack.c.h.s8.bf16 %v1373_v8  ;;  %v2143_v28 = vunpack.c.h.s8.bf16 %v1375_v9  ;;  %v2140_v31 = vunpack.c.h.s8.bf16 %v1372_v15  ;;  %v2174_v1 = vunpack.c.h.s8.bf16 %v1390_v60 }
 0x564   :  { %3452 = vmatpush1.bf16.msra.mxu0 %v2084_v33  ;;  %3780 = vmatpush1.bf16.msra.mxu1 %v2086_v34  ;;  %v2142_v33 = vunpack.c.h.s8.bf16 %v1374_v25  ;;  %v2149_v34 = vunpack.c.l.s8.bf16 %v1381_v29 }
 0x565   :  { %3453 = vmatprep.subr.bf16.mxu0 %v2093_v36  ;;  %3781 = vmatprep.subr.bf16.mxu1 %v2095_v37  ;;  %v2151_v36 = vunpack.c.l.s8.bf16 %v1383_v30  ;;  %v1380_v37 = vld [vmem:[#allocation2 + $0x820] sm:$0xff] }
 0x566   :  { %v2148_v50 = vunpack.c.l.s8.bf16 %v1380_v37  ;;  %v2156_v47 = vunpack.c.h.s8.bf16 %v1380_v37 }
 0x568   :  { %3454 = vmatpush1.bf16.msra.mxu0 %v2092_v39  ;;  %3782 = vmatpush1.bf16.msra.mxu1 %v2094_v40  ;;  %v2150_v39 = vunpack.c.l.s8.bf16 %v1382_v38  ;;  %v2157_v40 = vunpack.c.h.s8.bf16 %v1381_v29 }
 0x569   :  { %3455 = vmatprep.subr.bf16.mxu0 %v2101_v41  ;;  %3783 = vmatprep.subr.bf16.mxu1 %v2103_v46  ;;  %v2159_v41 = vunpack.c.h.s8.bf16 %v1383_v30  ;;  %v1389_v46 = vld [vmem:[#allocation2 + $0x868] sm:$0xff] }
 0x56c   :  { %3456 = vmatpush1.bf16.msra.mxu0 %v2100_v56  ;;  %3784 = vmatpush1.bf16.msra.mxu1 %v2102_v57  ;;  %v2158_v56 = vunpack.c.h.s8.bf16 %v1382_v38  ;;  %v2165_v57 = vunpack.c.l.s8.bf16 %v1389_v46 }
 0x56d   :  { %3457 = vmatprep.subr.bf16.mxu0 %v2109_v58  ;;  %3785 = vmatprep.subr.bf16.mxu1 %v2111_v59  ;;  %v2167_v58 = vunpack.c.l.s8.bf16 %v1391_v48  ;;  %v1388_v59 = vld [vmem:[#allocation2 + $0x860] sm:$0xff] }
 0x56e   :  { %v2164_v61 = vunpack.c.l.s8.bf16 %v1388_v59  ;;  %v2172_v0 = vunpack.c.h.s8.bf16 %v1388_v59 }
 0x570   :  { %3458 = vmatpush1.bf16.msra.mxu0 %v2108_v62  ;;  %3786 = vmatpush1.bf16.msra.mxu1 %v2110_v51  ;;  %v2166_v62 = vunpack.c.l.s8.bf16 %v1390_v60  ;;  %v2175_v51 = vunpack.c.h.s8.bf16 %v1391_v48 }
 0x571   :  { %3459 = vmatprep.subr.bf16.mxu0 %v2117_v49  ;;  %3787 = vmatprep.subr.bf16.mxu1 %v2119_v63  ;;  %v1397_v49 = vld [vmem:[#allocation2 + $0x8a8] sm:$0xff]  ;;  %v1399_v63 = vld [vmem:[#allocation2 + $0x8b8] sm:$0xff] }
 0x572   :  { %v2189_v9 = vunpack.c.h.s8.bf16 %v1397_v49 }
 0x574   :  { %3460 = vmatpush1.bf16.msra.mxu0 %v2116_v6  ;;  %3788 = vmatpush1.bf16.msra.mxu1 %v2118_v7  ;;  %v2181_v6 = vunpack.c.l.s8.bf16 %v1397_v49  ;;  %v2183_v7 = vunpack.c.l.s8.bf16 %v1399_v63 }
 0x575   :  { %3461 = vmatprep.subr.bf16.mxu0 %v2125_v22  ;;  %3789 = vmatprep.subr.bf16.mxu1 %v2127_v35  ;;  %v1396_v22 = vld [vmem:[#allocation2 + $0x8a0] sm:$0xff] }
 0x576   :  { %v2180_v35 = vunpack.c.l.s8.bf16 %v1396_v22 }
 0x578   :  { %3462 = vmatpush1.bf16.msra.mxu0 %v2124_v24  ;;  %3790 = vmatpush1.bf16.msra.mxu1 %v2126_v10  ;;  %v2191_v24 = vunpack.c.h.s8.bf16 %v1399_v63  ;;  %v1405_v10 = vld [vmem:[#allocation2 + $0x8e8] sm:$0xff] }
 0x579   :  { %3463 = vmatprep.subr.bf16.mxu0 %v2133_v11  ;;  %3791 = vmatprep.subr.bf16.mxu1 %v2135_v12  ;;  %v1407_v11 = vld [vmem:[#allocation2 + $0x8f8] sm:$0xff]  ;;  %v2188_v12 = vunpack.c.h.s8.bf16 %v1396_v22  ;;  %v2197_v25 = vunpack.c.l.s8.bf16 %v1405_v10  ;;  %v2205_v30 = vunpack.c.h.s8.bf16 %v1405_v10 }
 0x57c   :  { %3464 = vmatpush1.bf16.msra.mxu0 %v2132_v19  ;;  %3792 = vmatpush1.bf16.msra.mxu1 %v2134_v20  ;;  %v2199_v19 = vunpack.c.l.s8.bf16 %v1407_v11  ;;  %v1404_v20 = vld [vmem:[#allocation2 + $0x8e0] sm:$0xff] }
 0x57d   :  { %3465 = vmatprep.subr.bf16.mxu0 %v2141_v21  ;;  %3793 = vmatprep.subr.bf16.mxu1 %v2143_v28  ;;  %v1406_v21 = vld [vmem:[#allocation2 + $0x8f0] sm:$0xff]  ;;  %v2196_v28 = vunpack.c.l.s8.bf16 %v1404_v20 }
 0x57e   :  { %v2198_v29 = vunpack.c.l.s8.bf16 %v1406_v21  ;;  %v2206_v37 = vunpack.c.h.s8.bf16 %v1406_v21 }
 0x580   :  { %3466 = vmatpush1.bf16.msra.mxu0 %v2140_v31  ;;  %3794 = vmatpush1.bf16.msra.mxu1 %v2142_v33  ;;  %v2207_v31 = vunpack.c.h.s8.bf16 %v1407_v11  ;;  %v1413_v33 = vld [vmem:[#allocation2 + $0x928] sm:$0xff] }
 0x581   :  { %3476 = vmatprep.subr.bf16.mxu0 %v2149_v34  ;;  %3804 = vmatprep.subr.bf16.mxu1 %v2151_v36  ;;  %v1415_v34 = vld [vmem:[#allocation2 + $0x938] sm:$0xff]  ;;  %v2204_v36 = vunpack.c.h.s8.bf16 %v1404_v20  ;;  %v2213_v38 = vunpack.c.l.s8.bf16 %v1413_v33  ;;  %v2221_v48 = vunpack.c.h.s8.bf16 %v1413_v33 }
 0x583   :  { %3468 = vmatmul.mubr.bf16.vlgmr.msra.gmra.mrb[20].mxu0 %v6029_v23  ;;  %3796 = vmatmul.mubr.bf16.vlgmr.msra.gmra.mrb[20].mxu1 %v6029_v23  ;;  %v2173_v23 = vunpack.c.h.s8.bf16 %v1389_v46 }
 0x584   :  { %3477 = vmatpush1.bf16.msra.mxu0 %v2148_v50  ;;  %3805 = vmatpush1.bf16.msra.mxu1 %v2150_v39  ;;  %v2215_v50 = vunpack.c.l.s8.bf16 %v1415_v34  ;;  %v1412_v39 = vld [vmem:[#allocation2 + $0x920] sm:$0xff] }
 0x585   :  { %3478 = vmatprep.subr.bf16.mxu0 %v2157_v40  ;;  %3806 = vmatprep.subr.bf16.mxu1 %v2159_v41  ;;  %v1414_v40 = vld [vmem:[#allocation2 + $0x930] sm:$0xff]  ;;  %v2212_v41 = vunpack.c.l.s8.bf16 %v1412_v39 }
 0x586   :  { %3508 = vmatprep.mubr.bf16.mxu0 %v6071_v4  ;;  %3836 = vmatprep.mubr.bf16.mxu1 %v6071_v4  ;;  %v1398_v4 = vld [vmem:[#allocation2 + $0x8b0] sm:$0xff]  ;;  %v2214_v46 = vunpack.c.l.s8.bf16 %v1414_v40  ;;  %v2222_v59 = vunpack.c.h.s8.bf16 %v1414_v40 }
 0x587   :  { %v2182_v8 = vunpack.c.l.s8.bf16 %v1398_v4  ;;  %v2190_v15 = vunpack.c.h.s8.bf16 %v1398_v4 }
 0x588   :  { %3479 = vmatpush1.bf16.msra.mxu0 %v2156_v47  ;;  %3807 = vmatpush1.bf16.msra.mxu1 %v2158_v56  ;;  %v2223_v47 = vunpack.c.h.s8.bf16 %v1415_v34  ;;  %v1421_v56 = vld [vmem:[#allocation2 + $0x968] sm:$0xff] }
 0x589   :  { %3480 = vmatprep.subr.bf16.mxu0 %v2165_v57  ;;  %3808 = vmatprep.subr.bf16.mxu1 %v2167_v58  ;;  %v1423_v57 = vld [vmem:[#allocation2 + $0x978] sm:$0xff]  ;;  %v2220_v58 = vunpack.c.h.s8.bf16 %v1412_v39  ;;  %v2229_v60 = vunpack.c.l.s8.bf16 %v1421_v56  ;;  %v2237_v63 = vunpack.c.h.s8.bf16 %v1421_v56 }
 0x58c   :  { %3481 = vmatpush1.bf16.msra.mxu0 %v2164_v61  ;;  %3809 = vmatpush1.bf16.msra.mxu1 %v2166_v62  ;;  %v2231_v61 = vunpack.c.l.s8.bf16 %v1423_v57  ;;  %v1420_v62 = vld [vmem:[#allocation2 + $0x960] sm:$0xff] }
 0x58d   :  { %3482 = vmatprep.subr.bf16.mxu0 %v2173_v23  ;;  %3810 = vmatprep.subr.bf16.mxu1 %v2175_v51  ;;  %v1422_v23 = vld [vmem:[#allocation2 + $0x970] sm:$0xff]  ;;  %v2228_v51 = vunpack.c.l.s8.bf16 %v1420_v62 }
 0x58e   :  { %v2230_v49 = vunpack.c.l.s8.bf16 %v1422_v23  ;;  %v2238_v22 = vunpack.c.h.s8.bf16 %v1422_v23 }
 0x590   :  { %3483 = vmatpush1.bf16.msra.mxu0 %v2172_v0  ;;  %3811 = vmatpush1.bf16.msra.mxu1 %v2174_v1  ;;  %v2239_v0 = vunpack.c.h.s8.bf16 %v1423_v57  ;;  %v1429_v1 = vld [vmem:[#allocation2 + $0x9a8] sm:$0xff] }
 0x591   :  { %3484 = vmatprep.subr.bf16.mxu0 %v2181_v6  ;;  %3812 = vmatprep.subr.bf16.mxu1 %v2183_v7  ;;  %v1431_v6 = vld [vmem:[#allocation2 + $0x9b8] sm:$0xff]  ;;  %v2236_v7 = vunpack.c.h.s8.bf16 %v1420_v62  ;;  %v2245_v4 = vunpack.c.l.s8.bf16 %v1429_v1  ;;  %v2253_v11 = vunpack.c.h.s8.bf16 %v1429_v1 }
 0x594   :  { %3485 = vmatpush1.bf16.msra.mxu0 %v2180_v35  ;;  %3813 = vmatpush1.bf16.msra.mxu1 %v2182_v8  ;;  %v2247_v35 = vunpack.c.l.s8.bf16 %v1431_v6  ;;  %v1428_v8 = vld [vmem:[#allocation2 + $0x9a0] sm:$0xff] }
 0x595   :  { %3486 = vmatprep.subr.bf16.mxu0 %v2189_v9  ;;  %3814 = vmatprep.subr.bf16.mxu1 %v2191_v24  ;;  %v1430_v9 = vld [vmem:[#allocation2 + $0x9b0] sm:$0xff]  ;;  %v2244_v24 = vunpack.c.l.s8.bf16 %v1428_v8 }
 0x596   :  { %v2246_v10 = vunpack.c.l.s8.bf16 %v1430_v9  ;;  %v2254_v20 = vunpack.c.h.s8.bf16 %v1430_v9 }
 0x598   :  { %3487 = vmatpush1.bf16.msra.mxu0 %v2188_v12  ;;  %3815 = vmatpush1.bf16.msra.mxu1 %v2190_v15  ;;  %v2255_v12 = vunpack.c.h.s8.bf16 %v1431_v6  ;;  %v1437_v15 = vld [vmem:[#allocation2 + $0x9e8] sm:$0xff] }
 0x599   :  { %3488 = vmatprep.subr.bf16.mxu0 %v2197_v25  ;;  %3816 = vmatprep.subr.bf16.mxu1 %v2199_v19  ;;  %v1439_v25 = vld [vmem:[#allocation2 + $0x9f8] sm:$0xff]  ;;  %v2252_v19 = vunpack.c.h.s8.bf16 %v1428_v8  ;;  %v2261_v21 = vunpack.c.l.s8.bf16 %v1437_v15  ;;  %v2269_v34 = vunpack.c.h.s8.bf16 %v1437_v15 }
 0x59c   :  { %3489 = vmatpush1.bf16.msra.mxu0 %v2196_v28  ;;  %3817 = vmatpush1.bf16.msra.mxu1 %v2198_v29  ;;  %v2263_v28 = vunpack.c.l.s8.bf16 %v1439_v25  ;;  %v1436_v29 = vld [vmem:[#allocation2 + $0x9e0] sm:$0xff] }
 0x59d   :  { %3490 = vmatprep.subr.bf16.mxu0 %v2205_v30  ;;  %3818 = vmatprep.subr.bf16.mxu1 %v2207_v31  ;;  %v1438_v30 = vld [vmem:[#allocation2 + $0x9f0] sm:$0xff]  ;;  %v2260_v31 = vunpack.c.l.s8.bf16 %v1436_v29 }
 0x59e   :  { %v2262_v33 = vunpack.c.l.s8.bf16 %v1438_v30  ;;  %v2270_v39 = vunpack.c.h.s8.bf16 %v1438_v30  ;;  %v1468_v30 = vld [vmem:[#allocation2 + $0xae0] sm:$0xff] }
 0x5a0   :  { %3491 = vmatpush1.bf16.msra.mxu0 %v2204_v36  ;;  %3819 = vmatpush1.bf16.msra.mxu1 %v2206_v37  ;;  %v2271_v36 = vunpack.c.h.s8.bf16 %v1439_v25  ;;  %v1445_v37 = vld [vmem:[#allocation2 + $0xa28] sm:$0xff] }
 0x5a1   :  { %3492 = vmatprep.subr.bf16.mxu0 %v2213_v38  ;;  %3820 = vmatprep.subr.bf16.mxu1 %v2215_v50  ;;  %v1447_v38 = vld [vmem:[#allocation2 + $0xa38] sm:$0xff]  ;;  %v2268_v50 = vunpack.c.h.s8.bf16 %v1436_v29  ;;  %v2277_v40 = vunpack.c.l.s8.bf16 %v1445_v37  ;;  %v2285_v57 = vunpack.c.h.s8.bf16 %v1445_v37  ;;  %v1469_v25 = vld [vmem:[#allocation2 + $0xae8] sm:$0xff] }
 0x5a4   :  { %3493 = vmatpush1.bf16.msra.mxu0 %v2212_v41  ;;  %3821 = vmatpush1.bf16.msra.mxu1 %v2214_v46  ;;  %v2279_v41 = vunpack.c.l.s8.bf16 %v1447_v38  ;;  %v1444_v46 = vld [vmem:[#allocation2 + $0xa20] sm:$0xff] }
 0x5a5   :  { %3494 = vmatprep.subr.bf16.mxu0 %v2221_v48  ;;  %3822 = vmatprep.subr.bf16.mxu1 %v2223_v47  ;;  %v1446_v48 = vld [vmem:[#allocation2 + $0xa30] sm:$0xff]  ;;  %v2276_v47 = vunpack.c.l.s8.bf16 %v1444_v46 }
 0x5a6   :  { %v2278_v56 = vunpack.c.l.s8.bf16 %v1446_v48  ;;  %v2286_v62 = vunpack.c.h.s8.bf16 %v1446_v48  ;;  %v1476_v48 = vld [vmem:[#allocation2 + $0xb20] sm:$0xff] }
 0x5a8   :  { %3495 = vmatpush1.bf16.msra.mxu0 %v2220_v58  ;;  %3823 = vmatpush1.bf16.msra.mxu1 %v2222_v59  ;;  %v2287_v58 = vunpack.c.h.s8.bf16 %v1447_v38  ;;  %v1453_v59 = vld [vmem:[#allocation2 + $0xa68] sm:$0xff] }
 0x5a9   :  { %3496 = vmatprep.subr.bf16.mxu0 %v2229_v60  ;;  %3824 = vmatprep.subr.bf16.mxu1 %v2231_v61  ;;  %v1455_v60 = vld [vmem:[#allocation2 + $0xa78] sm:$0xff]  ;;  %v2284_v61 = vunpack.c.h.s8.bf16 %v1444_v46  ;;  %v2293_v23 = vunpack.c.l.s8.bf16 %v1453_v59  ;;  %v1477_v38 = vld [vmem:[#allocation2 + $0xb28] sm:$0xff] }
 0x5aa   :  { %v2303_v6 = vunpack.c.h.s8.bf16 %v1455_v60 }
 0x5ac   :  { %3497 = vmatpush1.bf16.msra.mxu0 %v2228_v51  ;;  %3825 = vmatpush1.bf16.msra.mxu1 %v2230_v49  ;;  %v2295_v51 = vunpack.c.l.s8.bf16 %v1455_v60  ;;  %v1452_v49 = vld [vmem:[#allocation2 + $0xa60] sm:$0xff]  ;;  %v1485_v60 = vld [vmem:[#allocation2 + $0xb68] sm:$0xff] }
 0x5ad   :  { %3498 = vmatprep.subr.bf16.mxu0 %v2237_v63  ;;  %3826 = vmatprep.subr.bf16.mxu1 %v2239_v0  ;;  %v1454_v63 = vld [vmem:[#allocation2 + $0xa70] sm:$0xff]  ;;  %v2292_v0 = vunpack.c.l.s8.bf16 %v1452_v49 }
 0x5ae   :  { %v2294_v1 = vunpack.c.l.s8.bf16 %v1454_v63 }
 0x5b0   :  { %3499 = vmatpush1.bf16.msra.mxu0 %v2236_v7  ;;  %3827 = vmatpush1.bf16.msra.mxu1 %v2238_v22  ;;  %v1461_v7 = vld [vmem:[#allocation2 + $0xaa8] sm:$0xff]  ;;  %v1463_v22 = vld [vmem:[#allocation2 + $0xab8] sm:$0xff] }
 0x5b1   :  { %3500 = vmatprep.subr.bf16.mxu0 %v2245_v4  ;;  %3828 = vmatprep.subr.bf16.mxu1 %v2247_v35  ;;  %v2300_v4 = vunpack.c.h.s8.bf16 %v1452_v49  ;;  %v2302_v35 = vunpack.c.h.s8.bf16 %v1454_v63  ;;  %v2309_v8 = vunpack.c.l.s8.bf16 %v1461_v7  ;;  %v2311_v9 = vunpack.c.l.s8.bf16 %v1463_v22  ;;  %v1484_v63 = vld [vmem:[#allocation2 + $0xb60] sm:$0xff] }
 0x5b2   :  { %v2319_v15 = vunpack.c.h.s8.bf16 %v1463_v22  ;;  %v1493_v22 = vld [vmem:[#allocation2 + $0xba8] sm:$0xff] }
 0x5b4   :  { %3501 = vmatpush1.bf16.msra.mxu0 %v2244_v24  ;;  %3829 = vmatpush1.bf16.msra.mxu1 %v2246_v10  ;;  %v1460_v24 = vld [vmem:[#allocation2 + $0xaa0] sm:$0xff] }
 0x5b5   :  { %3502 = vmatprep.subr.bf16.mxu0 %v2253_v11  ;;  %3830 = vmatprep.subr.bf16.mxu1 %v2255_v12  ;;  %v2308_v10 = vunpack.c.l.s8.bf16 %v1460_v24  ;;  %v2317_v12 = vunpack.c.h.s8.bf16 %v1461_v7 }
 0x5b8   :  { %3503 = vmatpush1.bf16.msra.mxu0 %v2252_v19  ;;  %3831 = vmatpush1.bf16.msra.mxu1 %v2254_v20  ;;  %v1471_v19 = vld [vmem:[#allocation2 + $0xaf8] sm:$0xff]  ;;  %v2316_v20 = vunpack.c.h.s8.bf16 %v1460_v24 }
 0x5b9   :  { %3504 = vmatprep.subr.bf16.mxu0 %v2261_v21  ;;  %3832 = vmatprep.subr.bf16.mxu1 %v2263_v28  ;;  %v2325_v28 = vunpack.c.l.s8.bf16 %v1469_v25  ;;  %v2327_v29 = vunpack.c.l.s8.bf16 %v1471_v19  ;;  %v2335_v37 = vunpack.c.h.s8.bf16 %v1471_v19  ;;  %v1501_v19 = vld [vmem:[#allocation2 + $0xbe8] sm:$0xff] }
 0x5bc   :  { %3505 = vmatpush1.bf16.msra.mxu0 %v2260_v31  ;;  %3833 = vmatpush1.bf16.msra.mxu1 %v2262_v33  ;;  %v1470_v31 = vld [vmem:[#allocation2 + $0xaf0] sm:$0xff]  ;;  %v2324_v33 = vunpack.c.l.s8.bf16 %v1468_v30 }
 0x5bd   :  { %3506 = vmatprep.subr.bf16.mxu0 %v2269_v34  ;;  %3834 = vmatprep.subr.bf16.mxu1 %v2271_v36  ;;  %v2326_v34 = vunpack.c.l.s8.bf16 %v1470_v31  ;;  %v2333_v36 = vunpack.c.h.s8.bf16 %v1469_v25 }
 0x5c0   :  { %3507 = vmatpush1.bf16.msra.mxu0 %v2268_v50  ;;  %3835 = vmatpush1.bf16.msra.mxu1 %v2270_v39  ;;  %v1479_v50 = vld [vmem:[#allocation2 + $0xb38] sm:$0xff]  ;;  %v2332_v39 = vunpack.c.h.s8.bf16 %v1468_v30 }
 0x5c1   :  { %3517 = vmatprep.subr.bf16.mxu0 %v2277_v40  ;;  %3845 = vmatprep.subr.bf16.mxu1 %v2279_v41  ;;  %v2334_v40 = vunpack.c.h.s8.bf16 %v1470_v31  ;;  %v2341_v41 = vunpack.c.l.s8.bf16 %v1477_v38  ;;  %v2343_v46 = vunpack.c.l.s8.bf16 %v1479_v50  ;;  %v1500_v31 = vld [vmem:[#allocation2 + $0xbe0] sm:$0xff] }
 0x5c3   :  { %3509 = vmatmul.mubr.bf16.vlgmr.msra.gmra.mrb[20].mxu0 %v6067_v2  ;;  %3837 = vmatmul.mubr.bf16.vlgmr.msra.gmra.mrb[20].mxu1 %v6067_v2  ;;  %v2301_v2 = vunpack.c.h.s8.bf16 %v1453_v59  ;;  %v2351_v59 = vunpack.c.h.s8.bf16 %v1479_v50  ;;  %v1509_v50 = vld [vmem:[#allocation2 + $0xc28] sm:$0xff] }
 0x5c4   :  { %3518 = vmatpush1.bf16.msra.mxu0 %v2276_v47  ;;  %3846 = vmatpush1.bf16.msra.mxu1 %v2278_v56  ;;  %v1478_v47 = vld [vmem:[#allocation2 + $0xb30] sm:$0xff]  ;;  %v2340_v56 = vunpack.c.l.s8.bf16 %v1476_v48 }
 0x5c5   :  { %3519 = vmatprep.subr.bf16.mxu0 %v2285_v57  ;;  %3847 = vmatprep.subr.bf16.mxu1 %v2287_v58  ;;  %v2342_v57 = vunpack.c.l.s8.bf16 %v1478_v47  ;;  %v2349_v58 = vunpack.c.h.s8.bf16 %v1477_v38 }
 0x5c6   :  { %3549 = vmatprep.mubr.bf16.mxu0 %v6073_v5  ;;  %3877 = vmatprep.mubr.bf16.mxu1 %v6073_v5  ;;  %v1462_v5 = vld [vmem:[#allocation2 + $0xab0] sm:$0xff] }
 0x5c7   :  { %v2310_v11 = vunpack.c.l.s8.bf16 %v1462_v5  ;;  %v2318_v21 = vunpack.c.h.s8.bf16 %v1462_v5  ;;  %v1492_v5 = vld [vmem:[#allocation2 + $0xba0] sm:$0xff] }
 0x5c8   :  { %3520 = vmatpush1.bf16.msra.mxu0 %v2284_v61  ;;  %3848 = vmatpush1.bf16.msra.mxu1 %v2286_v62  ;;  %v1487_v61 = vld [vmem:[#allocation2 + $0xb78] sm:$0xff]  ;;  %v2348_v62 = vunpack.c.h.s8.bf16 %v1476_v48 }
 0x5c9   :  { %3521 = vmatprep.subr.bf16.mxu0 %v2293_v23  ;;  %3849 = vmatprep.subr.bf16.mxu1 %v2295_v51  ;;  %v2350_v23 = vunpack.c.h.s8.bf16 %v1478_v47  ;;  %v2357_v51 = vunpack.c.l.s8.bf16 %v1485_v60  ;;  %v2359_v49 = vunpack.c.l.s8.bf16 %v1487_v61  ;;  %v2367_v7 = vunpack.c.h.s8.bf16 %v1487_v61  ;;  %v1508_v47 = vld [vmem:[#allocation2 + $0xc20] sm:$0xff]  ;;  %v1517_v61 = vld [vmem:[#allocation2 + $0xc68] sm:$0xff] }
 0x5cc   :  { %3522 = vmatpush1.bf16.msra.mxu0 %v2292_v0  ;;  %3850 = vmatpush1.bf16.msra.mxu1 %v2294_v1  ;;  %v1486_v0 = vld [vmem:[#allocation2 + $0xb70] sm:$0xff]  ;;  %v2356_v1 = vunpack.c.l.s8.bf16 %v1484_v63 }
 0x5cd   :  { %3523 = vmatprep.subr.bf16.mxu0 %v2301_v2  ;;  %3851 = vmatprep.subr.bf16.mxu1 %v2303_v6  ;;  %v2358_v2 = vunpack.c.l.s8.bf16 %v1486_v0  ;;  %v2365_v6 = vunpack.c.h.s8.bf16 %v1485_v60 }
 0x5d0   :  { %3524 = vmatpush1.bf16.msra.mxu0 %v2300_v4  ;;  %3852 = vmatpush1.bf16.msra.mxu1 %v2302_v35  ;;  %v1495_v4 = vld [vmem:[#allocation2 + $0xbb8] sm:$0xff]  ;;  %v2364_v35 = vunpack.c.h.s8.bf16 %v1484_v63 }
 0x5d1   :  { %3525 = vmatprep.subr.bf16.mxu0 %v2309_v8  ;;  %3853 = vmatprep.subr.bf16.mxu1 %v2311_v9  ;;  %v2366_v8 = vunpack.c.h.s8.bf16 %v1486_v0  ;;  %v2373_v9 = vunpack.c.l.s8.bf16 %v1493_v22  ;;  %v2375_v24 = vunpack.c.l.s8.bf16 %v1495_v4  ;;  %v2383_v25 = vunpack.c.h.s8.bf16 %v1495_v4  ;;  %v1516_v0 = vld [vmem:[#allocation2 + $0xc60] sm:$0xff]  ;;  %v1527_v4 = vld [vmem:[#allocation2 + $0xcb8] sm:$0xff] }
 0x5d4   :  { %3526 = vmatpush1.bf16.msra.mxu0 %v2308_v10  ;;  %3854 = vmatpush1.bf16.msra.mxu1 %v2310_v11  ;;  %v1494_v10 = vld [vmem:[#allocation2 + $0xbb0] sm:$0xff]  ;;  %v2372_v11 = vunpack.c.l.s8.bf16 %v1492_v5 }
 0x5d5   :  { %3527 = vmatprep.subr.bf16.mxu0 %v2317_v12  ;;  %3855 = vmatprep.subr.bf16.mxu1 %v2319_v15  ;;  %v2374_v12 = vunpack.c.l.s8.bf16 %v1494_v10  ;;  %v2381_v15 = vunpack.c.h.s8.bf16 %v1493_v22  ;;  %v1525_v22 = vld [vmem:[#allocation2 + $0xca8] sm:$0xff] }
 0x5d8   :  { %3528 = vmatpush1.bf16.msra.mxu0 %v2316_v20  ;;  %3856 = vmatpush1.bf16.msra.mxu1 %v2318_v21  ;;  %v1503_v20 = vld [vmem:[#allocation2 + $0xbf8] sm:$0xff]  ;;  %v2380_v21 = vunpack.c.h.s8.bf16 %v1492_v5  ;;  %v1524_v5 = vld [vmem:[#allocation2 + $0xca0] sm:$0xff] }
 0x5d9   :  { %3529 = vmatprep.subr.bf16.mxu0 %v2325_v28  ;;  %3857 = vmatprep.subr.bf16.mxu1 %v2327_v29  ;;  %v2382_v28 = vunpack.c.h.s8.bf16 %v1494_v10  ;;  %v2389_v29 = vunpack.c.l.s8.bf16 %v1501_v19  ;;  %v2391_v30 = vunpack.c.l.s8.bf16 %v1503_v20  ;;  %v2399_v38 = vunpack.c.h.s8.bf16 %v1503_v20 }
 0x5da   :  { %v2436_v10 = vunpack.c.l.s8.bf16 %v1524_v5  ;;  %v2444_v20 = vunpack.c.h.s8.bf16 %v1524_v5  ;;  %v1558_v5 = vld [vmem:[#allocation2 + $0xdb0] sm:$0xff] }
 0x5dc   :  { %3530 = vmatpush1.bf16.msra.mxu0 %v2324_v33  ;;  %3858 = vmatpush1.bf16.msra.mxu1 %v2326_v34  ;;  %v1502_v33 = vld [vmem:[#allocation2 + $0xbf0] sm:$0xff]  ;;  %v2388_v34 = vunpack.c.l.s8.bf16 %v1500_v31 }
 0x5dd   :  { %3531 = vmatprep.subr.bf16.mxu0 %v2333_v36  ;;  %3859 = vmatprep.subr.bf16.mxu1 %v2335_v37  ;;  %v2390_v36 = vunpack.c.l.s8.bf16 %v1502_v33  ;;  %v2397_v37 = vunpack.c.h.s8.bf16 %v1501_v19  ;;  %v1535_v19 = vld [vmem:[#allocation2 + $0xcf8] sm:$0xff] }
 0x5e0   :  { %3532 = vmatpush1.bf16.msra.mxu0 %v2332_v39  ;;  %3860 = vmatpush1.bf16.msra.mxu1 %v2334_v40  ;;  %v1511_v39 = vld [vmem:[#allocation2 + $0xc38] sm:$0xff]  ;;  %v2396_v40 = vunpack.c.h.s8.bf16 %v1500_v31  ;;  %v1534_v31 = vld [vmem:[#allocation2 + $0xcf0] sm:$0xff] }
 0x5e1   :  { %3533 = vmatprep.subr.bf16.mxu0 %v2341_v41  ;;  %3861 = vmatprep.subr.bf16.mxu1 %v2343_v46  ;;  %v2398_v41 = vunpack.c.h.s8.bf16 %v1502_v33  ;;  %v2405_v46 = vunpack.c.l.s8.bf16 %v1509_v50  ;;  %v2407_v48 = vunpack.c.l.s8.bf16 %v1511_v39  ;;  %v2415_v60 = vunpack.c.h.s8.bf16 %v1511_v39 }
 0x5e4   :  { %3534 = vmatpush1.bf16.msra.mxu0 %v2340_v56  ;;  %3862 = vmatpush1.bf16.msra.mxu1 %v2342_v57  ;;  %v1510_v56 = vld [vmem:[#allocation2 + $0xc30] sm:$0xff]  ;;  %v2404_v57 = vunpack.c.l.s8.bf16 %v1508_v47 }
 0x5e5   :  { %3535 = vmatprep.subr.bf16.mxu0 %v2349_v58  ;;  %3863 = vmatprep.subr.bf16.mxu1 %v2351_v59  ;;  %v2406_v58 = vunpack.c.l.s8.bf16 %v1510_v56  ;;  %v2413_v59 = vunpack.c.h.s8.bf16 %v1509_v50  ;;  %v1543_v50 = vld [vmem:[#allocation2 + $0xd38] sm:$0xff] }
 0x5e8   :  { %3536 = vmatpush1.bf16.msra.mxu0 %v2348_v62  ;;  %3864 = vmatpush1.bf16.msra.mxu1 %v2350_v23  ;;  %v1519_v62 = vld [vmem:[#allocation2 + $0xc78] sm:$0xff]  ;;  %v2412_v23 = vunpack.c.h.s8.bf16 %v1508_v47  ;;  %v1542_v47 = vld [vmem:[#allocation2 + $0xd30] sm:$0xff] }
 0x5e9   :  { %3537 = vmatprep.subr.bf16.mxu0 %v2357_v51  ;;  %3865 = vmatprep.subr.bf16.mxu1 %v2359_v49  ;;  %v2414_v51 = vunpack.c.h.s8.bf16 %v1510_v56  ;;  %v2421_v49 = vunpack.c.l.s8.bf16 %v1517_v61  ;;  %v2423_v63 = vunpack.c.l.s8.bf16 %v1519_v62 }
 0x5ec   :  { %3538 = vmatpush1.bf16.msra.mxu0 %v2356_v1  ;;  %3866 = vmatpush1.bf16.msra.mxu1 %v2358_v2  ;;  %v1518_v1 = vld [vmem:[#allocation2 + $0xc70] sm:$0xff]  ;;  %v2420_v2 = vunpack.c.l.s8.bf16 %v1516_v0 }
 0x5ed   :  { %3539 = vmatprep.subr.bf16.mxu0 %v2365_v6  ;;  %3867 = vmatprep.subr.bf16.mxu1 %v2367_v7  ;;  %v2422_v6 = vunpack.c.l.s8.bf16 %v1518_v1  ;;  %v2431_v7 = vunpack.c.h.s8.bf16 %v1519_v62 }
 0x5f0   :  { %3540 = vmatpush1.bf16.msra.mxu0 %v2364_v35  ;;  %3868 = vmatpush1.bf16.msra.mxu1 %v2366_v8  ;;  %v2428_v35 = vunpack.c.h.s8.bf16 %v1516_v0  ;;  %v2430_v8 = vunpack.c.h.s8.bf16 %v1518_v1  ;;  %v1550_v0 = vld [vmem:[#allocation2 + $0xd70] sm:$0xff] }
 0x5f1   :  { %3541 = vmatprep.subr.bf16.mxu0 %v2373_v9  ;;  %3869 = vmatprep.subr.bf16.mxu1 %v2375_v24  ;;  %v2437_v9 = vunpack.c.l.s8.bf16 %v1525_v22  ;;  %v2439_v24 = vunpack.c.l.s8.bf16 %v1527_v4 }
 0x5f4   :  { %3542 = vmatpush1.bf16.msra.mxu0 %v2372_v11  ;;  %3870 = vmatpush1.bf16.msra.mxu1 %v2374_v12  ;;  %v2445_v12 = vunpack.c.h.s8.bf16 %v1525_v22  ;;  %v1559_v22 = vld [vmem:[#allocation2 + $0xdb8] sm:$0xff] }
 0x5f5   :  { %3543 = vmatprep.subr.bf16.mxu0 %v2381_v15  ;;  %3871 = vmatprep.subr.bf16.mxu1 %v2383_v25  ;;  %v2447_v15 = vunpack.c.h.s8.bf16 %v1527_v4  ;;  %v1533_v25 = vld [vmem:[#allocation2 + $0xce8] sm:$0xff] }
 0x5f8   :  { %3544 = vmatpush1.bf16.msra.mxu0 %v2380_v21  ;;  %3872 = vmatpush1.bf16.msra.mxu1 %v2382_v28  ;;  %v2453_v28 = vunpack.c.l.s8.bf16 %v1533_v25 }
 0x5f9   :  { %3545 = vmatprep.subr.bf16.mxu0 %v2389_v29  ;;  %3873 = vmatprep.subr.bf16.mxu1 %v2391_v30  ;;  %v2455_v29 = vunpack.c.l.s8.bf16 %v1535_v19  ;;  %v1532_v30 = vld [vmem:[#allocation2 + $0xce0] sm:$0xff] }
 0x5fa   :  { %v2452_v33 = vunpack.c.l.s8.bf16 %v1532_v30  ;;  %v2460_v39 = vunpack.c.h.s8.bf16 %v1532_v30  ;;  %v1566_v30 = vld [vmem:[#allocation2 + $0xdf0] sm:$0xff] }
 0x5fc   :  { %3546 = vmatpush1.bf16.msra.mxu0 %v2388_v34  ;;  %3874 = vmatpush1.bf16.msra.mxu1 %v2390_v36  ;;  %v2454_v34 = vunpack.c.l.s8.bf16 %v1534_v31  ;;  %v2461_v36 = vunpack.c.h.s8.bf16 %v1533_v25  ;;  %v1567_v25 = vld [vmem:[#allocation2 + $0xdf8] sm:$0xff] }
 0x5fd   :  { %3547 = vmatprep.subr.bf16.mxu0 %v2397_v37  ;;  %3875 = vmatprep.subr.bf16.mxu1 %v2399_v38  ;;  %v2463_v37 = vunpack.c.h.s8.bf16 %v1535_v19  ;;  %v1541_v38 = vld [vmem:[#allocation2 + $0xd28] sm:$0xff] }
 0x600   :  { %3548 = vmatpush1.bf16.msra.mxu0 %v2396_v40  ;;  %3876 = vmatpush1.bf16.msra.mxu1 %v2398_v41  ;;  %v2462_v40 = vunpack.c.h.s8.bf16 %v1534_v31  ;;  %v2469_v41 = vunpack.c.l.s8.bf16 %v1541_v38 }
 0x601   :  { %3558 = vmatprep.subr.bf16.mxu0 %v2405_v46  ;;  %3886 = vmatprep.subr.bf16.mxu1 %v2407_v48  ;;  %v2471_v46 = vunpack.c.l.s8.bf16 %v1543_v50  ;;  %v1540_v48 = vld [vmem:[#allocation2 + $0xd20] sm:$0xff] }
 0x602   :  { %v2468_v56 = vunpack.c.l.s8.bf16 %v1540_v48  ;;  %v2476_v62 = vunpack.c.h.s8.bf16 %v1540_v48  ;;  %v1574_v48 = vld [vmem:[#allocation2 + $0xe30] sm:$0xff] }
 0x603   :  { %3550 = vmatmul.mubr.bf16.vlgmr.msra.gmra.mrb[20].mxu0 %v6069_v3  ;;  %3878 = vmatmul.mubr.bf16.vlgmr.msra.gmra.mrb[20].mxu1 %v6069_v3  ;;  %v2429_v3 = vunpack.c.h.s8.bf16 %v1517_v61  ;;  %v1551_v61 = vld [vmem:[#allocation2 + $0xd78] sm:$0xff] }
 0x604   :  { %3559 = vmatpush1.bf16.msra.mxu0 %v2404_v57  ;;  %3887 = vmatpush1.bf16.msra.mxu1 %v2406_v58  ;;  %v2470_v57 = vunpack.c.l.s8.bf16 %v1542_v47  ;;  %v2477_v58 = vunpack.c.h.s8.bf16 %v1541_v38  ;;  %v1575_v38 = vld [vmem:[#allocation2 + $0xe38] sm:$0xff] }
 0x605   :  { %3560 = vmatprep.subr.bf16.mxu0 %v2413_v59  ;;  %3888 = vmatprep.subr.bf16.mxu1 %v2415_v60  ;;  %v2479_v59 = vunpack.c.h.s8.bf16 %v1543_v50  ;;  %v1549_v60 = vld [vmem:[#allocation2 + $0xd68] sm:$0xff] }
 0x606   :  { %3590 = vmatprep.mubr.bf16.mxu0 %v6087_v44  ;;  %3918 = vmatprep.mubr.bf16.mxu1 %v6087_v44  ;;  %v1526_v44 = vld [vmem:[#allocation2 + $0xcb0] sm:$0xff] }
 0x607   :  { %v2438_v11 = vunpack.c.l.s8.bf16 %v1526_v44  ;;  %v2446_v21 = vunpack.c.h.s8.bf16 %v1526_v44 }
 0x608   :  { %3561 = vmatpush1.bf16.msra.mxu0 %v2412_v23  ;;  %3889 = vmatpush1.bf16.msra.mxu1 %v2414_v51  ;;  %v2478_v23 = vunpack.c.h.s8.bf16 %v1542_v47  ;;  %v2485_v51 = vunpack.c.l.s8.bf16 %v1549_v60 }
 0x609   :  { %3562 = vmatprep.subr.bf16.mxu0 %v2421_v49  ;;  %3890 = vmatprep.subr.bf16.mxu1 %v2423_v63  ;;  %v2487_v49 = vunpack.c.l.s8.bf16 %v1551_v61  ;;  %v1548_v63 = vld [vmem:[#allocation2 + $0xd60] sm:$0xff] }
 0x60a   :  { %v2484_v1 = vunpack.c.l.s8.bf16 %v1548_v63  ;;  %v2492_v4 = vunpack.c.h.s8.bf16 %v1548_v63  ;;  %v1582_v63 = vld [vmem:[#allocation2 + $0xe70] sm:$0xff] }
 0x60c   :  { %3563 = vmatpush1.bf16.msra.mxu0 %v2420_v2  ;;  %3891 = vmatpush1.bf16.msra.mxu1 %v2422_v6  ;;  %v2486_v2 = vunpack.c.l.s8.bf16 %v1550_v0  ;;  %v2493_v6 = vunpack.c.h.s8.bf16 %v1549_v60  ;;  %v1583_v60 = vld [vmem:[#allocation2 + $0xe78] sm:$0xff] }
 0x60d   :  { %3564 = vmatprep.subr.bf16.mxu0 %v2429_v3  ;;  %3892 = vmatprep.subr.bf16.mxu1 %v2431_v7  ;;  %v2495_v3 = vunpack.c.h.s8.bf16 %v1551_v61  ;;  %v1557_v7 = vld [vmem:[#allocation2 + $0xda8] sm:$0xff] }
 0x610   :  { %3565 = vmatpush1.bf16.msra.mxu0 %v2428_v35  ;;  %3893 = vmatpush1.bf16.msra.mxu1 %v2430_v8  ;;  %v2494_v35 = vunpack.c.h.s8.bf16 %v1550_v0  ;;  %v2501_v8 = vunpack.c.l.s8.bf16 %v1557_v7 }
 0x611   :  { %3566 = vmatprep.subr.bf16.mxu0 %v2437_v9  ;;  %3894 = vmatprep.subr.bf16.mxu1 %v2439_v24  ;;  %v2503_v9 = vunpack.c.l.s8.bf16 %v1559_v22  ;;  %v1556_v24 = vld [vmem:[#allocation2 + $0xda0] sm:$0xff] }
 0x612   :  { %v2500_v44 = vunpack.c.l.s8.bf16 %v1556_v24  ;;  %v2508_v19 = vunpack.c.h.s8.bf16 %v1556_v24 }
 0x614   :  { %3567 = vmatpush1.bf16.msra.mxu0 %v2436_v10  ;;  %3895 = vmatpush1.bf16.msra.mxu1 %v2438_v11  ;;  %v2502_v10 = vunpack.c.l.s8.bf16 %v1558_v5  ;;  %v2509_v11 = vunpack.c.h.s8.bf16 %v1557_v7 }
 0x615   :  { %3568 = vmatprep.subr.bf16.mxu0 %v2445_v12  ;;  %3896 = vmatprep.subr.bf16.mxu1 %v2447_v15  ;;  %v2511_v12 = vunpack.c.h.s8.bf16 %v1559_v22  ;;  %v1565_v15 = vld [vmem:[#allocation2 + $0xde8] sm:$0xff]  ;;  %v2558_v22 = vunpack.c.h.s8.bf16 %v1582_v63 }
 0x618   :  { %3569 = vmatpush1.bf16.msra.mxu0 %v2444_v20  ;;  %3897 = vmatpush1.bf16.msra.mxu1 %v2446_v21  ;;  %v2510_v20 = vunpack.c.h.s8.bf16 %v1558_v5  ;;  %v2517_v21 = vunpack.c.l.s8.bf16 %v1565_v15 }
 0x619   :  { %3570 = vmatprep.subr.bf16.mxu0 %v2453_v28  ;;  %3898 = vmatprep.subr.bf16.mxu1 %v2455_v29  ;;  %v2519_v28 = vunpack.c.l.s8.bf16 %v1567_v25  ;;  %v1564_v29 = vld [vmem:[#allocation2 + $0xde0] sm:$0xff] }
 0x61a   :  { %v2516_v31 = vunpack.c.l.s8.bf16 %v1564_v29  ;;  %v2524_v50 = vunpack.c.h.s8.bf16 %v1564_v29 }
 0x61c   :  { %3571 = vmatpush1.bf16.msra.mxu0 %v2452_v33  ;;  %3899 = vmatpush1.bf16.msra.mxu1 %v2454_v34  ;;  %v2518_v33 = vunpack.c.l.s8.bf16 %v1566_v30  ;;  %v2525_v34 = vunpack.c.h.s8.bf16 %v1565_v15 }
 0x61d   :  { %3572 = vmatprep.subr.bf16.mxu0 %v2461_v36  ;;  %3900 = vmatprep.subr.bf16.mxu1 %v2463_v37  ;;  %v2527_v36 = vunpack.c.h.s8.bf16 %v1567_v25  ;;  %v1573_v37 = vld [vmem:[#allocation2 + $0xe28] sm:$0xff] }
 0x620   :  { %3573 = vmatpush1.bf16.msra.mxu0 %v2460_v39  ;;  %3901 = vmatpush1.bf16.msra.mxu1 %v2462_v40  ;;  %v2526_v39 = vunpack.c.h.s8.bf16 %v1566_v30  ;;  %v2533_v40 = vunpack.c.l.s8.bf16 %v1573_v37 }
 0x621   :  { %3574 = vmatprep.subr.bf16.mxu0 %v2469_v41  ;;  %3902 = vmatprep.subr.bf16.mxu1 %v2471_v46  ;;  %v2535_v41 = vunpack.c.l.s8.bf16 %v1575_v38  ;;  %v1572_v46 = vld [vmem:[#allocation2 + $0xe20] sm:$0xff] }
 0x622   :  { %v2532_v47 = vunpack.c.l.s8.bf16 %v1572_v46  ;;  %v2540_v61 = vunpack.c.h.s8.bf16 %v1572_v46 }
 0x624   :  { %3575 = vmatpush1.bf16.msra.mxu0 %v2468_v56  ;;  %3903 = vmatpush1.bf16.msra.mxu1 %v2470_v57  ;;  %v2534_v56 = vunpack.c.l.s8.bf16 %v1574_v48  ;;  %v2541_v57 = vunpack.c.h.s8.bf16 %v1573_v37 }
 0x625   :  { %3576 = vmatprep.subr.bf16.mxu0 %v2477_v58  ;;  %3904 = vmatprep.subr.bf16.mxu1 %v2479_v59  ;;  %v2543_v58 = vunpack.c.h.s8.bf16 %v1575_v38  ;;  %v1581_v59 = vld [vmem:[#allocation2 + $0xe68] sm:$0xff] }
 0x628   :  { %3577 = vmatpush1.bf16.msra.mxu0 %v2476_v62  ;;  %3905 = vmatpush1.bf16.msra.mxu1 %v2478_v23  ;;  %v2542_v62 = vunpack.c.h.s8.bf16 %v1574_v48  ;;  %v2549_v23 = vunpack.c.l.s8.bf16 %v1581_v59 }
 0x629   :  { %3578 = vmatprep.subr.bf16.mxu0 %v2485_v51  ;;  %3906 = vmatprep.subr.bf16.mxu1 %v2487_v49  ;;  %v2551_v51 = vunpack.c.l.s8.bf16 %v1583_v60  ;;  %v1580_v49 = vld [vmem:[#allocation2 + $0xe60] sm:$0xff] }
 0x62a   :  { %v2548_v0 = vunpack.c.l.s8.bf16 %v1580_v49  ;;  %v2556_v7 = vunpack.c.h.s8.bf16 %v1580_v49 }
 0x62c   :  { %3579 = vmatpush1.bf16.msra.mxu0 %v2484_v1  ;;  %3907 = vmatpush1.bf16.msra.mxu1 %v2486_v2  ;;  %v2550_v1 = vunpack.c.l.s8.bf16 %v1582_v63  ;;  %v2559_v2 = vunpack.c.h.s8.bf16 %v1583_v60 }
 0x62d   :  { %3580 = vmatprep.subr.bf16.mxu0 %v2493_v6  ;;  %3908 = vmatprep.subr.bf16.mxu1 %v2495_v3  ;;  %v1589_v6 = vld [vmem:[#allocation2 + $0xea8] sm:$0xff]  ;;  %v1591_v3 = vld [vmem:[#allocation2 + $0xeb8] sm:$0xff] }
 0x62e   :  { %v2573_v5 = vunpack.c.h.s8.bf16 %v1589_v6 }
 0x630   :  { %3581 = vmatpush1.bf16.msra.mxu0 %v2492_v4  ;;  %3909 = vmatpush1.bf16.msra.mxu1 %v2494_v35  ;;  %v2565_v4 = vunpack.c.l.s8.bf16 %v1589_v6  ;;  %v2567_v35 = vunpack.c.l.s8.bf16 %v1591_v3 }
 0x631   :  { %3582 = vmatprep.subr.bf16.mxu0 %v2501_v8  ;;  %3910 = vmatprep.subr.bf16.mxu1 %v2503_v9  ;;  %v1588_v8 = vld [vmem:[#allocation2 + $0xea0] sm:$0xff] }
 0x632   :  { %v2564_v9 = vunpack.c.l.s8.bf16 %v1588_v8 }
 0x634   :  { %3583 = vmatpush1.bf16.msra.mxu0 %v2500_v44  ;;  %3911 = vmatpush1.bf16.msra.mxu1 %v2502_v10  ;;  %v2575_v44 = vunpack.c.h.s8.bf16 %v1591_v3  ;;  %v1597_v10 = vld [vmem:[#allocation2 + $0xee8] sm:$0xff] }
 0x635   :  { %3584 = vmatprep.subr.bf16.mxu0 %v2509_v11  ;;  %3912 = vmatprep.subr.bf16.mxu1 %v2511_v12  ;;  %v1599_v11 = vld [vmem:[#allocation2 + $0xef8] sm:$0xff]  ;;  %v2572_v12 = vunpack.c.h.s8.bf16 %v1588_v8  ;;  %v2581_v25 = vunpack.c.l.s8.bf16 %v1597_v10  ;;  %v2589_v30 = vunpack.c.h.s8.bf16 %v1597_v10 }
 0x638   :  { %3585 = vmatpush1.bf16.msra.mxu0 %v2508_v19  ;;  %3913 = vmatpush1.bf16.msra.mxu1 %v2510_v20  ;;  %v2583_v19 = vunpack.c.l.s8.bf16 %v1599_v11  ;;  %v1596_v20 = vld [vmem:[#allocation2 + $0xee0] sm:$0xff] }
 0x639   :  { %3586 = vmatprep.subr.bf16.mxu0 %v2517_v21  ;;  %3914 = vmatprep.subr.bf16.mxu1 %v2519_v28  ;;  %v1598_v21 = vld [vmem:[#allocation2 + $0xef0] sm:$0xff]  ;;  %v2580_v28 = vunpack.c.l.s8.bf16 %v1596_v20 }
 0x63a   :  { %v2582_v29 = vunpack.c.l.s8.bf16 %v1598_v21  ;;  %v2590_v37 = vunpack.c.h.s8.bf16 %v1598_v21 }
 0x63c   :  { %3587 = vmatpush1.bf16.msra.mxu0 %v2516_v31  ;;  %3915 = vmatpush1.bf16.msra.mxu1 %v2518_v33  ;;  %v2591_v31 = vunpack.c.h.s8.bf16 %v1599_v11  ;;  %v1605_v33 = vld [vmem:[#allocation2 + $0xf28] sm:$0xff] }
 0x63d   :  { %3588 = vmatprep.subr.bf16.mxu0 %v2525_v34  ;;  %3916 = vmatprep.subr.bf16.mxu1 %v2527_v36  ;;  %v1607_v34 = vld [vmem:[#allocation2 + $0xf38] sm:$0xff]  ;;  %v2588_v36 = vunpack.c.h.s8.bf16 %v1596_v20  ;;  %v2597_v38 = vunpack.c.l.s8.bf16 %v1605_v33  ;;  %v2605_v48 = vunpack.c.h.s8.bf16 %v1605_v33 }
 0x640   :  { %3589 = vmatpush1.bf16.msra.mxu0 %v2524_v50  ;;  %3917 = vmatpush1.bf16.msra.mxu1 %v2526_v39  ;;  %v2599_v50 = vunpack.c.l.s8.bf16 %v1607_v34  ;;  %v1604_v39 = vld [vmem:[#allocation2 + $0xf20] sm:$0xff] }
 0x641   :  { %3599 = vmatprep.subr.bf16.mxu0 %v2533_v40  ;;  %3927 = vmatprep.subr.bf16.mxu1 %v2535_v41  ;;  %v1606_v40 = vld [vmem:[#allocation2 + $0xf30] sm:$0xff]  ;;  %v2596_v41 = vunpack.c.l.s8.bf16 %v1604_v39 }
 0x642   :  { %v2598_v46 = vunpack.c.l.s8.bf16 %v1606_v40 }
 0x643   :  { %3591 = vmatmul.mubr.bf16.vlgmr.msra.gmra.mrb[20].mxu0 %v6083_v43  ;;  %3919 = vmatmul.mubr.bf16.vlgmr.msra.gmra.mrb[20].mxu1 %v6083_v43  ;;  %v2557_v43 = vunpack.c.h.s8.bf16 %v1581_v59  ;;  %v2606_v59 = vunpack.c.h.s8.bf16 %v1606_v40 }
 0x644   :  { %3600 = vmatpush1.bf16.msra.mxu0 %v2532_v47  ;;  %3928 = vmatpush1.bf16.msra.mxu1 %v2534_v56  ;;  %v2607_v47 = vunpack.c.h.s8.bf16 %v1607_v34  ;;  %v1613_v56 = vld [vmem:[#allocation2 + $0xf68] sm:$0xff] }
 0x645   :  { %3601 = vmatprep.subr.bf16.mxu0 %v2541_v57  ;;  %3929 = vmatprep.subr.bf16.mxu1 %v2543_v58  ;;  %v1615_v57 = vld [vmem:[#allocation2 + $0xf78] sm:$0xff]  ;;  %v2604_v58 = vunpack.c.h.s8.bf16 %v1604_v39  ;;  %v2613_v60 = vunpack.c.l.s8.bf16 %v1613_v56  ;;  %v2621_v63 = vunpack.c.h.s8.bf16 %v1613_v56 }
 0x646   :  { %3631 = vmatprep.mubr.bf16.mxu0 %v6089_v45  ;;  %3959 = vmatprep.mubr.bf16.mxu1 %v6089_v45  ;;  %v1590_v45 = vld [vmem:[#allocation2 + $0xeb0] sm:$0xff] }
 0x647   :  { %v2566_v24 = vunpack.c.l.s8.bf16 %v1590_v45  ;;  %v2574_v15 = vunpack.c.h.s8.bf16 %v1590_v45 }
 0x648   :  { %3602 = vmatpush1.bf16.msra.mxu0 %v2540_v61  ;;  %3930 = vmatpush1.bf16.msra.mxu1 %v2542_v62  ;;  %v2615_v61 = vunpack.c.l.s8.bf16 %v1615_v57  ;;  %v1612_v62 = vld [vmem:[#allocation2 + $0xf60] sm:$0xff] }
 0x649   :  { %3603 = vmatprep.subr.bf16.mxu0 %v2549_v23  ;;  %3931 = vmatprep.subr.bf16.mxu1 %v2551_v51  ;;  %v1614_v23 = vld [vmem:[#allocation2 + $0xf70] sm:$0xff]  ;;  %v2612_v51 = vunpack.c.l.s8.bf16 %v1612_v62 }
 0x64a   :  { %v2614_v49 = vunpack.c.l.s8.bf16 %v1614_v23  ;;  %v2622_v6 = vunpack.c.h.s8.bf16 %v1614_v23 }
 0x64c   :  { %3604 = vmatpush1.bf16.msra.mxu0 %v2548_v0  ;;  %3932 = vmatpush1.bf16.msra.mxu1 %v2550_v1  ;;  %v2623_v0 = vunpack.c.h.s8.bf16 %v1615_v57  ;;  %v1621_v1 = vld [vmem:[#allocation2 + $0xfa8] sm:$0xff] }
 0x64d   :  { %3605 = vmatprep.subr.bf16.mxu0 %v2557_v43  ;;  %3933 = vmatprep.subr.bf16.mxu1 %v2559_v2  ;;  %v1623_v43 = vld [vmem:[#allocation2 + $0xfb8] sm:$0xff]  ;;  %v2620_v2 = vunpack.c.h.s8.bf16 %v1612_v62  ;;  %v2629_v3 = vunpack.c.l.s8.bf16 %v1621_v1  ;;  %v2637_v45 = vunpack.c.h.s8.bf16 %v1621_v1 }
 0x650   :  { %3606 = vmatpush1.bf16.msra.mxu0 %v2556_v7  ;;  %3934 = vmatpush1.bf16.msra.mxu1 %v2558_v22  ;;  %v2631_v7 = vunpack.c.l.s8.bf16 %v1623_v43  ;;  %v1620_v22 = vld [vmem:[#allocation2 + $0xfa0] sm:$0xff] }
 0x651   :  { %3607 = vmatprep.subr.bf16.mxu0 %v2565_v4  ;;  %3935 = vmatprep.subr.bf16.mxu1 %v2567_v35  ;;  %v1622_v4 = vld [vmem:[#allocation2 + $0xfb0] sm:$0xff]  ;;  %v2628_v35 = vunpack.c.l.s8.bf16 %v1620_v22 }
 0x652   :  { %v2630_v8 = vunpack.c.l.s8.bf16 %v1622_v4  ;;  %v2638_v10 = vunpack.c.h.s8.bf16 %v1622_v4 }
 0x654   :  { %3608 = vmatpush1.bf16.msra.mxu0 %v2564_v9  ;;  %3936 = vmatpush1.bf16.msra.mxu1 %v2566_v24  ;;  %v2639_v9 = vunpack.c.h.s8.bf16 %v1623_v43  ;;  %v1629_v24 = vld [vmem:[#allocation2 + $0xfe8] sm:$0xff] }
 0x655   :  { %3609 = vmatprep.subr.bf16.mxu0 %v2573_v5  ;;  %3937 = vmatprep.subr.bf16.mxu1 %v2575_v44  ;;  %v1631_v5 = vld [vmem:[#allocation2 + $0xff8] sm:$0xff]  ;;  %v2636_v44 = vunpack.c.h.s8.bf16 %v1620_v22  ;;  %v2645_v11 = vunpack.c.l.s8.bf16 %v1629_v24  ;;  %v2653_v21 = vunpack.c.h.s8.bf16 %v1629_v24 }
 0x658   :  { %3610 = vmatpush1.bf16.msra.mxu0 %v2572_v12  ;;  %3938 = vmatpush1.bf16.msra.mxu1 %v2574_v15  ;;  %v2647_v12 = vunpack.c.l.s8.bf16 %v1631_v5  ;;  %v1628_v15 = vld [vmem:[#allocation2 + $0xfe0] sm:$0xff] }
 0x659   :  { %3611 = vmatprep.subr.bf16.mxu0 %v2581_v25  ;;  %3939 = vmatprep.subr.bf16.mxu1 %v2583_v19  ;;  %v1630_v25 = vld [vmem:[#allocation2 + $0xff0] sm:$0xff]  ;;  %v2644_v19 = vunpack.c.l.s8.bf16 %v1628_v15 }
 0x65a   :  { %v2646_v20 = vunpack.c.l.s8.bf16 %v1630_v25 }
 0x65c   :  { %3612 = vmatpush1.bf16.msra.mxu0 %v2580_v28  ;;  %3940 = vmatpush1.bf16.msra.mxu1 %v2582_v29  ;;  %v2655_v28 = vunpack.c.h.s8.bf16 %v1631_v5  ;;  %v2652_v29 = vunpack.c.h.s8.bf16 %v1628_v15 }
 0x65d   :  { %3613 = vmatprep.subr.bf16.mxu0 %v2589_v30  ;;  %3941 = vmatprep.subr.bf16.mxu1 %v2591_v31  ;;  %v2654_v30 = vunpack.c.h.s8.bf16 %v1630_v25  ;;  %v5466_v31 = vld [vmem:[#allocation13] sm:$0xff] }
 0x65e   :  { %v3989_v33 = vrot.slane %v5466_v31, %v6011_v52  ;;  %v3997_v34 = vrot.slane %v5466_v31, %v6013_v53 }
 0x660   :  { %3614 = vmatpush1.bf16.msra.mxu0 %v2588_v36  ;;  %3942 = vmatpush1.bf16.msra.mxu1 %v2590_v37  ;;  %v3993_v36 = vrot.slane %v5466_v31, %v6015_v54  ;;  %v4001_v37 = vrot.slane %v5466_v31, %v6017_v55 }
 0x661   :  { %3615 = vmatprep.subr.bf16.mxu0 %v2597_v38  ;;  %3943 = vmatprep.subr.bf16.mxu1 %v2599_v50  ;;  %v5467_v38 = vld [vmem:[#allocation14] sm:$0xff] }
 0x662   :  { %v4039_v50 = vrot.slane %v5467_v38, %v6011_v52  ;;  %v4047_v39 = vrot.slane %v5467_v38, %v6013_v53 }
 0x664   :  { %3616 = vmatpush1.bf16.msra.mxu0 %v2596_v41  ;;  %3944 = vmatpush1.bf16.msra.mxu1 %v2598_v46  ;;  %v4043_v46 = vrot.slane %v5467_v38, %v6015_v54 }
 0x665   :  { %3617 = vmatprep.subr.bf16.mxu0 %v2605_v48  ;;  %3945 = vmatprep.subr.bf16.mxu1 %v2607_v47 }
 0x668   :  { %3618 = vmatpush1.bf16.msra.mxu0 %v2604_v58  ;;  %3946 = vmatpush1.bf16.msra.mxu1 %v2606_v59 }
 0x669   :  { %3619 = vmatprep.subr.bf16.mxu0 %v2613_v60  ;;  %3947 = vmatprep.subr.bf16.mxu1 %v2615_v61 }
 0x66c   :  { %3620 = vmatpush1.bf16.msra.mxu0 %v2612_v51  ;;  %3948 = vmatpush1.bf16.msra.mxu1 %v2614_v49 }
 0x66d   :  { %3621 = vmatprep.subr.bf16.mxu0 %v2621_v63  ;;  %3949 = vmatprep.subr.bf16.mxu1 %v2623_v0 }
 0x670   :  { %3622 = vmatpush1.bf16.msra.mxu0 %v2620_v2  ;;  %3950 = vmatpush1.bf16.msra.mxu1 %v2622_v6 }
 0x671   :  { %3623 = vmatprep.subr.bf16.mxu0 %v2629_v3  ;;  %3951 = vmatprep.subr.bf16.mxu1 %v2631_v7 }
 0x674   :  { %3624 = vmatpush1.bf16.msra.mxu0 %v2628_v35  ;;  %3952 = vmatpush1.bf16.msra.mxu1 %v2630_v8 }
 0x675   :  { %3625 = vmatprep.subr.bf16.mxu0 %v2637_v45  ;;  %3953 = vmatprep.subr.bf16.mxu1 %v2639_v9 }
 0x678   :  { %3626 = vmatpush1.bf16.msra.mxu0 %v2636_v44  ;;  %3954 = vmatpush1.bf16.msra.mxu1 %v2638_v10 }
 0x679   :  { %3627 = vmatprep.subr.bf16.mxu0 %v2645_v11  ;;  %3955 = vmatprep.subr.bf16.mxu1 %v2647_v12 }
 0x67c   :  { %3628 = vmatpush1.bf16.msra.mxu0 %v2644_v19  ;;  %3956 = vmatpush1.bf16.msra.mxu1 %v2646_v20 }
 0x67d   :  { %3629 = vmatprep.subr.bf16.mxu0 %v2653_v21  ;;  %3957 = vmatprep.subr.bf16.mxu1 %v2655_v28 }
 0x680   :  { %3630 = vmatpush1.bf16.msra.mxu0 %v2652_v29  ;;  %3958 = vmatpush1.bf16.msra.mxu1 %v2654_v30 }
 0x683   :  { %3632 = vmatmul.mubr.bf16.vlgmr.msra.gmra.mrb[20].mxu0 %v6085_v27  ;;  %3960 = vmatmul.mubr.bf16.vlgmr.msra.gmra.mrb[20].mxu1 %v6085_v27  ;;  %v4051_v27 = vrot.slane %v5467_v38, %v6017_v55 }
 0x756   :  { %v3633_v40 = vpop.f32.mrb[20].mxu0  ;;  %v3961_v41 = vpop.f32.mrb[20].mxu1 }
 0x757   :  { %v4014_v48 = vmul.f32 %v3989_v33, %v3633_v40  ;;  %v4016_v47 = vmul.f32 %v3997_v34, %v3961_v41  ;;  %v3635_v56 = vpop.f32.mrb[21].mxu0  ;;  %v3963_v57 = vpop.f32.mrb[21].mxu1 }
 0x758   :  { %v4015_v58 = vmul.f32 %v3993_v36, %v3635_v56  ;;  %v4017_v59 = vmul.f32 %v4001_v37, %v3963_v57  ;;  %v3637_v60 = vpop.f32.mrb[22].mxu0  ;;  %v3965_v61 = vpop.f32.mrb[22].mxu1 }
 0x759   :  { %v4064_v62 = vadd.f32 %v4039_v50, %v4014_v48  ;;  %v4066_v23 = vadd.f32 %v4047_v39, %v4016_v47  ;;  %v3638_v51 = vpop.f32.mrb[23].mxu0  ;;  %v3966_v52 = vpop.f32.mrb[23].mxu1 }
 0x75a   :  { %v4065_v49 = vadd.f32 %v4043_v46, %v4015_v58  ;;  %v4067_v53 = vadd.f32 %v4051_v27, %v4017_v59 }
 0x75b   :  { %v4072_v63 = vmax.f32 %v4064_v62, 0.0  ;;  %v4074_v0 = vmax.f32 %v4066_v23, 0.0 }
 0x75c   :  { %v4073_v1 = vmax.f32 %v4065_v49, 0.0  ;;  %v4075_v54 = vmax.f32 %v4067_v53, 0.0 }
 0x75d   :  { %v6179_v43 = vpack.c.bf16 %v4072_v63, %v4072_v63  ;;  %v6181_v55 = vpack.c.bf16 %v4074_v0, %v4074_v0 }
 0x75e   :  { %v6183_v2 = vpack.c.bf16 %v4073_v1, %v4073_v1  ;;  %v6185_v6 = vpack.c.bf16 %v4075_v54, %v4075_v54 }
 0x75f   :  { %5776 = dma.done.wait [#allocation4 + $0x1], 16384 }
 0x760   :  { %5777 = vsyncadd [#allocation4 + $0x1], 4294950912  ;;  %4504 = vmatprep.mubr.bf16.mxu0 %v6149_v32  ;;  %4668 = vmatprep.mubr.bf16.mxu1 %v6149_v32  ;;  %v4089_v3 = vld [vmem:[#allocation3 + $0x8] sm:$0xff]  ;;  %v4091_v7 = vld [vmem:[#allocation3 + $0x18] sm:$0xff]  ;;  %vm5203_vm0 = vcmask 130048  }
 0x761   :  { %v4088_v22 = vld [vmem:[#allocation3] sm:$0xff]  ;;  %v4217_v4 = vunpack.c.l.s8.bf16 %v4089_v3  ;;  %v4221_v35 = vunpack.c.h.s8.bf16 %v4089_v3  ;;  %v4219_v8 = vunpack.c.l.s8.bf16 %v4091_v7  ;;  %v4223_v45 = vunpack.c.h.s8.bf16 %v4091_v7  ;;  %v4090_v9 = vld [vmem:[#allocation3 + $0x10] sm:$0xff]  ;;  %v4093_v44 = vld [vmem:[#allocation3 + $0x28] sm:$0xff] }
 0x762   :  { %v4216_v24 = vunpack.c.l.s8.bf16 %v4088_v22  ;;  %v4218_v5 = vunpack.c.l.s8.bf16 %v4090_v9  ;;  %v4095_v10 = vld [vmem:[#allocation3 + $0x38] sm:$0xff]  ;;  %v4220_v11 = vunpack.c.h.s8.bf16 %v4088_v22  ;;  %v4222_v12 = vunpack.c.h.s8.bf16 %v4090_v9  ;;  %v4092_v25 = vld [vmem:[#allocation3 + $0x20] sm:$0xff]  ;;  %v4094_v19 = vld [vmem:[#allocation3 + $0x30] sm:$0xff] }
 0x763   :  { %4472 = vmatprep.subr.bf16.mxu0 %v4217_v4  ;;  %4636 = vmatprep.subr.bf16.mxu1 %v4219_v8  ;;  %v4225_v32 = vunpack.c.l.s8.bf16 %v4093_v44  ;;  %v4227_v15 = vunpack.c.l.s8.bf16 %v4095_v10  ;;  %v4224_v20 = vunpack.c.l.s8.bf16 %v4092_v25  ;;  %v4226_v21 = vunpack.c.l.s8.bf16 %v4094_v19  ;;  %v4097_v30 = vld [vmem:[#allocation3 + $0x48] sm:$0xff]  ;;  %v4099_v31 = vld [vmem:[#allocation3 + $0x58] sm:$0xff]  ;;  %v4096_v38 = vld [vmem:[#allocation3 + $0x40] sm:$0xff] }
 0x764   :  { %4473 = vmatpush1.bf16.msra.mxu0 %v4216_v24  ;;  %4637 = vmatpush1.bf16.msra.mxu1 %v4218_v5  ;;  %v4229_v28 = vunpack.c.h.s8.bf16 %v4093_v44  ;;  %v4231_v29 = vunpack.c.h.s8.bf16 %v4095_v10  ;;  %v4228_v33 = vunpack.c.h.s8.bf16 %v4092_v25  ;;  %v4230_v34 = vunpack.c.h.s8.bf16 %v4094_v19  ;;  %v4098_v50 = vld [vmem:[#allocation3 + $0x50] sm:$0xff]  ;;  %v4101_v27 = vld [vmem:[#allocation3 + $0x68] sm:$0xff]  ;;  %v4103_v48 = vld [vmem:[#allocation3 + $0x78] sm:$0xff] }
 0x765   :  { %4474 = vmatprep.subr.bf16.mxu0 %v4221_v35  ;;  %4638 = vmatprep.subr.bf16.mxu1 %v4223_v45  ;;  %v4233_v36 = vunpack.c.l.s8.bf16 %v4097_v30  ;;  %v4235_v37 = vunpack.c.l.s8.bf16 %v4099_v31  ;;  %v4232_v39 = vunpack.c.l.s8.bf16 %v4096_v38  ;;  %v4234_v40 = vunpack.c.l.s8.bf16 %v4098_v50  ;;  %v4100_v59 = vld [vmem:[#allocation3 + $0x60] sm:$0xff]  ;;  %v4102_v60 = vld [vmem:[#allocation3 + $0x70] sm:$0xff]  ;;  %v4105_v52 = vld [vmem:[#allocation3 + $0x88] sm:$0xff] }
 0x766   :  { %v4237_v41 = vunpack.c.h.s8.bf16 %v4097_v30  ;;  %v4239_v46 = vunpack.c.h.s8.bf16 %v4099_v31  ;;  %v4236_v47 = vunpack.c.h.s8.bf16 %v4096_v38  ;;  %v4238_v56 = vunpack.c.h.s8.bf16 %v4098_v50  ;;  %v4107_v49 = vld [vmem:[#allocation3 + $0x98] sm:$0xff]  ;;  %v4104_v53 = vld [vmem:[#allocation3 + $0x80] sm:$0xff]  ;;  %v4106_v63 = vld [vmem:[#allocation3 + $0x90] sm:$0xff] }
 0x767   :  { %v4241_v57 = vunpack.c.l.s8.bf16 %v4101_v27  ;;  %v4243_v58 = vunpack.c.l.s8.bf16 %v4103_v48  ;;  %v4240_v61 = vunpack.c.l.s8.bf16 %v4100_v59  ;;  %v4242_v62 = vunpack.c.l.s8.bf16 %v4102_v60  ;;  %v4109_v8 = vld [vmem:[#allocation3 + $0xa8] sm:$0xff]  ;;  %v4111_v45 = vld [vmem:[#allocation3 + $0xb8] sm:$0xff]  ;;  %v4108_v9 = vld [vmem:[#allocation3 + $0xa0] sm:$0xff] }
 0x768   :  { %4475 = vmatpush1.bf16.msra.mxu0 %v4220_v11  ;;  %4639 = vmatpush1.bf16.msra.mxu1 %v4222_v12  ;;  %v4245_v23 = vunpack.c.h.s8.bf16 %v4101_v27  ;;  %v4247_v51 = vunpack.c.h.s8.bf16 %v4103_v48  ;;  %v4244_v0 = vunpack.c.h.s8.bf16 %v4100_v59  ;;  %v4246_v1 = vunpack.c.h.s8.bf16 %v4102_v60  ;;  %v4110_v24 = vld [vmem:[#allocation3 + $0xb0] sm:$0xff]  ;;  %v4113_v19 = vld [vmem:[#allocation3 + $0xc8] sm:$0xff]  ;;  %v4116_v48 = vld [vmem:[#allocation3 + $0xe0] sm:$0xff] }
 0x769   :  { %4476 = vmatprep.subr.bf16.mxu0 %v4225_v32  ;;  %4640 = vmatprep.subr.bf16.mxu1 %v4227_v15  ;;  %v4249_v54 = vunpack.c.l.s8.bf16 %v4105_v52  ;;  %v4251_v3 = vunpack.c.l.s8.bf16 %v4107_v49  ;;  %v4248_v7 = vunpack.c.l.s8.bf16 %v4104_v53  ;;  %v4250_v22 = vunpack.c.l.s8.bf16 %v4106_v63  ;;  %v4117_v50 = vld [vmem:[#allocation3 + $0xe8] sm:$0xff] }
 0x76a   :  { %v4253_v4 = vunpack.c.h.s8.bf16 %v4105_v52  ;;  %v4255_v35 = vunpack.c.h.s8.bf16 %v4107_v49  ;;  %v4252_v5 = vunpack.c.h.s8.bf16 %v4104_v53  ;;  %v4254_v44 = vunpack.c.h.s8.bf16 %v4106_v63  ;;  %v4121_v60 = vld [vmem:[#allocation3 + $0x108] sm:$0xff]  ;;  %v4120_v49 = vld [vmem:[#allocation3 + $0x100] sm:$0xff]  ;;  %v4122_v53 = vld [vmem:[#allocation3 + $0x110] sm:$0xff] }
 0x76b   :  { %v4257_v10 = vunpack.c.l.s8.bf16 %v4109_v8  ;;  %v4259_v11 = vunpack.c.l.s8.bf16 %v4111_v45  ;;  %v4256_v12 = vunpack.c.l.s8.bf16 %v4108_v9  ;;  %v4258_v32 = vunpack.c.l.s8.bf16 %v4110_v24 }
 0x76c   :  { %4477 = vmatpush1.bf16.msra.mxu0 %v4224_v20  ;;  %4641 = vmatpush1.bf16.msra.mxu1 %v4226_v21  ;;  %v4261_v15 = vunpack.c.h.s8.bf16 %v4109_v8  ;;  %v4263_v25 = vunpack.c.h.s8.bf16 %v4111_v45  ;;  %v4115_v20 = vld [vmem:[#allocation3 + $0xd8] sm:$0xff]  ;;  %v4112_v21 = vld [vmem:[#allocation3 + $0xc0] sm:$0xff]  ;;  %v4262_v30 = vunpack.c.h.s8.bf16 %v4110_v24  ;;  %v4265_v31 = vunpack.c.l.s8.bf16 %v4113_v19 }
 0x76d   :  { %4478 = vmatprep.subr.bf16.mxu0 %v4229_v28  ;;  %4642 = vmatprep.subr.bf16.mxu1 %v4231_v29  ;;  %v4114_v28 = vld [vmem:[#allocation3 + $0xd0] sm:$0xff]  ;;  %v4260_v29 = vunpack.c.h.s8.bf16 %v4108_v9  ;;  %v4271_v38 = vunpack.c.h.s8.bf16 %v4115_v20  ;;  %v4280_v63 = vunpack.c.l.s8.bf16 %v4120_v49  ;;  %v4124_v45 = vld [vmem:[#allocation3 + $0x120] sm:$0xff] }
 0x76e   :  { %v4126_v9 = vld [vmem:[#allocation3 + $0x130] sm:$0xff]  ;;  %v4288_v24 = vunpack.c.l.s8.bf16 %v4124_v45 }
 0x770   :  { %4479 = vmatpush1.bf16.msra.mxu0 %v4228_v33  ;;  %4643 = vmatpush1.bf16.msra.mxu1 %v4230_v34  ;;  %v4267_v33 = vunpack.c.l.s8.bf16 %v4115_v20  ;;  %v4264_v34 = vunpack.c.l.s8.bf16 %v4112_v21 }
 0x771   :  { %4480 = vmatprep.subr.bf16.mxu0 %v4233_v36  ;;  %4644 = vmatprep.subr.bf16.mxu1 %v4235_v37  ;;  %v4266_v36 = vunpack.c.l.s8.bf16 %v4114_v28  ;;  %v4269_v37 = vunpack.c.h.s8.bf16 %v4113_v19  ;;  %v4128_v19 = vld [vmem:[#allocation3 + $0x140] sm:$0xff] }
 0x772   :  { %v4296_v20 = vunpack.c.l.s8.bf16 %v4128_v19 }
 0x774   :  { %4481 = vmatpush1.bf16.msra.mxu0 %v4232_v39  ;;  %4645 = vmatpush1.bf16.msra.mxu1 %v4234_v40  ;;  %v4119_v39 = vld [vmem:[#allocation3 + $0xf8] sm:$0xff]  ;;  %v4268_v40 = vunpack.c.h.s8.bf16 %v4112_v21 }
 0x775   :  { %4482 = vmatprep.subr.bf16.mxu0 %v4237_v41  ;;  %4646 = vmatprep.subr.bf16.mxu1 %v4239_v46  ;;  %v4270_v41 = vunpack.c.h.s8.bf16 %v4114_v28  ;;  %v4273_v46 = vunpack.c.l.s8.bf16 %v4117_v50  ;;  %v4275_v27 = vunpack.c.l.s8.bf16 %v4119_v39  ;;  %v4279_v59 = vunpack.c.h.s8.bf16 %v4119_v39 }
 0x778   :  { %4483 = vmatpush1.bf16.msra.mxu0 %v4236_v47  ;;  %4647 = vmatpush1.bf16.msra.mxu1 %v4238_v56  ;;  %v4118_v47 = vld [vmem:[#allocation3 + $0xf0] sm:$0xff]  ;;  %v4272_v56 = vunpack.c.l.s8.bf16 %v4116_v48 }
 0x779   :  { %4484 = vmatprep.subr.bf16.mxu0 %v4241_v57  ;;  %4648 = vmatprep.subr.bf16.mxu1 %v4243_v58  ;;  %v4274_v57 = vunpack.c.l.s8.bf16 %v4118_v47  ;;  %v4277_v58 = vunpack.c.h.s8.bf16 %v4117_v50  ;;  %v4134_v50 = vld [vmem:[#allocation3 + $0x170] sm:$0xff] }
 0x77c   :  { %4485 = vmatpush1.bf16.msra.mxu0 %v4240_v61  ;;  %4649 = vmatpush1.bf16.msra.mxu1 %v4242_v62  ;;  %v4123_v61 = vld [vmem:[#allocation3 + $0x118] sm:$0xff]  ;;  %v4276_v62 = vunpack.c.h.s8.bf16 %v4116_v48 }
 0x77d   :  { %4486 = vmatprep.subr.bf16.mxu0 %v4245_v23  ;;  %4650 = vmatprep.subr.bf16.mxu1 %v4247_v51  ;;  %v4278_v23 = vunpack.c.h.s8.bf16 %v4118_v47  ;;  %v4281_v51 = vunpack.c.l.s8.bf16 %v4121_v60  ;;  %v4283_v52 = vunpack.c.l.s8.bf16 %v4123_v61  ;;  %v4139_v48 = vld [vmem:[#allocation3 + $0x198] sm:$0xff] }
 0x780   :  { %4487 = vmatpush1.bf16.msra.mxu0 %v4244_v0  ;;  %4651 = vmatpush1.bf16.msra.mxu1 %v4246_v1  ;;  %v4282_v0 = vunpack.c.l.s8.bf16 %v4122_v53  ;;  %v4285_v1 = vunpack.c.h.s8.bf16 %v4121_v60  ;;  %v4138_v60 = vld [vmem:[#allocation3 + $0x190] sm:$0xff] }
 0x781   :  { %4488 = vmatprep.subr.bf16.mxu0 %v4249_v54  ;;  %4652 = vmatprep.subr.bf16.mxu1 %v4251_v3  ;;  %v4287_v54 = vunpack.c.h.s8.bf16 %v4123_v61  ;;  %v4125_v3 = vld [vmem:[#allocation3 + $0x128] sm:$0xff] }
 0x784   :  { %4489 = vmatpush1.bf16.msra.mxu0 %v4248_v7  ;;  %4653 = vmatpush1.bf16.msra.mxu1 %v4250_v22  ;;  %v4127_v7 = vld [vmem:[#allocation3 + $0x138] sm:$0xff]  ;;  %v4284_v22 = vunpack.c.h.s8.bf16 %v4120_v49 }
 0x785   :  { %4490 = vmatprep.subr.bf16.mxu0 %v4253_v4  ;;  %4654 = vmatprep.subr.bf16.mxu1 %v4255_v35  ;;  %v4286_v4 = vunpack.c.h.s8.bf16 %v4122_v53  ;;  %v4289_v35 = vunpack.c.l.s8.bf16 %v4125_v3  ;;  %v4291_v8 = vunpack.c.l.s8.bf16 %v4127_v7  ;;  %v4143_v49 = vld [vmem:[#allocation3 + $0x1b8] sm:$0xff] }
 0x788   :  { %4491 = vmatpush1.bf16.msra.mxu0 %v4252_v5  ;;  %4655 = vmatpush1.bf16.msra.mxu1 %v4254_v44  ;;  %v4290_v5 = vunpack.c.l.s8.bf16 %v4126_v9  ;;  %v4295_v44 = vunpack.c.h.s8.bf16 %v4127_v7 }
 0x789   :  { %4492 = vmatprep.subr.bf16.mxu0 %v4257_v10  ;;  %4656 = vmatprep.subr.bf16.mxu1 %v4259_v11  ;;  %v4129_v10 = vld [vmem:[#allocation3 + $0x148] sm:$0xff]  ;;  %v4131_v11 = vld [vmem:[#allocation3 + $0x158] sm:$0xff] }
 0x78a   :  { %v4301_v28 = vunpack.c.h.s8.bf16 %v4129_v10 }
 0x78c   :  { %4493 = vmatpush1.bf16.msra.mxu0 %v4256_v12  ;;  %4657 = vmatpush1.bf16.msra.mxu1 %v4258_v32  ;;  %v4292_v12 = vunpack.c.h.s8.bf16 %v4124_v45  ;;  %v4294_v32 = vunpack.c.h.s8.bf16 %v4126_v9  ;;  %v4147_v45 = vld [vmem:[#allocation3 + $0x1d8] sm:$0xff] }
 0x78d   :  { %4494 = vmatprep.subr.bf16.mxu0 %v4261_v15  ;;  %4658 = vmatprep.subr.bf16.mxu1 %v4263_v25  ;;  %v4297_v15 = vunpack.c.l.s8.bf16 %v4129_v10  ;;  %v4299_v25 = vunpack.c.l.s8.bf16 %v4131_v11  ;;  %v4146_v10 = vld [vmem:[#allocation3 + $0x1d0] sm:$0xff] }
 0x790   :  { %4495 = vmatpush1.bf16.msra.mxu0 %v4260_v29  ;;  %4659 = vmatpush1.bf16.msra.mxu1 %v4262_v30  ;;  %v4303_v29 = vunpack.c.h.s8.bf16 %v4131_v11  ;;  %v4133_v30 = vld [vmem:[#allocation3 + $0x168] sm:$0xff] }
 0x791   :  { %4496 = vmatprep.subr.bf16.mxu0 %v4265_v31  ;;  %4660 = vmatprep.subr.bf16.mxu1 %v4267_v33  ;;  %v4135_v31 = vld [vmem:[#allocation3 + $0x178] sm:$0xff]  ;;  %v4300_v33 = vunpack.c.h.s8.bf16 %v4128_v19 }
 0x792   :  { %v4151_v19 = vld [vmem:[#allocation3 + $0x1f8] sm:$0xff] }
 0x794   :  { %4497 = vmatpush1.bf16.msra.mxu0 %v4264_v34  ;;  %4661 = vmatpush1.bf16.msra.mxu1 %v4266_v36  ;;  %v4305_v36 = vunpack.c.l.s8.bf16 %v4133_v30 }
 0x795   :  { %4498 = vmatprep.subr.bf16.mxu0 %v4269_v37  ;;  %4662 = vmatprep.subr.bf16.mxu1 %v4271_v38  ;;  %v4307_v37 = vunpack.c.l.s8.bf16 %v4135_v31  ;;  %v4132_v38 = vld [vmem:[#allocation3 + $0x160] sm:$0xff] }
 0x796   :  { %v4304_v39 = vunpack.c.l.s8.bf16 %v4132_v38  ;;  %v4308_v47 = vunpack.c.h.s8.bf16 %v4132_v38  ;;  %v4155_v38 = vld [vmem:[#allocation3 + $0x218] sm:$0xff] }
 0x798   :  { %4499 = vmatpush1.bf16.msra.mxu0 %v4268_v40  ;;  %4663 = vmatpush1.bf16.msra.mxu1 %v4270_v41  ;;  %v4306_v40 = vunpack.c.l.s8.bf16 %v4134_v50  ;;  %v4309_v41 = vunpack.c.h.s8.bf16 %v4133_v30  ;;  %v4150_v30 = vld [vmem:[#allocation3 + $0x1f0] sm:$0xff] }
 0x799   :  { %4500 = vmatprep.subr.bf16.mxu0 %v4273_v46  ;;  %4664 = vmatprep.subr.bf16.mxu1 %v4275_v27  ;;  %v4311_v46 = vunpack.c.h.s8.bf16 %v4135_v31  ;;  %v4137_v27 = vld [vmem:[#allocation3 + $0x188] sm:$0xff] }
 0x79c   :  { %4501 = vmatpush1.bf16.msra.mxu0 %v4272_v56  ;;  %4665 = vmatpush1.bf16.msra.mxu1 %v4274_v57  ;;  %v4310_v56 = vunpack.c.h.s8.bf16 %v4134_v50  ;;  %v4313_v57 = vunpack.c.l.s8.bf16 %v4137_v27 }
 0x79d   :  { %4502 = vmatprep.subr.bf16.mxu0 %v4277_v58  ;;  %4666 = vmatprep.subr.bf16.mxu1 %v4279_v59  ;;  %v4315_v58 = vunpack.c.l.s8.bf16 %v4139_v48  ;;  %v4136_v59 = vld [vmem:[#allocation3 + $0x180] sm:$0xff] }
 0x79e   :  { %v4312_v61 = vunpack.c.l.s8.bf16 %v4136_v59  ;;  %v4316_v53 = vunpack.c.h.s8.bf16 %v4136_v59  ;;  %v4159_v59 = vld [vmem:[#allocation3 + $0x238] sm:$0xff] }
 0x7a0   :  { %4503 = vmatpush1.bf16.msra.mxu0 %v4276_v62  ;;  %4667 = vmatpush1.bf16.msra.mxu1 %v4278_v23  ;;  %v4314_v62 = vunpack.c.l.s8.bf16 %v4138_v60  ;;  %v4317_v23 = vunpack.c.h.s8.bf16 %v4137_v27  ;;  %v4154_v27 = vld [vmem:[#allocation3 + $0x210] sm:$0xff] }
 0x7a1   :  { %4513 = vmatprep.subr.bf16.mxu0 %v4281_v51  ;;  %4677 = vmatprep.subr.bf16.mxu1 %v4283_v52  ;;  %v4319_v51 = vunpack.c.h.s8.bf16 %v4139_v48  ;;  %v4141_v52 = vld [vmem:[#allocation3 + $0x1a8] sm:$0xff] }
 0x7a3   :  { %4505 = vmatmul.mubr.bf16.vlgmr.msra.gmra.mrb[24].mxu0 %v6145_v42  ;;  %4669 = vmatmul.mubr.bf16.vlgmr.msra.gmra.mrb[24].mxu1 %v6145_v42  ;;  %v4293_v42 = vunpack.c.h.s8.bf16 %v4125_v3  ;;  %v4142_v3 = vld [vmem:[#allocation3 + $0x1b0] sm:$0xff] }
 0x7a4   :  { %4514 = vmatpush1.bf16.msra.mxu0 %v4280_v63  ;;  %4678 = vmatpush1.bf16.msra.mxu1 %v4282_v0  ;;  %v4318_v63 = vunpack.c.h.s8.bf16 %v4138_v60  ;;  %v4321_v0 = vunpack.c.l.s8.bf16 %v4141_v52 }
 0x7a5   :  { %4515 = vmatprep.subr.bf16.mxu0 %v4285_v1  ;;  %4679 = vmatprep.subr.bf16.mxu1 %v4287_v54  ;;  %v4323_v1 = vunpack.c.l.s8.bf16 %v4143_v49  ;;  %v4140_v54 = vld [vmem:[#allocation3 + $0x1a0] sm:$0xff] }
 0x7a6   :  { %4545 = vmatprep.mubr.bf16.mxu0 %v6151_v26  ;;  %4709 = vmatprep.mubr.bf16.mxu1 %v6151_v26  ;;  %v4130_v26 = vld [vmem:[#allocation3 + $0x150] sm:$0xff]  ;;  %v4320_v7 = vunpack.c.l.s8.bf16 %v4140_v54  ;;  %v4324_v9 = vunpack.c.h.s8.bf16 %v4140_v54 }
 0x7a7   :  { %v4298_v21 = vunpack.c.l.s8.bf16 %v4130_v26  ;;  %v4302_v34 = vunpack.c.h.s8.bf16 %v4130_v26 }
 0x7a8   :  { %4516 = vmatpush1.bf16.msra.mxu0 %v4284_v22  ;;  %4680 = vmatpush1.bf16.msra.mxu1 %v4286_v4  ;;  %v4322_v22 = vunpack.c.l.s8.bf16 %v4142_v3  ;;  %v4325_v4 = vunpack.c.h.s8.bf16 %v4141_v52  ;;  %v4158_v52 = vld [vmem:[#allocation3 + $0x230] sm:$0xff] }
 0x7a9   :  { %4517 = vmatprep.subr.bf16.mxu0 %v4289_v35  ;;  %4681 = vmatprep.subr.bf16.mxu1 %v4291_v8  ;;  %v4327_v35 = vunpack.c.h.s8.bf16 %v4143_v49  ;;  %v4145_v8 = vld [vmem:[#allocation3 + $0x1c8] sm:$0xff] }
 0x7ac   :  { %4518 = vmatpush1.bf16.msra.mxu0 %v4288_v24  ;;  %4682 = vmatpush1.bf16.msra.mxu1 %v4290_v5  ;;  %v4326_v24 = vunpack.c.h.s8.bf16 %v4142_v3  ;;  %v4329_v5 = vunpack.c.l.s8.bf16 %v4145_v8  ;;  %v4358_v3 = vunpack.c.h.s8.bf16 %v4158_v52 }
 0x7ad   :  { %4519 = vmatprep.subr.bf16.mxu0 %v4293_v42  ;;  %4683 = vmatprep.subr.bf16.mxu1 %v4295_v44  ;;  %v4331_v42 = vunpack.c.l.s8.bf16 %v4147_v45  ;;  %v4144_v44 = vld [vmem:[#allocation3 + $0x1c0] sm:$0xff] }
 0x7ae   :  { %v4328_v11 = vunpack.c.l.s8.bf16 %v4144_v44  ;;  %v4332_v26 = vunpack.c.h.s8.bf16 %v4144_v44 }
 0x7b0   :  { %4520 = vmatpush1.bf16.msra.mxu0 %v4292_v12  ;;  %4684 = vmatpush1.bf16.msra.mxu1 %v4294_v32  ;;  %v4330_v12 = vunpack.c.l.s8.bf16 %v4146_v10  ;;  %v4333_v32 = vunpack.c.h.s8.bf16 %v4145_v8 }
 0x7b1   :  { %4521 = vmatprep.subr.bf16.mxu0 %v4297_v15  ;;  %4685 = vmatprep.subr.bf16.mxu1 %v4299_v25  ;;  %v4335_v15 = vunpack.c.h.s8.bf16 %v4147_v45  ;;  %v4149_v25 = vld [vmem:[#allocation3 + $0x1e8] sm:$0xff] }
 0x7b4   :  { %4522 = vmatpush1.bf16.msra.mxu0 %v4296_v20  ;;  %4686 = vmatpush1.bf16.msra.mxu1 %v4298_v21  ;;  %v4334_v20 = vunpack.c.h.s8.bf16 %v4146_v10  ;;  %v4337_v21 = vunpack.c.l.s8.bf16 %v4149_v25 }
 0x7b5   :  { %4523 = vmatprep.subr.bf16.mxu0 %v4301_v28  ;;  %4687 = vmatprep.subr.bf16.mxu1 %v4303_v29  ;;  %v4339_v28 = vunpack.c.l.s8.bf16 %v4151_v19  ;;  %v4148_v29 = vld [vmem:[#allocation3 + $0x1e0] sm:$0xff] }
 0x7b6   :  { %v4336_v31 = vunpack.c.l.s8.bf16 %v4148_v29  ;;  %v4340_v50 = vunpack.c.h.s8.bf16 %v4148_v29 }
 0x7b8   :  { %4524 = vmatpush1.bf16.msra.mxu0 %v4300_v33  ;;  %4688 = vmatpush1.bf16.msra.mxu1 %v4302_v34  ;;  %v4338_v33 = vunpack.c.l.s8.bf16 %v4150_v30  ;;  %v4341_v34 = vunpack.c.h.s8.bf16 %v4149_v25 }
 0x7b9   :  { %4525 = vmatprep.subr.bf16.mxu0 %v4305_v36  ;;  %4689 = vmatprep.subr.bf16.mxu1 %v4307_v37  ;;  %v4343_v36 = vunpack.c.h.s8.bf16 %v4151_v19  ;;  %v4153_v37 = vld [vmem:[#allocation3 + $0x208] sm:$0xff] }
 0x7bc   :  { %4526 = vmatpush1.bf16.msra.mxu0 %v4304_v39  ;;  %4690 = vmatpush1.bf16.msra.mxu1 %v4306_v40  ;;  %v4342_v39 = vunpack.c.h.s8.bf16 %v4150_v30  ;;  %v4345_v40 = vunpack.c.l.s8.bf16 %v4153_v37 }
 0x7bd   :  { %4527 = vmatprep.subr.bf16.mxu0 %v4309_v41  ;;  %4691 = vmatprep.subr.bf16.mxu1 %v4311_v46  ;;  %v4347_v41 = vunpack.c.l.s8.bf16 %v4155_v38  ;;  %v4152_v46 = vld [vmem:[#allocation3 + $0x200] sm:$0xff] }
 0x7be   :  { %v4344_v48 = vunpack.c.l.s8.bf16 %v4152_v46  ;;  %v4348_v60 = vunpack.c.h.s8.bf16 %v4152_v46 }
 0x7c0   :  { %4528 = vmatpush1.bf16.msra.mxu0 %v4308_v47  ;;  %4692 = vmatpush1.bf16.msra.mxu1 %v4310_v56  ;;  %v4346_v47 = vunpack.c.l.s8.bf16 %v4154_v27  ;;  %v4349_v56 = vunpack.c.h.s8.bf16 %v4153_v37 }
 0x7c1   :  { %4529 = vmatprep.subr.bf16.mxu0 %v4313_v57  ;;  %4693 = vmatprep.subr.bf16.mxu1 %v4315_v58  ;;  %v4351_v57 = vunpack.c.h.s8.bf16 %v4155_v38  ;;  %v4157_v58 = vld [vmem:[#allocation3 + $0x228] sm:$0xff] }
 0x7c4   :  { %4530 = vmatpush1.bf16.msra.mxu0 %v4312_v61  ;;  %4694 = vmatpush1.bf16.msra.mxu1 %v4314_v62  ;;  %v4350_v61 = vunpack.c.h.s8.bf16 %v4154_v27  ;;  %v4353_v62 = vunpack.c.l.s8.bf16 %v4157_v58 }
 0x7c5   :  { %4531 = vmatprep.subr.bf16.mxu0 %v4317_v23  ;;  %4695 = vmatprep.subr.bf16.mxu1 %v4319_v51  ;;  %v4355_v23 = vunpack.c.l.s8.bf16 %v4159_v59  ;;  %v4156_v51 = vld [vmem:[#allocation3 + $0x220] sm:$0xff] }
 0x7c6   :  { %v4352_v49 = vunpack.c.l.s8.bf16 %v4156_v51  ;;  %v4356_v54 = vunpack.c.h.s8.bf16 %v4156_v51 }
 0x7c8   :  { %4532 = vmatpush1.bf16.msra.mxu0 %v4316_v53  ;;  %4696 = vmatpush1.bf16.msra.mxu1 %v4318_v63  ;;  %v4354_v53 = vunpack.c.l.s8.bf16 %v4158_v52  ;;  %v4359_v63 = vunpack.c.h.s8.bf16 %v4159_v59 }
 0x7c9   :  { %4533 = vmatprep.subr.bf16.mxu0 %v4321_v0  ;;  %4697 = vmatprep.subr.bf16.mxu1 %v4323_v1  ;;  %v4161_v0 = vld [vmem:[#allocation3 + $0x248] sm:$0xff]  ;;  %v4163_v1 = vld [vmem:[#allocation3 + $0x258] sm:$0xff] }
 0x7ca   :  { %v4365_v45 = vunpack.c.h.s8.bf16 %v4161_v0 }
 0x7cc   :  { %4534 = vmatpush1.bf16.msra.mxu0 %v4320_v7  ;;  %4698 = vmatpush1.bf16.msra.mxu1 %v4322_v22  ;;  %v4361_v7 = vunpack.c.l.s8.bf16 %v4161_v0  ;;  %v4363_v22 = vunpack.c.l.s8.bf16 %v4163_v1 }
 0x7cd   :  { %4535 = vmatprep.subr.bf16.mxu0 %v4325_v4  ;;  %4699 = vmatprep.subr.bf16.mxu1 %v4327_v35  ;;  %v4160_v4 = vld [vmem:[#allocation3 + $0x240] sm:$0xff] }
 0x7ce   :  { %v4360_v35 = vunpack.c.l.s8.bf16 %v4160_v4 }
 0x7d0   :  { %4536 = vmatpush1.bf16.msra.mxu0 %v4324_v9  ;;  %4700 = vmatpush1.bf16.msra.mxu1 %v4326_v24  ;;  %v4367_v9 = vunpack.c.h.s8.bf16 %v4163_v1  ;;  %v4165_v24 = vld [vmem:[#allocation3 + $0x268] sm:$0xff] }
 0x7d1   :  { %4537 = vmatprep.subr.bf16.mxu0 %v4329_v5  ;;  %4701 = vmatprep.subr.bf16.mxu1 %v4331_v42  ;;  %v4167_v5 = vld [vmem:[#allocation3 + $0x278] sm:$0xff]  ;;  %v4364_v42 = vunpack.c.h.s8.bf16 %v4160_v4  ;;  %v4369_v10 = vunpack.c.l.s8.bf16 %v4165_v24  ;;  %v4373_v19 = vunpack.c.h.s8.bf16 %v4165_v24 }
 0x7d4   :  { %4538 = vmatpush1.bf16.msra.mxu0 %v4328_v11  ;;  %4702 = vmatpush1.bf16.msra.mxu1 %v4330_v12  ;;  %v4371_v11 = vunpack.c.l.s8.bf16 %v4167_v5  ;;  %v4164_v12 = vld [vmem:[#allocation3 + $0x260] sm:$0xff] }
 0x7d5   :  { %4539 = vmatprep.subr.bf16.mxu0 %v4333_v32  ;;  %4703 = vmatprep.subr.bf16.mxu1 %v4335_v15  ;;  %v4166_v32 = vld [vmem:[#allocation3 + $0x270] sm:$0xff]  ;;  %v4368_v15 = vunpack.c.l.s8.bf16 %v4164_v12 }
 0x7d6   :  { %v4370_v25 = vunpack.c.l.s8.bf16 %v4166_v32  ;;  %v4374_v29 = vunpack.c.h.s8.bf16 %v4166_v32 }
 0x7d8   :  { %4540 = vmatpush1.bf16.msra.mxu0 %v4332_v26  ;;  %4704 = vmatpush1.bf16.msra.mxu1 %v4334_v20  ;;  %v4375_v26 = vunpack.c.h.s8.bf16 %v4167_v5  ;;  %v4169_v20 = vld [vmem:[#allocation3 + $0x288] sm:$0xff] }
 0x7d9   :  { %4541 = vmatprep.subr.bf16.mxu0 %v4337_v21  ;;  %4705 = vmatprep.subr.bf16.mxu1 %v4339_v28  ;;  %v4171_v21 = vld [vmem:[#allocation3 + $0x298] sm:$0xff]  ;;  %v4372_v28 = vunpack.c.h.s8.bf16 %v4164_v12  ;;  %v4377_v30 = vunpack.c.l.s8.bf16 %v4169_v20  ;;  %v4381_v38 = vunpack.c.h.s8.bf16 %v4169_v20 }
 0x7dc   :  { %4542 = vmatpush1.bf16.msra.mxu0 %v4336_v31  ;;  %4706 = vmatpush1.bf16.msra.mxu1 %v4338_v33  ;;  %v4379_v31 = vunpack.c.l.s8.bf16 %v4171_v21  ;;  %v4168_v33 = vld [vmem:[#allocation3 + $0x280] sm:$0xff] }
 0x7dd   :  { %4543 = vmatprep.subr.bf16.mxu0 %v4341_v34  ;;  %4707 = vmatprep.subr.bf16.mxu1 %v4343_v36  ;;  %v4170_v34 = vld [vmem:[#allocation3 + $0x290] sm:$0xff]  ;;  %v4376_v36 = vunpack.c.l.s8.bf16 %v4168_v33 }
 0x7de   :  { %v4378_v37 = vunpack.c.l.s8.bf16 %v4170_v34  ;;  %v4382_v46 = vunpack.c.h.s8.bf16 %v4170_v34 }
 0x7e0   :  { %4544 = vmatpush1.bf16.msra.mxu0 %v4340_v50  ;;  %4708 = vmatpush1.bf16.msra.mxu1 %v4342_v39  ;;  %v4383_v50 = vunpack.c.h.s8.bf16 %v4171_v21  ;;  %v4173_v39 = vld [vmem:[#allocation3 + $0x2a8] sm:$0xff] }
 0x7e1   :  { %4554 = vmatprep.subr.bf16.mxu0 %v4345_v40  ;;  %4718 = vmatprep.subr.bf16.mxu1 %v4347_v41  ;;  %v4175_v40 = vld [vmem:[#allocation3 + $0x2b8] sm:$0xff]  ;;  %v4380_v41 = vunpack.c.h.s8.bf16 %v4168_v33  ;;  %v4385_v27 = vunpack.c.l.s8.bf16 %v4173_v39  ;;  %v4389_v59 = vunpack.c.h.s8.bf16 %v4173_v39 }
 0x7e3   :  { %4546 = vmatmul.mubr.bf16.vlgmr.msra.gmra.mrb[24].mxu0 %v6147_v18  ;;  %4710 = vmatmul.mubr.bf16.vlgmr.msra.gmra.mrb[24].mxu1 %v6147_v18  ;;  %v4357_v18 = vunpack.c.h.s8.bf16 %v4157_v58 }
 0x7e4   :  { %4555 = vmatpush1.bf16.msra.mxu0 %v4344_v48  ;;  %4719 = vmatpush1.bf16.msra.mxu1 %v4346_v47  ;;  %v4387_v48 = vunpack.c.l.s8.bf16 %v4175_v40  ;;  %v4172_v47 = vld [vmem:[#allocation3 + $0x2a0] sm:$0xff] }
 0x7e5   :  { %4556 = vmatprep.subr.bf16.mxu0 %v4349_v56  ;;  %4720 = vmatprep.subr.bf16.mxu1 %v4351_v57  ;;  %v4174_v56 = vld [vmem:[#allocation3 + $0x2b0] sm:$0xff]  ;;  %v4384_v57 = vunpack.c.l.s8.bf16 %v4172_v47 }
 0x7e6   :  { %4586 = vmatprep.mubr.bf16.mxu0 %v6183_v2  ;;  %4750 = vmatprep.mubr.bf16.mxu1 %v6183_v2  ;;  %v4162_v2 = vld [vmem:[#allocation3 + $0x250] sm:$0xff]  ;;  %v4386_v58 = vunpack.c.l.s8.bf16 %v4174_v56  ;;  %v4390_v51 = vunpack.c.h.s8.bf16 %v4174_v56 }
 0x7e7   :  { %v4362_v8 = vunpack.c.l.s8.bf16 %v4162_v2  ;;  %v4366_v44 = vunpack.c.h.s8.bf16 %v4162_v2 }
 0x7e8   :  { %4557 = vmatpush1.bf16.msra.mxu0 %v4348_v60  ;;  %4721 = vmatpush1.bf16.msra.mxu1 %v4350_v61  ;;  %v4391_v60 = vunpack.c.h.s8.bf16 %v4175_v40  ;;  %v4177_v61 = vld [vmem:[#allocation3 + $0x2c8] sm:$0xff] }
 0x7e9   :  { %4558 = vmatprep.subr.bf16.mxu0 %v4353_v62  ;;  %4722 = vmatprep.subr.bf16.mxu1 %v4355_v23  ;;  %v4179_v62 = vld [vmem:[#allocation3 + $0x2d8] sm:$0xff]  ;;  %v4388_v23 = vunpack.c.h.s8.bf16 %v4172_v47  ;;  %v4393_v52 = vunpack.c.l.s8.bf16 %v4177_v61  ;;  %v4397_v1 = vunpack.c.h.s8.bf16 %v4177_v61 }
 0x7ec   :  { %4559 = vmatpush1.bf16.msra.mxu0 %v4352_v49  ;;  %4723 = vmatpush1.bf16.msra.mxu1 %v4354_v53  ;;  %v4395_v49 = vunpack.c.l.s8.bf16 %v4179_v62  ;;  %v4176_v53 = vld [vmem:[#allocation3 + $0x2c0] sm:$0xff] }
 0x7ed   :  { %4560 = vmatprep.subr.bf16.mxu0 %v4357_v18  ;;  %4724 = vmatprep.subr.bf16.mxu1 %v4359_v63  ;;  %v4178_v18 = vld [vmem:[#allocation3 + $0x2d0] sm:$0xff]  ;;  %v4392_v63 = vunpack.c.l.s8.bf16 %v4176_v53 }
 0x7ee   :  { %v4394_v0 = vunpack.c.l.s8.bf16 %v4178_v18  ;;  %v4398_v4 = vunpack.c.h.s8.bf16 %v4178_v18  ;;  %v4196_v18 = vld [vmem:[#allocation3 + $0x360] sm:$0xff] }
 0x7f0   :  { %4561 = vmatpush1.bf16.msra.mxu0 %v4356_v54  ;;  %4725 = vmatpush1.bf16.msra.mxu1 %v4358_v3  ;;  %v4399_v54 = vunpack.c.h.s8.bf16 %v4179_v62  ;;  %v4181_v3 = vld [vmem:[#allocation3 + $0x2e8] sm:$0xff] }
 0x7f1   :  { %4562 = vmatprep.subr.bf16.mxu0 %v4361_v7  ;;  %4726 = vmatprep.subr.bf16.mxu1 %v4363_v22  ;;  %v4183_v7 = vld [vmem:[#allocation3 + $0x2f8] sm:$0xff]  ;;  %v4396_v22 = vunpack.c.h.s8.bf16 %v4176_v53  ;;  %v4401_v2 = vunpack.c.l.s8.bf16 %v4181_v3  ;;  %v4405_v5 = vunpack.c.h.s8.bf16 %v4181_v3  ;;  %v4197_v62 = vld [vmem:[#allocation3 + $0x368] sm:$0xff] }
 0x7f4   :  { %4563 = vmatpush1.bf16.msra.mxu0 %v4360_v35  ;;  %4727 = vmatpush1.bf16.msra.mxu1 %v4362_v8  ;;  %v4403_v35 = vunpack.c.l.s8.bf16 %v4183_v7  ;;  %v4180_v8 = vld [vmem:[#allocation3 + $0x2e0] sm:$0xff] }
 0x7f5   :  { %4564 = vmatprep.subr.bf16.mxu0 %v4365_v45  ;;  %4728 = vmatprep.subr.bf16.mxu1 %v4367_v9  ;;  %v4182_v45 = vld [vmem:[#allocation3 + $0x2f0] sm:$0xff]  ;;  %v4400_v9 = vunpack.c.l.s8.bf16 %v4180_v8 }
 0x7f6   :  { %v4402_v24 = vunpack.c.l.s8.bf16 %v4182_v45  ;;  %v4406_v12 = vunpack.c.h.s8.bf16 %v4182_v45  ;;  %v4200_v45 = vld [vmem:[#allocation3 + $0x380] sm:$0xff] }
 0x7f8   :  { %4565 = vmatpush1.bf16.msra.mxu0 %v4364_v42  ;;  %4729 = vmatpush1.bf16.msra.mxu1 %v4366_v44  ;;  %v4407_v42 = vunpack.c.h.s8.bf16 %v4183_v7  ;;  %v4185_v44 = vld [vmem:[#allocation3 + $0x308] sm:$0xff] }
 0x7f9   :  { %4566 = vmatprep.subr.bf16.mxu0 %v4369_v10  ;;  %4730 = vmatprep.subr.bf16.mxu1 %v4371_v11  ;;  %v4187_v10 = vld [vmem:[#allocation3 + $0x318] sm:$0xff]  ;;  %v4404_v11 = vunpack.c.h.s8.bf16 %v4180_v8  ;;  %v4409_v32 = vunpack.c.l.s8.bf16 %v4185_v44  ;;  %v4413_v21 = vunpack.c.h.s8.bf16 %v4185_v44  ;;  %v4201_v7 = vld [vmem:[#allocation3 + $0x388] sm:$0xff] }
 0x7fc   :  { %4567 = vmatpush1.bf16.msra.mxu0 %v4368_v15  ;;  %4731 = vmatpush1.bf16.msra.mxu1 %v4370_v25  ;;  %v4411_v15 = vunpack.c.l.s8.bf16 %v4187_v10  ;;  %v4184_v25 = vld [vmem:[#allocation3 + $0x300] sm:$0xff] }
 0x7fd   :  { %4568 = vmatprep.subr.bf16.mxu0 %v4373_v19  ;;  %4732 = vmatprep.subr.bf16.mxu1 %v4375_v26  ;;  %v4186_v19 = vld [vmem:[#allocation3 + $0x310] sm:$0xff]  ;;  %v4408_v26 = vunpack.c.l.s8.bf16 %v4184_v25 }
 0x7fe   :  { %v4410_v20 = vunpack.c.l.s8.bf16 %v4186_v19  ;;  %v4414_v33 = vunpack.c.h.s8.bf16 %v4186_v19  ;;  %v4204_v19 = vld [vmem:[#allocation3 + $0x3a0] sm:$0xff] }
 0x800   :  { %4569 = vmatpush1.bf16.msra.mxu0 %v4372_v28  ;;  %4733 = vmatpush1.bf16.msra.mxu1 %v4374_v29  ;;  %v4415_v28 = vunpack.c.h.s8.bf16 %v4187_v10  ;;  %v4189_v29 = vld [vmem:[#allocation3 + $0x328] sm:$0xff] }
 0x801   :  { %4570 = vmatprep.subr.bf16.mxu0 %v4377_v30  ;;  %4734 = vmatprep.subr.bf16.mxu1 %v4379_v31  ;;  %v4191_v30 = vld [vmem:[#allocation3 + $0x338] sm:$0xff]  ;;  %v4412_v31 = vunpack.c.h.s8.bf16 %v4184_v25  ;;  %v4417_v34 = vunpack.c.l.s8.bf16 %v4189_v29  ;;  %v4205_v10 = vld [vmem:[#allocation3 + $0x3a8] sm:$0xff] }
 0x802   :  { %v4423_v40 = vunpack.c.h.s8.bf16 %v4191_v30 }
 0x804   :  { %4571 = vmatpush1.bf16.msra.mxu0 %v4376_v36  ;;  %4735 = vmatpush1.bf16.msra.mxu1 %v4378_v37  ;;  %v4419_v36 = vunpack.c.l.s8.bf16 %v4191_v30  ;;  %v4188_v37 = vld [vmem:[#allocation3 + $0x320] sm:$0xff]  ;;  %v4209_v30 = vld [vmem:[#allocation3 + $0x3c8] sm:$0xff] }
 0x805   :  { %4572 = vmatprep.subr.bf16.mxu0 %v4381_v38  ;;  %4736 = vmatprep.subr.bf16.mxu1 %v4383_v50  ;;  %v4190_v38 = vld [vmem:[#allocation3 + $0x330] sm:$0xff]  ;;  %v4416_v50 = vunpack.c.l.s8.bf16 %v4188_v37 }
 0x806   :  { %v4418_v39 = vunpack.c.l.s8.bf16 %v4190_v38 }
 0x808   :  { %4573 = vmatpush1.bf16.msra.mxu0 %v4380_v41  ;;  %4737 = vmatpush1.bf16.msra.mxu1 %v4382_v46  ;;  %v4193_v41 = vld [vmem:[#allocation3 + $0x348] sm:$0xff]  ;;  %v4195_v46 = vld [vmem:[#allocation3 + $0x358] sm:$0xff] }
 0x809   :  { %4574 = vmatprep.subr.bf16.mxu0 %v4385_v27  ;;  %4738 = vmatprep.subr.bf16.mxu1 %v4387_v48  ;;  %v4420_v27 = vunpack.c.h.s8.bf16 %v4188_v37  ;;  %v4422_v48 = vunpack.c.h.s8.bf16 %v4190_v38  ;;  %v4425_v47 = vunpack.c.l.s8.bf16 %v4193_v41  ;;  %v4427_v56 = vunpack.c.l.s8.bf16 %v4195_v46  ;;  %v4208_v38 = vld [vmem:[#allocation3 + $0x3c0] sm:$0xff] }
 0x80a   :  { %v4431_v61 = vunpack.c.h.s8.bf16 %v4195_v46  ;;  %v4213_v46 = vld [vmem:[#allocation3 + $0x3e8] sm:$0xff] }
 0x80c   :  { %4575 = vmatpush1.bf16.msra.mxu0 %v4384_v57  ;;  %4739 = vmatpush1.bf16.msra.mxu1 %v4386_v58  ;;  %v4192_v57 = vld [vmem:[#allocation3 + $0x340] sm:$0xff] }
 0x80d   :  { %4576 = vmatprep.subr.bf16.mxu0 %v4389_v59  ;;  %4740 = vmatprep.subr.bf16.mxu1 %v4391_v60  ;;  %v4424_v58 = vunpack.c.l.s8.bf16 %v4192_v57  ;;  %v4429_v60 = vunpack.c.h.s8.bf16 %v4193_v41 }
 0x810   :  { %4577 = vmatpush1.bf16.msra.mxu0 %v4388_v23  ;;  %4741 = vmatpush1.bf16.msra.mxu1 %v4390_v51  ;;  %v4199_v23 = vld [vmem:[#allocation3 + $0x378] sm:$0xff]  ;;  %v4428_v51 = vunpack.c.h.s8.bf16 %v4192_v57 }
 0x811   :  { %4578 = vmatprep.subr.bf16.mxu0 %v4393_v52  ;;  %4742 = vmatprep.subr.bf16.mxu1 %v4395_v49  ;;  %v4433_v49 = vunpack.c.l.s8.bf16 %v4197_v62  ;;  %v4435_v53 = vunpack.c.l.s8.bf16 %v4199_v23  ;;  %v4439_v3 = vunpack.c.h.s8.bf16 %v4199_v23 }
 0x814   :  { %4579 = vmatpush1.bf16.msra.mxu0 %v4392_v63  ;;  %4743 = vmatpush1.bf16.msra.mxu1 %v4394_v0  ;;  %v4198_v63 = vld [vmem:[#allocation3 + $0x370] sm:$0xff]  ;;  %v4432_v0 = vunpack.c.l.s8.bf16 %v4196_v18 }
 0x815   :  { %4580 = vmatprep.subr.bf16.mxu0 %v4397_v1  ;;  %4744 = vmatprep.subr.bf16.mxu1 %v4399_v54  ;;  %v4434_v1 = vunpack.c.l.s8.bf16 %v4198_v63  ;;  %v4437_v54 = vunpack.c.h.s8.bf16 %v4197_v62 }
 0x818   :  { %4581 = vmatpush1.bf16.msra.mxu0 %v4396_v22  ;;  %4745 = vmatpush1.bf16.msra.mxu1 %v4398_v4  ;;  %v4203_v22 = vld [vmem:[#allocation3 + $0x398] sm:$0xff]  ;;  %v4436_v4 = vunpack.c.h.s8.bf16 %v4196_v18  ;;  %v5471_v18 = vld [vmem:[%s6329_s10 + $0x80] sm:$0xff]  }
 0x819   :  { %4582 = vmatprep.subr.bf16.mxu0 %v4401_v2  ;;  %4746 = vmatprep.subr.bf16.mxu1 %v4403_v35  ;;  %v4438_v2 = vunpack.c.h.s8.bf16 %v4198_v63  ;;  %v4441_v35 = vunpack.c.l.s8.bf16 %v4201_v7  ;;  %v4443_v8 = vunpack.c.l.s8.bf16 %v4203_v22  ;;  %v4447_v44 = vunpack.c.h.s8.bf16 %v4203_v22  ;;  %v5472_v63 = vld [vmem:[%s6329_s10 + $0x48] sm:$0xff]   ;;  %v5479_v22 = vld [vmem:[%s6329_s10 + $0x90] sm:$0xff]  }
 0x81c   :  { %4583 = vmatpush1.bf16.msra.mxu0 %v4400_v9  ;;  %4747 = vmatpush1.bf16.msra.mxu1 %v4402_v24  ;;  %v4202_v9 = vld [vmem:[#allocation3 + $0x390] sm:$0xff]  ;;  %v4440_v24 = vunpack.c.l.s8.bf16 %v4200_v45 }
 0x81d   :  { %4584 = vmatprep.subr.bf16.mxu0 %v4405_v5  ;;  %4748 = vmatprep.subr.bf16.mxu1 %v4407_v42  ;;  %v4442_v5 = vunpack.c.l.s8.bf16 %v4202_v9  ;;  %v4445_v42 = vunpack.c.h.s8.bf16 %v4201_v7  ;;  %v5478_v7 = vld [vmem:[%s6329_s10 + $0x10] sm:$0xff]  }
 0x820   :  { %4585 = vmatpush1.bf16.msra.mxu0 %v4404_v11  ;;  %4749 = vmatpush1.bf16.msra.mxu1 %v4406_v12  ;;  %v4207_v11 = vld [vmem:[#allocation3 + $0x3b8] sm:$0xff]  ;;  %v4444_v12 = vunpack.c.h.s8.bf16 %v4200_v45  ;;  %v5484_v45 = vld [vmem:[%s6329_s10 + $0x60] sm:$0xff]  }
 0x821   :  { %4595 = vmatprep.subr.bf16.mxu0 %v4409_v32  ;;  %4759 = vmatprep.subr.bf16.mxu1 %v4411_v15  ;;  %v4446_v32 = vunpack.c.h.s8.bf16 %v4202_v9  ;;  %v4449_v15 = vunpack.c.l.s8.bf16 %v4205_v10  ;;  %v4451_v25 = vunpack.c.l.s8.bf16 %v4207_v11  ;;  %v5485_v9 = vld [vmem:[%s6329_s10 + $0xe0] sm:$0xff]  }
 0x823   :  { %4587 = vmatmul.mubr.bf16.vlgmr.msra.gmra.mrb[24].mxu0 %v6179_v43  ;;  %4751 = vmatmul.mubr.bf16.vlgmr.msra.gmra.mrb[24].mxu1 %v6179_v43  ;;  %v4421_v43 = vunpack.c.h.s8.bf16 %v4189_v29  ;;  %v4455_v29 = vunpack.c.h.s8.bf16 %v4207_v11  ;;  %v5491_v11 = vld [vmem:[%s6329_s10 + $0xa8] sm:$0xff]  }
 0x824   :  { %4596 = vmatpush1.bf16.msra.mxu0 %v4408_v26  ;;  %4760 = vmatpush1.bf16.msra.mxu1 %v4410_v20  ;;  %v4206_v26 = vld [vmem:[#allocation3 + $0x3b0] sm:$0xff]  ;;  %v4448_v20 = vunpack.c.l.s8.bf16 %v4204_v19 }
 0x825   :  { %4597 = vmatprep.subr.bf16.mxu0 %v4413_v21  ;;  %4761 = vmatprep.subr.bf16.mxu1 %v4415_v28  ;;  %v4450_v21 = vunpack.c.l.s8.bf16 %v4206_v26  ;;  %v4453_v28 = vunpack.c.h.s8.bf16 %v4205_v10  ;;  %v5490_v10 = vld [vmem:[%s6329_s10 + $0x28] sm:$0xff]  }
 0x826   :  { %4627 = vmatprep.mubr.bf16.mxu0 %v6185_v6  ;;  %4791 = vmatprep.mubr.bf16.mxu1 %v6185_v6  ;;  %v4194_v6 = vld [vmem:[#allocation3 + $0x350] sm:$0xff] }
 0x827   :  { %v4426_v59 = vunpack.c.l.s8.bf16 %v4194_v6  ;;  %v4430_v52 = vunpack.c.h.s8.bf16 %v4194_v6  ;;  %v4212_v6 = vld [vmem:[#allocation3 + $0x3e0] sm:$0xff] }
 0x828   :  { %4598 = vmatpush1.bf16.msra.mxu0 %v4412_v31  ;;  %4762 = vmatpush1.bf16.msra.mxu1 %v4414_v33  ;;  %v4211_v31 = vld [vmem:[#allocation3 + $0x3d8] sm:$0xff]  ;;  %v4452_v33 = vunpack.c.h.s8.bf16 %v4204_v19  ;;  %v4468_v23 = vunpack.c.h.s8.bf16 %v4212_v6 }
 0x829   :  { %4599 = vmatprep.subr.bf16.mxu0 %v4417_v34  ;;  %4763 = vmatprep.subr.bf16.mxu1 %v4419_v36  ;;  %v4454_v34 = vunpack.c.h.s8.bf16 %v4206_v26  ;;  %v4457_v36 = vunpack.c.l.s8.bf16 %v4209_v30  ;;  %v4459_v37 = vunpack.c.l.s8.bf16 %v4211_v31  ;;  %v4463_v41 = vunpack.c.h.s8.bf16 %v4211_v31  ;;  %v5496_v19 = vld [vmem:[%s6329_s10 + $0x78] sm:$0xff]  }
 0x82a   :  { %v5497_v26 = vld [vmem:[%s6329_s10 + $0xf8] sm:$0xff]  }
 0x82c   :  { %4600 = vmatpush1.bf16.msra.mxu0 %v4416_v50  ;;  %4764 = vmatpush1.bf16.msra.mxu1 %v4418_v39  ;;  %v4210_v50 = vld [vmem:[#allocation3 + $0x3d0] sm:$0xff]  ;;  %v4456_v39 = vunpack.c.l.s8.bf16 %v4208_v38 }
 0x82d   :  { %4601 = vmatprep.subr.bf16.mxu0 %v4421_v43  ;;  %4765 = vmatprep.subr.bf16.mxu1 %v4423_v40  ;;  %v4458_v43 = vunpack.c.l.s8.bf16 %v4210_v50  ;;  %v4461_v40 = vunpack.c.h.s8.bf16 %v4209_v30 }
 0x830   :  { %4602 = vmatpush1.bf16.msra.mxu0 %v4420_v27  ;;  %4766 = vmatpush1.bf16.msra.mxu1 %v4422_v48  ;;  %v4215_v27 = vld [vmem:[#allocation3 + $0x3f8] sm:$0xff]  ;;  %v4460_v48 = vunpack.c.h.s8.bf16 %v4208_v38 }
 0x831   :  { %4603 = vmatprep.subr.bf16.mxu0 %v4425_v47  ;;  %4767 = vmatprep.subr.bf16.mxu1 %v4427_v56  ;;  %v4462_v47 = vunpack.c.h.s8.bf16 %v4210_v50  ;;  %v4465_v56 = vunpack.c.l.s8.bf16 %v4213_v46  ;;  %v4467_v57 = vunpack.c.l.s8.bf16 %v4215_v27  ;;  %v4471_v62 = vunpack.c.h.s8.bf16 %v4215_v27 }
 0x834   :  { %4604 = vmatpush1.bf16.msra.mxu0 %v4424_v58  ;;  %4768 = vmatpush1.bf16.msra.mxu1 %v4426_v59  ;;  %v4214_v58 = vld [vmem:[#allocation3 + $0x3f0] sm:$0xff]  ;;  %v4464_v59 = vunpack.c.l.s8.bf16 %v4212_v6 }
 0x835   :  { %4605 = vmatprep.subr.bf16.mxu0 %v4429_v60  ;;  %4769 = vmatprep.subr.bf16.mxu1 %v4431_v61  ;;  %v4466_v60 = vunpack.c.l.s8.bf16 %v4214_v58  ;;  %v4469_v61 = vunpack.c.h.s8.bf16 %v4213_v46 }
 0x838   :  { %4606 = vmatpush1.bf16.msra.mxu0 %v4428_v51  ;;  %4770 = vmatpush1.bf16.msra.mxu1 %v4430_v52  ;;  %v4470_v51 = vunpack.c.h.s8.bf16 %v4214_v58  ;;  %v5468_v52 = vld [vmem:[%s6329_s10 + $0x40] sm:$0xff]  }
 0x839   :  { %4607 = vmatprep.subr.bf16.mxu0 %v4433_v49  ;;  %4771 = vmatprep.subr.bf16.mxu1 %v4435_v53  ;;  %v5469_v49 = vld [vmem:[%s6329_s10 + $0xc0] sm:$0xff]  }
 0x83a   :  { %v5470_v53 = vld [vmem:[%s6329_s10] sm:$0xff]  }
 0x83c   :  { %4608 = vmatpush1.bf16.msra.mxu0 %v4432_v0  ;;  %4772 = vmatpush1.bf16.msra.mxu1 %v4434_v1  ;;  %v5473_v0 = vld [vmem:[%s6329_s10 + $0xc8] sm:$0xff]  }
 0x83d   :  { %4609 = vmatprep.subr.bf16.mxu0 %v4437_v54  ;;  %4773 = vmatprep.subr.bf16.mxu1 %v4439_v3  ;;  %v5474_v1 = vld [vmem:[%s6329_s10 + $0x8] sm:$0xff]   ;;  %v5476_v3 = vld [vmem:[%s6329_s10 + $0x50] sm:$0xff]  }
 0x83e   :  { %v5475_v54 = vld [vmem:[%s6329_s10 + $0x88] sm:$0xff]  }
 0x840   :  { %4610 = vmatpush1.bf16.msra.mxu0 %v4436_v4  ;;  %4774 = vmatpush1.bf16.msra.mxu1 %v4438_v2  ;;  %v5480_v4 = vld [vmem:[%s6329_s10 + $0x58] sm:$0xff]  }
 0x841   :  { %4611 = vmatprep.subr.bf16.mxu0 %v4441_v35  ;;  %4775 = vmatprep.subr.bf16.mxu1 %v4443_v8  ;;  %v5481_v2 = vld [vmem:[%s6329_s10 + $0xd8] sm:$0xff]  }
 0x842   :  { %v5482_v35 = vld [vmem:[%s6329_s10 + $0x18] sm:$0xff]  }
 0x843   :  { %v5483_v8 = vld [vmem:[%s6329_s10 + $0x98] sm:$0xff]  }
 0x844   :  { %4612 = vmatpush1.bf16.msra.mxu0 %v4440_v24  ;;  %4776 = vmatpush1.bf16.msra.mxu1 %v4442_v5  ;;  %v5486_v24 = vld [vmem:[%s6329_s10 + $0x20] sm:$0xff]  }
 0x845   :  { %4613 = vmatprep.subr.bf16.mxu0 %v4445_v42  ;;  %4777 = vmatprep.subr.bf16.mxu1 %v4447_v44  ;;  %v5487_v5 = vld [vmem:[%s6329_s10 + $0xa0] sm:$0xff]   ;;  %v5488_v42 = vld [vmem:[%s6329_s10 + $0x68] sm:$0xff]  }
 0x846   :  { %v5489_v44 = vld [vmem:[%s6329_s10 + $0xe8] sm:$0xff]  }
 0x848   :  { %4614 = vmatpush1.bf16.msra.mxu0 %v4444_v12  ;;  %4778 = vmatpush1.bf16.msra.mxu1 %v4446_v32  ;;  %v5492_v12 = vld [vmem:[%s6329_s10 + $0x70] sm:$0xff]  }
 0x849   :  { %4615 = vmatprep.subr.bf16.mxu0 %v4449_v15  ;;  %4779 = vmatprep.subr.bf16.mxu1 %v4451_v25  ;;  %v5493_v32 = vld [vmem:[%s6329_s10 + $0xf0] sm:$0xff]  }
 0x84a   :  { %v5494_v15 = vld [vmem:[%s6329_s10 + $0x30] sm:$0xff]  }
 0x84b   :  { %v5495_v25 = vld [vmem:[%s6329_s10 + $0xb0] sm:$0xff]  }
 0x84c   :  { %4616 = vmatpush1.bf16.msra.mxu0 %v4448_v20  ;;  %4780 = vmatpush1.bf16.msra.mxu1 %v4450_v21  ;;  %v5498_v20 = vld [vmem:[%s6329_s10 + $0x38] sm:$0xff]  }
 0x84d   :  { %4617 = vmatprep.subr.bf16.mxu0 %v4453_v28  ;;  %4781 = vmatprep.subr.bf16.mxu1 %v4455_v29  ;;  %v5499_v21 = vld [vmem:[%s6329_s10 + $0xb8] sm:$0xff]   ;;  %v4800_v28 = vld [vmem:[#allocation16] sm:$0xf]  ;;  %v4826_v29 = vld [vmem:[#allocation17] sm:$0xf] }
 0x84e   :  { %v4805_v30 = vrot.slane %v4800_v28, %v5987_v13  ;;  %v4813_v31 = vrot.slane %v4800_v28, %v5989_v14 }
 0x850   :  { %4618 = vmatpush1.bf16.msra.mxu0 %v4452_v33  ;;  %4782 = vmatpush1.bf16.msra.mxu1 %v4454_v34  ;;  %v4809_v33 = vrot.slane %v4800_v28, %v5991_v16  ;;  %v4817_v34 = vrot.slane %v4800_v28, %v5993_v17 }
 0x851   :  { %4619 = vmatprep.subr.bf16.mxu0 %v4457_v36  ;;  %4783 = vmatprep.subr.bf16.mxu1 %v4459_v37  ;;  %v4831_v36 = vrot.slane %v4826_v29, %v5987_v13  ;;  %v4839_v37 = vrot.slane %v4826_v29, %v5989_v14 }
 0x854   :  { %4620 = vmatpush1.bf16.msra.mxu0 %v4456_v39  ;;  %4784 = vmatpush1.bf16.msra.mxu1 %v4458_v43  ;;  %v4835_v39 = vrot.slane %v4826_v29, %v5991_v16  ;;  %v4843_v43 = vrot.slane %v4826_v29, %v5993_v17 }
 0x855   :  { %4621 = vmatprep.subr.bf16.mxu0 %v4461_v40  ;;  %4785 = vmatprep.subr.bf16.mxu1 %v4463_v41 }
 0x858   :  { %4622 = vmatpush1.bf16.msra.mxu0 %v4460_v48  ;;  %4786 = vmatpush1.bf16.msra.mxu1 %v4462_v47 }
 0x859   :  { %4623 = vmatprep.subr.bf16.mxu0 %v4465_v56  ;;  %4787 = vmatprep.subr.bf16.mxu1 %v4467_v57 }
 0x85c   :  { %4624 = vmatpush1.bf16.msra.mxu0 %v4464_v59  ;;  %4788 = vmatpush1.bf16.msra.mxu1 %v4466_v60 }
 0x85d   :  { %4625 = vmatprep.subr.bf16.mxu0 %v4469_v61  ;;  %4789 = vmatprep.subr.bf16.mxu1 %v4471_v62 }
 0x860   :  { %4626 = vmatpush1.bf16.msra.mxu0 %v4468_v23  ;;  %4790 = vmatpush1.bf16.msra.mxu1 %v4470_v51 }
 0x861   :  { %5272 = vmatprep.subr.bf16.mxu0 %v5468_v52  ;;  %5294 = vmatprep.subr.bf16.mxu1 %v5469_v49 }
 0x863   :  { %4628 = vmatmul.mubr.bf16.vlgmr.msra.gmra.mrb[24].mxu0 %v6181_v55  ;;  %4792 = vmatmul.mubr.bf16.vlgmr.msra.gmra.mrb[24].mxu1 %v6181_v55  ;;  %v5477_v55 = vld [vmem:[%s6329_s10 + $0xd0] sm:$0xff]   ;;  %s5793_s10 = smov [#allocation20]  }
 0x864   :  { %5273 = vmatpush3.bf16.msra.mxu0 %v5470_v53  ;;  %5295 = vmatpush3.bf16.msra.mxu1 %v5471_v18  ;;  %s5211_s24 = sshll.u32 %s5793_s10, 4  ;;  %s5212_s24 = int_to_ptr.vmem [resolvable:$true] %s5211_s24 }
 0x865   :  { %5274 = vmatprep.subr.bf16.mxu0 %v5472_v63  ;;  %5296 = vmatprep.subr.bf16.mxu1 %v5473_v0  ;;  %v5237_v63 = vld [vmem:[#allocation19] ss:$0 sm:$0xff]  ;;  %s5742_s25 = scalar_lea.vmem %s5212_s24, 128  ;;  %p5747_p5 = scmp.lt.s32.totalorder %s5212_s24, %s5212_s24 }
 0x866   :  { %p5743_p4 = scmp.ne.s32.totalorder %s5212_s24, %s5742_s25  ;;  %p5748_p6 = scmp.lt.s32.totalorder %s5742_s25, %s5742_s25 }
 0x868   :  { %5275 = vmatpush3.bf16.msra.mxu0 %v5474_v1  ;;  %5297 = vmatpush3.bf16.msra.mxu1 %v5475_v54  ;;  %p5749_p7 = por %p5748_p6, %p5747_p5 }
 0x869   :  { %5276 = vmatprep.subr.bf16.mxu0 %v5476_v3  ;;  %5298 = vmatprep.subr.bf16.mxu1 %v5477_v55 }
 0x86a   :  { %p5750_p8 = pnand %p5749_p7, %p5743_p4 }
 0x86c   :  { %5277 = vmatpush3.bf16.msra.mxu0 %v5478_v7  ;;  %5299 = vmatpush3.bf16.msra.mxu1 %v5479_v22 }
 0x86d   :  { %5278 = vmatprep.subr.bf16.mxu0 %v5480_v4  ;;  %5300 = vmatprep.subr.bf16.mxu1 %v5481_v2 }
 0x870   :  { %5279 = vmatpush3.bf16.msra.mxu0 %v5482_v35  ;;  %5301 = vmatpush3.bf16.msra.mxu1 %v5483_v8 }
 0x871   :  { %5280 = vmatprep.subr.bf16.mxu0 %v5484_v45  ;;  %5302 = vmatprep.subr.bf16.mxu1 %v5485_v9 }
 0x874   :  { %5281 = vmatpush3.bf16.msra.mxu0 %v5486_v24  ;;  %5303 = vmatpush3.bf16.msra.mxu1 %v5487_v5 }
 0x875   :  { %5282 = vmatprep.subr.bf16.mxu0 %v5488_v42  ;;  %5304 = vmatprep.subr.bf16.mxu1 %v5489_v44 }
 0x878   :  { %5283 = vmatpush3.bf16.msra.mxu0 %v5490_v10  ;;  %5305 = vmatpush3.bf16.msra.mxu1 %v5491_v11 }
 0x879   :  { %5284 = vmatprep.subr.bf16.mxu0 %v5492_v12  ;;  %5306 = vmatprep.subr.bf16.mxu1 %v5493_v32 }
 0x87c   :  { %5285 = vmatpush3.bf16.msra.mxu0 %v5494_v15  ;;  %5307 = vmatpush3.bf16.msra.mxu1 %v5495_v25 }
 0x87d   :  { %5286 = vmatprep.subr.bf16.mxu0 %v5496_v19  ;;  %5308 = vmatprep.subr.bf16.mxu1 %v5497_v26 }
 0x880   :  { %5287 = vmatpush3.bf16.msra.mxu0 %v5498_v20  ;;  %5309 = vmatpush3.bf16.msra.mxu1 %v5499_v21 }
 0x936   :  { %v4629_v38 = vpop.f32.mrb[24].mxu0  ;;  %v4793_v50 = vpop.f32.mrb[24].mxu1 }
 0x937   :  { %v4822_v40 = vmul.f32 %v4805_v30, %v4629_v38  ;;  %v4824_v41 = vmul.f32 %v4813_v31, %v4793_v50  ;;  %v4631_v46 = vpop.f32.mrb[25].mxu0  ;;  %v4795_v27 = vpop.f32.mrb[25].mxu1 }
 0x938   :  { %v4823_v48 = vmul.f32 %v4809_v33, %v4631_v46  ;;  %v4825_v47 = vmul.f32 %v4817_v34, %v4795_v27  ;;  %v4633_v56 = vpop.f32.mrb[26].mxu0  ;;  %v4797_v57 = vpop.f32.mrb[26].mxu1 }
 0x939   :  { %v4848_v6 = vadd.f32 %v4831_v36, %v4822_v40  ;;  %v4850_v58 = vadd.f32 %v4839_v37, %v4824_v41  ;;  %v4634_v59 = vpop.f32.mrb[27].mxu0  ;;  %v4798_v13 = vpop.f32.mrb[27].mxu1 }
 0x93a   :  { %v4849_v60 = vadd.f32 %v4835_v39, %v4823_v48  ;;  %v4851_v14 = vadd.f32 %v4843_v43, %v4825_v47 }
 0x93b   :  { %v4852_v61 = vmax.f32 %v4848_v6, 0.0  ;;  %v4854_v62 = vmax.f32 %v4850_v58, 0.0 }
 0x93c   :  { %v4853_v23 = vmax.f32 %v4849_v60, 0.0  ;;  %v4855_v16 = vmax.f32 %v4851_v14, 0.0 }
 0x93d   :  { %v4856_v52 = vpack.c.bf16 %v4852_v61, %v4852_v61  ;;  %v4858_v49 = vpack.c.bf16 %v4854_v62, %v4854_v62 }
 0x93e   :  { %v4857_v51 = vpack.c.bf16 %v4853_v23, %v4853_v23  ;;  %v4859_v17 = vpack.c.bf16 %v4855_v16, %v4855_v16 }
 0x940   :  { %5155 = vmatprep.mubr.bf16.mxu0 %v4857_v51  ;;  %5195 = vmatprep.mubr.bf16.mxu1 %v4859_v17 }
 0x941   :  { %5156 = vmatmul.mubr.bf16.vlgmr.msra.gmra.mrb[28].mxu0 %v4856_v52  ;;  %5196 = vmatmul.mubr.bf16.vlgmr.msra.gmra.mrb[28].mxu1 %v4858_v49 }
 0xa14   :  { %v5288_v53 = vpop.f32.mrb[28].mxu0  ;;  %v5310_v18 = vpop.f32.mrb[28].mxu1 }
 0xa15   :  { %v5289_v0 = vpop.f32.mrb[29].mxu0  ;;  %v5311_v1 = vpop.f32.mrb[29].mxu1 }
 0xa16   :  { %v5290_v54 = vadd.f32 %v5289_v0, %v5288_v53  ;;  %v5312_v3 = vadd.f32 %v5311_v1, %v5310_v18  ;;  %v5291_v55 = vpop.f32.mrb[30].mxu0  ;;  %v5313_v7 = vpop.f32.mrb[30].mxu1 }
 0xa17   :  { %v5292_v22 = vpop.f32.mrb[31].mxu0  ;;  %v5314_v4 = vpop.f32.mrb[31].mxu1 }
 0xa18   :  { %v5158_v2 = vadd.f32 %v5290_v54, %v5237_v63 }
 0xa1a   :  { %v5198_v35 = vadd.f32 %v5312_v3, %v5158_v2 }
 0xa1c   :  { %5204 = vst.msk [vmem:[#allocation20] sm:$0xff] %vm5203_vm0, %v5198_v35 }
 0xa1d   :  { %5753 = shalt.err (!%p5750_p8)
}
 0xa1e   :  { %s5754_s22 = scalar_lea.hbm %s6331_s12, 128 }
 0xa1f   :  { %p5755_p9 = scmp.ne.s32.totalorder %s6331_s12, %s5754_s22  ;;  %p5758_p10 = scmp.lt.u32.totalorder %s5754_s22, %s6331_s12 }
 0xa21   :  { %p5760_p11 = pnand %p5758_p10, %p5755_p9 }
 0xa23   :  { %5763 = shalt.err (!%p5760_p11)
}
 0xa24   :  { %5214 = dma.vmem_to_hbm [thread:$0]  %s5212_s24, 128, %s6331_s12, [#allocation7]  }
 0xa25   :  { %5778 = dma.done.wait [#allocation7], 128  }
 0xa26   :  { %5779 = vsyncadd [#allocation7], 4294967168 }
 0xa27   :  { %5218 = vsyncpa [#allocation6], 1 }
 0xa28   :  { %5219 = vsyncpa [#allocation9], 1 }
 0xa29   :  { %5220 = vsyncpa [#allocation12], 1 }
 0xa2a   :  { %5221 = vsyncpa [#allocation15], 1 }
 0xa2b   :  { %5222 = vsyncpa [#allocation18], 1 }
 0xa2c   :  { %5223 = vsyncpa [#allocation7], 1 }
 0xa2d   :  { %5224 = vsyncmov [#allocation4] }
 0xa30   :  { %s5225_s0 = vpop.sfrf %5224 }
 0xa31   :  { %p5270_p12 = scmp.ne.s32.totalorder %s5225_s0, 0 }
 0xa33   :  { %5229 = shalt.err (%p5270_p12)  }
 0xa34   :  { %5231 = vsyncmov [#allocation4 + $0x1] }
 0xa37   :  { %s5232_s5 = vpop.sfrf %5231 }
 0xa38   :  { %p5271_p13 = scmp.ne.s32.totalorder %s5232_s5, 0 }
 0xa3a   :  { %5236 = shalt.err (%p5271_p13)  }

</bundles_post_ra>
